<compile_context>
chip_gen: v6e
topology: v6e:2x2x1
jax: 0.10.0
libtpu: 0.0.40
codegen_flags: <defaults>
</compile_context>

<pallas_src>
import functools

import jax
import jax.numpy as jnp
import numpy as np
from jax.experimental import pallas as pl
from jax.experimental.pallas import tpu as pltpu


# --------------------------- fused forward kernel ---------------------------

def fused_pointnet_kernel(x_ref,
                          ew1, et1, ew2, et2, ew3, et3, ew4, et4,
                          dw1, db1, dw2, db2, dw3, db3,
                          lat_ref, o_ref, h2_ref):
    # Grid is only over the last decoder layer's output tiles.  All other
    # inputs have constant block indices (fetched once, resident in VMEM).
    # Encoder + max-pool + decoder layers 1&2 run once at j == 0; the latent
    # lives in the (constant-index) lat_ref output block and h2 in a VMEM
    # scratch, both persisting across grid steps (axis is "arbitrary").
    j = pl.program_id(0)

    @pl.when(j == 0)
    def _():
        # ---- encoder: per-point MLP on (B*N, C) rows, BN folded, ReLU ----
        x = x_ref[...]                                    # (B*N, 3) f32
        w1 = ew1[...]                                     # (3, C1)  f32
        # K=3 first layer as three VPU broadcast MACs (skips a 3-wide MXU op).
        h = (x[:, 0:1] * w1[0:1, :]
             + x[:, 1:2] * w1[1:2, :]
             + x[:, 2:3] * w1[2:3, :])
        h = jnp.maximum(h + et1[...], 0.0)                # (B*N, C1) f32

        def layer(h, w_ref, t_ref):
            y = jnp.dot(h.astype(w_ref.dtype), w_ref[...],
                        preferred_element_type=jnp.float32)
            return jnp.maximum(y + t_ref[...], 0.0)

        h = layer(h, ew2, et2)
        h = layer(h, ew3, et3)
        h = layer(h, ew4, et4)                            # (B*N, L_pad) f32

        # ---- per-cloud max pool -> latent (stays resident in VMEM) ----
        b_sz = lat_ref.shape[0]
        n = x_ref.shape[0] // b_sz
        for b in range(b_sz):                             # tiny static batch
            lat_ref[pl.ds(b, 1), :] = jnp.max(
                h[b * n:(b + 1) * n, :], axis=0, keepdims=True)
        lat = lat_ref[...]                                # (B, L_pad) f32

        # ---- decoder layers 1 & 2 (computed once, h2 cached as bf16) ----
        h1 = jnp.maximum(
            jnp.dot(lat.astype(dw1.dtype), dw1[...],
                    preferred_element_type=jnp.float32) + db1[...], 0.0)
        h2 = jnp.maximum(
            jnp.dot(h1.astype(dw2.dtype), dw2[...],
                    preferred_element_type=jnp.float32) + db2[...], 0.0)
        h2_ref[...] = h2.astype(h2_ref.dtype)

    # ---- decoder layer 3: lane-dense w3 tile streamed every grid step ----
    o_ref[...] = (jnp.dot(h2_ref[...], dw3[...],
                          preferred_element_type=jnp.float32)
                  + db3[...]).astype(o_ref.dtype)


def pointnet_autoencoder_forward(x, enc_params, dec_params, *,
                                 num_points, latent_dim):
    B, N, _ = x.shape
    (ew1, et1), (ew2, et2), (ew3, et3), (ew4, et4) = enc_params
    (dw1, db1), (dw2, db2), (dw3, db3) = dec_params

    C1, C2, C3 = ew1.shape[1], ew2.shape[1], ew3.shape[1]
    L_pad = ew4.shape[1]                     # padded latent width (mult of 128)
    D1, D2 = dw1.shape[1], dw2.shape[1]
    N3 = num_points * 3
    N3_pad = dw3.shape[1]                    # padded output width (mult of 128)

    # Largest lane-dense tile for the streamed last layer; N3_pad % 128 == 0
    # always, so this never falls through to a non-128 width.
    tn3 = next(t for t in (512, 384, 256, 128) if N3_pad % t == 0)
    grid = (N3_pad // tn3,)

    xf = x.reshape(B * N, 3)

    def nbytes(a):
        return int(np.prod(a.shape)) * a.dtype.itemsize

    # VMEM budget: constants (assume double-buffered), streamed w3/b3 tiles,
    # outputs, encoder activation working set, scratch — with 2x slack,
    # clamped to [32 MiB, 64 MiB] (safe on v5e/v6e/v7x).
    const_bytes = sum(nbytes(a) for a in (
        xf, ew1, et1, ew2, et2, ew3, et3, ew4, et4, dw1, db1, dw2, db2))
    stream_bytes = 2 * (D2 * tn3 * 2 + tn3 * 4)
    out_bytes = B * L_pad * 4 + 2 * B * tn3 * 4
    act_bytes = B * N * (C1 + C2 + C3 + L_pad) * 4
    scratch_bytes = B * D2 * 2
    est = 2 * const_bytes + stream_bytes + out_bytes + act_bytes + scratch_bytes
    vmem_limit = int(min(max(2 * est, 32 * 1024 * 1024), 64 * 1024 * 1024))

    flops = (2 * B * N * (3 * C1 + C1 * C2 + C2 * C3 + C3 * L_pad)
             + 2 * B * (L_pad * D1 + D1 * D2 + D2 * N3_pad))
    bytes_accessed = (nbytes(xf)
                      + sum(nbytes(a) for a in (
                          ew1, et1, ew2, et2, ew3, et3, ew4, et4,
                          dw1, db1, dw2, db2, dw3, db3))
                      + B * L_pad * 4 + B * N3_pad * 4)

    def const(shape):
        return pl.BlockSpec(shape, lambda j: (0,) * len(shape))

    lat_pad, recon_pad = pl.pallas_call(
        fused_pointnet_kernel,
        grid=grid,
        in_specs=[
            const(xf.shape),
            const(ew1.shape), const(et1.shape),
            const(ew2.shape), const(et2.shape),
            const(ew3.shape), const(et3.shape),
            const(ew4.shape), const(et4.shape),
            const(dw1.shape), const(db1.shape),
            const(dw2.shape), const(db2.shape),
            pl.BlockSpec((D2, tn3), lambda j: (0, j)),
            pl.BlockSpec((1, tn3), lambda j: (0, j)),
        ],
        out_specs=(
            pl.BlockSpec((B, L_pad), lambda j: (0, 0)),
            pl.BlockSpec((B, tn3), lambda j: (0, j)),
        ),
        out_shape=(
            jax.ShapeDtypeStruct((B, L_pad), jnp.float32),
            jax.ShapeDtypeStruct((B, N3_pad), jnp.float32),
        ),
        scratch_shapes=[pltpu.VMEM((B, D2), jnp.bfloat16)],
        compiler_params=pltpu.CompilerParams(
            dimension_semantics=("arbitrary",),
            vmem_limit_bytes=vmem_limit),
        cost_estimate=pl.CostEstimate(
            flops=flops, transcendentals=0, bytes_accessed=bytes_accessed),
    )(xf, ew1, et1, ew2, et2, ew3, et3, ew4, et4,
      dw1, db1, dw2, db2, dw3, db3)

    latent = lat_pad[:, :latent_dim] if L_pad != latent_dim else lat_pad
    recon_flat = recon_pad[:, :N3] if N3_pad != N3 else recon_pad
    return recon_flat.reshape(B, num_points, 3), latent


# ----------------------------- parameter init -----------------------------

def init_params(key, num_points, latent_dim):
    """PyTorch-default-style init; BN folded (inference mode); padded widths."""
    enc_channels = [3, 64, 128, 256, latent_dim]
    eps = 1e-5
    L_pad = pl.cdiv(latent_dim, 128) * 128
    N3 = num_points * 3
    N3_pad = pl.cdiv(N3, 128) * 128

    keys = jax.random.split(key, 14)
    ki = 0

    enc_params = []
    n_enc = len(enc_channels) - 1
    for li, (cin, cout) in enumerate(zip(enc_channels[:-1], enc_channels[1:])):
        bound = 1.0 / np.sqrt(cin)
        w = jax.random.uniform(keys[ki], (cin, cout), jnp.float32,
                               -bound, bound); ki += 1
        bconv = jax.random.uniform(keys[ki], (cout,), jnp.float32,
                                   -bound, bound); ki += 1
        gamma = jnp.ones((cout,), jnp.float32)
        beta = jnp.zeros((cout,), jnp.float32)
        rmean = jnp.zeros((cout,), jnp.float32)
        rvar = jnp.ones((cout,), jnp.float32)
        scale = gamma / jnp.sqrt(rvar + eps)
        shift = (beta - rmean * scale + bconv * scale).reshape(1, cout)
        w = w * scale[None, :]                 # fold BN scale into the weight
        if li == n_enc - 1 and L_pad != cout:  # lane-dense latent width
            w = jnp.pad(w, ((0, 0), (0, L_pad - cout)))
            shift = jnp.pad(shift, ((0, 0), (0, L_pad - cout)))
        if li > 0:                             # layers 2..4 run bf16 on the MXU
            w = w.astype(jnp.bfloat16)
        enc_params.append((w, shift))

    dec_params = []
    logical_in = [latent_dim, 1024, 2048]
    logical_out = [1024, 2048, N3]
    padded_in = [L_pad, 1024, 2048]
    padded_out = [1024, 2048, N3_pad]
    for li in range(3):
        din, dout = logical_in[li], logical_out[li]
        bound = 1.0 / np.sqrt(din)
        w = jax.random.uniform(keys[ki], (din, dout), jnp.float32,
                               -bound, bound); ki += 1
        b = jax.random.uniform(keys[ki], (dout,), jnp.float32,
                               -bound, bound).reshape(1, dout); ki += 1
        if padded_in[li] != din:               # padded latent rows are exactly 0
            w = jnp.pad(w, ((0, padded_in[li] - din), (0, 0)))
        if padded_out[li] != dout:             # lane-dense output width
            w = jnp.pad(w, ((0, 0), (0, padded_out[li] - dout)))
            b = jnp.pad(b, ((0, 0), (0, padded_out[li] - dout)))
        dec_params.append((w.astype(jnp.bfloat16), b))

    return enc_params, dec_params


# ----------------------------------- main -----------------------------------

if __name__ == "__main__":
    B, N, L = 2, 256, 128   # small shapes: batch=2, num_points=256, latent=128
    key = jax.random.PRNGKey(0)
    pkey, xkey = jax.random.split(key)
    enc_params, dec_params = init_params(pkey, N, L)
    x = jax.random.normal(xkey, (B, N, 3), jnp.float32)

    fwd = jax.jit(functools.partial(pointnet_autoencoder_forward,
                                    num_points=N, latent_dim=L))
    recon, latent = fwd(x, enc_params, dec_params)
    jax.block_until_ready((recon, latent))

    # Pure-JAX reference mirroring the kernel's precision choices.
    (ew1, et1), (ew2, et2), (ew3, et3), (ew4, et4) = enc_params
    (dw1, db1), (dw2, db2), (dw3, db3) = dec_params

    def ref_forward(x):
        xf = x.reshape(B * N, 3)
        h = (xf[:, 0:1] * ew1[0:1, :] + xf[:, 1:2] * ew1[1:2, :]
             + xf[:, 2:3] * ew1[2:3, :])
        h = jnp.maximum(h + et1, 0.0)
        for w, t in ((ew2, et2), (ew3, et3), (ew4, et4)):
            h = jnp.maximum(
                jnp.dot(h.astype(w.dtype), w,
                        preferred_element_type=jnp.float32) + t, 0.0)
        lat = h.reshape(B, N, -1).max(axis=1)
        d = lat
        for i, (w, b) in enumerate(((dw1, db1), (dw2, db2), (dw3, db3))):
            d = jnp.dot(d.astype(w.dtype), w,
                        preferred_element_type=jnp.float32) + b
            if i < 2:
                d = jnp.maximum(d, 0.0)
        return d[:, :N * 3].reshape(B, N, 3), lat[:, :L]

    recon_ref, latent_ref = jax.jit(ref_forward)(x)
    jax.block_until_ready((recon_ref, latent_ref))

    assert recon.shape == (B, N, 3) and latent.shape == (B, L)
    assert np.allclose(np.asarray(latent), np.asarray(latent_ref),
                       atol=2e-2, rtol=2e-2)
    assert np.allclose(np.asarray(recon), np.asarray(recon_ref),
                       atol=2e-2, rtol=2e-2)
    print("KERNEL_OK")
</pallas_src>

<mosaic_0001>
module attributes {stable_mosaic.version = 11 : i64} {
  func.func @fused_pointnet_kernel(%arg0: i32, %arg1: memref<512x3xf32, #tpu.memory_space<vmem>>, %arg2: memref<3x64xf32, #tpu.memory_space<vmem>>, %arg3: memref<1x64xf32, #tpu.memory_space<vmem>>, %arg4: memref<64x128xbf16, #tpu.memory_space<vmem>>, %arg5: memref<1x128xf32, #tpu.memory_space<vmem>>, %arg6: memref<128x256xbf16, #tpu.memory_space<vmem>>, %arg7: memref<1x256xf32, #tpu.memory_space<vmem>>, %arg8: memref<256x128xbf16, #tpu.memory_space<vmem>>, %arg9: memref<1x128xf32, #tpu.memory_space<vmem>>, %arg10: memref<128x1024xbf16, #tpu.memory_space<vmem>>, %arg11: memref<1x1024xf32, #tpu.memory_space<vmem>>, %arg12: memref<1024x2048xbf16, #tpu.memory_space<vmem>>, %arg13: memref<1x2048xf32, #tpu.memory_space<vmem>>, %arg14: memref<2048x384xbf16, #tpu.memory_space<vmem>>, %arg15: memref<1x384xf32, #tpu.memory_space<vmem>>, %arg16: memref<2x128xf32, #tpu.memory_space<vmem>>, %arg17: memref<2x384xf32, #tpu.memory_space<vmem>>, %arg18: memref<2x2048xbf16, #tpu.memory_space<vmem>>) attributes {dimension_semantics = [#tpu.dimension_semantics<arbitrary>], iteration_bounds = array<i64: 2>, scalar_prefetch = 0 : i64, scratch_operands = 1 : i64, tpu.core_type = #tpu.core_type<tc>, window_params = [{pipeline_mode = #tpu.pipeline_mode<synchronous>, transform_indices = @transform_0, window_bounds = array<i64: 512, 3>}, {pipeline_mode = #tpu.pipeline_mode<synchronous>, transform_indices = @transform_1, window_bounds = array<i64: 3, 64>}, {pipeline_mode = #tpu.pipeline_mode<synchronous>, transform_indices = @transform_2, window_bounds = array<i64: 1, 64>}, {pipeline_mode = #tpu.pipeline_mode<synchronous>, transform_indices = @transform_3, window_bounds = array<i64: 64, 128>}, {pipeline_mode = #tpu.pipeline_mode<synchronous>, transform_indices = @transform_4, window_bounds = array<i64: 1, 128>}, {pipeline_mode = #tpu.pipeline_mode<synchronous>, transform_indices = @transform_5, window_bounds = array<i64: 128, 256>}, {pipeline_mode = #tpu.pipeline_mode<synchronous>, transform_indices = @transform_6, window_bounds = array<i64: 1, 256>}, {pipeline_mode = #tpu.pipeline_mode<synchronous>, transform_indices = @transform_7, window_bounds = array<i64: 256, 128>}, {pipeline_mode = #tpu.pipeline_mode<synchronous>, transform_indices = @transform_8, window_bounds = array<i64: 1, 128>}, {pipeline_mode = #tpu.pipeline_mode<synchronous>, transform_indices = @transform_9, window_bounds = array<i64: 128, 1024>}, {pipeline_mode = #tpu.pipeline_mode<synchronous>, transform_indices = @transform_10, window_bounds = array<i64: 1, 1024>}, {pipeline_mode = #tpu.pipeline_mode<synchronous>, transform_indices = @transform_11, window_bounds = array<i64: 1024, 2048>}, {pipeline_mode = #tpu.pipeline_mode<synchronous>, transform_indices = @transform_12, window_bounds = array<i64: 1, 2048>}, {transform_indices = @transform_13, window_bounds = array<i64: 2048, 384>}, {transform_indices = @transform_14, window_bounds = array<i64: 1, 384>}, {pipeline_mode = #tpu.pipeline_mode<synchronous>, transform_indices = @transform_15, window_bounds = array<i64: 2, 128>}, {transform_indices = @transform_16, window_bounds = array<i64: 2, 384>}]} {
    %c0_i32 = arith.constant 0 : i32
    %0 = arith.cmpi eq, %arg0, %c0_i32 : i32
    %1 = arith.extui %0 : i1 to i32
    %c0_i32_0 = arith.constant 0 : i32
    %2 = arith.cmpi ne, %1, %c0_i32_0 : i32
    scf.if %2 {
      %c0_8 = arith.constant 0 : index
      %c0_9 = arith.constant 0 : index
      %10 = vector.load %arg1[%c0_8, %c0_9] : memref<512x3xf32, #tpu.memory_space<vmem>>, vector<512x3xf32>
      %c0_10 = arith.constant 0 : index
      %c0_11 = arith.constant 0 : index
      %11 = vector.load %arg2[%c0_10, %c0_11] : memref<3x64xf32, #tpu.memory_space<vmem>>, vector<3x64xf32>
      %12 = vector.extract_strided_slice %10 {offsets = [0, 0], sizes = [512, 1], strides = [1, 1]} : vector<512x3xf32> to vector<512x1xf32>
      %13 = vector.extract_strided_slice %11 {offsets = [0, 0], sizes = [1, 64], strides = [1, 1]} : vector<3x64xf32> to vector<1x64xf32>
      %14 = vector.broadcast %12 : vector<512x1xf32> to vector<512x64xf32>
      %15 = vector.broadcast %13 : vector<1x64xf32> to vector<512x64xf32>
      %16 = arith.mulf %14, %15 : vector<512x64xf32>
      %17 = vector.extract_strided_slice %10 {offsets = [0, 1], sizes = [512, 1], strides = [1, 1]} : vector<512x3xf32> to vector<512x1xf32>
      %18 = vector.extract_strided_slice %11 {offsets = [1, 0], sizes = [1, 64], strides = [1, 1]} : vector<3x64xf32> to vector<1x64xf32>
      %19 = vector.broadcast %17 : vector<512x1xf32> to vector<512x64xf32>
      %20 = vector.broadcast %18 : vector<1x64xf32> to vector<512x64xf32>
      %21 = arith.mulf %19, %20 : vector<512x64xf32>
      %22 = arith.addf %16, %21 : vector<512x64xf32>
      %23 = vector.extract_strided_slice %10 {offsets = [0, 2], sizes = [512, 1], strides = [1, 1]} : vector<512x3xf32> to vector<512x1xf32>
      %24 = vector.extract_strided_slice %11 {offsets = [2, 0], sizes = [1, 64], strides = [1, 1]} : vector<3x64xf32> to vector<1x64xf32>
      %25 = vector.broadcast %23 : vector<512x1xf32> to vector<512x64xf32>
      %26 = vector.broadcast %24 : vector<1x64xf32> to vector<512x64xf32>
      %27 = arith.mulf %25, %26 : vector<512x64xf32>
      %28 = arith.addf %22, %27 : vector<512x64xf32>
      %c0_12 = arith.constant 0 : index
      %c0_13 = arith.constant 0 : index
      %29 = vector.load %arg3[%c0_12, %c0_13] : memref<1x64xf32, #tpu.memory_space<vmem>>, vector<1x64xf32>
      %30 = vector.broadcast %29 : vector<1x64xf32> to vector<512x64xf32>
      %31 = arith.addf %28, %30 : vector<512x64xf32>
      %cst_14 = arith.constant 0.000000e+00 : f32
      %32 = vector.broadcast %cst_14 : f32 to vector<512x64xf32>
      %33 = arith.maximumf %31, %32 : vector<512x64xf32>
      %34 = arith.truncf %33 : vector<512x64xf32> to vector<512x64xbf16>
      %c0_15 = arith.constant 0 : index
      %c0_16 = arith.constant 0 : index
      %35 = vector.load %arg4[%c0_15, %c0_16] : memref<64x128xbf16, #tpu.memory_space<vmem>>, vector<64x128xbf16>
      %cst_17 = arith.constant dense<0.000000e+00> : vector<512x128xf32>
      %36 = tpu.matmul %34, %35, %cst_17 {dimension_numbers = #tpu.dot_dimension_numbers<[1], [0], [0], [1], [0, 0, 1, 1], [], []>} : vector<512x64xbf16>, vector<64x128xbf16>, vector<512x128xf32> -> vector<512x128xf32>
      %c0_18 = arith.constant 0 : index
      %c0_19 = arith.constant 0 : index
      %37 = vector.load %arg5[%c0_18, %c0_19] : memref<1x128xf32, #tpu.memory_space<vmem>>, vector<1x128xf32>
      %38 = vector.broadcast %37 : vector<1x128xf32> to vector<512x128xf32>
      %39 = arith.addf %36, %38 : vector<512x128xf32>
      %cst_20 = arith.constant 0.000000e+00 : f32
      %40 = vector.broadcast %cst_20 : f32 to vector<512x128xf32>
      %41 = arith.maximumf %39, %40 : vector<512x128xf32>
      %42 = arith.truncf %41 : vector<512x128xf32> to vector<512x128xbf16>
      %c0_21 = arith.constant 0 : index
      %c0_22 = arith.constant 0 : index
      %43 = vector.load %arg6[%c0_21, %c0_22] : memref<128x256xbf16, #tpu.memory_space<vmem>>, vector<128x256xbf16>
      %cst_23 = arith.constant dense<0.000000e+00> : vector<512x256xf32>
      %44 = tpu.matmul %42, %43, %cst_23 {dimension_numbers = #tpu.dot_dimension_numbers<[1], [0], [0], [1], [0, 0, 1, 1], [], []>} : vector<512x128xbf16>, vector<128x256xbf16>, vector<512x256xf32> -> vector<512x256xf32>
      %c0_24 = arith.constant 0 : index
      %c0_25 = arith.constant 0 : index
      %45 = vector.load %arg7[%c0_24, %c0_25] : memref<1x256xf32, #tpu.memory_space<vmem>>, vector<1x256xf32>
      %46 = vector.broadcast %45 : vector<1x256xf32> to vector<512x256xf32>
      %47 = arith.addf %44, %46 : vector<512x256xf32>
      %cst_26 = arith.constant 0.000000e+00 : f32
      %48 = vector.broadcast %cst_26 : f32 to vector<512x256xf32>
      %49 = arith.maximumf %47, %48 : vector<512x256xf32>
      %50 = arith.truncf %49 : vector<512x256xf32> to vector<512x256xbf16>
      %c0_27 = arith.constant 0 : index
      %c0_28 = arith.constant 0 : index
      %51 = vector.load %arg8[%c0_27, %c0_28] : memref<256x128xbf16, #tpu.memory_space<vmem>>, vector<256x128xbf16>
      %cst_29 = arith.constant dense<0.000000e+00> : vector<512x128xf32>
      %52 = tpu.matmul %50, %51, %cst_29 {dimension_numbers = #tpu.dot_dimension_numbers<[1], [0], [0], [1], [0, 0, 1, 1], [], []>} : vector<512x256xbf16>, vector<256x128xbf16>, vector<512x128xf32> -> vector<512x128xf32>
      %c0_30 = arith.constant 0 : index
      %c0_31 = arith.constant 0 : index
      %53 = vector.load %arg9[%c0_30, %c0_31] : memref<1x128xf32, #tpu.memory_space<vmem>>, vector<1x128xf32>
      %54 = vector.broadcast %53 : vector<1x128xf32> to vector<512x128xf32>
      %55 = arith.addf %52, %54 : vector<512x128xf32>
      %cst_32 = arith.constant 0.000000e+00 : f32
      %56 = vector.broadcast %cst_32 : f32 to vector<512x128xf32>
      %57 = arith.maximumf %55, %56 : vector<512x128xf32>
      %58 = vector.extract_strided_slice %57 {offsets = [0, 0], sizes = [256, 128], strides = [1, 1]} : vector<512x128xf32> to vector<256x128xf32>
      %cst_33 = arith.constant dense<0xFF800000> : vector<128xf32>
      %59 = vector.multi_reduction <maximumf>, %58, %cst_33 [0] : vector<256x128xf32> to vector<128xf32>
      %60 = vector.shape_cast %59 : vector<128xf32> to vector<1x128xf32>
      %c0_34 = arith.constant 0 : index
      %c0_35 = arith.constant 0 : index
      %61 = vector.load %arg16[%c0_34, %c0_35] : memref<2x128xf32, #tpu.memory_space<vmem>>, vector<1x128xf32>
      tpu.vector_store %arg16[%c0_34, %c0_35], %60 {strides = array<i32>} : memref<2x128xf32, #tpu.memory_space<vmem>>, vector<1x128xf32>,
      %62 = vector.extract_strided_slice %57 {offsets = [256, 0], sizes = [256, 128], strides = [1, 1]} : vector<512x128xf32> to vector<256x128xf32>
      %cst_36 = arith.constant dense<0xFF800000> : vector<128xf32>
      %63 = vector.multi_reduction <maximumf>, %62, %cst_36 [0] : vector<256x128xf32> to vector<128xf32>
      %64 = vector.shape_cast %63 : vector<128xf32> to vector<1x128xf32>
      %c1 = arith.constant 1 : index
      %c0_37 = arith.constant 0 : index
      %65 = vector.load %arg16[%c1, %c0_37] : memref<2x128xf32, #tpu.memory_space<vmem>>, vector<1x128xf32>
      tpu.vector_store %arg16[%c1, %c0_37], %64 {strides = array<i32>} : memref<2x128xf32, #tpu.memory_space<vmem>>, vector<1x128xf32>,
      %c0_38 = arith.constant 0 : index
      %c0_39 = arith.constant 0 : index
      %66 = vector.load %arg16[%c0_38, %c0_39] : memref<2x128xf32, #tpu.memory_space<vmem>>, vector<2x128xf32>
      %67 = arith.truncf %66 : vector<2x128xf32> to vector<2x128xbf16>
      %c0_40 = arith.constant 0 : index
      %c0_41 = arith.constant 0 : index
      %68 = vector.load %arg10[%c0_40, %c0_41] : memref<128x1024xbf16, #tpu.memory_space<vmem>>, vector<128x1024xbf16>
      %cst_42 = arith.constant dense<0.000000e+00> : vector<2x1024xf32>
      %69 = tpu.matmul %67, %68, %cst_42 {dimension_numbers = #tpu.dot_dimension_numbers<[1], [0], [0], [1], [0, 0, 1, 1], [], []>} : vector<2x128xbf16>, vector<128x1024xbf16>, vector<2x1024xf32> -> vector<2x1024xf32>
      %c0_43 = arith.constant 0 : index
      %c0_44 = arith.constant 0 : index
      %70 = vector.load %arg11[%c0_43, %c0_44] : memref<1x1024xf32, #tpu.memory_space<vmem>>, vector<1x1024xf32>
      %71 = vector.broadcast %70 : vector<1x1024xf32> to vector<2x1024xf32>
      %72 = arith.addf %69, %71 : vector<2x1024xf32>
      %cst_45 = arith.constant 0.000000e+00 : f32
      %73 = vector.broadcast %cst_45 : f32 to vector<2x1024xf32>
      %74 = arith.maximumf %72, %73 : vector<2x1024xf32>
      %75 = arith.truncf %74 : vector<2x1024xf32> to vector<2x1024xbf16>
      %c0_46 = arith.constant 0 : index
      %c0_47 = arith.constant 0 : index
      %76 = vector.load %arg12[%c0_46, %c0_47] : memref<1024x2048xbf16, #tpu.memory_space<vmem>>, vector<1024x2048xbf16>
      %cst_48 = arith.constant dense<0.000000e+00> : vector<2x2048xf32>
      %77 = tpu.matmul %75, %76, %cst_48 {dimension_numbers = #tpu.dot_dimension_numbers<[1], [0], [0], [1], [0, 0, 1, 1], [], []>} : vector<2x1024xbf16>, vector<1024x2048xbf16>, vector<2x2048xf32> -> vector<2x2048xf32>
      %c0_49 = arith.constant 0 : index
      %c0_50 = arith.constant 0 : index
      %78 = vector.load %arg13[%c0_49, %c0_50] : memref<1x2048xf32, #tpu.memory_space<vmem>>, vector<1x2048xf32>
      %79 = vector.broadcast %78 : vector<1x2048xf32> to vector<2x2048xf32>
      %80 = arith.addf %77, %79 : vector<2x2048xf32>
      %cst_51 = arith.constant 0.000000e+00 : f32
      %81 = vector.broadcast %cst_51 : f32 to vector<2x2048xf32>
      %82 = arith.maximumf %80, %81 : vector<2x2048xf32>
      %83 = arith.truncf %82 : vector<2x2048xf32> to vector<2x2048xbf16>
      %c0_52 = arith.constant 0 : index
      %c0_53 = arith.constant 0 : index
      %84 = vector.load %arg18[%c0_52, %c0_53] : memref<2x2048xbf16, #tpu.memory_space<vmem>>, vector<2x2048xbf16>
      tpu.vector_store %arg18[%c0_52, %c0_53], %83 {strides = array<i32>} : memref<2x2048xbf16, #tpu.memory_space<vmem>>, vector<2x2048xbf16>,
    } else {
    }
    %c0 = arith.constant 0 : index
    %c0_1 = arith.constant 0 : index
    %3 = vector.load %arg18[%c0, %c0_1] : memref<2x2048xbf16, #tpu.memory_space<vmem>>, vector<2x2048xbf16>
    %c0_2 = arith.constant 0 : index
    %c0_3 = arith.constant 0 : index
    %4 = vector.load %arg14[%c0_2, %c0_3] : memref<2048x384xbf16, #tpu.memory_space<vmem>>, vector<2048x384xbf16>
    %cst = arith.constant dense<0.000000e+00> : vector<2x384xf32>
    %5 = tpu.matmul %3, %4, %cst {dimension_numbers = #tpu.dot_dimension_numbers<[1], [0], [0], [1], [0, 0, 1, 1], [], []>} : vector<2x2048xbf16>, vector<2048x384xbf16>, vector<2x384xf32> -> vector<2x384xf32>
    %c0_4 = arith.constant 0 : index
    %c0_5 = arith.constant 0 : index
    %6 = vector.load %arg15[%c0_4, %c0_5] : memref<1x384xf32, #tpu.memory_space<vmem>>, vector<1x384xf32>
    %7 = vector.broadcast %6 : vector<1x384xf32> to vector<2x384xf32>
    %8 = arith.addf %5, %7 : vector<2x384xf32>
    %c0_6 = arith.constant 0 : index
    %c0_7 = arith.constant 0 : index
    %9 = vector.load %arg17[%c0_6, %c0_7] : memref<2x384xf32, #tpu.memory_space<vmem>>, vector<2x384xf32>
    tpu.vector_store %arg17[%c0_6, %c0_7], %8 {strides = array<i32>} : memref<2x384xf32, #tpu.memory_space<vmem>>, vector<2x384xf32>,
    return
  }
  func.func @transform_0(%arg0: i32) -> (i32, i32) {
    %c0_i32 = arith.constant 0 : i32
    %c0_i32_0 = arith.constant 0 : i32
    %c0_i32_1 = arith.constant 0 : i32
    return %c0_i32, %c0_i32_0 : i32, i32
  }
  func.func @transform_1(%arg0: i32) -> (i32, i32) {
    %c0_i32 = arith.constant 0 : i32
    %c0_i32_0 = arith.constant 0 : i32
    %c0_i32_1 = arith.constant 0 : i32
    return %c0_i32, %c0_i32_0 : i32, i32
  }
  func.func @transform_2(%arg0: i32) -> (i32, i32) {
    %c0_i32 = arith.constant 0 : i32
    %c0_i32_0 = arith.constant 0 : i32
    %c0_i32_1 = arith.constant 0 : i32
    return %c0_i32, %c0_i32_0 : i32, i32
  }
  func.func @transform_3(%arg0: i32) -> (i32, i32) {
    %c0_i32 = arith.constant 0 : i32
    %c0_i32_0 = arith.constant 0 : i32
    %c0_i32_1 = arith.constant 0 : i32
    return %c0_i32, %c0_i32_0 : i32, i32
  }
  func.func @transform_4(%arg0: i32) -> (i32, i32) {
    %c0_i32 = arith.constant 0 : i32
    %c0_i32_0 = arith.constant 0 : i32
    %c0_i32_1 = arith.constant 0 : i32
    return %c0_i32, %c0_i32_0 : i32, i32
  }
  func.func @transform_5(%arg0: i32) -> (i32, i32) {
    %c0_i32 = arith.constant 0 : i32
    %c0_i32_0 = arith.constant 0 : i32
    %c0_i32_1 = arith.constant 0 : i32
    return %c0_i32, %c0_i32_0 : i32, i32
  }
  func.func @transform_6(%arg0: i32) -> (i32, i32) {
    %c0_i32 = arith.constant 0 : i32
    %c0_i32_0 = arith.constant 0 : i32
    %c0_i32_1 = arith.constant 0 : i32
    return %c0_i32, %c0_i32_0 : i32, i32
  }
  func.func @transform_7(%arg0: i32) -> (i32, i32) {
    %c0_i32 = arith.constant 0 : i32
    %c0_i32_0 = arith.constant 0 : i32
    %c0_i32_1 = arith.constant 0 : i32
    return %c0_i32, %c0_i32_0 : i32, i32
  }
  func.func @transform_8(%arg0: i32) -> (i32, i32) {
    %c0_i32 = arith.constant 0 : i32
    %c0_i32_0 = arith.constant 0 : i32
    %c0_i32_1 = arith.constant 0 : i32
    return %c0_i32, %c0_i32_0 : i32, i32
  }
  func.func @transform_9(%arg0: i32) -> (i32, i32) {
    %c0_i32 = arith.constant 0 : i32
    %c0_i32_0 = arith.constant 0 : i32
    %c0_i32_1 = arith.constant 0 : i32
    return %c0_i32, %c0_i32_0 : i32, i32
  }
  func.func @transform_10(%arg0: i32) -> (i32, i32) {
    %c0_i32 = arith.constant 0 : i32
    %c0_i32_0 = arith.constant 0 : i32
    %c0_i32_1 = arith.constant 0 : i32
    return %c0_i32, %c0_i32_0 : i32, i32
  }
  func.func @transform_11(%arg0: i32) -> (i32, i32) {
    %c0_i32 = arith.constant 0 : i32
    %c0_i32_0 = arith.constant 0 : i32
    %c0_i32_1 = arith.constant 0 : i32
    return %c0_i32, %c0_i32_0 : i32, i32
  }
  func.func @transform_12(%arg0: i32) -> (i32, i32) {
    %c0_i32 = arith.constant 0 : i32
    %c0_i32_0 = arith.constant 0 : i32
    %c0_i32_1 = arith.constant 0 : i32
    return %c0_i32, %c0_i32_0 : i32, i32
  }
  func.func @transform_13(%arg0: i32) -> (i32, i32) {
    %c0_i32 = arith.constant 0 : i32
    %c0_i32_0 = arith.constant 0 : i32
    return %c0_i32, %arg0 : i32, i32
  }
  func.func @transform_14(%arg0: i32) -> (i32, i32) {
    %c0_i32 = arith.constant 0 : i32
    %c0_i32_0 = arith.constant 0 : i32
    return %c0_i32, %arg0 : i32, i32
  }
  func.func @transform_15(%arg0: i32) -> (i32, i32) {
    %c0_i32 = arith.constant 0 : i32
    %c0_i32_0 = arith.constant 0 : i32
    %c0_i32_1 = arith.constant 0 : i32
    return %c0_i32, %c0_i32_0 : i32, i32
  }
  func.func @transform_16(%arg0: i32) -> (i32, i32) {
    %c0_i32 = arith.constant 0 : i32
    %c0_i32_0 = arith.constant 0 : i32
    return %c0_i32, %arg0 : i32, i32
  }
}

</mosaic_0001>

<bundles_post_ra>
// kernel: pointnet_autoencoder_forward.1
= control target key start
LH: loop header
LB: loop body
LE: loop exit
PB: predicated region body
PF: predicated region fallthrough
CT: control target
= control target key end

     0   :  { %s21607_s0 = inlined_call_operand.vmem [shape: f32[512,3], index: 0, kind: input, shape index: {}]   ;;  %s21608_s1 = inlined_call_operand.hbm [shape: f32[3,64], index: 1, kind: input, shape index: {}]   ;;  %s21609_s2 = inlined_call_operand.hbm [shape: f32[1,64], index: 2, kind: input, shape index: {}]   ;;  %s21610_s3 = inlined_call_operand.hbm [shape: bf16[64,128], index: 3, kind: input, shape index: {}]   ;;  %s21611_s4 = inlined_call_operand.hbm [shape: f32[1,128], index: 4, kind: input, shape index: {}]   ;;  %s21612_s5 = inlined_call_operand.hbm [shape: bf16[128,256], index: 5, kind: input, shape index: {}]   ;;  %s21613_s6 = inlined_call_operand.hbm [shape: f32[1,256], index: 6, kind: input, shape index: {}]   ;;  %s21614_s7 = inlined_call_operand.hbm [shape: bf16[256,128], index: 7, kind: input, shape index: {}]   ;;  %s21615_s8 = inlined_call_operand.hbm [shape: f32[1,128], index: 8, kind: input, shape index: {}]   ;;  %s21616_s9 = inlined_call_operand.hbm [shape: bf16[128,1024], index: 9, kind: input, shape index: {}]   ;;  %s21617_s10 = inlined_call_operand.hbm [shape: f32[1,1024], index: 10, kind: input, shape index: {}]   ;;  %s21618_s11 = inlined_call_operand.hbm [shape: bf16[1024,2048], index: 11, kind: input, shape index: {}]   ;;  %s21619_s12 = inlined_call_operand.hbm [shape: f32[1,2048], index: 12, kind: input, shape index: {}]   ;;  %s21620_s13 = inlined_call_operand.hbm [shape: bf16[2048,768], index: 13, kind: input, shape index: {}]   ;;  %s21621_s14 = inlined_call_operand.hbm [shape: f32[1,768], index: 14, kind: input, shape index: {}]   ;;  %s21622_s15 = inlined_call_operand.hbm [shape: f32[2,128], index: 15, kind: output, shape index: {0}]   ;;  %s21623_s16 = inlined_call_operand.vmem [shape: f32[2,768], index: 16, kind: output, shape index: {1}]  }
   0x1   :  { %21635 = sst [smem:[#allocation36_spill]] %s21607_s0 }
   0x2   :  { %21636 = sst [smem:[#allocation37_spill]] %s21608_s1 }
   0x3   :  { %21637 = sst [smem:[#allocation38_spill]] %s21609_s2 }
   0x4   :  { %21638 = sst [smem:[#allocation39_spill]] %s21610_s3 }
   0x5   :  { %21639 = sst [smem:[#allocation40_spill]] %s21611_s4 }
   0x6   :  { %21640 = sst [smem:[#allocation41_spill]] %s21613_s6 }
   0x7   :  { %21641 = sst [smem:[#allocation42_spill]] %s21615_s8 }
   0x8   :  { %21642 = sst [smem:[#allocation43_spill]] %s21622_s15 }
   0x9   :  { %21643 = sst [smem:[#allocation44_spill]] %s21623_s16 }
   0xa   :  { %22 = vsyncpa [#allocation4], 0 }
   0xb   :  { %23 = vsyncpa [#allocation7], 0 }
   0xc   :  { %24 = vsyncpa [#allocation10], 0 }
   0xd   :  { %25 = vsyncpa [#allocation13], 0 }
   0xe   :  { %26 = vsyncpa [#allocation16], 0 }
   0xf   :  { %27 = vsyncpa [#allocation19], 0 }
  0x10   :  { %28 = vsyncpa [#allocation22], 0 }
  0x11   :  { %29 = vsyncpa [#allocation5], 0  ;;  %s19061_s21 = smov 0   ;;  %s19063_s22 = smov 0  }
  0x12   :  { %s19065_s23 = smov 0   ;;  %s19067_s24 = smov 0  }
  0x13 LB: > { %s18945_s25 = smov [#allocation3]   ;;  %s19082_s27 = sadd.s32 4294967295, %s18943_s24   ;;  %s18943_s24 = sphi %s19067_s24, %s21685_s24   ;;  %s18939_s23 = sphi %s19065_s23, %s21684_s23   ;;  %s18935_s22 = sphi %s19063_s22, %s21683_s22   ;;  %s18931_s21 = sphi %s19061_s21, %s21682_s21  }
  0x14   : > { %s428_s26 = sshll.u32 %s18945_s25, 4  ;;  %p15765_p0 = scmp.ge.s32.totalorder %s18943_s24, 1  ;;  %s429_s26 = int_to_ptr.vmem [resolvable:$true] %s428_s26 }
  0x15   : > { %p21625_p1 = scmp.eq.s32.totalorder %s19082_s27, 0  ;;  %p412_p2 = scmp.lt.s32.totalorder %s18943_s24, 3 }
  0x16   : > { %s18946_s29 = smov [#allocation6]   ;;  %s18947_s0 = smov [#allocation9]  }
  0x17   : > { %p19088_p4 = pnand %p15765_p0, %p412_p2  ;;  %s439_s30 = sshll.u32 %s18946_s29, 4  ;;  %s440_s30 = int_to_ptr.vmem [resolvable:$true] %s439_s30 }
  0x18   : > { %s463_s17 = sshll.u32 %s18947_s0, 4  ;;  %s18948_s19 = smov [#allocation12]   ;;  %s19100_s17 = int_to_ptr.vmem [resolvable:$true] %s463_s17 }
  0x19   : > { %s21644_s28 = scalar_select %p19088_p4, 1, 0 }
  0x1a   : > { %p17697_p5 = pneg %p19088_p4  ;;  %s19102_s20 = sshll.u32 %s18948_s19, 4  ;;  %s488_s20 = int_to_ptr.vmem [resolvable:$true] %s19102_s20 }
  0x1b   : > { %21645 = sst [smem:[#allocation35_spill]] %s21644_s28  ;;  %s18496_s29 = scalar_lea.vmem %s429_s26, 64 }
  0x1c   : > { %p19096_p6 = pnand %p17697_p5, %p21625_p1  ;;  %p18497_p8 = scmp.ne.s32.totalorder %s429_s26, %s18496_s29 }
  0x1d   : > { %p18504_p11 = scmp.lt.s32.totalorder %s429_s26, %s429_s26  ;;  %p18505_p12 = scmp.lt.s32.totalorder %s18496_s29, %s18496_s29 }
  0x1e   : > { %s21646_s18 = scalar_select %p19096_p6, 1, 0 }
  0x1f   : > { %p19106_p7 = pneg %p19096_p6  ;;  %p18506_p13 = por %p18505_p12, %p18504_p11 }
  0x21   : > { %p18499_p9 = pnand %p18497_p8, %p19106_p7 }
  0x23   : > { %p18500_p10 = pneg %p18499_p9 }
  0x25   : > { %p18507_p0 = pnand %p18506_p13, %p18500_p10 }
  0x27   : > { %18510 = shalt.err (!%p18507_p0)
}
  0x28   : > { %s21648_s1 = sld [smem:[#allocation37_spill]]  ;;  %s18522_s15 = scalar_lea.vmem %s440_s30, 16 }
  0x29   : > { %p18523_p2 = scmp.ne.s32.totalorder %s440_s30, %s18522_s15  ;;  %s18529_s16 = scalar_lea.vmem %s440_s30, 32 }
  0x2a   : > { %p18530_p8 = scmp.lt.s32.totalorder %s440_s30, %s440_s30  ;;  %p18531_p9 = scmp.lt.s32.totalorder %s18529_s16, %s18522_s15 }
  0x2b   : > { %p18525_p5 = pnand %p18523_p2, %p19106_p7 }
  0x2c   : > { %p18532_p1 = por %p18531_p9, %p18530_p8 }
  0x2d   : > { %p18526_p3 = pneg %p18525_p5 }
  0x2e   : > { %17700 = dma.hbm_to_vmem [thread:$0]  (!%p19096_p6), %s21648_s1, 64, %s429_s26, [#allocation4]  }
  0x2f   : > { %p18533_p4 = pnand %p18532_p1, %p18526_p3 }
  0x31   : > { %18536 = shalt.err (!%p18533_p4)
}
  0x32   : > { %s21649_s2 = sld [smem:[#allocation38_spill]]  ;;  %s18548_s26 = scalar_lea.vmem %s19100_s17, 16 }
  0x33   : > { %p18549_p10 = scmp.ne.s32.totalorder %s19100_s17, %s18548_s26  ;;  %s18555_s15 = scalar_lea.vmem %s19100_s17, 32 }
  0x34   : > { %p18556_p1 = scmp.lt.s32.totalorder %s19100_s17, %s19100_s17  ;;  %p18557_p3 = scmp.lt.s32.totalorder %s18555_s15, %s18548_s26 }
  0x35   : > { %p18551_p11 = pnand %p18549_p10, %p19106_p7 }
  0x36   : > { %p18558_p4 = por %p18557_p3, %p18556_p1 }
  0x37   : > { %p18552_p12 = pneg %p18551_p11 }
  0x38   : > { %17703 = dma.hbm_to_vmem [thread:$0]  (!%p19096_p6), %s21649_s2, 16, %s440_s30, [#allocation7]  }
  0x39   : > { %p18559_p13 = pnand %p18558_p4, %p18552_p12 }
  0x3b   : > { %18562 = shalt.err (!%p18559_p13)
}
  0x3c   : > { %s21650_s4 = sld [smem:[#allocation40_spill]]  ;;  %s18949_s30 = smov [#allocation15]  }
  0x3d   : > { %s511_s0 = sshll.u32 %s18949_s30, 4  ;;  %s18574_s19 = scalar_lea.vmem %s488_s20, 32  ;;  %s512_s0 = int_to_ptr.vmem [resolvable:$true] %s511_s0 }
  0x3e   : > { %p18575_p0 = scmp.ne.s32.totalorder %s488_s20, %s18574_s19  ;;  %p18582_p8 = scmp.lt.s32.totalorder %s488_s20, %s488_s20 }
  0x3f   : > { %p18583_p9 = scmp.lt.s32.totalorder %s18574_s19, %s18574_s19 }
  0x40   : > { %p18577_p2 = pnand %p18575_p0, %p19106_p7 }
  0x41   : > { %p18584_p10 = por %p18583_p9, %p18582_p8 }
  0x42   : > { %17709 = dma.hbm_to_vmem [thread:$0]  (!%p19096_p6), %s21650_s4, 16, %s19100_s17, [#allocation10]  }
  0x43   : > { %p18578_p5 = pneg %p18577_p2 }
  0x45   : > { %p18585_p11 = pnand %p18584_p10, %p18578_p5 }
  0x47   : > { %18588 = shalt.err (!%p18585_p11)
}
  0x48   : > { %s21651_s6 = sld [smem:[#allocation41_spill]]  ;;  %s18600_s17 = scalar_lea.vmem %s512_s0, 16 }
  0x49   : > { %p18601_p12 = scmp.ne.s32.totalorder %s512_s0, %s18600_s17  ;;  %s18607_s15 = scalar_lea.vmem %s512_s0, 32 }
  0x4a   : > { %p18608_p4 = scmp.lt.s32.totalorder %s512_s0, %s512_s0  ;;  %p18609_p13 = scmp.lt.s32.totalorder %s18607_s15, %s18600_s17 }
  0x4b   : > { %p18603_p1 = pnand %p18601_p12, %p19106_p7 }
  0x4c   : > { %p18610_p0 = por %p18609_p13, %p18608_p4 }
  0x4d   : > { %p18604_p3 = pneg %p18603_p1 }
  0x4e   : > { %17715 = dma.hbm_to_vmem [thread:$0]  (!%p19096_p6), %s21651_s6, 32, %s488_s20, [#allocation13]  }
  0x4f   : > { %p18611_p2 = pnand %p18610_p0, %p18604_p3 }
  0x51   : > { %18614 = shalt.err (!%p18611_p2)
}
  0x52   : > { %s21652_s8 = sld [smem:[#allocation42_spill]]  ;;  %s18950_s20 = smov [#allocation18]  }
  0x53   : > { %s535_s30 = sshll.u32 %s18950_s20, 4  ;;  %s536_s30 = int_to_ptr.vmem [resolvable:$true] %s535_s30 }
  0x54   : > { %s18626_s19 = scalar_lea.vmem %s536_s30, 128  ;;  %p18634_p10 = scmp.lt.s32.totalorder %s536_s30, %s536_s30 }
  0x55   : > { %p18627_p5 = scmp.ne.s32.totalorder %s536_s30, %s18626_s19  ;;  %p18635_p11 = scmp.lt.s32.totalorder %s18626_s19, %s18626_s19 }
  0x57   : > { %p18629_p8 = pnand %p18627_p5, %p19106_p7  ;;  %p18636_p12 = por %p18635_p11, %p18634_p10 }
  0x58   : > { %17721 = dma.hbm_to_vmem [thread:$0]  (!%p19096_p6), %s21652_s8, 16, %s512_s0, [#allocation16]  }
  0x59   : > { %p18630_p9 = pneg %p18629_p8 }
  0x5b   : > { %p18637_p1 = pnand %p18636_p12, %p18630_p9 }
  0x5d   : > { %18640 = shalt.err (!%p18637_p1)
}
  0x5e   : > { %17727 = dma.hbm_to_vmem [thread:$0]  (!%p19096_p6), %s21617_s10, 128, %s536_s30, [#allocation19]  }
  0x5f   : > { %s19160_s0 = sadd.s32 1, %s18943_s24   ;;  %s315_s17 = sadd.s32 1, %s18939_s23 }
  0x60   : > { %s312_s15 = ssub.s32 %s18943_s24, %s19160_s0  ;;  %p322_p3 = scmp.ne.s32.totalorder %s18939_s23, %s18935_s22 }
  0x61   : > { %p313_p4 = scmp.eq.s32.totalorder %s312_s15, 0  ;;  %p323_p13 = scmp.eq.s32.totalorder %s18943_s24, 0 }
  0x62   : > { %p328_p0 = scmp.ne.s32.totalorder %s18935_s22, %s18931_s21  ;;  %p17753_p2 = scmp.lt.s32.totalorder %s18943_s24, 2 }
  0x63   : > { %s19172_s16 = scalar_select %p313_p4, %s18939_s23, %s315_s17  }
  0x64   : > { %p324_p5 = por %p323_p13, %p322_p3  ;;  %p21653_p8 = scmp.eq.s32.totalorder %s19082_s27, 0 }
  0x65   : > { %s570_s20 = sand.u32 1, %s18943_s24   ;;  %s21628_s30 = sand.u32 1, %s18939_s23  }
  0x66   : > { %p19176_p9 = por %p21653_p8, %p328_p0  ;;  %s17637_s19 = smul.u32 3072, %s21628_s30 }
  0x67   : > { %s17351_s29 = smul.u32 192, %s18943_s24  ;;  %p19185_p10 = pnand %p17753_p2, %p324_p5 }
  0x68   : > { %s21654_s28 = scalar_select %p19176_p9, 1, 0 }
  0x69   : > { %s19192_s17 = scalar_lea.hbm %s21620_s13, %s17351_s29  ;;  %s574_s1 = scalar_lea.vmem [#allocation23], %s17637_s19 }
  0x6a   : > { %s581_s2 = sshll.u32 %s574_s1, 4  ;;  %s19196_s30 = scalar_lea.sflag [#allocation4], %s570_s20  ;;  %s19194_s2 = int_to_ptr.vmem [resolvable:$true] %s581_s2 }
  0x6b   : > { %s18641_s4 = scalar_lea.hbm %s19192_s17, 49152  ;;  %p18643_p12 = pneg %p19185_p10 }
  0x6c   : > { %p18642_p11 = scmp.ne.s32.totalorder %s19192_s17, %s18641_s4  ;;  %s18646_s21 = scalar_lea.hbm %s21620_s13, 98304 }
  0x6d   : > { %p18647_p4 = scmp.lt.s32.totalorder %s19192_s17, %s21620_s13  ;;  %p18648_p13 = scmp.lt.s32.totalorder %s18646_s21, %s18641_s4 }
  0x6e   : > { %p18644_p1 = pnand %p18643_p12, %p18642_p11 }
  0x6f   : > { %p18649_p0 = por %p18648_p13, %p18647_p4 }
  0x70   : > { %p18645_p3 = pneg %p18644_p1 }
  0x72   : > { %p18650_p2 = pnand %p18649_p0, %p18645_p3 }
  0x74   : > { %18653 = shalt.err (!%p18650_p2)
}
  0x75   : > { %s18654_s1 = scalar_lea.vmem %s19194_s2, 49152  ;;  %s18951_s20 = smov [#allocation23]  }
  0x76   : > { %p18655_p5 = scmp.ne.s32.totalorder %s19194_s2, %s18654_s1  ;;  %s18659_s19 = sshll.u32 %s18951_s20, 4  ;;  %s18660_s19 = int_to_ptr.vmem [resolvable:$false] %s18659_s19 }
  0x77   : > { %s18661_s15 = scalar_lea.vmem %s18660_s19, 98304  ;;  %p18662_p1 = scmp.lt.s32.totalorder %s19194_s2, %s18660_s19 }
  0x78   : > { %p18657_p8 = pnand %p18655_p5, %p18643_p12  ;;  %p18663_p9 = scmp.lt.s32.totalorder %s18661_s15, %s18654_s1 }
  0x7a   : > { %p18658_p11 = pneg %p18657_p8  ;;  %p18664_p6 = por %p18663_p9, %p18662_p1 }
  0x7c   : > { %p18665_p4 = pnand %p18664_p6, %p18658_p11 }
  0x7e   : > { %18668 = shalt.err (!%p18665_p4)
}
  0x7f   : > { %s18952_s4 = smov 384   ;;  %s18953_s6 = smov 192  }
  0x80   : > { %s18954_s8 = smov 12   ;;  %s18955_s29 = smov [#allocation8]  }
  0x81   : > { %17737 = dma.hbm_to_vmem [thread:$0]  (!%p19185_p10), %s19192_s17, 49152, %s19194_s2, %s19196_s30, %s18952_s4, %s18953_s6, %s18954_s8  }
  0x82   : > { %s449_s21 = sshll.u32 %s18955_s29, 4  ;;  %s450_s21 = int_to_ptr.vmem [resolvable:$true] %s449_s21 }
  0x83   : > { %s18680_s20 = scalar_lea.vmem %s450_s21, 512  ;;  %p18688_p6 = scmp.lt.s32.totalorder %s450_s21, %s450_s21 }
  0x84   : > { %p18681_p3 = scmp.ne.s32.totalorder %s450_s21, %s18680_s20  ;;  %p18689_p0 = scmp.lt.s32.totalorder %s18680_s20, %s18680_s20 }
  0x86   : > { %p18683_p13 = pnand %p18681_p3, %p19106_p7  ;;  %p18690_p2 = por %p18689_p0, %p18688_p6 }
  0x88   : > { %p18684_p9 = pneg %p18683_p13 }
  0x8a   : > { %p18691_p5 = pnand %p18690_p2, %p18684_p9 }
  0x8c   : > { %18694 = shalt.err (!%p18691_p5)
}
  0x8d   : > { %s21632_s1 = smov 64   ;;  %s21634_s19 = smov 4  }
  0x8e   : > { %p21656_p8 = scmp.ne.s32.totalorder %s21646_s18, 0  ;;  %s21657_s3 = sld [smem:[#allocation39_spill]] }
  0x8f   : > { %s18958_s15 = smov [#allocation11]  }
  0x90   : > { %s473_s4 = sshll.u32 %s18958_s15, 4  ;;  %s474_s4 = int_to_ptr.vmem [resolvable:$true] %s473_s4 }
  0x91   : > { %s18706_s6 = scalar_lea.vmem %s474_s4, 2048  ;;  %p18714_p3 = scmp.lt.s32.totalorder %s474_s4, %s474_s4 }
  0x92   : > { %p18707_p11 = scmp.ne.s32.totalorder %s474_s4, %s18706_s6  ;;  %p18715_p13 = scmp.lt.s32.totalorder %s18706_s6, %s18706_s6 }
  0x94   : > { %17706 = dma.hbm_to_vmem [thread:$0]  (!%p21656_p8), %s21657_s3, 512, %s450_s21, [#allocation7], %s21632_s1, %s21632_s1, %s21634_s19  }
  0x95   : > { %p18709_p1 = pnand %p18707_p11, %p19106_p7  ;;  %p18716_p9 = por %p18715_p13, %p18714_p3 }
  0x97   : > { %p18710_p4 = pneg %p18709_p1 }
  0x99   : > { %p18717_p6 = pnand %p18716_p9, %p18710_p4 }
  0x9b   : > { %18720 = shalt.err (!%p18717_p6)
}
  0x9c   : > { %s18959_s8 = smov 128   ;;  %s18960_s29 = smov 8  }
  0x9d   : > { %17712 = dma.hbm_to_vmem [thread:$0]  (!%p21656_p8), %s21612_s5, 2048, %s474_s4, [#allocation10], %s18959_s8, %s18959_s8, %s18960_s29  }
  0x9e   : > { %s18961_s2 = smov [#allocation14]   ;;  %s18962_s15 = smov [#allocation17]  }
  0x9f   : > { %s497_s17 = sshll.u32 %s18961_s2, 4  ;;  %s521_s1 = sshll.u32 %s18962_s15, 4  ;;  %s498_s17 = int_to_ptr.vmem [resolvable:$true] %s497_s17  ;;  %s522_s1 = int_to_ptr.vmem [resolvable:$true] %s521_s1 }
  0xa0   : > { %s18732_s19 = scalar_lea.vmem %s498_s17, 2048  ;;  %p18740_p11 = scmp.lt.s32.totalorder %s498_s17, %s498_s17 }
  0xa1   : > { %p18733_p0 = scmp.ne.s32.totalorder %s498_s17, %s18732_s19  ;;  %p18741_p1 = scmp.lt.s32.totalorder %s18732_s19, %s18732_s19 }
  0xa3   : > { %p18735_p2 = pnand %p18733_p0, %p19106_p7  ;;  %p18742_p4 = por %p18741_p1, %p18740_p11 }
  0xa5   : > { %p18736_p5 = pneg %p18735_p2 }
  0xa7   : > { %p18743_p3 = pnand %p18742_p4, %p18736_p5 }
  0xa9   : > { %18746 = shalt.err (!%p18743_p3)
}
  0xaa   : > { %s21658_s6 = smov 4   ;;  %s21659_s4 = smov 64  }
  0xab   : > { %17718 = dma.hbm_to_vmem [thread:$0]  (!%p21656_p8), %s21614_s7, 2048, %s498_s17, [#allocation13], %s21659_s4, %s21659_s4, %s21658_s6  }
  0xac   : > { %s18758_s20 = scalar_lea.vmem %s522_s1, 8192  ;;  %p18766_p0 = scmp.lt.s32.totalorder %s522_s1, %s522_s1 }
  0xad   : > { %p18759_p13 = scmp.ne.s32.totalorder %s522_s1, %s18758_s20  ;;  %p18767_p2 = scmp.lt.s32.totalorder %s18758_s20, %s18758_s20 }
  0xaf   : > { %p18761_p9 = pnand %p18759_p13, %p19106_p7  ;;  %p18768_p11 = por %p18767_p2, %p18766_p0 }
  0xb1   : > { %p18762_p6 = pneg %p18761_p9 }
  0xb3   : > { %p18769_p5 = pnand %p18768_p11, %p18762_p6 }
  0xb5   : > { %18772 = shalt.err (!%p18769_p5)
}
  0xb6   : > { %s18963_s19 = smov 512   ;;  %s18964_s21 = smov 32  }
  0xb7   : > { %17724 = dma.hbm_to_vmem [thread:$0]  (!%p21656_p8), %s21616_s9, 8192, %s522_s1, [#allocation16], %s18963_s19, %s18963_s19, %s18964_s21  }
  0xb8   : > { %s18965_s17 = smov [#allocation20]   ;;  %s18966_s8 = smov [#allocation21]  }
  0xb9   : > { %s545_s6 = sshll.u32 %s18965_s17, 4  ;;  %s559_s29 = sshll.u32 %s18966_s8, 4  ;;  %s546_s6 = int_to_ptr.vmem [resolvable:$true] %s545_s6  ;;  %s560_s29 = int_to_ptr.vmem [resolvable:$true] %s559_s29 }
  0xba   : > { %s18784_s3 = scalar_lea.vmem %s546_s6, 131072  ;;  %p18792_p13 = scmp.lt.s32.totalorder %s546_s6, %s546_s6 }
  0xbb   : > { %p18785_p1 = scmp.ne.s32.totalorder %s546_s6, %s18784_s3  ;;  %p18793_p9 = scmp.lt.s32.totalorder %s18784_s3, %s18784_s3 }
  0xbd   : > { %p18787_p4 = pnand %p18785_p1, %p19106_p7  ;;  %p18794_p6 = por %p18793_p9, %p18792_p13 }
  0xbf   : > { %p18788_p3 = pneg %p18787_p4 }
  0xc1   : > { %p18795_p0 = pnand %p18794_p6, %p18788_p3 }
  0xc3   : > { %18798 = shalt.err (!%p18795_p0)
}
  0xc4   : > { %s18967_s20 = smov 1024   ;;  %s21660_s21 = sand.u32 1, %s18939_s23  }
  0xc5   : > { %17730 = dma.hbm_to_vmem [thread:$0]  (!%p21656_p8), %s21618_s11, 131072, %s546_s6, [#allocation19], %s18967_s20, %s18967_s20, %s21659_s4  }
  0xc6   : > { %s17638_s2 = smul.u32 3, %s21660_s21  ;;  %s18810_s15 = scalar_lea.vmem %s560_s29, 256 }
  0xc7   : > { %p18811_p2 = scmp.ne.s32.totalorder %s560_s29, %s18810_s15  ;;  %p18818_p1 = scmp.lt.s32.totalorder %s560_s29, %s560_s29 }
  0xc8   : > { %p18819_p4 = scmp.lt.s32.totalorder %s18810_s15, %s18810_s15 }
  0xc9   : > { %p18813_p11 = pnand %p18811_p2, %p19106_p7 }
  0xca   : > { %p18820_p3 = por %p18819_p4, %p18818_p1 }
  0xcb   : > { %p18814_p5 = pneg %p18813_p11 }
  0xcd   : > { %p18821_p13 = pnand %p18820_p3, %p18814_p5 }
  0xcf   : > { %18824 = shalt.err (!%p18821_p13)
}
  0xd0   : > { %17733 = dma.hbm_to_vmem [thread:$0]  (!%p21656_p8), %s21619_s12, 256, %s560_s29, [#allocation22]  }
  0xd1   : > { %s17352_s4 = smul.u32 48, %s18943_s24  ;;  %s595_s6 = scalar_lea.vmem [#allocation24], %s17638_s2 }
  0xd2   : > { %s603_s8 = sshll.u32 %s595_s6, 4  ;;  %s18830_s15 = scalar_lea.hbm %s21621_s14, 96  ;;  %s604_s8 = int_to_ptr.vmem [resolvable:$true] %s603_s8 }
  0xd3   : > { %s601_s1 = scalar_lea.hbm %s21621_s14, %s17352_s4 }
  0xd4   : > { %s18825_s19 = scalar_lea.hbm %s601_s1, 48  ;;  %p18831_p8 = scmp.lt.s32.totalorder %s601_s1, %s21621_s14 }
  0xd5   : > { %p18826_p7 = scmp.ne.s32.totalorder %s601_s1, %s18825_s19  ;;  %p18832_p0 = scmp.lt.s32.totalorder %s18830_s15, %s18825_s19 }
  0xd7   : > { %p18828_p9 = pnand %p18826_p7, %p18643_p12  ;;  %p18833_p2 = por %p18832_p0, %p18831_p8 }
  0xd9   : > { %p18829_p6 = pneg %p18828_p9 }
  0xdb   : > { %p18834_p11 = pnand %p18833_p2, %p18829_p6 }
  0xdd   : > { %18837 = shalt.err (!%p18834_p11)
}
  0xde   : > { %s18838_s24 = scalar_lea.vmem %s604_s8, 48  ;;  %s18968_s2 = smov [#allocation24]  }
  0xdf   : > { %p18839_p5 = scmp.ne.s32.totalorder %s604_s8, %s18838_s24  ;;  %s18843_s17 = sshll.u32 %s18968_s2, 4  ;;  %s18844_s17 = int_to_ptr.vmem [resolvable:$false] %s18843_s17 }
  0xe0   : > { %s18845_s4 = scalar_lea.vmem %s18844_s17, 96  ;;  %p18846_p3 = scmp.lt.s32.totalorder %s604_s8, %s18844_s17 }
  0xe1   : > { %p18841_p1 = pnand %p18839_p5, %p18643_p12  ;;  %p18847_p13 = scmp.lt.s32.totalorder %s18845_s4, %s18838_s24 }
  0xe3   : > { %p18842_p4 = pneg %p18841_p1  ;;  %p18848_p7 = por %p18847_p13, %p18846_p3 }
  0xe5   : > { %p18849_p9 = pnand %p18848_p7, %p18842_p4 }
  0xe7   : > { %18852 = shalt.err (!%p18849_p9)
}
  0xe8   : > { %17740 = dma.hbm_to_vmem [thread:$0]  (!%p19185_p10), %s601_s1, 48, %s604_s8, %s19196_s30  }
  0xe9   : > { %s21661_s6 = sld [smem:[#allocation35_spill]] }
  0xef   : > { %p21662_p6 = scmp.ne.s32.totalorder %s21661_s6, 0 }
  0xf0   : > { %p21663_p8 = scmp.eq.s32.totalorder (!%p21662_p6), %s19082_s27, 0 }
  0xf1   : > { %612 = sbr.rel (%p21662_p6) target bundleno = 3609 (0xe19), region = 80 }
  0xf6   : > { %18894 = dma.done.wait (%p21663_p8), [#allocation4], 64   ;;  %p21664_p12 = pmov %p21663_p8 }
  0xf7   : > { %p21665_p0 = pmov %p21663_p8 }
  0xf8   : > { %18896 = vsyncadd (%p21664_p12), [#allocation4], 4294967232 }
  0xf9   : > { %18898 = dma.done.wait (%p21665_p0), [#allocation7], 528   ;;  %p21666_p2 = pmov %p21665_p0 }
  0xfa   : > { %p21667_p11 = pmov %p21665_p0 }
  0xfb   : > { %18900 = vsyncadd (%p21666_p2), [#allocation7], 4294966768 }
  0xfc   : > { %18902 = dma.done.wait (%p21667_p11), [#allocation10], 2064   ;;  %p21668_p10 = pmov %p21665_p0 }
  0xfd   : > { %p21669_p5 = pmov %p21665_p0 }
  0xfe   : > { %18904 = vsyncadd (%p21668_p10), [#allocation10], 4294965232 }
  0xff   : > { %18906 = dma.done.wait (%p21669_p5), [#allocation13], 2080   ;;  %p21670_p1 = pmov %p21665_p0 }
 0x100   : > { %p21671_p4 = pmov %p21665_p0 }
 0x101   : > { %18908 = vsyncadd (%p21670_p1), [#allocation13], 4294965216 }
 0x102   : > { %18910 = dma.done.wait (%p21671_p4), [#allocation16], 8208   ;;  %p21672_p3 = pmov %p21665_p0 }
 0x103   : > { %p21673_p13 = pmov %p21665_p0 }
 0x104   : > { %18912 = vsyncadd (%p21672_p3), [#allocation16], 4294959088 }
 0x105   : > { %18914 = dma.done.wait (%p21673_p13), [#allocation19], 131200   ;;  %p21674_p7 = pmov %p21665_p0 }
 0x106   : > { %p21675_p9 = pmov %p21665_p0 }
 0x107   : > { %18916 = vsyncadd (%p21674_p7), [#allocation19], 4294836096 }
 0x108   : > { %18918 = dma.done.wait (%p21675_p9), [#allocation22], 256   ;;  %p21676_p6 = pmov %p21665_p0 }
 0x109   : > { %s662_s30 = sand.u32 1, %s19082_s27   ;;  %s664_s26 = sand.u32 1, %s18935_s22  }
 0x10a   : > { %18920 = vsyncadd (%p21676_p6), [#allocation22], 4294967040  ;;  %s17639_s8 = smul.u32 3072, %s664_s26  ;;  %s663_s20 = scalar_lea.sflag [#allocation4], %s662_s30 }
 0x10b   : > { %p21677_p8 = scmp.ne.s32.totalorder %s21654_s28, 0 }
 0x10c   : > { %s19325_s25 = scalar_lea.vmem [#allocation23], %s17639_s8 }
 0x10d   : > { %18922 = dma.done.wait (%p21677_p8), %s663_s20, 49200  }
 0x10e   : > { %18924 = vsyncadd (%p21677_p8), %s663_s20, 4294918096  ;;  %s19331_s1 = smul.u32 3, %s664_s26  ;;  %s21678_s3 = sld [smem:[#allocation44_spill]] }
 0x10f   : > { %s731_s19 = smul.u32 3, %s19082_s27  ;;  %p21679_p0 = scmp.ne.s32.totalorder %s19082_s27, 0 }
 0x110   : > { %s675_s24 = scalar_lea.vmem [#allocation24], %s19331_s1  ;;  %s21680_s17 = sld [smem:[#allocation36_spill]] (!%p21679_p0) }
 0x111   : > { %p732_p12 = scmp.lt.s32.totalorder %s731_s19, 5  ;;  %741 = sbr.rel (%p21679_p0) target bundleno = 3016 (0xbc8), region = 140 }
 0x113   : > { %s21687_s19 = smov (!%p732_p12, %s731_s19), 5 }
 0x114   : > { %s15794_s18 = sshll.u32 %s21687_s19, 1 }
 0x115   : > { %s19337_s29 = scalar_lea.vmem %s21678_s3, %s15794_s18 }
 0x116   : > { %v743_v0 = vld [vmem:[%s21680_s17 + $0x8] sm:$0xff]  ;;  %v742_v1 = vld [vmem:[%s21680_s17] sm:$0xff]  ;;  %v18969_v2 = vmov 2   ;;  %v18970_v3 = vmov 1   ;;  %v18971_v5 = vmov 0   ;;  %v749_v6 = vld [vmem:[%s21680_s17 + $0x38] sm:$0xff]  ;;  %v1127_v35 = vlaneseq }
 0x117   : > { %17833 = vset.pattern.permute.xlu0 %v18969_v2  ;;  %17829 = vset.pattern.permute.xlu1 %v18970_v3  ;;  %v746_v4 = vld [vmem:[%s21680_s17 + $0x20] sm:$0xff]  ;;  %v745_v7 = vld [vmem:[%s21680_s17 + $0x18] sm:$0xff]  ;;  %v19363_v8 = vld [vmem:[%s21680_s17 + $0x48] sm:$0xff]  ;;  %vm2177_vm0 = vcmask 523264  }
 0x118   : > { %1588 = vperm.xlu0 %17833, %v743_v0   ;;  %1196 = vperm.xlu1 %17829, %v742_v1   ;;  %v744_v9 = vld [vmem:[%s21680_s17 + $0x10] sm:$0xff]  ;;  %v747_v10 = vld [vmem:[%s21680_s17 + $0x28] sm:$0xff]  ;;  %v19385_v12 = vld [vmem:[%s21680_s17 + $0x60] sm:$0xff]  ;;  %v19495_v39 = vshrl.u32 %v1127_v35, 7 }
 0x119   : > { %2799 = vmatprep.mubr.bf16.mxu1 %v18971_v5  ;;  %v752_v11 = vld [vmem:[%s21680_s17 + $0x50] sm:$0xff]  ;;  %v19395_v14 = vld [vmem:[%s21680_s17 + $0x88] sm:$0xff]  ;;  %v19408_v17 = vld [vmem:[%s21680_s17 + $0xa0] sm:$0xff] }
 0x11a   : > { %v748_v13 = vld [vmem:[%s21680_s17 + $0x30] sm:$0xff]  ;;  %v17919_v18 = vld [vmem:[#allocation8 + $0x10] sm:$0xff]   ;;  %v17920_v19 = vld [vmem:[#allocation8 + $0x8] sm:$0xff]   ;;  %v19511_v44 = vsub.s32 1, %v19495_v39  ;;  %v19515_v46 = vsub.s32 2, %v19495_v39  ;;  %v19518_v47 = vsub.s32 0, %v19495_v39 }
 0x11b   : > { %v19401_v15 = vld [vmem:[%s21680_s17 + $0x90] sm:$0xff]  ;;  %v750_v21 = vld [vmem:[%s21680_s17 + $0x40] sm:$0xff]  ;;  %v755_v22 = vld [vmem:[%s21680_s17 + $0x68] sm:$0xff] }
 0x11c   : > { %1600 = vperm.xlu0 %17833, %v746_v4   ;;  %1200 = vperm.xlu1 %17829, %v743_v0   ;;  %v17918_v16 = vld [vmem:[#allocation8 + $0x18] sm:$0xff]   ;;  %v17921_v20 = vld [vmem:[#allocation8] sm:$0xff]   ;;  %v758_v42 = vld [vmem:[%s21680_s17 + $0x80] sm:$0xff] }
 0x11d   : > { %17565 = vmatprep.subr.bf16.mxu0 %v17918_v16  ;;  %v756_v23 = vld [vmem:[%s21680_s17 + $0x70] sm:$0xff]  ;;  %v753_v24 = vld [vmem:[%s21680_s17 + $0x58] sm:$0xff]  ;;  %v19435_v25 = vld [vmem:[%s21680_s17 + $0xa8] sm:$0xff] }
 0x11e   : > { %17566 = vmatpush3.bf16.msra.mxu0 %v17918_v16  ;;  %v19441_v26 = vld [vmem:[%s21680_s17 + $0xb0] sm:$0xff]  ;;  %v19454_v28 = vld [vmem:[%s21680_s17 + $0xe8] sm:$0xff]  ;;  %v757_v31 = vld [vmem:[%s21680_s17 + $0x78] sm:$0xff] }
 0x11f   : > { %17567 = vmatprep.subr.bf16.mxu0 %v17919_v18  ;;  %v19448_v27 = vld [vmem:[%s21680_s17 + $0xd0] sm:$0xff]  ;;  %v19484_v34 = vld [vmem:[%s21680_s17 + $0xb8] sm:$0xff]  ;;  %v19493_v38 = vld [vmem:[%s21680_s17 + $0xc8] sm:$0xff] }
 0x120   : > { %1612 = vperm.xlu0 %17833, %v749_v6   ;;  %17830 = vset.pattern.permute.xlu1 %v18971_v5  ;;  %v19460_v29 = vld [vmem:[%s21680_s17 + $0xf0] sm:$0xff]  ;;  %v19508_v43 = vld [vmem:[%s21680_s17 + $0xe0] sm:$0xff]  ;;  %v19526_v49 = vld [vmem:[%s21680_s17 + $0xf8] sm:$0xff] }
 0x121   : > { %824 = vperm.xlu1 %17830, %v745_v7   ;;  %v19467_v30 = vld [vmem:[%s21680_s17 + $0x110] sm:$0xff]  ;;  %v19544_v55 = vld [vmem:[%s21680_s17 + $0x108] sm:$0xff]  ;;  %v19554_v62 = vld [vmem:[%s21680_s17 + $0x120] sm:$0xff] }
 0x122   : > { %17568 = vmatpush3.bf16.msra.mxu0 %v17919_v18  ;;  %v806_v45 = vld [vmem:[#allocation3] sm:$0x7] }
 0x123   : > { %17569 = vmatprep.subr.bf16.mxu0 %v17920_v19  ;;  %v19529_v50 = vrot.slane %v806_v45, %v19511_v44  ;;  %v19534_v52 = vrot.slane %v806_v45, %v19515_v46  ;;  %v19537_v53 = vrot.slane %v806_v45, %v19518_v47 }
 0x124   : > { %1620 = vperm.xlu0 %17833, %v19363_v8  }
 0x125   : > { %17831 = vset.pattern.permute.xlu1 %v18970_v3 }
 0x126   : > { %1208 = vperm.xlu1 %17831, %v745_v7   ;;  %17570 = vmatpush3.bf16.msra.mxu0 %v17920_v19  ;;  %v19579_v19 = vld [vmem:[%s21680_s17 + $0x148] sm:$0xff] }
 0x127   : > { %17571 = vmatprep.subr.bf16.mxu0 %v17921_v20 }
 0x128   : > { %17844 = vset.pattern.permute.xlu0 %v18971_v5 }
 0x129   : > { %809 = vperm.xlu0 %17844, %v742_v1  }
 0x12a   : > { %17832 = vset.pattern.permute.xlu1 %v18969_v2  ;;  %17572 = vmatpush3.bf16.msra.mxu0 %v17921_v20 }
 0x12b   : > { %1584 = vperm.xlu1 %17832, %v742_v1   ;;  %3447 = vmatprep.subr.bf16.mxu0 %v18971_v5 }
 0x12d   : > { %814 = vperm.xlu0 %17844, %v743_v0  }
 0x12f   : > { %1592 = vperm.xlu1 %17832, %v744_v9  }
 0x131   : > { %819 = vperm.xlu0 %17844, %v744_v9  }
 0x133   : > { %1596 = vperm.xlu1 %17832, %v745_v7   ;;  %v761_v7 = vld [vmem:[%s21680_s17 + $0x98] sm:$0xff] }
 0x135   : > { %829 = vperm.xlu0 %17844, %v746_v4  }
 0x137   : > { %17834 = vset.pattern.permute.xlu1 %v18971_v5 }
 0x138   : > { %834 = vperm.xlu1 %17834, %v747_v10  }
 0x139   : > { %854 = vperm.xlu0 %17844, %v19363_v8  }
 0x13c   : > { %17835 = vset.pattern.permute.xlu1 %v18970_v3 }
 0x13d   : > { %859 = vperm.xlu0 %17844, %v752_v11   ;;  %1212 = vperm.xlu1 %17835, %v746_v4  }
 0x141   : > { %869 = vperm.xlu0 %17844, %v19385_v12   ;;  %17836 = vset.pattern.permute.xlu1 %v18971_v5 }
 0x142   : > { %839 = vperm.xlu1 %17836, %v748_v13  }
 0x145   : > { %894 = vperm.xlu0 %17844, %v19395_v14  }
 0x146   : > { %844 = vperm.xlu1 %17836, %v749_v6  }
 0x149   : > { %899 = vperm.xlu0 %17844, %v19401_v15  }
 0x14a   : > { %17837 = vset.pattern.permute.xlu1 %v18970_v3 }
 0x14b   : > { %1224 = vperm.xlu1 %17837, %v749_v6  }
 0x14d   : > { %909 = vperm.xlu0 %17844, %v19408_v17  }
 0x14f   : > { %17838 = vset.pattern.permute.xlu1 %v18969_v2 }
 0x150   : > { %1604 = vperm.xlu1 %17838, %v747_v10  }
 0x151   : > { %17855 = vset.pattern.permute.xlu0 %v18970_v3 }
 0x152   : > { %1204 = vperm.xlu0 %17855, %v744_v9  }
 0x154   : > { %1608 = vperm.xlu1 %17838, %v748_v13  }
 0x156   : > { %1216 = vperm.xlu0 %17855, %v747_v10  }
 0x158   : > { %17839 = vset.pattern.permute.xlu1 %v18971_v5 }
 0x159   : > { %849 = vperm.xlu1 %17839, %v750_v21  }
 0x15a   : > { %1220 = vperm.xlu0 %17855, %v748_v13  }
 0x15d   : > { %17840 = vset.pattern.permute.xlu1 %v18970_v3 }
 0x15e   : > { %1236 = vperm.xlu0 %17855, %v752_v11   ;;  %1228 = vperm.xlu1 %17840, %v750_v21  }
 0x162   : > { %1248 = vperm.xlu0 %17855, %v755_v22   ;;  %1232 = vperm.xlu1 %17840, %v19363_v8   ;;  %v19564_v8 = vld [vmem:[#allocation6] ss:$0 sm:$0xff] }
 0x166   : > { %1252 = vperm.xlu0 %17855, %v756_v23   ;;  %17841 = vset.pattern.permute.xlu1 %v18971_v5 }
 0x167   : > { %864 = vperm.xlu1 %17841, %v753_v24  }
 0x16a   : > { %1268 = vperm.xlu0 %17855, %v19401_v15  }
 0x16b   : > { %17842 = vset.pattern.permute.xlu1 %v18970_v3 }
 0x16c   : > { %1240 = vperm.xlu1 %17842, %v753_v24  }
 0x16e   : > { %1280 = vperm.xlu0 %17855, %v19435_v25  }
 0x170   : > { %17843 = vset.pattern.permute.xlu1 %v18969_v2 }
 0x171   : > { %1616 = vperm.xlu1 %17843, %v750_v21  }
 0x172   : > { %1284 = vperm.xlu0 %17855, %v19441_v26  }
 0x175   : > { %1624 = vperm.xlu1 %17843, %v752_v11   ;;  %v19571_v11 = vld [vmem:[%s21680_s17 + $0x138] sm:$0xff] }
 0x176   : > { %1300 = vperm.xlu0 %17855, %v19448_v27  }
 0x179   : > { %1628 = vperm.xlu1 %17843, %v753_v24  }
 0x17a   : > { %1312 = vperm.xlu0 %17855, %v19454_v28  }
 0x17d   : > { %17845 = vset.pattern.permute.xlu1 %v18971_v5 }
 0x17e   : > { %1316 = vperm.xlu0 %17855, %v19460_v29   ;;  %874 = vperm.xlu1 %17845, %v755_v22  }
 0x182   : > { %1332 = vperm.xlu0 %17855, %v19467_v30   ;;  %17846 = vset.pattern.permute.xlu1 %v18970_v3 }
 0x183   : > { %1244 = vperm.xlu1 %17846, %v19385_v12  }
 0x186   : > { %17874 = vset.pattern.permute.xlu0 %v18969_v2 }
 0x187   : > { %1632 = vperm.xlu0 %17874, %v19385_v12   ;;  %17847 = vset.pattern.permute.xlu1 %v18971_v5 }
 0x188   : > { %879 = vperm.xlu1 %17847, %v756_v23  }
 0x18b   : > { %1644 = vperm.xlu0 %17874, %v757_v31  }
 0x18c   : > { %884 = vperm.xlu1 %17847, %v757_v31  }
 0x18f   : > { %1652 = vperm.xlu0 %17874, %v19395_v14  }
 0x190   : > { %17848 = vset.pattern.permute.xlu1 %v18970_v3 }
 0x191   : > { %1256 = vperm.xlu1 %17848, %v757_v31  }
 0x193   : > { %v1197_v32 = vpop.permute.xlu1 %1196  ;;  %v1589_v33 = vpop.permute.xlu0 %1588  ;;  %1664 = vperm.xlu0 %17874, %v19408_v17  }
 0x194   : > { %v1455_v56 = vmul.f32 %v19529_v50, %v1197_v32  ;;  %v1844_v63 = vmul.f32 %v19534_v52, %v1589_v33 }
 0x195   : > { %17849 = vset.pattern.permute.xlu1 %v18969_v2 }
 0x196   : > { %1636 = vperm.xlu1 %17849, %v755_v22  }
 0x197   : > { %v1201_v36 = vpop.permute.xlu1 %1200  ;;  %v19487_v37 = vpop.permute.xlu0 %1600  ;;  %1676 = vperm.xlu0 %17874, %v19484_v34  }
 0x198   : > { %v1456_v0 = vmul.f32 %v19529_v50, %v1201_v36 }
 0x19a   : > { %1640 = vperm.xlu1 %17849, %v756_v23  }
 0x19b   : > { %v19497_v40 = vpop.permute.xlu0 %1612  ;;  %1684 = vperm.xlu0 %17874, %v19493_v38  }
 0x19c   : > { %v19500_v41 = vpop.permute.xlu1 %824 }
 0x19e   : > { %17850 = vset.pattern.permute.xlu1 %v18971_v5 }
 0x19f   : > { %889 = vperm.xlu1 %17850, %v758_v42   ;;  %v19520_v48 = vpop.permute.xlu0 %1620  ;;  %1696 = vperm.xlu0 %17874, %v19508_v43  }
 0x1a1   : > { %v19531_v51 = vpop.permute.xlu1 %1208 }
 0x1a3   : > { %17851 = vset.pattern.permute.xlu1 %v18970_v3  ;;  %1708 = vperm.xlu0 %17874, %v19526_v49  }
 0x1a4   : > { %v810_v54 = vpop.permute.xlu0 %809  ;;  %1260 = vperm.xlu1 %17851, %v758_v42  }
 0x1a5   : > { %v1131_v57 = vmul.f32 %v19537_v53, %v810_v54  ;;  %v1458_v54 = vmul.f32 %v19529_v50, %v19531_v51 }
 0x1a6   : > { %v1585_v58 = vpop.permute.xlu1 %1584 }
 0x1a7   : > { %v1519_v59 = vadd.f32 %v1455_v56, %v1131_v57  ;;  %v1843_v60 = vmul.f32 %v19534_v52, %v1585_v58  ;;  %1716 = vperm.xlu0 %17874, %v19544_v55   ;;  %v1134_v57 = vmul.f32 %v19537_v53, %v19500_v41 }
 0x1a8   : > { %v815_v61 = vpop.permute.xlu0 %814  ;;  %1264 = vperm.xlu1 %17851, %v19395_v14  }
 0x1a9   : > { %v1907_v1 = vadd.f32 %v1843_v60, %v1519_v59  ;;  %v1132_v4 = vmul.f32 %v19537_v53, %v815_v61  ;;  %v1522_v61 = vadd.f32 %v1458_v54, %v1134_v57 }
 0x1aa   : > { %v19559_v6 = vpop.permute.xlu1 %1592 }
 0x1ab   : > { %v1520_v9 = vadd.f32 %v1456_v0, %v1132_v4  ;;  %1728 = vperm.xlu0 %17874, %v19554_v62   ;;  %v1978_v13 = vadd.f32 %v19564_v8, %v1907_v1  ;;  %v1847_v0 = vmul.f32 %v19534_v52, %v19487_v37  ;;  %v1850_v37 = vmul.f32 %v19534_v52, %v19497_v40 }
 0x1ac   : > { %17852 = vset.pattern.permute.xlu1 %v18971_v5  ;;  %v820_v10 = vpop.permute.xlu0 %819 }
 0x1ad   : > { %v1908_v12 = vadd.f32 %v1844_v63, %v1520_v9  ;;  %904 = vperm.xlu1 %17852, %v761_v7   ;;  %v2042_v20 = vmax.f32 %v1978_v13, 0.0  ;;  %v1133_v51 = vmul.f32 %v19537_v53, %v820_v10  ;;  %v1845_v10 = vmul.f32 %v19534_v52, %v19559_v6 }
 0x1ae   : > { %v1597_v14 = vpop.permute.xlu1 %1596 }
 0x1af   : > { %v1979_v16 = vadd.f32 %v19564_v8, %v1908_v12  ;;  %1740 = vperm.xlu0 %17874, %v19571_v11   ;;  %v1846_v58 = vmul.f32 %v19534_v52, %v1597_v14 }
 0x1b0   : > { %v830_v18 = vpop.permute.xlu0 %829 }
 0x1b1   : > { %17853 = vset.pattern.permute.xlu1 %v18970_v3  ;;  %v2043_v21 = vmax.f32 %v1979_v16, 0.0  ;;  %v1135_v59 = vmul.f32 %v19537_v53, %v830_v18  ;;  %v1910_v1 = vadd.f32 %v1846_v58, %v1522_v61 }
 0x1b2   : > { %1272 = vperm.xlu1 %17853, %v761_v7  }
 0x1b3   : > { %v835_v22 = vpop.permute.xlu1 %834  ;;  %v2106_v23 = vpack.c.bf16 %v2043_v21, %v2042_v20  ;;  %1748 = vperm.xlu0 %17874, %v19579_v19   ;;  %v1981_v14 = vadd.f32 %v19564_v8, %v1910_v1  ;;  %v19633_v20 = vld [vmem:[%s21680_s17 + $0x150] sm:$0xff] }
 0x1b4   : > { %v19583_v24 = vpop.permute.xlu0 %854  ;;  %v1136_v21 = vmul.f32 %v19537_v53, %v835_v22 }
 0x1b5   : > { %17573 = vmatprep.mubr.msk.bf16.mxu0 %vm2177_vm0, %v2106_v23  ;;  %v2045_v57 = vmax.f32 %v1981_v14, 0.0 }
 0x1b6   : > { %17854 = vset.pattern.permute.xlu1 %v18969_v2 }
 0x1b7   : > { %1648 = vperm.xlu1 %17854, %v758_v42   ;;  %17887 = vset.pattern.permute.xlu0 %v18971_v5 }
 0x1b8   : > { %v1213_v31 = vpop.permute.xlu1 %1212  ;;  %v19588_v32 = vpop.permute.xlu0 %859  ;;  %934 = vperm.xlu0 %17887, %v19493_v38  }
 0x1b9   : > { %v1459_v60 = vmul.f32 %v19529_v50, %v1213_v31 }
 0x1bb   : > { %1656 = vperm.xlu1 %17854, %v19401_v15   ;;  %v1523_v4 = vadd.f32 %v1459_v60, %v1135_v59  ;;  %v19646_v60 = vld [vmem:[%s21680_s17 + $0x160] sm:$0xff] }
 0x1bc   : > { %v19592_v33 = vpop.permute.xlu0 %869  ;;  %939 = vperm.xlu0 %17887, %v19448_v27  }
 0x1bd   : > { %v840_v35 = vpop.permute.xlu1 %839  ;;  %v1911_v16 = vadd.f32 %v1847_v0, %v1523_v4 }
 0x1be   : > { %v1137_v59 = vmul.f32 %v19537_v53, %v840_v35 }
 0x1bf   : > { %1660 = vperm.xlu1 %17854, %v761_v7   ;;  %v1982_v58 = vadd.f32 %v19564_v8, %v1911_v16 }
 0x1c0   : > { %v19595_v36 = vpop.permute.xlu0 %894  ;;  %949 = vperm.xlu0 %17887, %v19508_v43  }
 0x1c1   : > { %v845_v42 = vpop.permute.xlu1 %844 }
 0x1c2   : > { %v1138_v12 = vmul.f32 %v19537_v53, %v845_v42 }
 0x1c3   : > { %17856 = vset.pattern.permute.xlu1 %v18971_v5 }
 0x1c4   : > { %914 = vperm.xlu1 %17856, %v19435_v25   ;;  %v19600_v45 = vpop.permute.xlu0 %899  ;;  %974 = vperm.xlu0 %17887, %v19544_v55  }
 0x1c6   : > { %v1225_v15 = vpop.permute.xlu1 %1224 }
 0x1c7   : > { %v1462_v7 = vmul.f32 %v19529_v50, %v1225_v15 }
 0x1c8   : > { %17857 = vset.pattern.permute.xlu1 %v18970_v3  ;;  %v19606_v56 = vpop.permute.xlu0 %909  ;;  %979 = vperm.xlu0 %17887, %v19467_v30  }
 0x1c9   : > { %1276 = vperm.xlu1 %17857, %v19408_v17   ;;  %v1526_v6 = vadd.f32 %v1462_v7, %v1138_v12 }
 0x1cb   : > { %v1605_v63 = vpop.permute.xlu1 %1604  ;;  %v1914_v61 = vadd.f32 %v1850_v37, %v1526_v6 }
 0x1cc   : > { %989 = vperm.xlu0 %17887, %v19554_v62   ;;  %v1848_v42 = vmul.f32 %v19534_v52, %v1605_v63 }
 0x1cd   : > { %v1205_v41 = vpop.permute.xlu0 %1204  ;;  %17858 = vset.pattern.permute.xlu1 %v18971_v5  ;;  %v1985_v12 = vadd.f32 %v19564_v8, %v1914_v61  ;;  %v19699_v61 = vld [vmem:[%s21680_s17 + $0x130] sm:$0xff] }
 0x1ce   : > { %v1457_v9 = vmul.f32 %v19529_v50, %v1205_v41  ;;  %919 = vperm.xlu1 %17858, %v19441_v26  }
 0x1cf   : > { %v1609_v17 = vpop.permute.xlu1 %1608 }
 0x1d0   : > { %v1521_v13 = vadd.f32 %v1457_v9, %v1133_v51  ;;  %1014 = vperm.xlu0 %17887, %v19579_v19   ;;  %v1849_v1 = vmul.f32 %v19534_v52, %v1609_v17 }
 0x1d1   : > { %v1217_v18 = vpop.permute.xlu0 %1216 }
 0x1d2   : > { %v1909_v23 = vadd.f32 %v1845_v10, %v1521_v13  ;;  %v1460_v31 = vmul.f32 %v19529_v50, %v1217_v18  ;;  %924 = vperm.xlu1 %17858, %v19484_v34   ;;  %v2046_v10 = vmax.f32 %v1982_v58, 0.0 }
 0x1d4   : > { %v1980_v40 = vadd.f32 %v19564_v8, %v1909_v23  ;;  %v1524_v15 = vadd.f32 %v1460_v31, %v1136_v21  ;;  %v850_v54 = vpop.permute.xlu1 %849  ;;  %1019 = vperm.xlu0 %17887, %v19633_v20   ;;  %v2049_v21 = vmax.f32 %v1985_v12, 0.0  ;;  %v19671_v23 = vld [vmem:[%s21680_s17 + $0x190] sm:$0xff] }
 0x1d5   : > { %v1221_v22 = vpop.permute.xlu0 %1220 }
 0x1d6   : > { %v2044_v51 = vmax.f32 %v1980_v40, 0.0  ;;  %v1912_v63 = vadd.f32 %v1848_v42, %v1524_v15  ;;  %v1461_v0 = vmul.f32 %v19529_v50, %v1221_v22  ;;  %17859 = vset.pattern.permute.xlu1 %v18970_v3  ;;  %v766_v40 = vld [vmem:[%s21680_s17 + $0xc0] sm:$0xff]  ;;  %v1140_v15 = vmul.f32 %v19537_v53, %v19583_v24 }
 0x1d7   : > { %1288 = vperm.xlu1 %17859, %v19484_v34   ;;  %v19659_v34 = vld [vmem:[%s21680_s17 + $0x188] sm:$0xff] }
 0x1d8   : > { %v1983_v4 = vadd.f32 %v19564_v8, %v1912_v63  ;;  %v1525_v35 = vadd.f32 %v1461_v0, %v1137_v59  ;;  %v2107_v41 = vpack.c.bf16 %v2045_v57, %v2044_v51  ;;  %1029 = vperm.xlu0 %17887, %v19646_v60   ;;  %v1852_v59 = vmul.f32 %v19534_v52, %v19520_v48 }
 0x1d9   : > { %v1229_v7 = vpop.permute.xlu1 %1228  ;;  %v1237_v9 = vpop.permute.xlu0 %1236  ;;  %v1141_v0 = vmul.f32 %v19537_v53, %v19588_v32  ;;  %v1139_v48 = vmul.f32 %v19537_v53, %v850_v54  ;;  %v769_v54 = vld [vmem:[%s21680_s17 + $0xd8] sm:$0xff] }
 0x1da   : > { %v2047_v13 = vmax.f32 %v1983_v4, 0.0  ;;  %v1913_v37 = vadd.f32 %v1849_v1, %v1525_v35  ;;  %17574 = vmatmul.mubr.msk.bf16.vlgmr.msra.gmra.mxu0 %vm2177_vm0, %v2107_v41  ;;  %v1463_v51 = vmul.f32 %v19529_v50, %v1229_v7  ;;  %v1465_v1 = vmul.f32 %v19529_v50, %v1237_v9 }
 0x1db   : > { %17860 = vset.pattern.permute.xlu1 %v18969_v2 }
 0x1dc   : > { %v1984_v17 = vadd.f32 %v19564_v8, %v1913_v37  ;;  %1668 = vperm.xlu1 %17860, %v19435_v25   ;;  %v2108_v14 = vpack.c.bf16 %v2047_v13, %v2046_v10  ;;  %1054 = vperm.xlu0 %17887, %v19659_v34   ;;  %v1527_v41 = vadd.f32 %v1463_v51, %v1139_v48 }
 0x1dd   : > { %v1233_v16 = vpop.permute.xlu1 %1232  ;;  %v19664_v18 = vpop.permute.xlu0 %1248  ;;  %v1529_v12 = vadd.f32 %v1465_v1, %v1141_v0 }
 0x1de   : > { %v2048_v6 = vmax.f32 %v1984_v17, 0.0  ;;  %17577 = vmatprep.mubr.msk.bf16.mxu0 %vm2177_vm0, %v2108_v14  ;;  %v1464_v57 = vmul.f32 %v19529_v50, %v1233_v16 }
 0x1e0   : > { %1672 = vperm.xlu1 %17860, %v19441_v26   ;;  %v2109_v31 = vpack.c.bf16 %v2049_v21, %v2048_v6  ;;  %1059 = vperm.xlu0 %17887, %v19671_v23   ;;  %v19687_v26 = vld [vmem:[%s21680_s17 + $0x128] sm:$0xff]  ;;  %v1528_v24 = vadd.f32 %v1464_v57, %v1140_v15 }
 0x1e1   : > { %v19674_v42 = vpop.permute.xlu0 %1252 }
 0x1e2   : > { %17578 = vmatmul.mubr.msk.bf16.gmra.mxu0 %vm2177_vm0, %v2109_v31  ;;  %v865_v25 = vpop.permute.xlu1 %864  ;;  %v1916_v4 = vadd.f32 %v1852_v59, %v1528_v24 }
 0x1e3   : > { %v1142_v21 = vmul.f32 %v19537_v53, %v865_v25 }
 0x1e4   : > { %17861 = vset.pattern.permute.xlu1 %v18971_v5  ;;  %17895 = vset.pattern.permute.xlu0 %v18970_v3  ;;  %v1987_v13 = vadd.f32 %v19564_v8, %v1916_v4 }
 0x1e5   : > { %929 = vperm.xlu1 %17861, %v766_v40   ;;  %v19690_v58 = vpop.permute.xlu0 %1268  ;;  %1344 = vperm.xlu0 %17895, %v19687_v26  }
 0x1e7   : > { %v1241_v22 = vpop.permute.xlu1 %1240 }
 0x1e8   : > { %v1466_v9 = vmul.f32 %v19529_v50, %v1241_v22 }
 0x1e9   : > { %17862 = vset.pattern.permute.xlu1 %v18970_v3  ;;  %v19703_v63 = vpop.permute.xlu0 %1280  ;;  %1348 = vperm.xlu0 %17895, %v19699_v61  }
 0x1ea   : > { %1292 = vperm.xlu1 %17862, %v766_v40   ;;  %v1530_v57 = vadd.f32 %v1466_v9, %v1142_v21  ;;  %v19754_v21 = vld [vmem:[%s21680_s17 + $0x170] sm:$0xff] }
 0x1ec   : > { %v1617_v35 = vpop.permute.xlu1 %1616 }
 0x1ed   : > { %v1851_v10 = vmul.f32 %v19534_v52, %v1617_v35  ;;  %v19711_v7 = vpop.permute.xlu0 %1284  ;;  %1364 = vperm.xlu0 %17895, %v19633_v20  }
 0x1ee   : > { %1296 = vperm.xlu1 %17862, %v19493_v38   ;;  %v2051_v38 = vmax.f32 %v1987_v13, 0.0 }
 0x1ef   : > { %v1915_v37 = vadd.f32 %v1851_v10, %v1527_v41 }
 0x1f0   : > { %v1625_v32 = vpop.permute.xlu1 %1624 }
 0x1f1   : > { %v1986_v17 = vadd.f32 %v19564_v8, %v1915_v37  ;;  %v1853_v14 = vmul.f32 %v19534_v52, %v1625_v32  ;;  %v19722_v16 = vpop.permute.xlu0 %1300  ;;  %v17922_v37 = vld [vmem:[#allocation11 + $0x74] ss:$8 sps:$4 sm:$0xff]   ;;  %v17924_v32 = vld [vmem:[#allocation11 + $0x70] ss:$8 sps:$4 sm:$0xff]  }
 0x1f2   : > { %17863 = vset.pattern.permute.xlu1 %v18971_v5  ;;  %2767 = vmatprep.subr.bf16.mxu1 %v17922_v37 }
 0x1f3   : > { %v2050_v6 = vmax.f32 %v1986_v17, 0.0  ;;  %v1917_v31 = vadd.f32 %v1853_v14, %v1529_v12  ;;  %944 = vperm.xlu1 %17863, %v769_v54   ;;  %v19743_v17 = vld [vmem:[%s21680_s17 + $0x168] sm:$0xff]  ;;  %2768 = vmatpush1.bf16.msra.mxu1 %v17924_v32  ;;  %v1143_v14 = vmul.f32 %v19537_v53, %v19592_v33 }
 0x1f4   : > { %v1629_v15 = vpop.permute.xlu1 %1628  ;;  %1376 = vperm.xlu0 %17895, %v19743_v17  }
 0x1f5   : > { %v1854_v59 = vmul.f32 %v19534_v52, %v1629_v15  ;;  %v2110_v24 = vpack.c.bf16 %v2051_v38, %v2050_v6  ;;  %v1988_v22 = vadd.f32 %v19564_v8, %v1917_v31  ;;  %v19728_v0 = vpop.permute.xlu0 %1312  ;;  %v17927_v38 = vld [vmem:[#allocation11 + $0x60] ss:$8 sps:$4 sm:$0xff]  }
 0x1f7   : > { %v1918_v51 = vadd.f32 %v1854_v59, %v1530_v57  ;;  %17864 = vset.pattern.permute.xlu1 %v18970_v3  ;;  %17581 = vmatprep.mubr.msk.bf16.mxu0 %vm2177_vm0, %v2110_v24  ;;  %v2052_v1 = vmax.f32 %v1988_v22, 0.0  ;;  %v17928_v57 = vld [vmem:[#allocation11 + $0x54] ss:$8 sps:$4 sm:$0xff]   ;;  %v1468_v59 = vmul.f32 %v19529_v50, %v19664_v18  ;;  %v17931_v18 = vld [vmem:[#allocation11 + $0x44] ss:$8 sps:$4 sm:$0xff]  }
 0x1f8   : > { %1304 = vperm.xlu1 %17864, %v769_v54   ;;  %1380 = vperm.xlu0 %17895, %v19754_v21  }
 0x1f9   : > { %v1989_v25 = vadd.f32 %v19564_v8, %v1918_v51  ;;  %v875_v48 = vpop.permute.xlu1 %874  ;;  %v19734_v35 = vpop.permute.xlu0 %1316 }
 0x1fa   : > { %v1144_v24 = vmul.f32 %v19537_v53, %v875_v48  ;;  %v1469_v48 = vmul.f32 %v19529_v50, %v19674_v42 }
 0x1fb   : > { %v2053_v4 = vmax.f32 %v1989_v25, 0.0  ;;  %v17930_v25 = vld [vmem:[#allocation11 + $0x50] ss:$8 sps:$4 sm:$0xff]  }
 0x1fc   : > { %17865 = vset.pattern.permute.xlu1 %v18969_v2  ;;  %1396 = vperm.xlu0 %17895, %v19671_v23   ;;  %v1532_v37 = vadd.f32 %v1468_v59, %v1144_v24 }
 0x1fd   : > { %1680 = vperm.xlu1 %17865, %v766_v40   ;;  %v2111_v41 = vpack.c.bf16 %v2053_v4, %v2052_v1  ;;  %v19738_v12 = vpop.permute.xlu0 %1332 }
 0x1fe   : > { %v1245_v10 = vpop.permute.xlu1 %1244 }
 0x1ff   : > { %17582 = vmatmul.mubr.msk.bf16.gmra.mxu0 %vm2177_vm0, %v2111_v41 }
 0x201   : > { %1688 = vperm.xlu1 %17865, %v19448_v27   ;;  %v17925_v27 = vld [vmem:[#allocation11 + $0x64] ss:$8 sps:$4 sm:$0xff]  }
 0x202   : > { %v1633_v40 = vpop.permute.xlu0 %1632  ;;  %2769 = vmatprep.subr.bf16.mxu1 %v17925_v27 }
 0x203   : > { %v880_v13 = vpop.permute.xlu1 %879  ;;  %v1855_v6 = vmul.f32 %v19534_v52, %v1633_v40  ;;  %2770 = vmatpush1.bf16.msra.mxu1 %v17927_v38  ;;  %v17933_v40 = vld [vmem:[#allocation11 + $0x40] ss:$8 sps:$4 sm:$0xff]  }
 0x204   : > { %2771 = vmatprep.subr.bf16.mxu1 %v17928_v57  ;;  %v1145_v32 = vmul.f32 %v19537_v53, %v880_v13  ;;  %v17934_v13 = vld [vmem:[#allocation11 + $0x34] ss:$8 sps:$4 sm:$0xff]  }
 0x205   : > { %1692 = vperm.xlu1 %17865, %v769_v54   ;;  %v1467_v54 = vmul.f32 %v19529_v50, %v1245_v10 }
 0x206   : > { %v1645_v33 = vpop.permute.xlu0 %1644 }
 0x207   : > { %v885_v9 = vpop.permute.xlu1 %884  ;;  %v1531_v22 = vadd.f32 %v1467_v54, %v1143_v14  ;;  %v1858_v41 = vmul.f32 %v19534_v52, %v1645_v33  ;;  %2772 = vmatpush1.bf16.msra.mxu1 %v17930_v25  ;;  %v1533_v54 = vadd.f32 %v1469_v48, %v1145_v32 }
 0x208   : > { %v1146_v51 = vmul.f32 %v19537_v53, %v885_v9  ;;  %2773 = vmatprep.subr.bf16.mxu1 %v17931_v18  ;;  %v17940_v18 = vld [vmem:[#allocation11 + $0x14] ss:$8 sps:$4 sm:$0xff]  }
 0x209   : > { %17866 = vset.pattern.permute.xlu1 %v18971_v5  ;;  %v1919_v1 = vadd.f32 %v1855_v6, %v1531_v22  ;;  %v17937_v22 = vld [vmem:[#allocation11 + $0x24] ss:$8 sps:$4 sm:$0xff]  }
 0x20a   : > { %954 = vperm.xlu1 %17866, %v19454_v28  }
 0x20b   : > { %v1990_v23 = vadd.f32 %v19564_v8, %v1919_v1  ;;  %2774 = vmatpush1.bf16.msra.mxu1 %v17933_v40  ;;  %v17945_v40 = vld [vmem:[#allocation11] ss:$8 sps:$4 sm:$0xff]  }
 0x20c   : > { %v1257_v31 = vpop.permute.xlu1 %1256  ;;  %2775 = vmatprep.subr.bf16.mxu1 %v17934_v13  ;;  %v1653_v13 = vpop.permute.xlu0 %1652 }
 0x20d   : > { %v1470_v15 = vmul.f32 %v19529_v50, %v1257_v31  ;;  %v17936_v31 = vld [vmem:[#allocation11 + $0x30] ss:$8 sps:$4 sm:$0xff]   ;;  %v2054_v33 = vmax.f32 %v1990_v23, 0.0  ;;  %v19802_v23 = vld [vmem:[%s21680_s17 + $0x178] sm:$0xff] }
 0x20e   : > { %17867 = vset.pattern.permute.xlu1 %v18970_v3 }
 0x20f   : > { %1308 = vperm.xlu1 %17867, %v19508_v43   ;;  %v1534_v4 = vadd.f32 %v1470_v15, %v1146_v51  ;;  %v19775_v43 = vld [vmem:[%s21680_s17 + $0x1a8] sm:$0xff]  ;;  %v19785_v15 = vld [vmem:[%s21680_s17 + $0x1b0] sm:$0xff]  ;;  %2776 = vmatpush1.bf16.msra.mxu1 %v17936_v31  ;;  %v1149_v31 = vmul.f32 %v19537_v53, %v19600_v45  ;;  %v777_v45 = vld [vmem:[%s21680_s17 + $0x118] sm:$0xff] }
 0x210   : > { %1408 = vperm.xlu0 %17895, %v19775_v43   ;;  %2777 = vmatprep.subr.bf16.mxu1 %v17937_v22 }
 0x211   : > { %v1637_v10 = vpop.permute.xlu1 %1636  ;;  %v1922_v27 = vadd.f32 %v1858_v41, %v1534_v4  ;;  %v17939_v4 = vld [vmem:[#allocation11 + $0x20] ss:$8 sps:$4 sm:$0xff]  }
 0x212   : > { %v1856_v9 = vmul.f32 %v19534_v52, %v1637_v10 }
 0x213   : > { %17868 = vset.pattern.permute.xlu1 %v18971_v5  ;;  %v1993_v57 = vadd.f32 %v19564_v8, %v1922_v27  ;;  %2778 = vmatpush1.bf16.msra.mxu1 %v17939_v4 }
 0x214   : > { %v1920_v14 = vadd.f32 %v1856_v9, %v1532_v37  ;;  %959 = vperm.xlu1 %17868, %v19460_v29   ;;  %1412 = vperm.xlu0 %17895, %v19785_v15   ;;  %v17942_v37 = vld [vmem:[#allocation11 + $0x10] ss:$8 sps:$4 sm:$0xff]   ;;  %v17943_v9 = vld [vmem:[#allocation11 + $0x4] ss:$8 sps:$4 sm:$0xff]  }
 0x215   : > { %v1641_v42 = vpop.permute.xlu1 %1640  ;;  %v2057_v41 = vmax.f32 %v1993_v57, 0.0  ;;  %2779 = vmatprep.subr.bf16.mxu1 %v17940_v18 }
 0x216   : > { %v1991_v38 = vadd.f32 %v19564_v8, %v1920_v14  ;;  %v1857_v6 = vmul.f32 %v19534_v52, %v1641_v42  ;;  %v774_v14 = vld [vmem:[%s21680_s17 + $0x100] sm:$0xff] }
 0x217   : > { %2780 = vmatpush1.bf16.msra.mxu1 %v17942_v37 }
 0x218   : > { %v2055_v59 = vmax.f32 %v1991_v38, 0.0  ;;  %v1921_v24 = vadd.f32 %v1857_v6, %v1533_v54  ;;  %964 = vperm.xlu1 %17868, %v19526_v49   ;;  %17902 = vset.pattern.permute.xlu0 %v18969_v2  ;;  %v1860_v38 = vmul.f32 %v19534_v52, %v1653_v13 }
 0x219   : > { %1760 = vperm.xlu0 %17902, %v19646_v60   ;;  %2781 = vmatprep.subr.bf16.mxu1 %v17943_v9 }
 0x21a   : > { %v1992_v51 = vadd.f32 %v19564_v8, %v1921_v24  ;;  %v890_v25 = vpop.permute.xlu1 %889  ;;  %v2112_v1 = vpack.c.bf16 %v2055_v59, %v2054_v33 }
 0x21b   : > { %2782 = vmatpush1.bf16.msra.mxu1 %v17945_v40  ;;  %v1147_v33 = vmul.f32 %v19537_v53, %v890_v25 }
 0x21c   : > { %v2056_v10 = vmax.f32 %v1992_v51, 0.0  ;;  %17869 = vset.pattern.permute.xlu1 %v18970_v3  ;;  %17585 = vmatprep.mubr.msk.bf16.mxu0 %vm2177_vm0, %v2112_v1 }
 0x21d   : > { %1320 = vperm.xlu1 %17869, %v19526_v49   ;;  %1772 = vperm.xlu0 %17902, %v19802_v23  }
 0x21e   : > { %v2113_v48 = vpack.c.bf16 %v2057_v41, %v2056_v10  ;;  %v1665_v10 = vpop.permute.xlu0 %1664 }
 0x21f   : > { %v1261_v32 = vpop.permute.xlu1 %1260 }
 0x220   : > { %17586 = vmatmul.mubr.msk.bf16.gmra.mxu0 %vm2177_vm0, %v2113_v48  ;;  %v1471_v6 = vmul.f32 %v19529_v50, %v1261_v32 }
 0x221   : > { %17870 = vset.pattern.permute.xlu1 %v18969_v2  ;;  %1780 = vperm.xlu0 %17902, %v19659_v34  }
 0x222   : > { %1700 = vperm.xlu1 %17870, %v19454_v28   ;;  %v1148_v28 = vmul.f32 %v19537_v53, %v19595_v36  ;;  %v1473_v36 = vmul.f32 %v19529_v50, %v19690_v58  ;;  %v1535_v24 = vadd.f32 %v1471_v6, %v1147_v33 }
 0x223   : > { %v1265_v49 = vpop.permute.xlu1 %1264 }
 0x224   : > { %v1472_v42 = vmul.f32 %v19529_v50, %v1265_v49  ;;  %v1537_v51 = vadd.f32 %v1473_v36, %v1149_v31 }
 0x226   : > { %1704 = vperm.xlu1 %17870, %v19460_v29   ;;  %v1536_v54 = vadd.f32 %v1472_v42, %v1148_v28  ;;  %v1677_v42 = vpop.permute.xlu0 %1676 }
 0x228   : > { %v905_v27 = vpop.permute.xlu1 %904  ;;  %v1924_v57 = vadd.f32 %v1860_v38, %v1536_v54 }
 0x22a   : > { %17871 = vset.pattern.permute.xlu1 %v18971_v5  ;;  %v1995_v1 = vadd.f32 %v19564_v8, %v1924_v57  ;;  %v19839_v31 = vpop.permute.xlu0 %1684 }
 0x22b   : > { %969 = vperm.xlu1 %17871, %v774_v14  }
 0x22c   : > { %v2059_v48 = vmax.f32 %v1995_v1, 0.0 }
 0x22d   : > { %v1273_v29 = vpop.permute.xlu1 %1272 }
 0x22e   : > { %v1474_v58 = vmul.f32 %v19529_v50, %v1273_v29  ;;  %v19843_v57 = vpop.permute.xlu0 %1696 }
 0x22f   : > { %17872 = vset.pattern.permute.xlu1 %v18970_v3 }
 0x230   : > { %1324 = vperm.xlu1 %17872, %v774_v14  }
 0x232   : > { %v1649_v59 = vpop.permute.xlu1 %1648  ;;  %v19848_v1 = vpop.permute.xlu0 %1708 }
 0x233   : > { %v1859_v22 = vmul.f32 %v19534_v52, %v1649_v59 }
 0x234   : > { %1328 = vperm.xlu1 %17872, %v19544_v55   ;;  %v1150_v55 = vmul.f32 %v19537_v53, %v905_v27 }
 0x235   : > { %v1923_v4 = vadd.f32 %v1859_v22, %v1535_v24  ;;  %v1151_v22 = vmul.f32 %v19537_v53, %v19606_v56  ;;  %v1476_v56 = vmul.f32 %v19529_v50, %v19703_v63  ;;  %v19872_v63 = vld [vmem:[%s21680_s17 + $0x1b8] sm:$0xff] }
 0x236   : > { %v1657_v41 = vpop.permute.xlu1 %1656  ;;  %v1538_v40 = vadd.f32 %v1474_v58, %v1150_v55 }
 0x237   : > { %v1994_v25 = vadd.f32 %v19564_v8, %v1923_v4  ;;  %v1861_v18 = vmul.f32 %v19534_v52, %v1657_v41  ;;  %v1863_v4 = vmul.f32 %v19534_v52, %v1665_v10 }
 0x238   : > { %17873 = vset.pattern.permute.xlu1 %v18971_v5 }
 0x239   : > { %v2058_v37 = vmax.f32 %v1994_v25, 0.0  ;;  %v1925_v32 = vadd.f32 %v1861_v18, %v1537_v51  ;;  %984 = vperm.xlu1 %17873, %v777_v45   ;;  %v19864_v18 = vpop.permute.xlu0 %1716 }
 0x23a   : > { %v1661_v9 = vpop.permute.xlu1 %1660 }
 0x23b   : > { %v1862_v49 = vmul.f32 %v19534_v52, %v1661_v9  ;;  %v2114_v28 = vpack.c.bf16 %v2059_v48, %v2058_v37  ;;  %v1996_v13 = vadd.f32 %v19564_v8, %v1925_v32  ;;  %v1866_v48 = vmul.f32 %v19534_v52, %v1677_v42 }
 0x23c   : > { %v1477_v32 = vmul.f32 %v19529_v50, %v19711_v7  ;;  %v19887_v7 = vld [vmem:[%s21680_s17 + $0x1c8] sm:$0xff] }
 0x23d   : > { %v1926_v54 = vadd.f32 %v1862_v49, %v1538_v40  ;;  %17875 = vset.pattern.permute.xlu1 %v18970_v3  ;;  %17589 = vmatprep.mubr.msk.bf16.mxu0 %vm2177_vm0, %v2114_v28  ;;  %v2060_v29 = vmax.f32 %v1996_v13, 0.0  ;;  %v19882_v13 = vpop.permute.xlu0 %1728 }
 0x23e   : > { %1336 = vperm.xlu1 %17875, %v777_v45  }
 0x23f   : > { %v1997_v38 = vadd.f32 %v19564_v8, %v1926_v54  ;;  %v915_v27 = vpop.permute.xlu1 %914 }
 0x240   : > { %v1152_v58 = vmul.f32 %v19537_v53, %v915_v27 }
 0x241   : > { %v2061_v6 = vmax.f32 %v1997_v38, 0.0 }
 0x242   : > { %17876 = vset.pattern.permute.xlu1 %v18969_v2  ;;  %v1540_v9 = vadd.f32 %v1476_v56, %v1152_v58 }
 0x243   : > { %1712 = vperm.xlu1 %17876, %v774_v14   ;;  %v2115_v36 = vpack.c.bf16 %v2061_v6, %v2060_v29 }
 0x244   : > { %v1277_v33 = vpop.permute.xlu1 %1276 }
 0x245   : > { %17590 = vmatmul.mubr.msk.bf16.gmra.mxu0 %vm2177_vm0, %v2115_v36  ;;  %v1475_v51 = vmul.f32 %v19529_v50, %v1277_v33 }
 0x247   : > { %1720 = vperm.xlu1 %17876, %v19467_v30   ;;  %v1539_v14 = vadd.f32 %v1475_v51, %v1151_v22  ;;  %v19895_v51 = vpop.permute.xlu0 %1740 }
 0x249   : > { %v920_v59 = vpop.permute.xlu1 %919  ;;  %v1927_v10 = vadd.f32 %v1863_v4, %v1539_v14 }
 0x24a   : > { %v1153_v40 = vmul.f32 %v19537_v53, %v920_v59 }
 0x24b   : > { %1724 = vperm.xlu1 %17876, %v777_v45   ;;  %v19857_v45 = vld [vmem:[%s21680_s17 + $0x1a0] sm:$0xff]  ;;  %v19903_v58 = vpop.permute.xlu0 %1748 }
 0x24c   : > { %1792 = vperm.xlu0 %17902, %v19857_v45   ;;  %v1541_v38 = vadd.f32 %v1477_v32, %v1153_v40  ;;  %v1868_v32 = vmul.f32 %v19534_v52, %v19839_v31 }
 0x24d   : > { %v925_v24 = vpop.permute.xlu1 %924 }
 0x24e   : > { %v1154_v25 = vmul.f32 %v19537_v53, %v925_v24 }
 0x24f   : > { %17877 = vset.pattern.permute.xlu1 %v18971_v5 }
 0x250   : > { %994 = vperm.xlu1 %17877, %v19687_v26   ;;  %1804 = vperm.xlu0 %17902, %v19872_v63  }
 0x252   : > { %v1289_v30 = vpop.permute.xlu1 %1288 }
 0x253   : > { %v1478_v41 = vmul.f32 %v19529_v50, %v1289_v30 }
 0x254   : > { %17878 = vset.pattern.permute.xlu1 %v18970_v3  ;;  %1812 = vperm.xlu0 %17902, %v19887_v7  }
 0x255   : > { %1340 = vperm.xlu1 %17878, %v19554_v62   ;;  %v1542_v55 = vadd.f32 %v1478_v41, %v1154_v25  ;;  %v1998_v62 = vadd.f32 %v19564_v8, %v1927_v10  ;;  %v935_v10 = vpop.permute.xlu0 %934 }
 0x257   : > { %v1669_v37 = vpop.permute.xlu1 %1668  ;;  %v1930_v28 = vadd.f32 %v1866_v48, %v1542_v55  ;;  %v2062_v6 = vmax.f32 %v1998_v62, 0.0  ;;  %v1156_v55 = vmul.f32 %v19537_v53, %v935_v10 }
 0x258   : > { %v1864_v49 = vmul.f32 %v19534_v52, %v1669_v37  ;;  %17910 = vset.pattern.permute.xlu0 %v18971_v5 }
 0x259   : > { %17879 = vset.pattern.permute.xlu1 %v18971_v5  ;;  %v2001_v36 = vadd.f32 %v19564_v8, %v1930_v28  ;;  %1069 = vperm.xlu0 %17910, %v19857_v45   ;;  %v940_v40 = vpop.permute.xlu0 %939 }
 0x25a   : > { %v1928_v42 = vadd.f32 %v1864_v49, %v1540_v9  ;;  %999 = vperm.xlu1 %17879, %v19699_v61   ;;  %v1481_v49 = vmul.f32 %v19529_v50, %v19722_v16  ;;  %v785_v16 = vld [vmem:[%s21680_s17 + $0x158] sm:$0xff] }
 0x25b   : > { %v1673_v54 = vpop.permute.xlu1 %1672  ;;  %v2065_v4 = vmax.f32 %v2001_v36, 0.0 }
 0x25c   : > { %v1999_v27 = vadd.f32 %v19564_v8, %v1928_v42  ;;  %v1865_v29 = vmul.f32 %v19534_v52, %v1673_v54  ;;  %v1157_v42 = vmul.f32 %v19537_v53, %v940_v40 }
 0x25d   : > { %1094 = vperm.xlu0 %17910, %v19887_v7  }
 0x25e   : > { %v2063_v33 = vmax.f32 %v1999_v27, 0.0  ;;  %v1929_v59 = vadd.f32 %v1865_v29, %v1541_v38  ;;  %1004 = vperm.xlu1 %17879, %v19571_v11  }
 0x260   : > { %v2000_v24 = vadd.f32 %v19564_v8, %v1929_v59  ;;  %v930_v22 = vpop.permute.xlu1 %929  ;;  %v2116_v14 = vpack.c.bf16 %v2063_v33, %v2062_v6  ;;  %v1545_v6 = vadd.f32 %v1481_v49, %v1157_v42 }
 0x261   : > { %v1155_v62 = vmul.f32 %v19537_v53, %v930_v22 }
 0x262   : > { %v2064_v30 = vmax.f32 %v2000_v24, 0.0  ;;  %17880 = vset.pattern.permute.xlu1 %v18970_v3  ;;  %17593 = vmatprep.mubr.msk.bf16.mxu0 %vm2177_vm0, %v2116_v14 }
 0x263   : > { %1352 = vperm.xlu1 %17880, %v19571_v11   ;;  %v782_v11 = vld [vmem:[%s21680_s17 + $0x140] sm:$0xff] }
 0x264   : > { %v2117_v41 = vpack.c.bf16 %v2065_v4, %v2064_v30 }
 0x265   : > { %v1293_v56 = vpop.permute.xlu1 %1292 }
 0x266   : > { %17594 = vmatmul.mubr.msk.bf16.gmra.mxu0 %vm2177_vm0, %v2117_v41 }
 0x267   : > { %17881 = vset.pattern.permute.xlu1 %v18969_v2 }
 0x268   : > { %1732 = vperm.xlu1 %17881, %v19687_v26  }
 0x269   : > { %v1297_v25 = vpop.permute.xlu1 %1296 }
 0x26a   : > { %v1480_v37 = vmul.f32 %v19529_v50, %v1297_v25 }
 0x26c   : > { %1736 = vperm.xlu1 %17881, %v19699_v61   ;;  %v1544_v26 = vadd.f32 %v1480_v37, %v1156_v55  ;;  %v1479_v61 = vmul.f32 %v19529_v50, %v1293_v56 }
 0x26e   : > { %v945_v48 = vpop.permute.xlu1 %944  ;;  %v1932_v28 = vadd.f32 %v1868_v32, %v1544_v26  ;;  %v1543_v38 = vadd.f32 %v1479_v61, %v1155_v62  ;;  %v19945_v61 = vld [vmem:[%s21680_s17 + $0x1d0] sm:$0xff]  ;;  %v950_v62 = vpop.permute.xlu0 %949 }
 0x26f   : > { %1099 = vperm.xlu0 %17910, %v19945_v61  }
 0x270   : > { %17882 = vset.pattern.permute.xlu1 %v18971_v5  ;;  %v2003_v27 = vadd.f32 %v19564_v8, %v1932_v28 }
 0x271   : > { %1009 = vperm.xlu1 %17882, %v782_v11  }
 0x272   : > { %v2067_v22 = vmax.f32 %v2003_v27, 0.0 }
 0x273   : > { %v1305_v9 = vpop.permute.xlu1 %1304 }
 0x274   : > { %v1482_v33 = vmul.f32 %v19529_v50, %v1305_v9 }
 0x275   : > { %17883 = vset.pattern.permute.xlu1 %v18970_v3 }
 0x276   : > { %1356 = vperm.xlu1 %17883, %v782_v11  }
 0x278   : > { %v1681_v54 = vpop.permute.xlu1 %1680 }
 0x279   : > { %v1867_v31 = vmul.f32 %v19534_v52, %v1681_v54  ;;  %v1871_v54 = vmul.f32 %v19534_v52, %v19843_v57 }
 0x27a   : > { %1360 = vperm.xlu1 %17883, %v19579_v19   ;;  %v1158_v19 = vmul.f32 %v19537_v53, %v945_v48 }
 0x27b   : > { %v1931_v29 = vadd.f32 %v1867_v31, %v1543_v38 }
 0x27c   : > { %v1689_v36 = vpop.permute.xlu1 %1688  ;;  %v1546_v41 = vadd.f32 %v1482_v33, %v1158_v19  ;;  %v1874_v33 = vmul.f32 %v19534_v52, %v19848_v1  ;;  %v1485_v19 = vmul.f32 %v19529_v50, %v19734_v35  ;;  %v19982_v1 = vld [vmem:[%s21680_s17 + $0x1e8] sm:$0xff] }
 0x27d   : > { %v2002_v59 = vadd.f32 %v19564_v8, %v1931_v29  ;;  %v1869_v24 = vmul.f32 %v19534_v52, %v1689_v36  ;;  %v1484_v29 = vmul.f32 %v19529_v50, %v19728_v0 }
 0x27e   : > { %17884 = vset.pattern.permute.xlu1 %v18971_v5 }
 0x27f   : > { %v2066_v14 = vmax.f32 %v2002_v59, 0.0  ;;  %v1933_v4 = vadd.f32 %v1869_v24, %v1545_v6  ;;  %1024 = vperm.xlu1 %17884, %v785_v16  }
 0x280   : > { %v1693_v30 = vpop.permute.xlu1 %1692 }
 0x281   : > { %v1870_v56 = vmul.f32 %v19534_v52, %v1693_v30  ;;  %v2118_v25 = vpack.c.bf16 %v2067_v22, %v2066_v14  ;;  %v2004_v10 = vadd.f32 %v19564_v8, %v1933_v4  ;;  %v19974_v4 = vld [vmem:[#allocation9] ss:$0 sm:$0xff] }
 0x283   : > { %v1934_v55 = vadd.f32 %v1870_v56, %v1546_v41  ;;  %17885 = vset.pattern.permute.xlu1 %v18970_v3  ;;  %17597 = vmatprep.mubr.msk.bf16.mxu0 %vm2177_vm0, %v2118_v25  ;;  %v2068_v48 = vmax.f32 %v2004_v10, 0.0 }
 0x284   : > { %1368 = vperm.xlu1 %17885, %v785_v16  }
 0x285   : > { %v2005_v37 = vadd.f32 %v19564_v8, %v1934_v55  ;;  %v955_v32 = vpop.permute.xlu1 %954 }
 0x286   : > { %v1160_v6 = vmul.f32 %v19537_v53, %v955_v32 }
 0x287   : > { %v2069_v26 = vmax.f32 %v2005_v37, 0.0 }
 0x288   : > { %17886 = vset.pattern.permute.xlu1 %v18969_v2  ;;  %v1548_v0 = vadd.f32 %v1484_v29, %v1160_v6 }
 0x289   : > { %1744 = vperm.xlu1 %17886, %v782_v11   ;;  %v2119_v9 = vpack.c.bf16 %v2069_v26, %v2068_v48  ;;  %v19951_v11 = vld [vmem:[%s21680_s17 + $0x1e0] sm:$0xff]  ;;  %v19988_v48 = vld [vmem:[#allocation6] ss:$0 sm:$0xff] }
 0x28a   : > { %v1309_v40 = vpop.permute.xlu1 %1308  ;;  %1109 = vperm.xlu0 %17910, %v19951_v11  }
 0x28b   : > { %17598 = vmatmul.mubr.msk.bf16.gmra.mxu0 %vm2177_vm0, %v2119_v9  ;;  %v1483_v42 = vmul.f32 %v19529_v50, %v1309_v40 }
 0x28d   : > { %1752 = vperm.xlu1 %17886, %v19633_v20   ;;  %v1159_v20 = vmul.f32 %v19537_v53, %v950_v62 }
 0x28e   : > { %17911 = vset.pattern.permute.xlu0 %v18970_v3 }
 0x28f   : > { %v960_v49 = vpop.permute.xlu1 %959  ;;  %1428 = vperm.xlu0 %17911, %v19945_v61   ;;  %v1547_v38 = vadd.f32 %v1483_v42, %v1159_v20 }
 0x290   : > { %v1161_v14 = vmul.f32 %v19537_v53, %v960_v49 }
 0x291   : > { %1756 = vperm.xlu1 %17886, %v785_v16   ;;  %v1935_v57 = vadd.f32 %v1871_v54, %v1547_v38 }
 0x292   : > { %v1549_v32 = vadd.f32 %v1485_v19, %v1161_v14 }
 0x293   : > { %v965_v28 = vpop.permute.xlu1 %964  ;;  %v2006_v56 = vadd.f32 %v19564_v8, %v1935_v57  ;;  %1440 = vperm.xlu0 %17911, %v19982_v1   ;;  %v19995_v8 = vld [vmem:[%s21680_s17 + $0x1f0] sm:$0xff] }
 0x294   : > { %v1162_v36 = vmul.f32 %v19537_v53, %v965_v28 }
 0x295   : > { %17888 = vset.pattern.permute.xlu1 %v18971_v5  ;;  %v2070_v28 = vmax.f32 %v2006_v56, 0.0 }
 0x296   : > { %1034 = vperm.xlu1 %17888, %v19743_v17  }
 0x297   : > { %1444 = vperm.xlu0 %17911, %v19995_v8  }
 0x298   : > { %v1321_v31 = vpop.permute.xlu1 %1320 }
 0x299   : > { %v1486_v27 = vmul.f32 %v19529_v50, %v1321_v31 }
 0x29a   : > { %v17575_v16 = vpop.f32.mrf.mxu0  ;;  %17889 = vset.pattern.permute.xlu1 %v18970_v3 }
 0x29b   : > { %1372 = vperm.xlu1 %17889, %v19646_v60   ;;  %v1550_v59 = vadd.f32 %v1486_v27, %v1162_v36  ;;  %v2317_v57 = vadd.f32 %v17575_v16, %v19974_v4  ;;  %17916 = vset.pattern.permute.xlu0 %v18969_v2 }
 0x29c   : > { %v2308_v24 = vpop.f32.mrf.mxu0  ;;  %1824 = vperm.xlu0 %17916, %v19951_v11  }
 0x29d   : > { %v1701_v22 = vpop.permute.xlu1 %1700  ;;  %v2309_v60 = vadd.f32 %v19974_v4, %v2308_v24  ;;  %v1938_v35 = vadd.f32 %v1874_v33, %v1550_v59  ;;  %v2565_v14 = vmax.f32 %v2317_v57, 0.0 }
 0x29e   : > { %v1872_v30 = vmul.f32 %v19534_v52, %v1701_v22  ;;  %v17576_v41 = vpop.f32.mrf.mxu0 }
 0x29f   : > { %17890 = vset.pattern.permute.xlu1 %v18971_v5  ;;  %v2563_v49 = vmax.f32 %v2309_v60, 0.0  ;;  %v2009_v20 = vadd.f32 %v19988_v48, %v1938_v35  ;;  %v2320_v31 = vadd.f32 %v17576_v41, %v19974_v4  ;;  %v975_v60 = vpop.permute.xlu0 %974  ;;  %v20017_v35 = vld [vmem:[%s21680_s17 + $0x1f8] sm:$0xff] }
 0x2a0   : > { %v1936_v25 = vadd.f32 %v1872_v30, %v1548_v0  ;;  %v2311_v10 = vpop.f32.mrf.mxu0  ;;  %1039 = vperm.xlu1 %17890, %v19754_v21   ;;  %1836 = vperm.xlu0 %17916, %v20017_v35  }
 0x2a1   : > { %v2312_v55 = vadd.f32 %v19974_v4, %v2311_v10  ;;  %v1705_v37 = vpop.permute.xlu1 %1704  ;;  %v2073_v59 = vmax.f32 %v2009_v20, 0.0  ;;  %v2566_v22 = vmax.f32 %v2320_v31, 0.0 }
 0x2a2   : > { %v2007_v26 = vadd.f32 %v19988_v48, %v1936_v25  ;;  %v1873_v9 = vmul.f32 %v19534_v52, %v1705_v37  ;;  %v17579_v40 = vpop.f32.mrf.mxu0 }
 0x2a3   : > { %v2564_v62 = vmax.f32 %v2312_v55, 0.0  ;;  %v2628_v16 = vpack.c.bf16 %v2566_v22, %v2565_v14  ;;  %v980_v55 = vpop.permute.xlu0 %979 }
 0x2a4   : > { %v2071_v42 = vmax.f32 %v2007_v26, 0.0  ;;  %v1937_v54 = vadd.f32 %v1873_v9, %v1549_v32  ;;  %v2324_v38 = vpop.f32.mrf.mxu0  ;;  %1044 = vperm.xlu1 %17890, %v19802_v23   ;;  %v1164_v26 = vmul.f32 %v19537_v53, %v975_v60  ;;  %v1165_v57 = vmul.f32 %v19537_v53, %v980_v55 }
 0x2a5   : > { %v2627_v27 = vpack.c.bf16 %v2564_v62, %v2563_v49  ;;  %v2333_v62 = vadd.f32 %v17579_v40, %v19974_v4 }
 0x2a6   : > { %v2008_v29 = vadd.f32 %v19988_v48, %v1937_v54  ;;  %v17580_v6 = vpop.f32.mrf.mxu0  ;;  %v970_v36 = vpop.permute.xlu1 %969  ;;  %v2120_v33 = vpack.c.bf16 %v2071_v42, %v2070_v28 }
 0x2a7   : > { %2800 = vmatmul.mubr.bf16.vlgmr.msra.gmra.mxu1 %v2627_v27  ;;  %v2336_v32 = vadd.f32 %v17580_v6, %v19974_v4  ;;  %v20036_v42 = vpop.permute.xlu0 %989  ;;  %v1163_v27 = vmul.f32 %v19537_v53, %v970_v36 }
 0x2a8   : > { %v2072_v24 = vmax.f32 %v2008_v29, 0.0  ;;  %17891 = vset.pattern.permute.xlu1 %v18970_v3  ;;  %17601 = vmatprep.mubr.msk.bf16.mxu0 %vm2177_vm0, %v2120_v33  ;;  %v2327_v19 = vpop.f32.mrf.mxu0 }
 0x2a9   : > { %1384 = vperm.xlu1 %17891, %v19802_v23   ;;  %2809 = vmatprep.mubr.bf16.mxu1 %v18971_v5  ;;  %v2328_v41 = vadd.f32 %v19974_v4, %v2327_v19  ;;  %v2325_v23 = vadd.f32 %v19974_v4, %v2324_v38  ;;  %v2570_v28 = vmax.f32 %v2336_v32, 0.0  ;;  %v2569_v38 = vmax.f32 %v2333_v62, 0.0 }
 0x2aa   : > { %v2121_v0 = vpack.c.bf16 %v2073_v59, %v2072_v24 }
 0x2ab   : > { %v1325_v30 = vpop.permute.xlu1 %1324  ;;  %v2568_v25 = vmax.f32 %v2328_v41, 0.0  ;;  %v2567_v10 = vmax.f32 %v2325_v23, 0.0  ;;  %v2630_v40 = vpack.c.bf16 %v2570_v28, %v2569_v38  ;;  %v20045_v59 = vpop.permute.xlu0 %1014 }
 0x2ac   : > { %17602 = vmatmul.mubr.msk.bf16.gmra.mxu0 %vm2177_vm0, %v2121_v0  ;;  %v1487_v31 = vmul.f32 %v19529_v50, %v1325_v30 }
 0x2ad   : > { %17892 = vset.pattern.permute.xlu1 %v18969_v2  ;;  %v2629_v49 = vpack.c.bf16 %v2568_v25, %v2567_v10 }
 0x2ae   : > { %1764 = vperm.xlu1 %17892, %v19743_v17   ;;  %v20025_v17 = vld [vmem:[%s21680_s17 + $0x180] sm:$0xff]  ;;  %v1551_v33 = vadd.f32 %v1487_v31, %v1163_v27 }
 0x2af   : > { %2810 = vmatmul.mubr.bf16.gmra.mxu1 %v2628_v16  ;;  %v1329_v56 = vpop.permute.xlu1 %1328  ;;  %v20060_v10 = vpop.permute.xlu0 %1019 }
 0x2b0   : > { %2819 = vmatprep.mubr.bf16.mxu1 %v18971_v5  ;;  %v1488_v9 = vmul.f32 %v19529_v50, %v1329_v56 }
 0x2b2   : > { %1768 = vperm.xlu1 %17892, %v19754_v21   ;;  %v1876_v21 = vmul.f32 %v19534_v52, %v19864_v18  ;;  %v1552_v20 = vadd.f32 %v1488_v9, %v1164_v26  ;;  %v1489_v18 = vmul.f32 %v19529_v50, %v19738_v12  ;;  %v793_v12 = vld [vmem:[%s21680_s17 + $0x198] sm:$0xff] }
 0x2b3   : > { %v20068_v27 = vpop.permute.xlu0 %1029 }
 0x2b4   : > { %v985_v37 = vpop.permute.xlu1 %984  ;;  %v1940_v29 = vadd.f32 %v1876_v21, %v1552_v20  ;;  %v1553_v30 = vadd.f32 %v1489_v18, %v1165_v57 }
 0x2b5   : > { %v1166_v25 = vmul.f32 %v19537_v53, %v985_v37 }
 0x2b6   : > { %17893 = vset.pattern.permute.xlu1 %v18971_v5  ;;  %v2011_v36 = vadd.f32 %v19988_v48, %v1940_v29 }
 0x2b7   : > { %2820 = vmatmul.mubr.bf16.gmra.mxu1 %v2629_v49  ;;  %1049 = vperm.xlu1 %17893, %v20025_v17  }
 0x2b8   : > { %2829 = vmatprep.mubr.bf16.mxu1 %v18971_v5  ;;  %v2075_v56 = vmax.f32 %v2011_v36, 0.0 }
 0x2b9   : > { %v1337_v54 = vpop.permute.xlu1 %1336 }
 0x2ba   : > { %v1490_v16 = vmul.f32 %v19529_v50, %v1337_v54 }
 0x2bb   : > { %17894 = vset.pattern.permute.xlu1 %v18970_v3 }
 0x2bc   : > { %1388 = vperm.xlu1 %17894, %v20025_v17   ;;  %v1554_v62 = vadd.f32 %v1490_v16, %v1166_v25 }
 0x2be   : > { %v1713_v6 = vpop.permute.xlu1 %1712 }
 0x2bf   : > { %v1875_v24 = vmul.f32 %v19534_v52, %v1713_v6  ;;  %v17583_v22 = vpop.f32.mrf.mxu0  ;;  %2830 = vmatmul.mubr.bf16.gmra.mxu1 %v2630_v40 }
 0x2c0   : > { %1392 = vperm.xlu1 %17894, %v19659_v34   ;;  %2839 = vmatprep.mubr.bf16.mxu1 %v18971_v5  ;;  %v2349_v18 = vadd.f32 %v17583_v22, %v19974_v4  ;;  %v17963_v22 = vld [vmem:[%s21680_s17 + $0x190] sm:$0xff] }
 0x2c1   : > { %v1939_v19 = vadd.f32 %v1875_v24, %v1551_v33  ;;  %v2340_v0 = vpop.f32.mrf.mxu0 }
 0x2c2   : > { %v1721_v14 = vpop.permute.xlu1 %1720  ;;  %v2341_v34 = vadd.f32 %v19974_v4, %v2340_v0 }
 0x2c3   : > { %v2010_v41 = vadd.f32 %v19988_v48, %v1939_v19  ;;  %v1877_v60 = vmul.f32 %v19534_v52, %v1721_v14  ;;  %v17584_v23 = vpop.f32.mrf.mxu0  ;;  %v2573_v19 = vmax.f32 %v2349_v18, 0.0  ;;  %v20075_v14 = vpop.permute.xlu0 %1054 }
 0x2c4   : > { %17896 = vset.pattern.permute.xlu1 %v18971_v5  ;;  %v2571_v20 = vmax.f32 %v2341_v34, 0.0  ;;  %v2352_v37 = vadd.f32 %v17584_v23, %v19974_v4 }
 0x2c5   : > { %v2074_v55 = vmax.f32 %v2010_v41, 0.0  ;;  %v1941_v32 = vadd.f32 %v1877_v60, %v1553_v30  ;;  %v2343_v26 = vpop.f32.mrf.mxu0  ;;  %1064 = vperm.xlu1 %17896, %v793_v12   ;;  %v1167_v60 = vmul.f32 %v19537_v53, %v20036_v42 }
 0x2c6   : > { %v2344_v9 = vadd.f32 %v19974_v4, %v2343_v26  ;;  %v1725_v49 = vpop.permute.xlu1 %1724  ;;  %v2574_v24 = vmax.f32 %v2352_v37, 0.0 }
 0x2c7   : > { %v1878_v21 = vmul.f32 %v19534_v52, %v1725_v49  ;;  %v2122_v28 = vpack.c.bf16 %v2075_v56, %v2074_v55  ;;  %v2012_v38 = vadd.f32 %v19988_v48, %v1941_v32  ;;  %v20082_v41 = vpop.permute.xlu0 %1059  ;;  %v1879_v56 = vmul.f32 %v19534_v52, %v19882_v13 }
 0x2c8   : > { %v2572_v54 = vmax.f32 %v2344_v9, 0.0  ;;  %v2632_v30 = vpack.c.bf16 %v2574_v24, %v2573_v19 }
 0x2c9   : > { %v1942_v31 = vadd.f32 %v1878_v21, %v1554_v62  ;;  %17897 = vset.pattern.permute.xlu1 %v18970_v3  ;;  %17605 = vmatprep.mubr.msk.bf16.mxu0 %vm2177_vm0, %v2122_v28  ;;  %v2076_v33 = vmax.f32 %v2012_v38, 0.0  ;;  %v1882_v62 = vmul.f32 %v19534_v52, %v19895_v51 }
 0x2ca   : > { %1400 = vperm.xlu1 %17897, %v793_v12   ;;  %v2631_v40 = vpack.c.bf16 %v2572_v54, %v2571_v20 }
 0x2cb   : > { %v2013_v29 = vadd.f32 %v19988_v48, %v1942_v31  ;;  %v995_v6 = vpop.permute.xlu1 %994  ;;  %v1345_v34 = vpop.permute.xlu0 %1344 }
 0x2cc   : > { %2840 = vmatmul.mubr.bf16.gmra.mxu1 %v2631_v40  ;;  %v1168_v26 = vmul.f32 %v19537_v53, %v995_v6 }
 0x2cd   : > { %v2077_v57 = vmax.f32 %v2013_v29, 0.0  ;;  %2849 = vmatprep.mubr.bf16.mxu1 %v18971_v5 }
 0x2ce   : > { %17898 = vset.pattern.permute.xlu1 %v18969_v2 }
 0x2cf   : > { %1776 = vperm.xlu1 %17898, %v20025_v17   ;;  %v2123_v36 = vpack.c.bf16 %v2077_v57, %v2076_v33  ;;  %v1349_v49 = vpop.permute.xlu0 %1348 }
 0x2d0   : > { %v1341_v0 = vpop.permute.xlu1 %1340  ;;  %v1493_v38 = vmul.f32 %v19529_v50, %v1349_v49 }
 0x2d1   : > { %17606 = vmatmul.mubr.msk.bf16.gmra.mxu0 %vm2177_vm0, %v2123_v36  ;;  %v1491_v23 = vmul.f32 %v19529_v50, %v1341_v0 }
 0x2d3   : > { %1784 = vperm.xlu1 %17898, %v17963_v22   ;;  %v1555_v25 = vadd.f32 %v1491_v23, %v1167_v60 }
 0x2d4   : > { %2850 = vmatmul.mubr.bf16.gmra.mxu1 %v2632_v30 }
 0x2d5   : > { %v1000_v16 = vpop.permute.xlu1 %999  ;;  %2859 = vmatprep.mubr.bf16.mxu1 %v18971_v5  ;;  %v1943_v13 = vadd.f32 %v1879_v56, %v1555_v25 }
 0x2d6   : > { %v1169_v31 = vmul.f32 %v19537_v53, %v1000_v16 }
 0x2d7   : > { %1788 = vperm.xlu1 %17898, %v793_v12   ;;  %v1492_v12 = vmul.f32 %v19529_v50, %v1345_v34 }
 0x2d8   : > { %v1557_v24 = vadd.f32 %v1493_v38, %v1169_v31 }
 0x2d9   : > { %v1005_v17 = vpop.permute.xlu1 %1004  ;;  %v1556_v54 = vadd.f32 %v1492_v12, %v1168_v26 }
 0x2da   : > { %v1170_v42 = vmul.f32 %v19537_v53, %v1005_v17 }
 0x2db   : > { %17899 = vset.pattern.permute.xlu1 %v18971_v5 }
 0x2dc   : > { %1074 = vperm.xlu1 %17899, %v19775_v43  }
 0x2de   : > { %v1353_v55 = vpop.permute.xlu1 %1352 }
 0x2df   : > { %v1494_v32 = vmul.f32 %v19529_v50, %v1353_v55 }
 0x2e0   : > { %v17587_v9 = vpop.f32.mrf.mxu0  ;;  %17900 = vset.pattern.permute.xlu1 %v18970_v3 }
 0x2e1   : > { %1404 = vperm.xlu1 %17900, %v19857_v45   ;;  %v1558_v21 = vadd.f32 %v1494_v32, %v1170_v42  ;;  %v2014_v45 = vadd.f32 %v19988_v48, %v1943_v13  ;;  %v2365_v32 = vadd.f32 %v17587_v9, %v19974_v4 }
 0x2e2   : > { %v2356_v28 = vpop.f32.mrf.mxu0 }
 0x2e3   : > { %v1733_v20 = vpop.permute.xlu1 %1732  ;;  %v2357_v29 = vadd.f32 %v19974_v4, %v2356_v28  ;;  %v1946_v6 = vadd.f32 %v1882_v62, %v1558_v21  ;;  %v2078_v22 = vmax.f32 %v2014_v45, 0.0  ;;  %v2577_v62 = vmax.f32 %v2365_v32, 0.0 }
 0x2e4   : > { %v1880_v37 = vmul.f32 %v19534_v52, %v1733_v20  ;;  %v17588_v40 = vpop.f32.mrf.mxu0  ;;  %v1172_v20 = vmul.f32 %v19537_v53, %v20045_v59  ;;  %v1173_v59 = vmul.f32 %v19537_v53, %v20060_v10 }
 0x2e5   : > { %17901 = vset.pattern.permute.xlu1 %v18971_v5  ;;  %v2575_v0 = vmax.f32 %v2357_v29, 0.0  ;;  %v2017_v16 = vadd.f32 %v19988_v48, %v1946_v6  ;;  %v2368_v23 = vadd.f32 %v17588_v40, %v19974_v4 }
 0x2e6   : > { %v1944_v51 = vadd.f32 %v1880_v37, %v1556_v54  ;;  %v2359_v18 = vpop.f32.mrf.mxu0  ;;  %1079 = vperm.xlu1 %17901, %v19785_v15  }
 0x2e7   : > { %v2360_v33 = vadd.f32 %v19974_v4, %v2359_v18  ;;  %v1737_v57 = vpop.permute.xlu1 %1736  ;;  %v2081_v12 = vmax.f32 %v2017_v16, 0.0  ;;  %v2578_v42 = vmax.f32 %v2368_v23, 0.0 }
 0x2e8   : > { %v2015_v36 = vadd.f32 %v19988_v48, %v1944_v51  ;;  %v1881_v19 = vmul.f32 %v19534_v52, %v1737_v57 }
 0x2e9   : > { %v2576_v30 = vmax.f32 %v2360_v33, 0.0  ;;  %v2634_v21 = vpack.c.bf16 %v2578_v42, %v2577_v62 }
 0x2ea   : > { %v2079_v17 = vmax.f32 %v2015_v36, 0.0  ;;  %v1945_v60 = vadd.f32 %v1881_v19, %v1557_v24  ;;  %1084 = vperm.xlu1 %17901, %v19872_v63  }
 0x2eb   : > { %v2633_v34 = vpack.c.bf16 %v2576_v30, %v2575_v0  ;;  %v801_v0 = vld [vmem:[%s21680_s17 + $0x1d8] sm:$0xff] }
 0x2ec   : > { %v2124_v56 = vpack.c.bf16 %v2079_v17, %v2078_v22  ;;  %v2016_v25 = vadd.f32 %v19988_v48, %v1945_v60  ;;  %v1010_v55 = vpop.permute.xlu1 %1009 }
 0x2ed   : > { %2860 = vmatmul.mubr.bf16.gmra.mxu1 %v2633_v34  ;;  %v1171_v40 = vmul.f32 %v19537_v53, %v1010_v55 }
 0x2ee   : > { %v2080_v26 = vmax.f32 %v2016_v25, 0.0  ;;  %17903 = vset.pattern.permute.xlu1 %v18970_v3  ;;  %17609 = vmatprep.mubr.msk.bf16.mxu0 %vm2177_vm0, %v2124_v56 }
 0x2ef   : > { %1416 = vperm.xlu1 %17903, %v19872_v63   ;;  %2869 = vmatprep.mubr.bf16.mxu1 %v18971_v5  ;;  %v20126_v63 = vld [vmem:[%s21680_s17 + $0x1c0] sm:$0xff] }
 0x2f0   : > { %v2125_v49 = vpack.c.bf16 %v2081_v12, %v2080_v26  ;;  %v17946_v26 = vld [vmem:[#allocation14 + $0x38] sm:$0xff]  }
 0x2f1   : > { %v1357_v13 = vpop.permute.xlu1 %1356  ;;  %3448 = vmatpush1.bf16.msra.mxu0 %v17946_v26 }
 0x2f2   : > { %17610 = vmatmul.mubr.msk.bf16.gmra.mxu0 %vm2177_vm0, %v2125_v49  ;;  %v1495_v37 = vmul.f32 %v19529_v50, %v1357_v13  ;;  %3449 = vmatprep.subr.bf16.mxu0 %v18971_v5 }
 0x2f3   : > { %17904 = vset.pattern.permute.xlu1 %v18969_v2 }
 0x2f4   : > { %1796 = vperm.xlu1 %17904, %v19775_v43   ;;  %v1365_v43 = vpop.permute.xlu0 %1364  ;;  %v1559_v18 = vadd.f32 %v1495_v37, %v1171_v40 }
 0x2f5   : > { %2870 = vmatmul.mubr.bf16.gmra.mxu1 %v2634_v21  ;;  %v1361_v9 = vpop.permute.xlu1 %1360  ;;  %v1497_v45 = vmul.f32 %v19529_v50, %v1365_v43 }
 0x2f6   : > { %2879 = vmatprep.mubr.bf16.mxu1 %v18971_v5  ;;  %v1496_v54 = vmul.f32 %v19529_v50, %v1361_v9 }
 0x2f7   : > { %v1561_v24 = vadd.f32 %v1497_v45, %v1173_v59  ;;  %v17948_v45 = vld [vmem:[#allocation14 + $0x28] sm:$0xff]  }
 0x2f8   : > { %1800 = vperm.xlu1 %17904, %v19785_v15   ;;  %v1560_v38 = vadd.f32 %v1496_v54, %v1172_v20  ;;  %v1884_v15 = vmul.f32 %v19534_v52, %v19903_v58  ;;  %v20142_v6 = vpop.permute.xlu0 %1376 }
 0x2fa   : > { %v1025_v28 = vpop.permute.xlu1 %1024  ;;  %v1948_v29 = vadd.f32 %v1884_v15, %v1560_v38  ;;  %v17947_v38 = vld [vmem:[#allocation14 + $0x30] sm:$0xff]  }
 0x2fb   : > { %v1174_v34 = vmul.f32 %v19537_v53, %v1025_v28  ;;  %3450 = vmatpush1.bf16.msra.mxu0 %v17947_v38 }
 0x2fc   : > { %17905 = vset.pattern.permute.xlu1 %v18971_v5  ;;  %v2019_v57 = vadd.f32 %v19988_v48, %v1948_v29  ;;  %v20152_v16 = vpop.permute.xlu0 %1380  ;;  %3451 = vmatprep.subr.bf16.mxu0 %v18971_v5 }
 0x2fd   : > { %1089 = vperm.xlu1 %17905, %v20126_v63  }
 0x2fe   : > { %v2083_v23 = vmax.f32 %v2019_v57, 0.0 }
 0x2ff   : > { %v1369_v31 = vpop.permute.xlu1 %1368  ;;  %3452 = vmatpush1.bf16.msra.mxu0 %v17948_v45 }
 0x300   : > { %v1498_v30 = vmul.f32 %v19529_v50, %v1369_v31  ;;  %v20161_v20 = vpop.permute.xlu0 %1396  ;;  %3453 = vmatprep.subr.bf16.mxu0 %v18971_v5 }
 0x301   : > { %17906 = vset.pattern.permute.xlu1 %v18970_v3 }
 0x302   : > { %1420 = vperm.xlu1 %17906, %v20126_v63   ;;  %v1562_v42 = vadd.f32 %v1498_v30, %v1174_v34  ;;  %v1175_v30 = vmul.f32 %v19537_v53, %v20068_v27  ;;  %v1500_v27 = vmul.f32 %v19529_v50, %v20142_v6  ;;  %v1501_v6 = vmul.f32 %v19529_v50, %v20152_v16  ;;  %v17954_v16 = vld [vmem:[#allocation14 + $0x78] sm:$0xff]  }
 0x304   : > { %v1745_v51 = vpop.permute.xlu1 %1744 }
 0x305   : > { %v1883_v58 = vmul.f32 %v19534_v52, %v1745_v51  ;;  %v17591_v33 = vpop.f32.mrf.mxu0 }
 0x306   : > { %1424 = vperm.xlu1 %17906, %v19887_v7   ;;  %v2381_v37 = vadd.f32 %v17591_v33, %v19974_v4 }
 0x307   : > { %v1947_v36 = vadd.f32 %v1883_v58, %v1559_v18  ;;  %v2372_v19 = vpop.f32.mrf.mxu0  ;;  %v20172_v18 = vpop.permute.xlu0 %1408 }
 0x308   : > { %v1753_v10 = vpop.permute.xlu1 %1752  ;;  %v2373_v7 = vadd.f32 %v19974_v4, %v2372_v19  ;;  %v2581_v58 = vmax.f32 %v2381_v37, 0.0 }
 0x309   : > { %v2018_v22 = vadd.f32 %v19988_v48, %v1947_v36  ;;  %v1885_v17 = vmul.f32 %v19534_v52, %v1753_v10  ;;  %v17592_v60 = vpop.f32.mrf.mxu0 }
 0x30a   : > { %17907 = vset.pattern.permute.xlu1 %v18971_v5  ;;  %v2579_v13 = vmax.f32 %v2373_v7, 0.0  ;;  %v2384_v54 = vadd.f32 %v17592_v60, %v19974_v4 }
 0x30b   : > { %v2082_v56 = vmax.f32 %v2018_v22, 0.0  ;;  %v1949_v25 = vadd.f32 %v1885_v17, %v1561_v24  ;;  %v2375_v55 = vpop.f32.mrf.mxu0  ;;  %1104 = vperm.xlu1 %17907, %v801_v0   ;;  %v17949_v24 = vld [vmem:[#allocation14 + $0x20] sm:$0xff]   ;;  %v20178_v36 = vpop.permute.xlu0 %1412  ;;  %v17951_v22 = vld [vmem:[#allocation14 + $0x10] sm:$0xff]  }
 0x30c   : > { %v2376_v32 = vadd.f32 %v19974_v4, %v2375_v55  ;;  %v1757_v12 = vpop.permute.xlu1 %1756  ;;  %v2582_v29 = vmax.f32 %v2384_v54, 0.0  ;;  %3454 = vmatpush1.bf16.msra.mxu0 %v17949_v24 }
 0x30d   : > { %v2126_v49 = vpack.c.bf16 %v2083_v23, %v2082_v56  ;;  %v1886_v62 = vmul.f32 %v19534_v52, %v1757_v12  ;;  %v2020_v9 = vadd.f32 %v19988_v48, %v1949_v25  ;;  %3455 = vmatprep.subr.bf16.mxu0 %v18971_v5  ;;  %v17952_v23 = vld [vmem:[#allocation14 + $0x8] sm:$0xff]  }
 0x30e   : > { %v2580_v21 = vmax.f32 %v2376_v32, 0.0  ;;  %v2636_v33 = vpack.c.bf16 %v2582_v29, %v2581_v58 }
 0x30f   : > { %v1950_v28 = vadd.f32 %v1886_v62, %v1562_v42  ;;  %17908 = vset.pattern.permute.xlu1 %v18970_v3  ;;  %17613 = vmatprep.mubr.msk.bf16.mxu0 %vm2177_vm0, %v2126_v49  ;;  %v2084_v59 = vmax.f32 %v2020_v9, 0.0  ;;  %v1761_v17 = vpop.permute.xlu0 %1760  ;;  %v17953_v62 = vld [vmem:[#allocation14] sm:$0xff]  }
 0x310   : > { %1432 = vperm.xlu1 %17908, %v801_v0   ;;  %v2635_v43 = vpack.c.bf16 %v2580_v21, %v2579_v13 }
 0x311   : > { %v2021_v31 = vadd.f32 %v19988_v48, %v1950_v28  ;;  %v1035_v15 = vpop.permute.xlu1 %1034 }
 0x312   : > { %2880 = vmatmul.mubr.bf16.gmra.mxu1 %v2635_v43  ;;  %v1176_v25 = vmul.f32 %v19537_v53, %v1035_v15 }
 0x313   : > { %v2085_v40 = vmax.f32 %v2021_v31, 0.0  ;;  %2889 = vmatprep.mubr.bf16.mxu1 %v18971_v5  ;;  %v1773_v56 = vpop.permute.xlu0 %1772 }
 0x314   : > { %17909 = vset.pattern.permute.xlu1 %v18969_v2  ;;  %v1890_v42 = vmul.f32 %v19534_v52, %v1773_v56  ;;  %v1564_v21 = vadd.f32 %v1500_v27, %v1176_v25 }
 0x315   : > { %v2127_v51 = vpack.c.bf16 %v2085_v40, %v2084_v59  ;;  %1808 = vperm.xlu1 %17909, %v20126_v63   ;;  %v17950_v63 = vld [vmem:[#allocation14 + $0x18] sm:$0xff]  }
 0x316   : > { %v1373_v57 = vpop.permute.xlu1 %1372  ;;  %3456 = vmatpush1.bf16.msra.mxu0 %v17950_v63  ;;  %v17955_v63 = vld [vmem:[#allocation14 + $0x70] sm:$0xff]  }
 0x317   : > { %17614 = vmatmul.mubr.msk.bf16.gmra.mxu0 %vm2177_vm0, %v2127_v51  ;;  %3457 = vmatprep.subr.bf16.mxu0 %v18971_v5 }
 0x319   : > { %1816 = vperm.xlu1 %17909, %v19945_v61   ;;  %v1499_v61 = vmul.f32 %v19529_v50, %v1373_v57 }
 0x31a   : > { %2890 = vmatmul.mubr.bf16.gmra.mxu1 %v2636_v33  ;;  %3458 = vmatpush1.bf16.msra.mxu0 %v17951_v22 }
 0x31b   : > { %v1040_v19 = vpop.permute.xlu1 %1039  ;;  %2899 = vmatprep.mubr.bf16.mxu1 %v18971_v5  ;;  %3459 = vmatprep.subr.bf16.mxu0 %v18971_v5  ;;  %v1563_v60 = vadd.f32 %v1499_v61, %v1175_v30 }
 0x31c   : > { %v1177_v9 = vmul.f32 %v19537_v53, %v1040_v19 }
 0x31d   : > { %1820 = vperm.xlu1 %17909, %v801_v0   ;;  %v1887_v0 = vmul.f32 %v19534_v52, %v1761_v17 }
 0x31e   : > { %3460 = vmatpush1.bf16.msra.mxu0 %v17952_v23  ;;  %v1565_v40 = vadd.f32 %v1501_v6, %v1177_v9  ;;  %v17956_v23 = vld [vmem:[#allocation14 + $0x68] sm:$0xff]  }
 0x31f   : > { %v1045_v10 = vpop.permute.xlu1 %1044  ;;  %3461 = vmatprep.subr.bf16.mxu0 %v18971_v5  ;;  %v1951_v12 = vadd.f32 %v1887_v0, %v1563_v60 }
 0x320   : > { %v1178_v55 = vmul.f32 %v19537_v53, %v1045_v10 }
 0x321   : > { %17912 = vset.pattern.permute.xlu1 %v18971_v5  ;;  %v2022_v43 = vadd.f32 %v19988_v48, %v1951_v12 }
 0x322   : > { %1114 = vperm.xlu1 %17912, %v19982_v1   ;;  %3462 = vmatpush1.bf16.msra.mxu0 %v17953_v62 }
 0x323   : > { %3463 = vmatprep.subr.bf16.mxu0 %v18971_v5  ;;  %v2086_v57 = vmax.f32 %v2022_v43, 0.0 }
 0x324   : > { %v1385_v7 = vpop.permute.xlu1 %1384 }
 0x325   : > { %v1502_v34 = vmul.f32 %v19529_v50, %v1385_v7 }
 0x326   : > { %v17595_v32 = vpop.f32.mrf.mxu0  ;;  %17913 = vset.pattern.permute.xlu1 %v18970_v3  ;;  %3464 = vmatpush2.bf16.msra.mxu0 %v17954_v16 }
 0x327   : > { %1436 = vperm.xlu1 %17913, %v19951_v11   ;;  %v1566_v26 = vadd.f32 %v1502_v34, %v1178_v55  ;;  %3465 = vmatprep.subr.bf16.mxu0 %v18971_v5  ;;  %v2397_v60 = vadd.f32 %v17595_v32, %v19974_v4  ;;  %v17957_v55 = vld [vmem:[#allocation14 + $0x60] sm:$0xff]  }
 0x328   : > { %v2388_v49 = vpop.f32.mrf.mxu0 }
 0x329   : > { %v1765_v13 = vpop.permute.xlu1 %1764  ;;  %v2389_v11 = vadd.f32 %v19974_v4, %v2388_v49  ;;  %v1954_v38 = vadd.f32 %v1890_v42, %v1566_v26  ;;  %v2585_v27 = vmax.f32 %v2397_v60, 0.0  ;;  %v17959_v26 = vld [vmem:[#allocation14 + $0x50] sm:$0xff]   ;;  %v17960_v49 = vld [vmem:[#allocation14 + $0x48] sm:$0xff]  }
 0x32a   : > { %v1888_v28 = vmul.f32 %v19534_v52, %v1765_v13  ;;  %v17596_v54 = vpop.f32.mrf.mxu0  ;;  %3466 = vmatpush2.bf16.msra.mxu0 %v17955_v63 }
 0x32b   : > { %17914 = vset.pattern.permute.xlu1 %v18971_v5  ;;  %v2583_v51 = vmax.f32 %v2389_v11, 0.0  ;;  %v2025_v33 = vadd.f32 %v19988_v48, %v1954_v38  ;;  %v2400_v10 = vadd.f32 %v17596_v54, %v19974_v4  ;;  %3467 = vmatprep.subr.bf16.mxu0 %v18971_v5  ;;  %v1505_v11 = vmul.f32 %v19529_v50, %v20161_v20 }
 0x32c   : > { %v1952_v31 = vadd.f32 %v1888_v28, %v1564_v21  ;;  %v2391_v15 = vpop.f32.mrf.mxu0  ;;  %1119 = vperm.xlu1 %17914, %v19995_v8   ;;  %v17961_v21 = vld [vmem:[#allocation14 + $0x40] sm:$0xff]  }
 0x32d   : > { %v2392_v37 = vadd.f32 %v19974_v4, %v2391_v15  ;;  %v1769_v59 = vpop.permute.xlu1 %1768  ;;  %v2089_v0 = vmax.f32 %v2025_v33, 0.0  ;;  %v2586_v34 = vmax.f32 %v2400_v10, 0.0 }
 0x32e   : > { %v2023_v29 = vadd.f32 %v19988_v48, %v1952_v31  ;;  %v1889_v45 = vmul.f32 %v19534_v52, %v1769_v59  ;;  %3468 = vmatpush2.bf16.msra.mxu0 %v17956_v23 }
 0x32f   : > { %v2584_v58 = vmax.f32 %v2392_v37, 0.0  ;;  %3469 = vmatprep.subr.bf16.mxu0 %v18971_v5  ;;  %v2638_v32 = vpack.c.bf16 %v2586_v34, %v2585_v27 }
 0x330   : > { %v2087_v24 = vmax.f32 %v2023_v29, 0.0  ;;  %v1953_v19 = vadd.f32 %v1889_v45, %v1565_v40  ;;  %1124 = vperm.xlu1 %17914, %v20017_v35  }
 0x331   : > { %v2637_v30 = vpack.c.bf16 %v2584_v58, %v2583_v51 }
 0x332   : > { %v2128_v61 = vpack.c.bf16 %v2087_v24, %v2086_v57  ;;  %v2024_v22 = vadd.f32 %v19988_v48, %v1953_v19  ;;  %v1050_v17 = vpop.permute.xlu1 %1049  ;;  %3470 = vmatpush2.bf16.msra.mxu0 %v17957_v55 }
 0x333   : > { %2900 = vmatmul.mubr.bf16.gmra.mxu1 %v2637_v30  ;;  %3471 = vmatprep.subr.bf16.mxu0 %v18971_v5  ;;  %v1179_v9 = vmul.f32 %v19537_v53, %v1050_v17 }
 0x334   : > { %v2088_v7 = vmax.f32 %v2024_v22, 0.0  ;;  %17915 = vset.pattern.permute.xlu1 %v18970_v3  ;;  %17617 = vmatprep.mubr.msk.bf16.mxu0 %vm2177_vm0, %v2128_v61 }
 0x335   : > { %1448 = vperm.xlu1 %17915, %v20017_v35   ;;  %2909 = vmatprep.mubr.bf16.mxu1 %v18971_v5  ;;  %v17958_v35 = vld [vmem:[#allocation14 + $0x58] sm:$0xff]  }
 0x336   : > { %v2129_v56 = vpack.c.bf16 %v2089_v0, %v2088_v7  ;;  %3472 = vmatpush2.bf16.msra.mxu0 %v17958_v35 }
 0x337   : > { %v1389_v25 = vpop.permute.xlu1 %1388  ;;  %3473 = vmatprep.subr.bf16.mxu0 %v18971_v5 }
 0x338   : > { %17618 = vmatmul.mubr.msk.bf16.gmra.mxu0 %vm2177_vm0, %v2129_v56 }
 0x339   : > { %17917 = vset.pattern.permute.xlu1 %v18969_v2  ;;  %v1781_v2 = vpop.permute.xlu0 %1780 }
 0x33a   : > { %1828 = vperm.xlu1 %17917, %v19982_v1   ;;  %3474 = vmatpush2.bf16.msra.mxu0 %v17959_v26  ;;  %v1180_v1 = vmul.f32 %v19537_v53, %v20075_v14  ;;  %v1892_v13 = vmul.f32 %v19534_v52, %v1781_v2  ;;  %v1181_v14 = vmul.f32 %v19537_v53, %v20082_v41 }
 0x33b   : > { %2910 = vmatmul.mubr.bf16.gmra.mxu1 %v2638_v32  ;;  %v1393_v3 = vpop.permute.xlu1 %1392  ;;  %3475 = vmatprep.subr.bf16.mxu0 %v18971_v5 }
 0x33c   : > { %2919 = vmatprep.mubr.bf16.mxu1 %v18971_v5  ;;  %v1504_v42 = vmul.f32 %v19529_v50, %v1393_v3  ;;  %v1569_v40 = vadd.f32 %v1505_v11, %v1181_v14 }
 0x33d   : > { %v1793_v19 = vpop.permute.xlu0 %1792 }
 0x33e   : > { %1832 = vperm.xlu1 %17917, %v19995_v8   ;;  %v1568_v62 = vadd.f32 %v1504_v42, %v1180_v1  ;;  %3476 = vmatpush2.bf16.msra.mxu0 %v17960_v49  ;;  %v1503_v8 = vmul.f32 %v19529_v50, %v1389_v25 }
 0x33f   : > { %3477 = vmatprep.subr.bf16.mxu0 %v18971_v5 }
 0x340   : > { %v1065_v12 = vpop.permute.xlu1 %1064  ;;  %v1956_v28 = vadd.f32 %v1892_v13, %v1568_v62  ;;  %v1567_v43 = vadd.f32 %v1503_v8, %v1179_v9 }
 0x341   : > { %v1182_v57 = vmul.f32 %v19537_v53, %v1065_v12  ;;  %v1805_v25 = vpop.permute.xlu0 %1804 }
 0x342   : > { %3478 = vmatpush2.bf16.msra.mxu0 %v17961_v21  ;;  %v2027_v15 = vadd.f32 %v19988_v48, %v1956_v28 }
 0x344   : > { %v2091_v20 = vmax.f32 %v2027_v15, 0.0 }
 0x345   : > { %v1401_v6 = vpop.permute.xlu1 %1400  ;;  %v20257_v1 = vpop.permute.xlu0 %1812 }
 0x346   : > { %v1506_v29 = vmul.f32 %v19529_v50, %v1401_v6 }
 0x348   : > { %v1570_v61 = vadd.f32 %v1506_v29, %v1182_v57 }
 0x349   : > { %v1070_v13 = vpop.permute.xlu0 %1069 }
 0x34a   : > { %v1777_v54 = vpop.permute.xlu1 %1776  ;;  %v1183_v8 = vmul.f32 %v19537_v53, %v1070_v13 }
 0x34b   : > { %v1891_v38 = vmul.f32 %v19534_v52, %v1777_v54  ;;  %v17599_v31 = vpop.f32.mrf.mxu0  ;;  %v1895_v54 = vmul.f32 %v19534_v52, %v1793_v19 }
 0x34c   : > { %v2413_v32 = vadd.f32 %v17599_v31, %v19974_v4 }
 0x34d   : > { %v1955_v16 = vadd.f32 %v1891_v38, %v1567_v43  ;;  %v2404_v37 = vpop.f32.mrf.mxu0 }
 0x34e   : > { %v1785_v59 = vpop.permute.xlu1 %1784  ;;  %v2405_v58 = vadd.f32 %v19974_v4, %v2404_v37  ;;  %v2589_v42 = vmax.f32 %v2413_v32, 0.0 }
 0x34f   : > { %v2026_v45 = vadd.f32 %v19988_v48, %v1955_v16  ;;  %v1893_v51 = vmul.f32 %v19534_v52, %v1785_v59  ;;  %v17600_v41 = vpop.f32.mrf.mxu0  ;;  %v1508_v59 = vmul.f32 %v19529_v50, %v20172_v18  ;;  %v1509_v18 = vmul.f32 %v19529_v50, %v20178_v36 }
 0x350   : > { %v2587_v60 = vmax.f32 %v2405_v58, 0.0  ;;  %v2416_v34 = vadd.f32 %v17600_v41, %v19974_v4 }
 0x351   : > { %v2090_v33 = vmax.f32 %v2026_v45, 0.0  ;;  %v1957_v24 = vadd.f32 %v1893_v51, %v1569_v40  ;;  %v2407_v63 = vpop.f32.mrf.mxu0  ;;  %v1898_v40 = vmul.f32 %v19534_v52, %v1805_v25 }
 0x352   : > { %v2408_v10 = vadd.f32 %v19974_v4, %v2407_v63  ;;  %v1789_v30 = vpop.permute.xlu1 %1788  ;;  %v2590_v12 = vmax.f32 %v2416_v34, 0.0 }
 0x353   : > { %v2130_v22 = vpack.c.bf16 %v2091_v20, %v2090_v33  ;;  %v1894_v17 = vmul.f32 %v19534_v52, %v1789_v30  ;;  %v2028_v7 = vadd.f32 %v19988_v48, %v1957_v24 }
 0x354   : > { %v2588_v0 = vmax.f32 %v2408_v10, 0.0  ;;  %v2640_v49 = vpack.c.bf16 %v2590_v12, %v2589_v42 }
 0x355   : > { %v1958_v23 = vadd.f32 %v1894_v17, %v1570_v61  ;;  %17621 = vmatprep.mubr.msk.bf16.mxu0 %vm2177_vm0, %v2130_v22  ;;  %v2092_v3 = vmax.f32 %v2028_v7, 0.0  ;;  %v20288_v17 = vld [vmem:[#allocation9] ss:$0 sm:$0xff] }
 0x356   : > { %v2639_v56 = vpack.c.bf16 %v2588_v0, %v2587_v60 }
 0x357   : > { %v2029_v27 = vadd.f32 %v19988_v48, %v1958_v23  ;;  %v1075_v55 = vpop.permute.xlu1 %1074 }
 0x358   : > { %2920 = vmatmul.mubr.bf16.gmra.mxu1 %v2639_v56  ;;  %v1184_v31 = vmul.f32 %v19537_v53, %v1075_v55 }
 0x359   : > { %v2093_v35 = vmax.f32 %v2029_v27, 0.0  ;;  %2929 = vmatprep.mubr.bf16.mxu1 %v18971_v5 }
 0x35a   : > { %v1572_v20 = vadd.f32 %v1508_v59, %v1184_v31 }
 0x35b   : > { %v2131_v26 = vpack.c.bf16 %v2093_v35, %v2092_v3 }
 0x35c   : > { %v1405_v2 = vpop.permute.xlu1 %1404 }
 0x35d   : > { %17622 = vmatmul.mubr.msk.bf16.gmra.mxu0 %vm2177_vm0, %v2131_v26  ;;  %v1507_v21 = vmul.f32 %v19529_v50, %v1405_v2  ;;  %v20297_v26 = vld [vmem:[#allocation6] ss:$0 sm:$0xff] }
 0x35f   : > { %v1571_v14 = vadd.f32 %v1507_v21, %v1183_v8 }
 0x360   : > { %2930 = vmatmul.mubr.bf16.gmra.mxu1 %v2640_v49 }
 0x361   : > { %v1080_v62 = vpop.permute.xlu1 %1079  ;;  %2939 = vmatprep.mubr.bf16.mxu1 %v18971_v5  ;;  %v1959_v29 = vadd.f32 %v1895_v54, %v1571_v14 }
 0x362   : > { %v1185_v57 = vmul.f32 %v19537_v53, %v1080_v62 }
 0x363   : > { %v2030_v10 = vadd.f32 %v19988_v48, %v1959_v29 }
 0x364   : > { %v1573_v7 = vadd.f32 %v1509_v18, %v1185_v57 }
 0x365   : > { %v1085_v6 = vpop.permute.xlu1 %1084  ;;  %v2094_v36 = vmax.f32 %v2030_v10, 0.0 }
 0x366   : > { %v1186_v15 = vmul.f32 %v19537_v53, %v1085_v6 }
 0x367   : > { %v20263_v9 = vpop.f32.mrf.mxu1 }
 0x369   : > { %v20265_v28 = vpop.f32.mrf.mxu1 }
 0x36a   : > { %v1417_v11 = vpop.permute.xlu1 %1416 }
 0x36b   : > { %v1510_v43 = vmul.f32 %v19529_v50, %v1417_v11  ;;  %v20269_v38 = vpop.f32.mrf.mxu1  ;;  %v1095_v11 = vpop.permute.xlu0 %1094 }
 0x36c   : > { %v17603_v16 = vpop.f32.mrf.mxu0  ;;  %v1188_v29 = vmul.f32 %v19537_v53, %v1095_v11 }
 0x36d   : > { %v20273_v37 = vpop.f32.mrf.mxu1  ;;  %v1574_v45 = vadd.f32 %v1510_v43, %v1186_v15  ;;  %v2429_v62 = vadd.f32 %v20288_v17, %v17603_v16 }
 0x36e   : > { %v2420_v51 = vpop.f32.mrf.mxu0 }
 0x36f   : > { %v20278_v41 = vpop.f32.mrf.mxu1  ;;  %v1797_v58 = vpop.permute.xlu1 %1796  ;;  %v2421_v19 = vadd.f32 %v19974_v4, %v2420_v51  ;;  %v1962_v30 = vadd.f32 %v1898_v40, %v1574_v45  ;;  %v2593_v54 = vmax.f32 %v2429_v62, 0.0 }
 0x370   : > { %v1896_v33 = vmul.f32 %v19534_v52, %v1797_v58  ;;  %v17604_v24 = vpop.f32.mrf.mxu0  ;;  %v1100_v16 = vpop.permute.xlu0 %1099 }
 0x371   : > { %v20283_v63 = vpop.f32.mrf.mxu1  ;;  %v2591_v56 = vmax.f32 %v2421_v19, 0.0  ;;  %v2033_v25 = vadd.f32 %v19988_v48, %v1962_v30  ;;  %v2432_v3 = vadd.f32 %v20288_v17, %v17604_v24  ;;  %v1900_v24 = vmul.f32 %v19534_v52, %v20257_v1 }
 0x372   : > { %v1960_v61 = vadd.f32 %v1896_v33, %v1572_v20  ;;  %v2423_v22 = vpop.f32.mrf.mxu0 }
 0x373   : > { %v2424_v60 = vadd.f32 %v20288_v17, %v2423_v22  ;;  %v1801_v0 = vpop.permute.xlu1 %1800  ;;  %v20292_v34 = vpop.f32.mrf.mxu1  ;;  %v2097_v13 = vmax.f32 %v2033_v25, 0.0  ;;  %v1189_v22 = vmul.f32 %v19537_v53, %v1100_v16 }
 0x374   : > { %v2031_v23 = vadd.f32 %v19988_v48, %v1960_v61  ;;  %v1897_v4 = vmul.f32 %v19534_v52, %v1801_v0  ;;  %v2594_v48 = vmax.f32 %v2432_v3, 0.0  ;;  %v20315_v51 = vpop.permute.xlu0 %1109 }
 0x375   : > { %v2592_v27 = vmax.f32 %v2424_v60, 0.0  ;;  %v20300_v2 = vpop.f32.mrf.mxu1 }
 0x376   : > { %v2095_v55 = vmax.f32 %v2031_v23, 0.0  ;;  %v1961_v32 = vadd.f32 %v1897_v4, %v1573_v7  ;;  %v2642_v43 = vpack.c.bf16 %v2594_v48, %v2593_v54 }
 0x377   : > { %v2641_v35 = vpack.c.bf16 %v2592_v27, %v2591_v56  ;;  %v20305_v21 = vpop.f32.mrf.mxu1 }
 0x378   : > { %v2132_v12 = vpack.c.bf16 %v2095_v55, %v2094_v36  ;;  %v2032_v42 = vadd.f32 %v20297_v26, %v1961_v32  ;;  %v1090_v49 = vpop.permute.xlu1 %1089  ;;  %v1429_v18 = vpop.permute.xlu0 %1428 }
 0x379   : > { %2940 = vmatmul.mubr.bf16.gmra.mxu1 %v2641_v35  ;;  %v20308_v31 = vpop.f32.mrf.mxu1  ;;  %v1187_v10 = vmul.f32 %v19537_v53, %v1090_v49  ;;  %v1513_v0 = vmul.f32 %v19529_v50, %v1429_v18 }
 0x37a   : > { %v2096_v6 = vmax.f32 %v2032_v42, 0.0  ;;  %17625 = vmatprep.mubr.msk.bf16.mxu0 %vm2177_vm0, %v2132_v12  ;;  %2949 = vmatprep.mubr.bf16.mxu1 %v18971_v5 }
 0x37b   : > { %v20311_v59 = vpop.f32.mrf.mxu1  ;;  %v1577_v25 = vadd.f32 %v1513_v0, %v1189_v22 }
 0x37c   : > { %v2133_v8 = vpack.c.bf16 %v2097_v13, %v2096_v6 }
 0x37d   : > { %v1421_v14 = vpop.permute.xlu1 %1420  ;;  %v20317_v58 = vpop.f32.mrf.mxu1 }
 0x37e   : > { %17626 = vmatmul.mubr.msk.bf16.gmra.mxu0 %vm2177_vm0, %v2133_v8  ;;  %v1511_v19 = vmul.f32 %v19529_v50, %v1421_v14 }
 0x37f   : > { %v20319_v33 = vpop.f32.mrf.mxu1 }
 0x380   : > { %v1575_v7 = vadd.f32 %v1511_v19, %v1187_v10 }
 0x381   : > { %2950 = vmatmul.mubr.bf16.gmra.mxu1 %v2642_v43  ;;  %v1425_v15 = vpop.permute.xlu1 %1424  ;;  %v20325_v61 = vpop.f32.mrf.mxu1 }
 0x382   : > { %2959 = vmatprep.mubr.bf16.mxu1 %v18971_v5  ;;  %v1512_v45 = vmul.f32 %v19529_v50, %v1425_v15 }
 0x383   : > { %v20331_v36 = vpop.f32.mrf.mxu1 }
 0x384   : > { %v1576_v20 = vadd.f32 %v1512_v45, %v1188_v29 }
 0x385   : > { %v20338_v48 = vpop.f32.mrf.mxu1 }
 0x386   : > { %v1105_v40 = vpop.permute.xlu1 %1104  ;;  %v1964_v30 = vadd.f32 %v1900_v24, %v1576_v20 }
 0x387   : > { %v1190_v62 = vmul.f32 %v19537_v53, %v1105_v40 }
 0x388   : > { %v2035_v56 = vadd.f32 %v20297_v26, %v1964_v30 }
 0x38a   : > { %v2099_v49 = vmax.f32 %v2035_v56, 0.0 }
 0x38b   : > { %v1433_v57 = vpop.permute.xlu1 %1432 }
 0x38c   : > { %v1514_v32 = vmul.f32 %v19529_v50, %v1433_v57  ;;  %v20342_v16 = vpop.f32.mrf.mxu1 }
 0x38e   : > { %v1578_v11 = vadd.f32 %v1514_v32, %v1190_v62  ;;  %v20348_v10 = vpop.f32.mrf.mxu1 }
 0x390   : > { %v1809_v60 = vpop.permute.xlu1 %1808  ;;  %v20352_v56 = vpop.f32.mrf.mxu1 }
 0x391   : > { %v1899_v23 = vmul.f32 %v19534_v52, %v1809_v60  ;;  %v17607_v4 = vpop.f32.mrf.mxu0 }
 0x392   : > { %v2445_v30 = vadd.f32 %v20288_v17, %v17607_v4 }
 0x393   : > { %v1963_v1 = vadd.f32 %v1899_v23, %v1575_v7  ;;  %v2436_v27 = vpop.f32.mrf.mxu0  ;;  %v1441_v23 = vpop.permute.xlu0 %1440 }
 0x394   : > { %v1817_v55 = vpop.permute.xlu1 %1816  ;;  %v2437_v12 = vadd.f32 %v20288_v17, %v2436_v27 }
 0x395   : > { %v2034_v3 = vadd.f32 %v20297_v26, %v1963_v1  ;;  %v17608_v35 = vpop.f32.mrf.mxu0  ;;  %v1901_v42 = vmul.f32 %v19534_v52, %v1817_v55  ;;  %v2597_v1 = vmax.f32 %v2445_v30, 0.0  ;;  %v20355_v55 = vpop.f32.mrf.mxu1 }
 0x396   : > { %v2595_v29 = vmax.f32 %v2437_v12, 0.0  ;;  %v2448_v40 = vadd.f32 %v20288_v17, %v17608_v35 }
 0x397   : > { %v2098_v13 = vmax.f32 %v2034_v3, 0.0  ;;  %v2439_v6 = vpop.f32.mrf.mxu0  ;;  %v1965_v8 = vadd.f32 %v1901_v42, %v1577_v25  ;;  %v1445_v32 = vpop.permute.xlu0 %1444 }
 0x398   : > { %v2440_v54 = vadd.f32 %v20288_v17, %v2439_v6  ;;  %v1821_v14 = vpop.permute.xlu1 %1820  ;;  %v2598_v0 = vmax.f32 %v2448_v40, 0.0  ;;  %v20358_v3 = vpop.f32.mrf.mxu1 }
 0x399   : > { %v2134_v43 = vpack.c.bf16 %v2099_v49, %v2098_v13  ;;  %v1902_v15 = vmul.f32 %v19534_v52, %v1821_v14  ;;  %v2036_v20 = vadd.f32 %v20297_v26, %v1965_v8  ;;  %v1191_v49 = vmul.f32 %v19537_v53, %v20315_v51 }
 0x39a   : > { %v2596_v45 = vmax.f32 %v2440_v54, 0.0  ;;  %v2644_v25 = vpack.c.bf16 %v2598_v0, %v2597_v1  ;;  %v20363_v62 = vpop.f32.mrf.mxu1 }
 0x39b   : > { %v1966_v57 = vadd.f32 %v1902_v15, %v1578_v11  ;;  %17629 = vmatprep.mubr.msk.bf16.mxu0 %vm2177_vm0, %v2134_v43  ;;  %v2100_v22 = vmax.f32 %v2036_v20, 0.0  ;;  %v1825_v42 = vpop.permute.xlu0 %1824  ;;  %v1516_v43 = vmul.f32 %v19529_v50, %v1441_v23  ;;  %v2675_v23 = vld [vmem:[#allocation12] sm:$0x3] }
 0x39c   : > { %v2643_v24 = vpack.c.bf16 %v2596_v45, %v2595_v29  ;;  %v1903_v6 = vmul.f32 %v19534_v52, %v1825_v42  ;;  %v20367_v11 = vpop.f32.mrf.mxu1  ;;  %v20383_v42 = vrot.slane %v2675_v23, %v19511_v44 }
 0x39d   : > { %v2037_v19 = vadd.f32 %v20297_v26, %v1966_v57  ;;  %v1115_v18 = vpop.permute.xlu1 %1114 }
 0x39e   : > { %2960 = vmatmul.mubr.bf16.gmra.mxu1 %v2643_v24  ;;  %v1192_v15 = vmul.f32 %v19537_v53, %v1115_v18 }
 0x39f   : > { %v2101_v60 = vmax.f32 %v2037_v19, 0.0  ;;  %2969 = vmatprep.mubr.bf16.mxu1 %v18971_v5  ;;  %v1837_v14 = vpop.permute.xlu0 %1836  ;;  %v20373_v19 = vpop.f32.mrf.mxu1 }
 0x3a0   : > { %v1906_v57 = vmul.f32 %v19534_v52, %v1837_v14  ;;  %v1580_v30 = vadd.f32 %v1516_v43, %v1192_v15 }
 0x3a1   : > { %v2135_v7 = vpack.c.bf16 %v2101_v60, %v2100_v22  ;;  %v1517_v22 = vmul.f32 %v19529_v50, %v1445_v32 }
 0x3a2   : > { %v1437_v27 = vpop.permute.xlu1 %1436 }
 0x3a3   : > { %17630 = vmatmul.mubr.msk.bf16.gmra.mxu0 %vm2177_vm0, %v2135_v7  ;;  %v1515_v12 = vmul.f32 %v19529_v50, %v1437_v27 }
 0x3a5   : > { %v1579_v13 = vadd.f32 %v1515_v12, %v1191_v49 }
 0x3a6   : > { %2970 = vmatmul.mubr.bf16.gmra.mxu1 %v2644_v25 }
 0x3a7   : > { %v1120_v4 = vpop.permute.xlu1 %1119  ;;  %2979 = vmatprep.mubr.bf16.mxu1 %v18971_v5  ;;  %v1967_v20 = vadd.f32 %v1903_v6, %v1579_v13  ;;  %v2808_v13 = vadd.f32 %v20273_v37, %v20383_v42 }
 0x3a8   : > { %v1193_v60 = vmul.f32 %v19537_v53, %v1120_v4 }
 0x3a9   : > { %v2038_v1 = vadd.f32 %v20297_v26, %v1967_v20  ;;  %v2804_v20 = vadd.f32 %v20265_v28, %v20383_v42 }
 0x3ab   : > { %v1125_v35 = vpop.permute.xlu1 %1124  ;;  %v3121_v28 = vmax.f32 %v2804_v20, 0.0 }
 0x3ac   : > { %v1194_v29 = vmul.f32 %v19537_v53, %v1125_v35  ;;  %v1581_v53 = vadd.f32 %v1517_v22, %v1193_v60 }
 0x3ad   : > { %v20380_v27 = vpop.f32.mrf.mxu1 }
 0x3af   : > { %v20390_v14 = vpop.f32.mrf.mxu1 }
 0x3b0   : > { %v1449_v8 = vpop.permute.xlu1 %1448 }
 0x3b1   : > { %v1518_v54 = vmul.f32 %v19529_v50, %v1449_v8  ;;  %v20401_v22 = vpop.f32.mrf.mxu1 }
 0x3b2   : > { %v17611_v45 = vpop.f32.mrf.mxu0 }
 0x3b3   : > { %v1582_v51 = vadd.f32 %v1518_v54, %v1194_v29  ;;  %v2102_v54 = vmax.f32 %v2038_v1, 0.0  ;;  %v2461_v37 = vadd.f32 %v20288_v17, %v17611_v45  ;;  %v2818_v45 = vadd.f32 %v20300_v2, %v20383_v42 }
 0x3b4   : > { %v2452_v40 = vpop.f32.mrf.mxu0 }
 0x3b5   : > { %v1829_v24 = vpop.permute.xlu1 %1828  ;;  %v2453_v18 = vadd.f32 %v20288_v17, %v2452_v40  ;;  %v1970_v25 = vadd.f32 %v1906_v57, %v1582_v51  ;;  %v2601_v1 = vmax.f32 %v2461_v37, 0.0 }
 0x3b6   : > { %v1904_v0 = vmul.f32 %v19534_v52, %v1829_v24  ;;  %v17612_v7 = vpop.f32.mrf.mxu0  ;;  %v3123_v24 = vmax.f32 %v2808_v13, 0.0  ;;  %v2828_v13 = vadd.f32 %v20317_v58, %v20383_v42 }
 0x3b7   : > { %v2599_v6 = vmax.f32 %v2453_v18, 0.0  ;;  %v2041_v43 = vadd.f32 %v20297_v26, %v1970_v25  ;;  %v2464_v51 = vadd.f32 %v20288_v17, %v17612_v7 }
 0x3b8   : > { %v1968_v35 = vadd.f32 %v1904_v0, %v1580_v30  ;;  %v2455_v12 = vpop.f32.mrf.mxu0  ;;  %v20399_v30 = vrot.slane %v2675_v23, %v19518_v47  ;;  %v3249_v23 = vpack.c.bf16 %v3123_v24, %v3121_v28 }
 0x3b9   : > { %v2456_v50 = vadd.f32 %v20288_v17, %v2455_v12  ;;  %v1833_v32 = vpop.permute.xlu1 %1832  ;;  %v2105_v60 = vmax.f32 %v2041_v43, 0.0  ;;  %v2602_v7 = vmax.f32 %v2464_v51, 0.0  ;;  %v2814_v12 = vadd.f32 %v20283_v63, %v20383_v42 }
 0x3ba   : > { %v2039_v4 = vadd.f32 %v20297_v26, %v1968_v35  ;;  %v1905_v49 = vmul.f32 %v19534_v52, %v1833_v32  ;;  %v2802_v25 = vadd.f32 %v20263_v9, %v20399_v30  ;;  %v20411_v35 = vpop.f32.mrf.mxu1  ;;  %v2816_v9 = vadd.f32 %v20292_v34, %v20399_v30 }
 0x3bb   : > { %v2600_v8 = vmax.f32 %v2456_v50, 0.0  ;;  %v2646_v50 = vpack.c.bf16 %v2602_v7, %v2601_v1  ;;  %v3125_v2 = vmax.f32 %v2814_v12, 0.0  ;;  %v2812_v63 = vadd.f32 %v20278_v41, %v20399_v30 }
 0x3bc   : > { %v2103_v15 = vmax.f32 %v2039_v4, 0.0  ;;  %v1969_v29 = vadd.f32 %v1905_v49, %v1581_v53  ;;  %v3120_v53 = vmax.f32 %v2802_v25, 0.0  ;;  %v20416_v4 = vpop.f32.mrf.mxu1  ;;  %v3126_v43 = vmax.f32 %v2816_v9, 0.0 }
 0x3bd   : > { %v2645_v57 = vpack.c.bf16 %v2600_v8, %v2599_v6  ;;  %v2826_v58 = vadd.f32 %v20311_v59, %v20399_v30  ;;  %v2838_v41 = vadd.f32 %v20338_v48, %v20383_v42  ;;  %v2832_v1 = vadd.f32 %v20319_v33, %v20399_v30 }
 0x3be   : > { %v2136_v40 = vpack.c.bf16 %v2103_v15, %v2102_v54  ;;  %v2040_v52 = vadd.f32 %v20297_v26, %v1969_v29  ;;  %v2806_v26 = vadd.f32 %v20269_v38, %v20399_v30  ;;  %v3127_v38 = vmax.f32 %v2818_v45, 0.0  ;;  %v20425_v8 = vpop.f32.mrf.mxu1 }
 0x3bf   : > { %2980 = vmatmul.mubr.bf16.gmra.mxu1 %v2645_v57  ;;  %v2824_v54 = vadd.f32 %v20308_v31, %v20383_v42  ;;  %v3131_v15 = vmax.f32 %v2828_v13, 0.0  ;;  %v3124_v29 = vmax.f32 %v2812_v63, 0.0  ;;  %v2834_v31 = vadd.f32 %v20325_v61, %v20383_v42 }
 0x3c0   : > { %v2104_v0 = vmax.f32 %v2040_v52, 0.0  ;;  %17633 = vmatprep.mubr.msk.bf16.mxu0 %vm2177_vm0, %v2136_v40  ;;  %2989 = vmatprep.mubr.bf16.mxu1 %v18971_v5  ;;  %v3122_v32 = vmax.f32 %v2806_v26, 0.0  ;;  %v3251_v6 = vpack.c.bf16 %v3127_v38, %v3125_v2  ;;  %v20429_v20 = vpop.f32.mrf.mxu1  ;;  %v2822_v40 = vadd.f32 %v20305_v21, %v20399_v30 }
 0x3c1   : > { %v3129_v34 = vmax.f32 %v2824_v54, 0.0  ;;  %v3250_v51 = vpack.c.bf16 %v3126_v43, %v3124_v29  ;;  %v3130_v24 = vmax.f32 %v2826_v58, 0.0  ;;  %v3133_v28 = vmax.f32 %v2834_v31, 0.0 }
 0x3c2   : > { %v2137_v18 = vpack.c.bf16 %v2105_v60, %v2104_v0  ;;  %v3248_v49 = vpack.c.bf16 %v3122_v32, %v3120_v53  ;;  %v20437_v52 = vpop.f32.mrf.mxu1  ;;  %v3135_v60 = vmax.f32 %v2838_v41, 0.0  ;;  %v3128_v59 = vmax.f32 %v2822_v40, 0.0 }
 0x3c3   : > { %v3253_v57 = vpack.c.bf16 %v3131_v15, %v3129_v34  ;;  %v2836_v26 = vadd.f32 %v20331_v36, %v20399_v30  ;;  %v2844_v25 = vadd.f32 %v20348_v10, %v20383_v42  ;;  %v2846_v33 = vadd.f32 %v20352_v56, %v20399_v30 }
 0x3c4   : > { %17634 = vmatmul.mubr.msk.bf16.gmra.mxu0 %vm2177_vm0, %v2137_v18  ;;  %v3252_v48 = vpack.c.bf16 %v3130_v24, %v3128_v59  ;;  %v2848_v18 = vadd.f32 %v20355_v55, %v20383_v42  ;;  %v3255_v61 = vpack.c.bf16 %v3135_v60, %v3133_v28  ;;  %v3132_v55 = vmax.f32 %v2832_v1, 0.0 }
 0x3c5   : > { %3479 = vmatprep.mubr.bf16.mxu0 %v3249_v23  ;;  %v2858_v63 = vadd.f32 %v20373_v19, %v20383_v42  ;;  %v2842_v43 = vadd.f32 %v20342_v16, %v20399_v30  ;;  %v2854_v29 = vadd.f32 %v20363_v62, %v20383_v42  ;;  %v3138_v56 = vmax.f32 %v2846_v33, 0.0 }
 0x3c6   : > { %v3139_v38 = vmax.f32 %v2848_v18, 0.0  ;;  %v2856_v16 = vadd.f32 %v20367_v11, %v20399_v30  ;;  %v2868_v62 = vadd.f32 %v20411_v35, %v20383_v42  ;;  %v2864_v59 = vadd.f32 %v20390_v14, %v20383_v42 }
 0x3c7   : > { %2990 = vmatmul.mubr.bf16.gmra.mxu1 %v2646_v50  ;;  %v3134_v50 = vmax.f32 %v2836_v26, 0.0  ;;  %v3143_v58 = vmax.f32 %v2858_v63, 0.0  ;;  %v3136_v19 = vmax.f32 %v2842_v43, 0.0  ;;  %v2866_v35 = vadd.f32 %v20401_v22, %v20399_v30 }
 0x3c8   : > { %2999 = vmatprep.mubr.bf16.mxu1 %v18971_v5  ;;  %v3142_v28 = vmax.f32 %v2856_v16, 0.0  ;;  %v3147_v11 = vmax.f32 %v2868_v62, 0.0  ;;  %v3145_v26 = vmax.f32 %v2864_v59, 0.0  ;;  %v2862_v14 = vadd.f32 %v20380_v27, %v20399_v30 }
 0x3c9   : > { %v3254_v9 = vpack.c.bf16 %v3134_v50, %v3132_v55  ;;  %v3256_v40 = vpack.c.bf16 %v3138_v56, %v3136_v19 }
 0x3ca   : > { %v3144_v50 = vmax.f32 %v2862_v14, 0.0 }
 0x3cc   : > { %3480 = vmatmul.mubr.bf16.vlgmr.msra.gmra.mxu0 %v3248_v49  ;;  %v3137_v49 = vmax.f32 %v2844_v25, 0.0  ;;  %v3146_v25 = vmax.f32 %v2866_v35, 0.0 }
 0x3cd   : > { %3487 = vmatprep.mubr.bf16.mxu0 %v3251_v6 }
 0x3ce   : > { %v3257_v54 = vpack.c.bf16 %v3139_v38, %v3137_v49  ;;  %v3260_v55 = vpack.c.bf16 %v3146_v25, %v3144_v50  ;;  %v2872_v49 = vadd.f32 %v20416_v4, %v20399_v30 }
 0x3d0   : > { %v3148_v43 = vmax.f32 %v2872_v49, 0.0 }
 0x3d2   : > { %v20441_v37 = vpop.f32.mrf.mxu1 }
 0x3d4   : > { %3488 = vmatmul.mubr.bf16.gmra.mxu0 %v3250_v51  ;;  %v20445_v21 = vpop.f32.mrf.mxu1 }
 0x3d5   : > { %3495 = vmatprep.mubr.bf16.mxu0 %v3253_v57  ;;  %v3141_v57 = vmax.f32 %v2854_v29, 0.0  ;;  %v2884_v33 = vadd.f32 %v20445_v21, %v20383_v42 }
 0x3d6   : > { %v20454_v36 = vpop.f32.mrf.mxu1 }
 0x3d7   : > { %v17615_v0 = vpop.f32.mrf.mxu0  ;;  %v3259_v60 = vpack.c.bf16 %v3143_v58, %v3141_v57  ;;  %v2882_v57 = vadd.f32 %v20441_v37, %v20399_v30 }
 0x3d8   : > { %v2887_v13 = vpop.f32.mrf.mxu1  ;;  %v2477_v15 = vadd.f32 %v20288_v17, %v17615_v0  ;;  %v2852_v0 = vadd.f32 %v20358_v3, %v20399_v30  ;;  %v2878_v3 = vadd.f32 %v20437_v52, %v20383_v42  ;;  %v2876_v52 = vadd.f32 %v20429_v20, %v20399_v30 }
 0x3d9   : > { %v2468_v7 = vpop.f32.mrf.mxu0  ;;  %v2888_v27 = vadd.f32 %v2887_v13, %v20383_v42 }
 0x3da   : > { %v2469_v23 = vadd.f32 %v20288_v17, %v2468_v7  ;;  %v20468_v34 = vpop.f32.mrf.mxu1  ;;  %v2605_v41 = vmax.f32 %v2477_v15, 0.0  ;;  %v3153_v15 = vmax.f32 %v2884_v33, 0.0 }
 0x3db   : > { %v17616_v45 = vpop.f32.mrf.mxu0  ;;  %v2892_v35 = vadd.f32 %v20468_v34, %v20399_v30 }
 0x3dc   : > { %3496 = vmatmul.mubr.bf16.gmra.mxu0 %v3252_v48  ;;  %v2603_v53 = vmax.f32 %v2469_v23, 0.0  ;;  %v2480_v6 = vadd.f32 %v20288_v17, %v17616_v45  ;;  %v2893_v24 = vpop.f32.mrf.mxu1  ;;  %v3140_v48 = vmax.f32 %v2852_v0, 0.0  ;;  %v2874_v23 = vadd.f32 %v20425_v8, %v20383_v42 }
 0x3dd   : > { %v2471_v12 = vpop.f32.mrf.mxu0  ;;  %3503 = vmatprep.mubr.bf16.mxu0 %v3255_v61  ;;  %v3261_v61 = vpack.c.bf16 %v3147_v11, %v3145_v26  ;;  %v2894_v16 = vadd.f32 %v2893_v24, %v20383_v42  ;;  %v3152_v0 = vmax.f32 %v2882_v57, 0.0 }
 0x3de   : > { %v2472_v32 = vadd.f32 %v20288_v17, %v2471_v12  ;;  %v2606_v51 = vmax.f32 %v2480_v6, 0.0  ;;  %v20479_v7 = vpop.f32.mrf.mxu1  ;;  %v3258_v18 = vpack.c.bf16 %v3142_v28, %v3140_v48  ;;  %v3151_v12 = vmax.f32 %v2878_v3, 0.0 }
 0x3df   : > { %v3149_v38 = vmax.f32 %v2874_v23, 0.0  ;;  %v3157_v28 = vmax.f32 %v2894_v16, 0.0  ;;  %v2896_v37 = vadd.f32 %v20479_v7, %v20399_v30  ;;  %v3156_v23 = vmax.f32 %v2892_v35, 0.0 }
 0x3e0   : > { %v2604_v2 = vmax.f32 %v2472_v32, 0.0  ;;  %v2648_v31 = vpack.c.bf16 %v2606_v51, %v2605_v41  ;;  %v2897_v45 = vpop.f32.mrf.mxu1  ;;  %v2886_v51 = vadd.f32 %v20454_v36, %v20399_v30 }
 0x3e1   : > { %v2898_v58 = vadd.f32 %v2897_v45, %v20383_v42 }
 0x3e2   : > { %v2647_v10 = vpack.c.bf16 %v2604_v2, %v2603_v53  ;;  %v3263_v2 = vpack.c.bf16 %v3151_v12, %v3149_v38  ;;  %v3154_v62 = vmax.f32 %v2886_v51, 0.0 }
 0x3e3   : > { %v3159_v36 = vmax.f32 %v2898_v58, 0.0 }
 0x3e4   : > { %3000 = vmatmul.mubr.bf16.gmra.mxu1 %v2647_v10  ;;  %3504 = vmatmul.mubr.bf16.gmra.mxu0 %v3254_v9  ;;  %v3150_v10 = vmax.f32 %v2876_v52, 0.0  ;;  %v3264_v48 = vpack.c.bf16 %v3154_v62, %v3152_v0 }
 0x3e5   : > { %3511 = vmatprep.mubr.bf16.mxu0 %v3257_v54  ;;  %3009 = vmatprep.mubr.bf16.mxu1 %v18971_v5  ;;  %v3155_v54 = vmax.f32 %v2888_v27, 0.0 }
 0x3e6   : > { %v3262_v4 = vpack.c.bf16 %v3150_v10, %v3148_v43 }
 0x3e7   : > { %v3265_v41 = vpack.c.bf16 %v3155_v54, %v3153_v15 }
 0x3ec   : > { %3010 = vmatmul.mubr.bf16.gmra.mxu1 %v2648_v31  ;;  %3512 = vmatmul.mubr.bf16.gmra.mxu0 %v3256_v40 }
 0x3ed   : > { %3519 = vmatprep.mubr.bf16.mxu0 %v3259_v60  ;;  %3019 = vmatprep.mubr.bf16.mxu1 %v18971_v5 }
 0x3f3   : > { %v20487_v1 = vpop.f32.mrf.mxu1 }
 0x3f4   : > { %3520 = vmatmul.mubr.bf16.gmra.mxu0 %v3258_v18  ;;  %v3267_v18 = vpack.c.bf16 %v3159_v36, %v3157_v28  ;;  %v2902_v34 = vadd.f32 %v20487_v1, %v20399_v30 }
 0x3f5   : > { %3527 = vmatprep.mubr.bf16.mxu0 %v3261_v61  ;;  %v2903_v32 = vpop.f32.mrf.mxu1  ;;  %v3158_v61 = vmax.f32 %v2896_v37, 0.0 }
 0x3f6   : > { %v2904_v3 = vadd.f32 %v2903_v32, %v20383_v42 }
 0x3f7   : > { %v2905_v9 = vpop.f32.mrf.mxu1  ;;  %v3266_v12 = vpack.c.bf16 %v3158_v61, %v3156_v23 }
 0x3f8   : > { %v17619_v22 = vpop.f32.mrf.mxu0  ;;  %v3161_v7 = vmax.f32 %v2904_v3, 0.0  ;;  %v2906_v50 = vadd.f32 %v2905_v9, %v20399_v30 }
 0x3f9   : > { %v2907_v13 = vpop.f32.mrf.mxu1  ;;  %v2493_v31 = vadd.f32 %v20288_v17, %v17619_v22 }
 0x3fa   : > { %v2484_v53 = vpop.f32.mrf.mxu0  ;;  %v2908_v26 = vadd.f32 %v2907_v13, %v20383_v42 }
 0x3fb   : > { %v2485_v6 = vadd.f32 %v20288_v17, %v2484_v53  ;;  %v2911_v40 = vpop.f32.mrf.mxu1  ;;  %v2609_v11 = vmax.f32 %v2493_v31, 0.0  ;;  %v3160_v53 = vmax.f32 %v2902_v34, 0.0 }
 0x3fc   : > { %v17620_v8 = vpop.f32.mrf.mxu0  ;;  %3528 = vmatmul.mubr.bf16.gmra.mxu0 %v3260_v55  ;;  %v3163_v14 = vmax.f32 %v2908_v26, 0.0  ;;  %v3162_v55 = vmax.f32 %v2906_v50, 0.0 }
 0x3fd   : > { %3535 = vmatprep.mubr.bf16.mxu0 %v3263_v2  ;;  %v2607_v29 = vmax.f32 %v2485_v6, 0.0  ;;  %v2496_v21 = vadd.f32 %v20288_v17, %v17620_v8  ;;  %v2913_v59 = vpop.f32.mrf.mxu1  ;;  %v2912_v6 = vadd.f32 %v2911_v40, %v20399_v30 }
 0x3fe   : > { %v2487_v63 = vpop.f32.mrf.mxu0  ;;  %v3269_v38 = vpack.c.bf16 %v3163_v14, %v3161_v7  ;;  %v2914_v32 = vadd.f32 %v2913_v59, %v20383_v42  ;;  %v3268_v49 = vpack.c.bf16 %v3162_v55, %v3160_v53 }
 0x3ff   : > { %v2488_v20 = vadd.f32 %v20288_v17, %v2487_v63  ;;  %v2610_v60 = vmax.f32 %v2496_v21, 0.0  ;;  %v2915_v45 = vpop.f32.mrf.mxu1  ;;  %v3164_v15 = vmax.f32 %v2912_v6, 0.0 }
 0x400   : > { %v3165_v2 = vmax.f32 %v2914_v32, 0.0  ;;  %v2916_v8 = vadd.f32 %v2915_v45, %v20399_v30 }
 0x401   : > { %v2608_v56 = vmax.f32 %v2488_v20, 0.0  ;;  %v2650_v24 = vpack.c.bf16 %v2610_v60, %v2609_v11  ;;  %v2917_v25 = vpop.f32.mrf.mxu1 }
 0x402   : > { %v2918_v22 = vadd.f32 %v2917_v25, %v20383_v42  ;;  %v3166_v54 = vmax.f32 %v2916_v8, 0.0 }
 0x403   : > { %v2649_v19 = vpack.c.bf16 %v2608_v56, %v2607_v29 }
 0x404   : > { %3536 = vmatmul.mubr.bf16.gmra.mxu0 %v3262_v4  ;;  %v3167_v52 = vmax.f32 %v2918_v22, 0.0  ;;  %v3270_v58 = vpack.c.bf16 %v3166_v54, %v3164_v15 }
 0x405   : > { %3020 = vmatmul.mubr.bf16.gmra.mxu1 %v2649_v19  ;;  %3543 = vmatprep.mubr.bf16.mxu0 %v3265_v41 }
 0x406   : > { %3029 = vmatprep.mubr.bf16.mxu1 %v18971_v5  ;;  %v3271_v9 = vpack.c.bf16 %v3167_v52, %v3165_v2 }
 0x40c   : > { %3544 = vmatmul.mubr.bf16.gmra.mxu0 %v3264_v48 }
 0x40d   : > { %3030 = vmatmul.mubr.bf16.gmra.mxu1 %v2650_v24  ;;  %3551 = vmatprep.mubr.bf16.mxu0 %v3267_v18 }
 0x40e   : > { %3039 = vmatprep.mubr.bf16.mxu1 %v18971_v5 }
 0x414   : > { %3552 = vmatmul.mubr.bf16.gmra.mxu0 %v3266_v12 }
 0x415   : > { %3559 = vmatprep.mubr.bf16.mxu0 %v3269_v38 }
 0x418   : > { %v2921_v27 = vpop.f32.mrf.mxu1 }
 0x419   : > { %v2922_v16 = vadd.f32 %v2921_v27, %v20399_v30 }
 0x41a   : > { %v2923_v33 = vpop.f32.mrf.mxu1 }
 0x41b   : > { %v2924_v1 = vadd.f32 %v2923_v33, %v20383_v42  ;;  %v3168_v48 = vmax.f32 %v2922_v16, 0.0 }
 0x41c   : > { %v2925_v10 = vpop.f32.mrf.mxu1  ;;  %3560 = vmatmul.mubr.bf16.gmra.mxu0 %v3268_v49 }
 0x41d   : > { %v17623_v63 = vpop.f32.mrf.mxu0  ;;  %3567 = vmatprep.mubr.bf16.mxu0 %v3271_v9  ;;  %v3169_v56 = vmax.f32 %v2924_v1, 0.0  ;;  %v2926_v21 = vadd.f32 %v2925_v10, %v20399_v30 }
 0x41e   : > { %v2927_v20 = vpop.f32.mrf.mxu1  ;;  %v2509_v45 = vadd.f32 %v20288_v17, %v17623_v63 }
 0x41f   : > { %v2928_v43 = vadd.f32 %v2927_v20, %v20383_v42  ;;  %v2500_v13 = vpop.f32.mrf.mxu0  ;;  %v3170_v60 = vmax.f32 %v2926_v21, 0.0 }
 0x420   : > { %v2931_v29 = vpop.f32.mrf.mxu1  ;;  %v2501_v19 = vadd.f32 %v20288_v17, %v2500_v13  ;;  %v2613_v25 = vmax.f32 %v2509_v45, 0.0 }
 0x421   : > { %v3171_v4 = vmax.f32 %v2928_v43, 0.0  ;;  %v17624_v51 = vpop.f32.mrf.mxu0  ;;  %v3272_v35 = vpack.c.bf16 %v3170_v60, %v3168_v48  ;;  %v2932_v14 = vadd.f32 %v2931_v29, %v20399_v30 }
 0x422   : > { %v2933_v41 = vpop.f32.mrf.mxu1  ;;  %v2611_v0 = vmax.f32 %v2501_v19, 0.0  ;;  %v2512_v37 = vadd.f32 %v20288_v17, %v17624_v51 }
 0x423   : > { %v2503_v57 = vpop.f32.mrf.mxu0  ;;  %v3273_v40 = vpack.c.bf16 %v3171_v4, %v3169_v56  ;;  %v2934_v36 = vadd.f32 %v2933_v41, %v20383_v42  ;;  %v3172_v12 = vmax.f32 %v2932_v14, 0.0 }
 0x424   : > { %v2504_v31 = vadd.f32 %v20288_v17, %v2503_v57  ;;  %v2935_v62 = vpop.f32.mrf.mxu1  ;;  %3568 = vmatmul.mubr.bf16.gmra.mxu0 %v3270_v58  ;;  %v2614_v23 = vmax.f32 %v2512_v37, 0.0 }
 0x425   : > { %3575 = vmatprep.mubr.bf16.mxu0 %v3273_v40  ;;  %v3173_v24 = vmax.f32 %v2934_v36, 0.0  ;;  %v2936_v3 = vadd.f32 %v2935_v62, %v20399_v30 }
 0x426   : > { %v2612_v59 = vmax.f32 %v2504_v31, 0.0  ;;  %v2937_v28 = vpop.f32.mrf.mxu1  ;;  %v2652_v50 = vpack.c.bf16 %v2614_v23, %v2613_v25 }
 0x427   : > { %v2938_v11 = vadd.f32 %v2937_v28, %v20383_v42  ;;  %v3174_v7 = vmax.f32 %v2936_v3, 0.0 }
 0x428   : > { %v2651_v26 = vpack.c.bf16 %v2612_v59, %v2611_v0 }
 0x429   : > { %v3175_v18 = vmax.f32 %v2938_v11, 0.0  ;;  %v3274_v22 = vpack.c.bf16 %v3174_v7, %v3172_v12 }
 0x42a   : > { %3040 = vmatmul.mubr.bf16.gmra.mxu1 %v2651_v26 }
 0x42b   : > { %v3275_v61 = vpack.c.bf16 %v3175_v18, %v3173_v24  ;;  %3049 = vmatprep.mubr.bf16.mxu1 %v18971_v5 }
 0x42c   : > { %3576 = vmatmul.mubr.bf16.gmra.mxu0 %v3272_v35 }
 0x42d   : > { %3583 = vmatprep.mubr.bf16.mxu0 %v3275_v61 }
 0x432   : > { %3050 = vmatmul.mubr.bf16.gmra.mxu1 %v2652_v50 }
 0x433   : > { %3059 = vmatprep.mubr.bf16.mxu1 %v18971_v5 }
 0x434   : > { %3584 = vmatmul.mubr.bf16.gmra.mxu0 %v3274_v22 }
 0x439   : > { %v2941_v38 = vpop.f32.mrf.mxu1 }
 0x43a   : > { %v2942_v27 = vadd.f32 %v2941_v38, %v20399_v30 }
 0x43b   : > { %v2943_v34 = vpop.f32.mrf.mxu1 }
 0x43c   : > { %v2944_v55 = vadd.f32 %v2943_v34, %v20383_v42  ;;  %v3176_v63 = vmax.f32 %v2942_v27, 0.0 }
 0x43d   : > { %v2945_v32 = vpop.f32.mrf.mxu1 }
 0x43e   : > { %v2946_v52 = vadd.f32 %v2945_v32, %v20399_v30  ;;  %v17627_v53 = vpop.f32.mrf.mxu0  ;;  %v3177_v6 = vmax.f32 %v2944_v55, 0.0 }
 0x43f   : > { %v2947_v2 = vpop.f32.mrf.mxu1  ;;  %v2525_v60 = vadd.f32 %v20288_v17, %v17627_v53 }
 0x440   : > { %v2948_v49 = vadd.f32 %v2947_v2, %v20383_v42  ;;  %v2516_v8 = vpop.f32.mrf.mxu0  ;;  %v3178_v33 = vmax.f32 %v2946_v52, 0.0 }
 0x441   : > { %v2951_v9 = vpop.f32.mrf.mxu1  ;;  %v2517_v54 = vadd.f32 %v20288_v17, %v2516_v8  ;;  %v2617_v48 = vmax.f32 %v2525_v60, 0.0 }
 0x442   : > { %v3179_v10 = vmax.f32 %v2948_v49, 0.0  ;;  %v17628_v1 = vpop.f32.mrf.mxu0  ;;  %v3276_v15 = vpack.c.bf16 %v3178_v33, %v3176_v63  ;;  %v2952_v21 = vadd.f32 %v2951_v9, %v20399_v30 }
 0x443   : > { %v2953_v20 = vpop.f32.mrf.mxu1  ;;  %v2615_v58 = vmax.f32 %v2517_v54, 0.0  ;;  %v2528_v40 = vadd.f32 %v20288_v17, %v17628_v1 }
 0x444   : > { %v2519_v43 = vpop.f32.mrf.mxu0  ;;  %v3277_v13 = vpack.c.bf16 %v3179_v10, %v3177_v6  ;;  %v2954_v4 = vadd.f32 %v2953_v20, %v20383_v42  ;;  %v3180_v0 = vmax.f32 %v2952_v21, 0.0 }
 0x445   : > { %v2520_v29 = vadd.f32 %v20288_v17, %v2519_v43  ;;  %v2955_v56 = vpop.f32.mrf.mxu1  ;;  %v2618_v28 = vmax.f32 %v2528_v40, 0.0 }
 0x446   : > { %v2956_v51 = vadd.f32 %v2955_v56, %v20399_v30  ;;  %3591 = vmatprep.mubr.bf16.mxu0 %v3277_v13  ;;  %v3181_v62 = vmax.f32 %v2954_v4, 0.0 }
 0x447   : > { %v2616_v19 = vmax.f32 %v2520_v29, 0.0  ;;  %v2957_v41 = vpop.f32.mrf.mxu1  ;;  %3592 = vmatmul.mubr.bf16.gmra.mxu0 %v3276_v15  ;;  %v2654_v37 = vpack.c.bf16 %v2618_v28, %v2617_v48  ;;  %v17966_v29 = vld [vmem:[#allocation9] ss:$0 sm:$0xff] }
 0x448   : > { %v2958_v57 = vadd.f32 %v2957_v41, %v20383_v42  ;;  %v3182_v16 = vmax.f32 %v2956_v51, 0.0 }
 0x449   : > { %v2653_v31 = vpack.c.bf16 %v2616_v19, %v2615_v58 }
 0x44a   : > { %v3183_v36 = vmax.f32 %v2958_v57, 0.0  ;;  %v3278_v11 = vpack.c.bf16 %v3182_v16, %v3180_v0 }
 0x44b   : > { %3060 = vmatmul.mubr.bf16.gmra.mxu1 %v2653_v31 }
 0x44c   : > { %v3279_v59 = vpack.c.bf16 %v3183_v36, %v3181_v62  ;;  %3069 = vmatprep.mubr.bf16.mxu1 %v18971_v5 }
 0x44e   : > { %3599 = vmatprep.mubr.bf16.mxu0 %v3279_v59 }
 0x44f   : > { %3600 = vmatmul.mubr.bf16.gmra.mxu0 %v3278_v11 }
 0x453   : > { %3070 = vmatmul.mubr.bf16.gmra.mxu1 %v2654_v37 }
 0x454   : > { %3079 = vmatprep.mubr.bf16.mxu1 %v18971_v5 }
 0x45e   : > { %v2961_v26 = vpop.f32.mrf.mxu1 }
 0x45f   : > { %v2962_v61 = vadd.f32 %v2961_v26, %v20399_v30 }
 0x460   : > { %v2963_v24 = vpop.f32.mrf.mxu1 }
 0x461   : > { %v2964_v35 = vadd.f32 %v2963_v24, %v20383_v42  ;;  %v3184_v34 = vmax.f32 %v2962_v61, 0.0 }
 0x462   : > { %v2965_v18 = vpop.f32.mrf.mxu1 }
 0x463   : > { %v2966_v45 = vadd.f32 %v2965_v18, %v20399_v30  ;;  %v17631_v3 = vpop.f32.mrf.mxu0  ;;  %v3185_v50 = vmax.f32 %v2964_v35, 0.0 }
 0x464   : > { %v2967_v14 = vpop.f32.mrf.mxu1  ;;  %v2541_v56 = vadd.f32 %v17966_v29, %v17631_v3 }
 0x465   : > { %v2968_v23 = vadd.f32 %v2967_v14, %v20383_v42  ;;  %v2532_v25 = vpop.f32.mrf.mxu0  ;;  %v3186_v7 = vmax.f32 %v2966_v45, 0.0 }
 0x466   : > { %v2971_v12 = vpop.f32.mrf.mxu1  ;;  %v2533_v32 = vadd.f32 %v20288_v17, %v2532_v25  ;;  %v2621_v19 = vmax.f32 %v2541_v56, 0.0 }
 0x467   : > { %v3187_v22 = vmax.f32 %v2968_v23, 0.0  ;;  %v17632_v38 = vpop.f32.mrf.mxu0  ;;  %v3280_v27 = vpack.c.bf16 %v3186_v7, %v3184_v34  ;;  %v2972_v6 = vadd.f32 %v2971_v12, %v20399_v30 }
 0x468   : > { %v2973_v55 = vpop.f32.mrf.mxu1  ;;  %v2619_v9 = vmax.f32 %v2533_v32, 0.0  ;;  %v2544_v54 = vadd.f32 %v20288_v17, %v17632_v38 }
 0x469   : > { %v2535_v52 = vpop.f32.mrf.mxu0  ;;  %v3281_v53 = vpack.c.bf16 %v3187_v22, %v3185_v50  ;;  %v2974_v8 = vadd.f32 %v2973_v55, %v20383_v42  ;;  %v3188_v4 = vmax.f32 %v2972_v6, 0.0 }
 0x46a   : > { %v2536_v2 = vadd.f32 %v20288_v17, %v2535_v52  ;;  %v2975_v49 = vpop.f32.mrf.mxu1  ;;  %v2622_v58 = vmax.f32 %v2544_v54, 0.0 }
 0x46b   : > { %v2976_v33 = vadd.f32 %v2975_v49, %v20399_v30  ;;  %3607 = vmatprep.mubr.bf16.mxu0 %v3281_v53  ;;  %v3189_v13 = vmax.f32 %v2974_v8, 0.0 }
 0x46c   : > { %v2620_v10 = vmax.f32 %v2536_v2, 0.0  ;;  %v2977_v1 = vpop.f32.mrf.mxu1  ;;  %3608 = vmatmul.mubr.bf16.gmra.mxu0 %v3280_v27  ;;  %v2656_v41 = vpack.c.bf16 %v2622_v58, %v2621_v19 }
 0x46d   : > { %v2978_v63 = vadd.f32 %v2977_v1, %v20383_v42  ;;  %v3190_v43 = vmax.f32 %v2976_v33, 0.0 }
 0x46e   : > { %v2655_v20 = vpack.c.bf16 %v2620_v10, %v2619_v9 }
 0x46f   : > { %v3191_v15 = vmax.f32 %v2978_v63, 0.0  ;;  %v3282_v21 = vpack.c.bf16 %v3190_v43, %v3188_v4 }
 0x470   : > { %3080 = vmatmul.mubr.bf16.gmra.mxu1 %v2655_v20 }
 0x471   : > { %v3283_v51 = vpack.c.bf16 %v3191_v15, %v3189_v13  ;;  %3089 = vmatprep.mubr.bf16.mxu1 %v18971_v5  ;;  %v20573_v15 = vld [vmem:[#allocation15] ss:$0 sm:$0xff] }
 0x473   : > { %3615 = vmatprep.mubr.bf16.mxu0 %v3283_v51 }
 0x474   : > { %3616 = vmatmul.mubr.bf16.gmra.mxu0 %v3282_v21 }
 0x478   : > { %3090 = vmatmul.mubr.bf16.gmra.mxu1 %v2656_v41 }
 0x479   : > { %3099 = vmatprep.mubr.bf16.mxu1 %v18971_v5 }
 0x47f   : > { %v2981_v17 = vpop.f32.mrf.mxu1 }
 0x480   : > { %v2982_v36 = vadd.f32 %v2981_v17, %v20399_v30 }
 0x481   : > { %v2983_v57 = vpop.f32.mrf.mxu1 }
 0x482   : > { %v2984_v16 = vadd.f32 %v2983_v57, %v20383_v42  ;;  %v3192_v24 = vmax.f32 %v2982_v36, 0.0 }
 0x483   : > { %v2985_v40 = vpop.f32.mrf.mxu1 }
 0x484   : > { %v2986_v31 = vadd.f32 %v2985_v40, %v20399_v30  ;;  %v17635_v62 = vpop.f32.mrf.mxu0  ;;  %v3193_v48 = vmax.f32 %v2984_v16, 0.0 }
 0x485   : > { %v2987_v60 = vpop.f32.mrf.mxu1  ;;  %v2557_v33 = vadd.f32 %v17966_v29, %v17635_v62 }
 0x486   : > { %v2988_v0 = vadd.f32 %v2987_v60, %v20383_v42  ;;  %v2548_v59 = vpop.f32.mrf.mxu0  ;;  %v3194_v28 = vmax.f32 %v2986_v31, 0.0 }
 0x487   : > { %v2991_v11 = vpop.f32.mrf.mxu1  ;;  %v2549_v18 = vadd.f32 %v17966_v29, %v2548_v59  ;;  %v2625_v20 = vmax.f32 %v2557_v33, 0.0 }
 0x488   : > { %v3195_v37 = vmax.f32 %v2988_v0, 0.0  ;;  %v17636_v26 = vpop.f32.mrf.mxu0  ;;  %v3284_v61 = vpack.c.bf16 %v3194_v28, %v3192_v24  ;;  %v2992_v22 = vadd.f32 %v2991_v11, %v20399_v30 }
 0x489   : > { %v2993_v35 = vpop.f32.mrf.mxu1  ;;  %v2623_v50 = vmax.f32 %v2549_v18, 0.0  ;;  %v2560_v52 = vadd.f32 %v17966_v29, %v17636_v26 }
 0x48a   : > { %v2551_v45 = vpop.f32.mrf.mxu0  ;;  %v3285_v3 = vpack.c.bf16 %v3195_v37, %v3193_v48  ;;  %v2994_v25 = vadd.f32 %v2993_v35, %v20383_v42  ;;  %v3196_v9 = vmax.f32 %v2992_v22, 0.0 }
 0x48b   : > { %v2552_v14 = vadd.f32 %v17966_v29, %v2551_v45  ;;  %v2995_v23 = vpop.f32.mrf.mxu1  ;;  %v2626_v1 = vmax.f32 %v2560_v52, 0.0 }
 0x48c   : > { %v2996_v7 = vadd.f32 %v2995_v23, %v20399_v30  ;;  %v3481_v12 = vpop.f32.mrf.mxu0  ;;  %3623 = vmatprep.mubr.bf16.mxu0 %v3285_v3  ;;  %v3197_v2 = vmax.f32 %v2994_v25, 0.0 }
 0x48d   : > { %v2624_v38 = vmax.f32 %v2552_v14, 0.0  ;;  %v2997_v34 = vpop.f32.mrf.mxu1  ;;  %3624 = vmatmul.mubr.bf16.gmra.mxu0 %v3284_v61  ;;  %v2658_v13 = vpack.c.bf16 %v2626_v1, %v2625_v20  ;;  %v3482_v29 = vadd.f32 %v20573_v15, %v3481_v12 }
 0x48e   : > { %v2998_v32 = vadd.f32 %v2997_v34, %v20383_v42  ;;  %v3483_v55 = vpop.f32.mrf.mxu0  ;;  %v3198_v27 = vmax.f32 %v2996_v7, 0.0 }
 0x48f   : > { %v2657_v53 = vpack.c.bf16 %v2624_v38, %v2623_v50  ;;  %v3736_v19 = vmax.f32 %v3482_v29, 0.0 }
 0x490   : > { %v3199_v49 = vmax.f32 %v2998_v32, 0.0  ;;  %v3484_v8 = vpop.f32.mrf.mxu0  ;;  %v3286_v63 = vpack.c.bf16 %v3198_v27, %v3196_v9 }
 0x491   : > { %3100 = vmatmul.mubr.bf16.gmra.mxu1 %v2657_v53  ;;  %v3485_v41 = vadd.f32 %v20573_v15, %v3484_v8 }
 0x492   : > { %v3486_v6 = vpop.f32.mrf.mxu0  ;;  %v3287_v10 = vpack.c.bf16 %v3199_v49, %v3197_v2  ;;  %3109 = vmatprep.mubr.bf16.mxu1 %v18971_v5 }
 0x493   : > { %v3737_v62 = vmax.f32 %v3485_v41, 0.0 }
 0x494   : > { %v3489_v54 = vpop.f32.mrf.mxu0  ;;  %3631 = vmatprep.mubr.bf16.mxu0 %v3287_v10 }
 0x495   : > { %3632 = vmatmul.mubr.bf16.gmra.mxu0 %v3286_v63  ;;  %v3490_v36 = vadd.f32 %v20573_v15, %v3489_v54 }
 0x496   : > { %v3491_v43 = vpop.f32.mrf.mxu0 }
 0x497   : > { %v3738_v26 = vmax.f32 %v3490_v36, 0.0 }
 0x498   : > { %v3492_v56 = vpop.f32.mrf.mxu0 }
 0x499   : > { %3110 = vmatmul.mubr.bf16.gmra.mxu1 %v2658_v13  ;;  %v3493_v24 = vadd.f32 %v20573_v15, %v3492_v56 }
 0x49a   : > { %v3494_v4 = vpop.f32.mrf.mxu0  ;;  %4336 = vmatprep.mubr.bf16.mxu1 %v18971_v5 }
 0x49b   : > { %v3739_v50 = vmax.f32 %v3493_v24, 0.0 }
 0x49c   : > { %v3497_v51 = vpop.f32.mrf.mxu0 }
 0x49d   : > { %v3498_v58 = vadd.f32 %v20573_v15, %v3497_v51 }
 0x49e   : > { %v3499_v21 = vpop.f32.mrf.mxu0 }
 0x49f   : > { %v3740_v17 = vmax.f32 %v3498_v58, 0.0 }
 0x4a0   : > { %v3500_v57 = vpop.f32.mrf.mxu0 }
 0x4a1   : > { %v3800_v40 = vmax.f32 %v3736_v19, %v3740_v17  ;;  %v3501_v16 = vadd.f32 %v20573_v15, %v3500_v57 }
 0x4a2   : > { %v3502_v31 = vpop.f32.mrf.mxu0 }
 0x4a3   : > { %v3741_v60 = vmax.f32 %v3501_v16, 0.0 }
 0x4a4   : > { %v3001_v0 = vpop.f32.mrf.mxu1  ;;  %v3505_v59 = vpop.f32.mrf.mxu0 }
 0x4a5   : > { %v3801_v28 = vmax.f32 %v3737_v62, %v3741_v60  ;;  %v3506_v11 = vadd.f32 %v20573_v15, %v3505_v59  ;;  %v3002_v25 = vadd.f32 %v3001_v0, %v20399_v30 }
 0x4a6   : > { %v3003_v48 = vpop.f32.mrf.mxu1  ;;  %v3507_v37 = vpop.f32.mrf.mxu0 }
 0x4a7   : > { %v3742_v18 = vmax.f32 %v3506_v11, 0.0  ;;  %v3004_v61 = vadd.f32 %v3003_v48, %v20383_v42  ;;  %v3200_v2 = vmax.f32 %v3002_v25, 0.0 }
 0x4a8   : > { %v3005_v35 = vpop.f32.mrf.mxu1  ;;  %v3508_v45 = vpop.f32.mrf.mxu0 }
 0x4a9   : > { %v3802_v3 = vmax.f32 %v3738_v26, %v3742_v18  ;;  %v3006_v14 = vadd.f32 %v3005_v35, %v20399_v30  ;;  %v3509_v23 = vadd.f32 %v20573_v15, %v3508_v45  ;;  %v3201_v52 = vmax.f32 %v3004_v61, 0.0 }
 0x4aa   : > { %v3007_v7 = vpop.f32.mrf.mxu1  ;;  %v3510_v12 = vpop.f32.mrf.mxu0 }
 0x4ab   : > { %v3743_v22 = vmax.f32 %v3509_v23, 0.0  ;;  %v3008_v38 = vadd.f32 %v3007_v7, %v20383_v42  ;;  %v3202_v34 = vmax.f32 %v3006_v14, 0.0 }
 0x4ac   : > { %v3011_v32 = vpop.f32.mrf.mxu1  ;;  %v3513_v55 = vpop.f32.mrf.mxu0 }
 0x4ad   : > { %v3803_v53 = vmax.f32 %v3739_v50, %v3743_v22  ;;  %v3203_v27 = vmax.f32 %v3008_v38, 0.0  ;;  %v3514_v49 = vadd.f32 %v20573_v15, %v3513_v55  ;;  %v3288_v6 = vpack.c.bf16 %v3202_v34, %v3200_v2  ;;  %v3934_v38 = vld [vmem:[#allocation17 + $0x1c0] sm:$0xff] }
 0x4ae   : > { %v3013_v8 = vpop.f32.mrf.mxu1  ;;  %v3515_v33 = vpop.f32.mrf.mxu0  ;;  %v3012_v13 = vadd.f32 %v3011_v32, %v20399_v30  ;;  %v3938_v34 = vld [vmem:[#allocation17 + $0x1e0] sm:$0xff] }
 0x4af   : > { %v3289_v9 = vpack.c.bf16 %v3203_v27, %v3201_v52  ;;  %v3744_v10 = vmax.f32 %v3514_v49, 0.0  ;;  %v3014_v54 = vadd.f32 %v3013_v8, %v20383_v42  ;;  %v15923_v52 = vcombine.low %v3934_v38, %v3938_v34 }
 0x4b0   : > { %v3015_v1 = vpop.f32.mrf.mxu1  ;;  %v3516_v63 = vpop.f32.mrf.mxu0  ;;  %v3204_v31 = vmax.f32 %v3012_v13, 0.0 }
 0x4b1   : > { %v3016_v20 = vadd.f32 %v3015_v1, %v20399_v30  ;;  %v3517_v43 = vadd.f32 %v20573_v15, %v3516_v63  ;;  %3639 = vmatprep.mubr.bf16.mxu0 %v3289_v9  ;;  %v3804_v56 = vmax.f32 %v3800_v40, %v3744_v10  ;;  %v3205_v41 = vmax.f32 %v3014_v54, 0.0 }
 0x4b2   : > { %v3017_v4 = vpop.f32.mrf.mxu1  ;;  %v3518_v29 = vpop.f32.mrf.mxu0  ;;  %3640 = vmatmul.mubr.bf16.gmra.mxu0 %v3288_v6 }
 0x4b3   : > { %v3745_v51 = vmax.f32 %v3517_v43, 0.0  ;;  %v3018_v58 = vadd.f32 %v3017_v4, %v20383_v42  ;;  %v3206_v21 = vmax.f32 %v3016_v20, 0.0 }
 0x4b4   : > { %v3521_v19 = vpop.f32.mrf.mxu0 }
 0x4b5   : > { %v3805_v17 = vmax.f32 %v3801_v28, %v3745_v51  ;;  %v3207_v57 = vmax.f32 %v3018_v58, 0.0  ;;  %v3522_v16 = vadd.f32 %v20573_v15, %v3521_v19  ;;  %v3290_v0 = vpack.c.bf16 %v3206_v21, %v3204_v31 }
 0x4b6   : > { %v3523_v62 = vpop.f32.mrf.mxu0 }
 0x4b7   : > { %v3746_v36 = vmax.f32 %v3522_v16, 0.0  ;;  %v3291_v60 = vpack.c.bf16 %v3207_v57, %v3205_v41 }
 0x4b8   : > { %v3524_v59 = vpop.f32.mrf.mxu0 }
 0x4b9   : > { %v3806_v40 = vmax.f32 %v3802_v3, %v3746_v36  ;;  %v3525_v11 = vadd.f32 %v20573_v15, %v3524_v59  ;;  %3647 = vmatprep.mubr.bf16.mxu0 %v3291_v60 }
 0x4ba   : > { %v3526_v48 = vpop.f32.mrf.mxu0  ;;  %3648 = vmatmul.mubr.bf16.gmra.mxu0 %v3290_v0 }
 0x4bb   : > { %v3747_v37 = vmax.f32 %v3525_v11, 0.0 }
 0x4bc   : > { %v3529_v26 = vpop.f32.mrf.mxu0 }
 0x4bd   : > { %v3807_v24 = vmax.f32 %v3803_v53, %v3747_v37  ;;  %v3530_v28 = vadd.f32 %v20573_v15, %v3529_v26  ;;  %v15924_v53 = vcombine.high %v3934_v38, %v3938_v34  ;;  %v3926_v38 = vld [vmem:[#allocation17 + $0x180] sm:$0xff] }
 0x4be   : > { %v3531_v18 = vpop.f32.mrf.mxu0  ;;  %v3930_v34 = vld [vmem:[#allocation17 + $0x1a0] sm:$0xff] }
 0x4bf   : > { %v3748_v35 = vmax.f32 %v3530_v28, 0.0  ;;  %4304 = vmatprep.subr.bf16.mxu1 %v15924_v53 }
 0x4c0   : > { %v3532_v45 = vpop.f32.mrf.mxu0  ;;  %4305 = vmatpush1.bf16.msra.mxu1 %v15923_v52  ;;  %v15916_v52 = vcombine.high %v3926_v38, %v3930_v34 }
 0x4c1   : > { %v3808_v61 = vmax.f32 %v3804_v56, %v3748_v35  ;;  %v3533_v14 = vadd.f32 %v20573_v15, %v3532_v45 }
 0x4c2   : > { %v3534_v23 = vpop.f32.mrf.mxu0  ;;  %4306 = vmatprep.subr.bf16.mxu1 %v15916_v52 }
 0x4c3   : > { %v3749_v25 = vmax.f32 %v3533_v14, 0.0 }
 0x4c4   : > { %v3537_v7 = vpop.f32.mrf.mxu0 }
 0x4c5   : > { %v20598_v3 = vmax.f32 %v3805_v17, %v3749_v25  ;;  %v3538_v12 = vadd.f32 %v20573_v15, %v3537_v7  ;;  %v3021_v50 = vpop.f32.mrf.mxu1 }
 0x4c6   : > { %v3539_v22 = vpop.f32.mrf.mxu0  ;;  %v3022_v10 = vadd.f32 %v3021_v50, %v20399_v30 }
 0x4c7   : > { %v3750_v32 = vmax.f32 %v3538_v12, 0.0  ;;  %v3023_v55 = vpop.f32.mrf.mxu1 }
 0x4c8   : > { %v3540_v27 = vpop.f32.mrf.mxu0  ;;  %v3024_v33 = vadd.f32 %v3023_v55, %v20383_v42  ;;  %v3208_v21 = vmax.f32 %v3022_v10, 0.0  ;;  %v15915_v55 = vcombine.low %v3926_v38, %v3930_v34 }
 0x4c9   : > { %v20601_v2 = vmax.f32 %v3806_v40, %v3750_v32  ;;  %v3541_v49 = vadd.f32 %v20573_v15, %v3540_v27  ;;  %v3025_v8 = vpop.f32.mrf.mxu1 }
 0x4ca   : > { %v3026_v9 = vadd.f32 %v3025_v8, %v20399_v30  ;;  %v3542_v6 = vpop.f32.mrf.mxu0  ;;  %v3209_v29 = vmax.f32 %v3024_v33, 0.0  ;;  %4307 = vmatpush1.bf16.msra.mxu1 %v15915_v55 }
 0x4cb   : > { %v3751_v1 = vmax.f32 %v3541_v49, 0.0  ;;  %v3027_v63 = vpop.f32.mrf.mxu1 }
 0x4cc   : > { %v3028_v54 = vadd.f32 %v3027_v63, %v20383_v42  ;;  %v3545_v20 = vpop.f32.mrf.mxu0  ;;  %v3210_v13 = vmax.f32 %v3026_v9, 0.0 }
 0x4cd   : > { %v20608_v43 = vmax.f32 %v3807_v24, %v3751_v1  ;;  %v3546_v56 = vadd.f32 %v20573_v15, %v3545_v20  ;;  %v3031_v4 = vpop.f32.mrf.mxu1 }
 0x4ce   : > { %v3211_v51 = vmax.f32 %v3028_v54, 0.0  ;;  %v3547_v58 = vpop.f32.mrf.mxu0  ;;  %v3292_v16 = vpack.c.bf16 %v3210_v13, %v3208_v21  ;;  %v3032_v59 = vadd.f32 %v3031_v4, %v20399_v30 }
 0x4cf   : > { %v3752_v19 = vmax.f32 %v3546_v56, 0.0  ;;  %v3033_v41 = vpop.f32.mrf.mxu1 }
 0x4d0   : > { %v20611_v17 = vpop.f32.mrf.mxu0  ;;  %v3293_v57 = vpack.c.bf16 %v3211_v51, %v3209_v29  ;;  %v3034_v36 = vadd.f32 %v3033_v41, %v20383_v42  ;;  %v3212_v18 = vmax.f32 %v3032_v59, 0.0 }
 0x4d1   : > { %v20613_v31 = vmax.f32 %v3808_v61, %v3752_v19  ;;  %v3035_v62 = vpop.f32.mrf.mxu1 }
 0x4d2   : > { %v3036_v60 = vadd.f32 %v3035_v62, %v20399_v30  ;;  %v3550_v0 = vpop.f32.mrf.mxu0  ;;  %3655 = vmatprep.mubr.bf16.mxu0 %v3293_v57  ;;  %v3213_v26 = vmax.f32 %v3034_v36, 0.0 }
 0x4d3   : > { %v3037_v40 = vpop.f32.mrf.mxu1  ;;  %3656 = vmatmul.mubr.bf16.gmra.mxu0 %v3292_v16 }
 0x4d4   : > { %v3038_v11 = vadd.f32 %v3037_v40, %v20383_v42  ;;  %v20619_v48 = vpop.f32.mrf.mxu0  ;;  %v3214_v37 = vmax.f32 %v3036_v60, 0.0 }
 0x4d6   : > { %v3215_v24 = vmax.f32 %v3038_v11, 0.0  ;;  %v3555_v28 = vpop.f32.mrf.mxu0  ;;  %v3294_v61 = vpack.c.bf16 %v3214_v37, %v3212_v18 }
 0x4d8   : > { %v20621_v35 = vpop.f32.mrf.mxu0  ;;  %v3295_v45 = vpack.c.bf16 %v3215_v24, %v3213_v26 }
 0x4da   : > { %v3558_v14 = vpop.f32.mrf.mxu0  ;;  %3663 = vmatprep.mubr.bf16.mxu0 %v3295_v45 }
 0x4db   : > { %3664 = vmatmul.mubr.bf16.gmra.mxu0 %v3294_v61  ;;  %v3549_v14 = vadd.f32 %v20573_v15, %v20611_v17 }
 0x4dc   : > { %v3561_v23 = vpop.f32.mrf.mxu0 }
 0x4dd   : > { %v3753_v52 = vmax.f32 %v3549_v14, 0.0 }
 0x4de   : > { %v3563_v25 = vpop.f32.mrf.mxu0 }
 0x4df   : > { %v3918_v25 = vld [vmem:[#allocation17 + $0x140] sm:$0xff] }
 0x4e0   : > { %v3564_v7 = vpop.f32.mrf.mxu0 }
 0x4e1   : > { %v3565_v38 = vadd.f32 %v20573_v15, %v3564_v7 }
 0x4e2   : > { %v3566_v12 = vpop.f32.mrf.mxu0 }
 0x4e3   : > { %v3922_v12 = vld [vmem:[#allocation17 + $0x160] sm:$0xff] }
 0x4e4   : > { %v20623_v50 = vpop.f32.mrf.mxu0  ;;  %v15907_v34 = vcombine.low %v3918_v25, %v3922_v12  ;;  %v15908_v55 = vcombine.high %v3918_v25, %v3922_v12 }
 0x4e6   : > { %v3571_v22 = vpop.f32.mrf.mxu0  ;;  %4308 = vmatprep.subr.bf16.mxu1 %v15908_v55 }
 0x4e7   : > { %v3562_v22 = vadd.f32 %v20573_v15, %v3561_v23  ;;  %4309 = vmatpush1.bf16.msra.mxu1 %v15907_v34  ;;  %v3554_v23 = vadd.f32 %v20573_v15, %v20619_v48 }
 0x4e8   : > { %v20625_v32 = vpop.f32.mrf.mxu0 }
 0x4ea   : > { %v3041_v53 = vpop.f32.mrf.mxu1  ;;  %v3574_v27 = vpop.f32.mrf.mxu0 }
 0x4eb   : > { %v3042_v1 = vadd.f32 %v3041_v53, %v20399_v30 }
 0x4ec   : > { %v3043_v49 = vpop.f32.mrf.mxu1  ;;  %v3577_v8 = vpop.f32.mrf.mxu0 }
 0x4ed   : > { %v3044_v6 = vadd.f32 %v3043_v49, %v20383_v42  ;;  %v3216_v58 = vmax.f32 %v3042_v1, 0.0  ;;  %v3578_v53 = vadd.f32 %v20573_v15, %v3577_v8  ;;  %v3557_v8 = vadd.f32 %v20573_v15, %v20621_v35 }
 0x4ee   : > { %v3045_v33 = vpop.f32.mrf.mxu1  ;;  %v3579_v9 = vpop.f32.mrf.mxu0 }
 0x4ef   : > { %v3046_v10 = vadd.f32 %v3045_v33, %v20399_v30  ;;  %v3217_v29 = vmax.f32 %v3044_v6, 0.0  ;;  %v3756_v33 = vmax.f32 %v3562_v22, 0.0  ;;  %v3757_v9 = vmax.f32 %v3565_v38, 0.0 }
 0x4f0   : > { %v3047_v63 = vpop.f32.mrf.mxu1  ;;  %v3580_v54 = vpop.f32.mrf.mxu0  ;;  %v3760_v7 = vmax.f32 %v3578_v53, 0.0 }
 0x4f1   : > { %v3048_v20 = vadd.f32 %v3047_v63, %v20383_v42  ;;  %v3218_v13 = vmax.f32 %v3046_v10, 0.0  ;;  %v3581_v27 = vadd.f32 %v20573_v15, %v3580_v54  ;;  %v3813_v10 = vmax.f32 %v20598_v3, %v3753_v52 }
 0x4f2   : > { %v3051_v56 = vpop.f32.mrf.mxu1  ;;  %v3582_v4 = vpop.f32.mrf.mxu0  ;;  %v3570_v63 = vadd.f32 %v20573_v15, %v20623_v50  ;;  %v3573_v3 = vadd.f32 %v20573_v15, %v20625_v32 }
 0x4f3   : > { %v3219_v51 = vmax.f32 %v3048_v20, 0.0  ;;  %v3296_v57 = vpack.c.bf16 %v3218_v13, %v3216_v58  ;;  %v3052_v0 = vadd.f32 %v3051_v56, %v20399_v30  ;;  %v3761_v1 = vmax.f32 %v3581_v27, 0.0 }
 0x4f4   : > { %v3053_v21 = vpop.f32.mrf.mxu1  ;;  %v3585_v19 = vpop.f32.mrf.mxu0  ;;  %v3816_v13 = vmax.f32 %v20613_v31, %v3756_v33  ;;  %v3817_v56 = vmax.f32 %v3813_v10, %v3757_v9  ;;  %v3754_v58 = vmax.f32 %v3554_v23, 0.0 }
 0x4f5   : > { %v3297_v41 = vpack.c.bf16 %v3219_v51, %v3217_v29  ;;  %v3054_v36 = vadd.f32 %v3053_v21, %v20383_v42  ;;  %v3220_v18 = vmax.f32 %v3052_v0, 0.0  ;;  %v3586_v50 = vadd.f32 %v20573_v15, %v3585_v19 }
 0x4f6   : > { %v3055_v16 = vpop.f32.mrf.mxu1  ;;  %v3587_v62 = vpop.f32.mrf.mxu0  ;;  %v3820_v21 = vmax.f32 %v3816_v13, %v3760_v7 }
 0x4f7   : > { %v3056_v60 = vadd.f32 %v3055_v16, %v20399_v30  ;;  %3671 = vmatprep.mubr.bf16.mxu0 %v3297_v41  ;;  %v3221_v24 = vmax.f32 %v3054_v36, 0.0  ;;  %v3821_v41 = vmax.f32 %v3817_v56, %v3761_v1  ;;  %v3758_v16 = vmax.f32 %v3570_v63, 0.0 }
 0x4f8   : > { %v3057_v59 = vpop.f32.mrf.mxu1  ;;  %v3588_v40 = vpop.f32.mrf.mxu0  ;;  %3672 = vmatmul.mubr.bf16.gmra.mxu0 %v3296_v57  ;;  %v3755_v57 = vmax.f32 %v3557_v8, 0.0 }
 0x4f9   : > { %v3058_v11 = vadd.f32 %v3057_v59, %v20383_v42  ;;  %v3222_v37 = vmax.f32 %v3056_v60, 0.0  ;;  %v3589_v62 = vadd.f32 %v20573_v15, %v3588_v40 }
 0x4fa   : > { %v3590_v26 = vpop.f32.mrf.mxu0 }
 0x4fb   : > { %v3223_v28 = vmax.f32 %v3058_v11, 0.0  ;;  %v3298_v61 = vpack.c.bf16 %v3222_v37, %v3220_v18  ;;  %v3759_v11 = vmax.f32 %v3573_v3, 0.0  ;;  %v3814_v18 = vmax.f32 %v20601_v2, %v3754_v58 }
 0x4fc   : > { %v3763_v14 = vmax.f32 %v3589_v62, 0.0 }
 0x4fd   : > { %v3299_v45 = vpack.c.bf16 %v3223_v28, %v3221_v24  ;;  %v3818_v38 = vmax.f32 %v3814_v18, %v3758_v16  ;;  %v3910_v16 = vld [vmem:[#allocation17 + $0x100] sm:$0xff] }
 0x4ff   : > { %3679 = vmatprep.mubr.bf16.mxu0 %v3299_v45  ;;  %v3815_v45 = vmax.f32 %v20608_v43, %v3755_v57 }
 0x500   : > { %3680 = vmatmul.mubr.bf16.gmra.mxu0 %v3298_v61  ;;  %v3762_v61 = vmax.f32 %v3586_v50, 0.0  ;;  %v3914_v50 = vld [vmem:[#allocation17 + $0x120] sm:$0xff] }
 0x501   : > { %v3819_v52 = vmax.f32 %v3815_v45, %v3759_v11 }
 0x507   : > { %v3593_v49 = vpop.f32.mrf.mxu0 }
 0x508   : > { %v3594_v17 = vadd.f32 %v20573_v15, %v3593_v49 }
 0x509   : > { %v3595_v6 = vpop.f32.mrf.mxu0 }
 0x50a   : > { %v3764_v4 = vmax.f32 %v3594_v17, 0.0  ;;  %v3822_v17 = vmax.f32 %v3818_v38, %v3762_v61  ;;  %v3823_v6 = vmax.f32 %v3819_v52, %v3763_v14 }
 0x50b   : > { %v3061_v54 = vpop.f32.mrf.mxu1  ;;  %v3596_v20 = vpop.f32.mrf.mxu0 }
 0x50c   : > { %v3597_v29 = vadd.f32 %v20573_v15, %v3596_v20  ;;  %v3824_v60 = vmax.f32 %v3820_v21, %v3764_v4  ;;  %v3062_v37 = vadd.f32 %v3061_v54, %v20399_v30 }
 0x50d   : > { %v3063_v48 = vpop.f32.mrf.mxu1  ;;  %v3598_v51 = vpop.f32.mrf.mxu0 }
 0x50e   : > { %v3765_v35 = vmax.f32 %v3597_v29, 0.0  ;;  %v3064_v59 = vadd.f32 %v3063_v48, %v20383_v42  ;;  %v3224_v53 = vmax.f32 %v3062_v37, 0.0 }
 0x50f   : > { %v3065_v31 = vpop.f32.mrf.mxu1  ;;  %v3601_v36 = vpop.f32.mrf.mxu0 }
 0x510   : > { %v3825_v0 = vmax.f32 %v3821_v41, %v3765_v35  ;;  %v3066_v32 = vadd.f32 %v3065_v31, %v20399_v30  ;;  %v3602_v26 = vadd.f32 %v20573_v15, %v3601_v36  ;;  %v3225_v34 = vmax.f32 %v3064_v59, 0.0 }
 0x511   : > { %v3067_v24 = vpop.f32.mrf.mxu1  ;;  %v3603_v28 = vpop.f32.mrf.mxu0  ;;  %v15899_v31 = vcombine.low %v3910_v16, %v3914_v50  ;;  %v15900_v36 = vcombine.high %v3910_v16, %v3914_v50 }
 0x512   : > { %v3828_v19 = vmax.f32 %v3824_v60, %v3825_v0  ;;  %v3068_v40 = vadd.f32 %v3067_v24, %v20383_v42  ;;  %v3226_v25 = vmax.f32 %v3066_v32, 0.0  ;;  %v3766_v27 = vmax.f32 %v3602_v26, 0.0 }
 0x513   : > { %v3071_v12 = vpop.f32.mrf.mxu1  ;;  %v3604_v22 = vpop.f32.mrf.mxu0  ;;  %4310 = vmatprep.subr.bf16.mxu1 %v15900_v36 }
 0x514   : > { %v3227_v55 = vmax.f32 %v3068_v40, 0.0  ;;  %v3605_v49 = vadd.f32 %v20573_v15, %v3604_v22  ;;  %v3300_v10 = vpack.c.bf16 %v3226_v25, %v3224_v53  ;;  %v3826_v8 = vmax.f32 %v3822_v17, %v3766_v27  ;;  %4311 = vmatpush1.bf16.msra.mxu1 %v15899_v31 }
 0x515   : > { %v3073_v33 = vpop.f32.mrf.mxu1  ;;  %v3606_v2 = vpop.f32.mrf.mxu0  ;;  %v3072_v63 = vadd.f32 %v3071_v12, %v20399_v30 }
 0x516   : > { %v3301_v9 = vpack.c.bf16 %v3227_v55, %v3225_v34  ;;  %v3767_v43 = vmax.f32 %v3605_v49, 0.0  ;;  %v3074_v7 = vadd.f32 %v3073_v33, %v20383_v42 }
 0x517   : > { %v3075_v23 = vpop.f32.mrf.mxu1  ;;  %v3228_v48 = vmax.f32 %v3072_v63, 0.0 }
 0x518   : > { %v3076_v1 = vadd.f32 %v3075_v23, %v20399_v30  ;;  %3687 = vmatprep.mubr.bf16.mxu0 %v3301_v9  ;;  %v3827_v54 = vmax.f32 %v3823_v6, %v3767_v43  ;;  %v3229_v29 = vmax.f32 %v3074_v7, 0.0 }
 0x519   : > { %v3077_v20 = vpop.f32.mrf.mxu1  ;;  %3688 = vmatmul.mubr.bf16.gmra.mxu0 %v3300_v10 }
 0x51a   : > { %v3078_v13 = vadd.f32 %v3077_v20, %v20383_v42  ;;  %v3829_v56 = vmax.f32 %v3826_v8, %v3827_v54  ;;  %v3230_v4 = vmax.f32 %v3076_v1, 0.0  ;;  %v3902_v20 = vld [vmem:[#allocation17 + $0xc0] sm:$0xff] }
 0x51c   : > { %v3231_v3 = vmax.f32 %v3078_v13, 0.0  ;;  %v3830_v51 = vmax.f32 %v3828_v19, %v3829_v56  ;;  %v3302_v41 = vpack.c.bf16 %v3230_v4, %v3228_v48  ;;  %v3906_v13 = vld [vmem:[#allocation17 + $0xe0] sm:$0xff] }
 0x51d   : > { %v15891_v56 = vcombine.low %v3902_v20, %v3906_v13  ;;  %v15892_v4 = vcombine.high %v3902_v20, %v3906_v13 }
 0x51e   : > { %v3303_v58 = vpack.c.bf16 %v3231_v3, %v3229_v29  ;;  %v3831_v21 = vrot.slane %v3830_v51, 4 }
 0x51f   : > { %4312 = vmatprep.subr.bf16.mxu1 %v15892_v4 }
 0x520   : > { %3695 = vmatprep.mubr.bf16.mxu0 %v3303_v58  ;;  %v3832_v35 = vmax.f32 %v3830_v51, %v3831_v21  ;;  %4313 = vmatpush1.bf16.msra.mxu1 %v15891_v56 }
 0x521   : > { %3696 = vmatmul.mubr.bf16.gmra.mxu0 %v3302_v41 }
 0x522   : > { %v3833_v57 = vrot.slane %v3832_v35, 2 }
 0x524   : > { %v3834_v62 = vmax.f32 %v3832_v35, %v3833_v57 }
 0x526   : > { %v3835_v60 = vrot.slane %v3834_v62, 1 }
 0x528   : > { %v3836_v0 = vmax.f32 %v3834_v62, %v3835_v60 }
 0x52a   : > { %3837 = vst [vmem:[#allocation25] sm:$0x1] %v3836_v0 }
 0x52c   : > { %v3609_v59 = vpop.f32.mrf.mxu0 }
 0x52d   : > { %v3610_v29 = vadd.f32 %v20573_v15, %v3609_v59 }
 0x52e   : > { %v3611_v32 = vpop.f32.mrf.mxu0 }
 0x52f   : > { %v3768_v58 = vmax.f32 %v3610_v29, 0.0  ;;  %v3894_v29 = vld [vmem:[#allocation17 + $0x80] sm:$0xff] }
 0x530   : > { %v3081_v11 = vpop.f32.mrf.mxu1  ;;  %v3612_v37 = vpop.f32.mrf.mxu0 }
 0x531   : > { %v3082_v45 = vadd.f32 %v3081_v11, %v20399_v30  ;;  %v3613_v21 = vadd.f32 %v20573_v15, %v3612_v37 }
 0x532   : > { %v3083_v26 = vpop.f32.mrf.mxu1  ;;  %v3614_v24 = vpop.f32.mrf.mxu0 }
 0x533   : > { %v3084_v19 = vadd.f32 %v3083_v26, %v20383_v42  ;;  %v3232_v52 = vmax.f32 %v3082_v45, 0.0  ;;  %v3769_v36 = vmax.f32 %v3613_v21, 0.0 }
 0x534   : > { %v3085_v28 = vpop.f32.mrf.mxu1  ;;  %v3617_v18 = vpop.f32.mrf.mxu0 }
 0x535   : > { %v3086_v40 = vadd.f32 %v3085_v28, %v20399_v30  ;;  %v3233_v34 = vmax.f32 %v3084_v19, 0.0  ;;  %v3618_v60 = vadd.f32 %v20573_v15, %v3617_v18 }
 0x536   : > { %v3087_v61 = vpop.f32.mrf.mxu1  ;;  %v3619_v14 = vpop.f32.mrf.mxu0 }
 0x537   : > { %v3088_v25 = vadd.f32 %v3087_v61, %v20383_v42  ;;  %v3234_v12 = vmax.f32 %v3086_v40, 0.0  ;;  %v3770_v45 = vmax.f32 %v3618_v60, 0.0 }
 0x538   : > { %v3091_v22 = vpop.f32.mrf.mxu1  ;;  %v3620_v38 = vpop.f32.mrf.mxu0 }
 0x539   : > { %v3235_v55 = vmax.f32 %v3088_v25, 0.0  ;;  %v3304_v33 = vpack.c.bf16 %v3234_v12, %v3232_v52  ;;  %v3092_v6 = vadd.f32 %v3091_v22, %v20399_v30  ;;  %v3621_v18 = vadd.f32 %v20573_v15, %v3620_v38 }
 0x53a   : > { %v3093_v53 = vpop.f32.mrf.mxu1  ;;  %v3622_v27 = vpop.f32.mrf.mxu0 }
 0x53b   : > { %v3305_v49 = vpack.c.bf16 %v3235_v55, %v3233_v34  ;;  %v3094_v9 = vadd.f32 %v3093_v53, %v20383_v42  ;;  %v3236_v8 = vmax.f32 %v3092_v6, 0.0 }
 0x53c   : > { %v3095_v2 = vpop.f32.mrf.mxu1 }
 0x53d   : > { %v3096_v17 = vadd.f32 %v3095_v2, %v20399_v30  ;;  %3703 = vmatprep.mubr.bf16.mxu0 %v3305_v49  ;;  %v3237_v7 = vmax.f32 %v3094_v9, 0.0  ;;  %v3771_v9 = vmax.f32 %v3621_v18, 0.0 }
 0x53e   : > { %v3097_v10 = vpop.f32.mrf.mxu1  ;;  %3704 = vmatmul.mubr.bf16.gmra.mxu0 %v3304_v33 }
 0x53f   : > { %v3098_v43 = vadd.f32 %v3097_v10, %v20383_v42  ;;  %v3238_v23 = vmax.f32 %v3096_v17, 0.0 }
 0x541   : > { %v3239_v1 = vmax.f32 %v3098_v43, 0.0  ;;  %v3306_v54 = vpack.c.bf16 %v3238_v23, %v3236_v8 }
 0x543   : > { %v3307_v63 = vpack.c.bf16 %v3239_v1, %v3237_v7 }
 0x545   : > { %3711 = vmatprep.mubr.bf16.mxu0 %v3307_v63 }
 0x546   : > { %3712 = vmatmul.mubr.bf16.gmra.mxu0 %v3306_v54 }
 0x54d   : > { %v3625_v3 = vpop.f32.mrf.mxu0 }
 0x54e   : > { %v3626_v48 = vadd.f32 %v20573_v15, %v3625_v3  ;;  %v3898_v3 = vld [vmem:[#allocation17 + $0xa0] sm:$0xff] }
 0x54f   : > { %v3627_v51 = vpop.f32.mrf.mxu0 }
 0x550   : > { %v3772_v41 = vmax.f32 %v3626_v48, 0.0  ;;  %v15883_v48 = vcombine.low %v3894_v29, %v3898_v3  ;;  %v15884_v51 = vcombine.high %v3894_v29, %v3898_v3 }
 0x551   : > { %v3101_v35 = vpop.f32.mrf.mxu1  ;;  %v3628_v57 = vpop.f32.mrf.mxu0 }
 0x552   : > { %v3838_v16 = vmax.f32 %v3768_v58, %v3772_v41  ;;  %v3629_v50 = vadd.f32 %v20573_v15, %v3628_v57  ;;  %v3102_v28 = vadd.f32 %v3101_v35, %v20399_v30  ;;  %4314 = vmatprep.subr.bf16.mxu1 %v15884_v51  ;;  %v3878_v51 = vld [vmem:[#allocation17] sm:$0xff] }
 0x553   : > { %v3103_v62 = vpop.f32.mrf.mxu1  ;;  %v3630_v31 = vpop.f32.mrf.mxu0  ;;  %4315 = vmatpush1.bf16.msra.mxu1 %v15883_v48 }
 0x554   : > { %v3773_v0 = vmax.f32 %v3629_v50, 0.0  ;;  %v3104_v26 = vadd.f32 %v3103_v62, %v20383_v42  ;;  %v3240_v53 = vmax.f32 %v3102_v28, 0.0 }
 0x555   : > { %v3105_v59 = vpop.f32.mrf.mxu1  ;;  %v3633_v32 = vpop.f32.mrf.mxu0 }
 0x556   : > { %v3839_v11 = vmax.f32 %v3769_v36, %v3773_v0  ;;  %v3106_v24 = vadd.f32 %v3105_v59, %v20399_v30  ;;  %v3634_v37 = vadd.f32 %v20573_v15, %v3633_v32  ;;  %v3241_v34 = vmax.f32 %v3104_v26, 0.0 }
 0x557   : > { %v3107_v19 = vpop.f32.mrf.mxu1  ;;  %v3635_v40 = vpop.f32.mrf.mxu0 }
 0x558   : > { %v3774_v61 = vmax.f32 %v3634_v37, 0.0  ;;  %v3108_v14 = vadd.f32 %v3107_v19, %v20383_v42  ;;  %v3242_v25 = vmax.f32 %v3106_v24, 0.0  ;;  %v3886_v40 = vld [vmem:[#allocation17 + $0x40] sm:$0xff] }
 0x559   : > { %v3111_v12 = vpop.f32.mrf.mxu1  ;;  %v3636_v22 = vpop.f32.mrf.mxu0 }
 0x55a   : > { %v3840_v55 = vmax.f32 %v3770_v45, %v3774_v61  ;;  %v3243_v52 = vmax.f32 %v3108_v14, 0.0  ;;  %v3637_v27 = vadd.f32 %v20573_v15, %v3636_v22  ;;  %v3308_v17 = vpack.c.bf16 %v3242_v25, %v3240_v53  ;;  %v3890_v45 = vld [vmem:[#allocation17 + $0x60] sm:$0xff] }
 0x55b   : > { %v3113_v49 = vpop.f32.mrf.mxu1  ;;  %v3638_v33 = vpop.f32.mrf.mxu0  ;;  %v3112_v23 = vadd.f32 %v3111_v12, %v20399_v30  ;;  %v15876_v61 = vcombine.high %v3886_v40, %v3890_v45 }
 0x55c   : > { %v3309_v2 = vpack.c.bf16 %v3243_v52, %v3241_v34  ;;  %v3775_v6 = vmax.f32 %v3637_v27, 0.0  ;;  %v3114_v43 = vadd.f32 %v3113_v49, %v20383_v42 }
 0x55d   : > { %v3115_v10 = vpop.f32.mrf.mxu1  ;;  %v3244_v13 = vmax.f32 %v3112_v23, 0.0  ;;  %4316 = vmatprep.subr.bf16.mxu1 %v15876_v61  ;;  %v4572_v61 = vld [vmem:[#allocation20 + $0x2c0] sm:$0xff] }
 0x55e   : > { %v3116_v38 = vadd.f32 %v3115_v10, %v20399_v30  ;;  %3719 = vmatprep.mubr.bf16.mxu0 %v3309_v2  ;;  %v3841_v7 = vmax.f32 %v3771_v9, %v3775_v6  ;;  %v3245_v54 = vmax.f32 %v3114_v43, 0.0 }
 0x55f   : > { %v3117_v1 = vpop.f32.mrf.mxu1  ;;  %3720 = vmatmul.mubr.bf16.gmra.mxu0 %v3308_v17 }
 0x560   : > { %v3118_v8 = vadd.f32 %v3117_v1, %v20383_v42  ;;  %v3246_v63 = vmax.f32 %v3116_v38, 0.0 }
 0x562   : > { %v3247_v20 = vmax.f32 %v3118_v8, 0.0  ;;  %v3310_v4 = vpack.c.bf16 %v3246_v63, %v3244_v13 }
 0x564   : > { %v3311_v56 = vpack.c.bf16 %v3247_v20, %v3245_v54 }
 0x566   : > { %3727 = vmatprep.mubr.bf16.mxu0 %v3311_v56 }
 0x567   : > { %3728 = vmatmul.mubr.bf16.gmra.mxu0 %v3310_v4 }
 0x572   : > { %v3641_v30 = vpop.f32.mrf.mxu0 }
 0x573   : > { %v3642_v58 = vadd.f32 %v20573_v15, %v3641_v30  ;;  %v3882_v30 = vld [vmem:[#allocation17 + $0x20] sm:$0xff] }
 0x574   : > { %v3643_v21 = vpop.f32.mrf.mxu0 }
 0x575   : > { %v3776_v41 = vmax.f32 %v3642_v58, 0.0  ;;  %v4596_v58 = vld [vmem:[#allocation20 + $0x380] sm:$0xff] }
 0x576   : > { %v3644_v42 = vpop.f32.mrf.mxu0 }
 0x577   : > { %v3842_v35 = vmax.f32 %v3838_v16, %v3776_v41  ;;  %v3645_v57 = vadd.f32 %v20573_v15, %v3644_v42  ;;  %v15875_v16 = vcombine.low %v3886_v40, %v3890_v45  ;;  %v15867_v41 = vcombine.low %v3878_v51, %v3882_v30 }
 0x578   : > { %v3646_v50 = vpop.f32.mrf.mxu0  ;;  %v15868_v42 = vcombine.high %v3878_v51, %v3882_v30  ;;  %v4524_v51 = vld [vmem:[#allocation20 + $0x140] sm:$0xff] }
 0x579   : > { %v3777_v62 = vmax.f32 %v3645_v57, 0.0  ;;  %4317 = vmatpush1.bf16.msra.mxu1 %v15875_v16  ;;  %v4580_v57 = vld [vmem:[#allocation20 + $0x300] sm:$0xff] }
 0x57a   : > { %v3649_v31 = vpop.f32.mrf.mxu0  ;;  %v4588_v50 = vld [vmem:[#allocation20 + $0x340] sm:$0xff]  ;;  %4318 = vmatprep.subr.bf16.mxu1 %v15868_v42 }
 0x57b   : > { %v3843_v36 = vmax.f32 %v3839_v11, %v3777_v62  ;;  %v3650_v60 = vadd.f32 %v20573_v15, %v3649_v31  ;;  %v16027_v40 = vcombine.low %v4580_v57, %v4588_v50  ;;  %v4564_v16 = vld [vmem:[#allocation20 + $0x280] sm:$0xff] }
 0x57c   : > { %v3651_v0 = vpop.f32.mrf.mxu0 }
 0x57d   : > { %v3778_v59 = vmax.f32 %v3650_v60, 0.0  ;;  %v16028_v60 = vcombine.high %v4580_v57, %v4588_v50  ;;  %v20702_v0 = vld [vmem:[#allocation17 + $0x1c8] sm:$0xff]  ;;  %4319 = vmatpush1.bf16.msra.mxu1 %v15867_v41 }
 0x57e   : > { %v3652_v32 = vpop.f32.mrf.mxu0 }
 0x57f   : > { %v3844_v26 = vmax.f32 %v3840_v55, %v3778_v59  ;;  %v3653_v24 = vadd.f32 %v20573_v15, %v3652_v32  ;;  %v20704_v59 = vld [vmem:[#allocation17 + $0x1e8] sm:$0xff] }
 0x580   : > { %v3654_v37 = vpop.f32.mrf.mxu0 }
 0x581   : > { %v3779_v28 = vmax.f32 %v3653_v24, 0.0  ;;  %v15925_v24 = vcombine.low %v20702_v0, %v20704_v59  ;;  %v15926_v37 = vcombine.high %v20702_v0, %v20704_v59  ;;  %v3899_v0 = vld [vmem:[#allocation17 + $0xa8] sm:$0xff] }
 0x583   : > { %v3845_v19 = vmax.f32 %v3841_v7, %v3779_v28  ;;  %4345 = vmatprep.subr.bf16.mxu1 %v15926_v37 }
 0x593   : > { %v3657_v14 = vpop.f32.mrf.mxu0 }
 0x594   : > { %v3658_v11 = vadd.f32 %v20573_v15, %v3657_v14  ;;  %v16012_v14 = vcombine.high %v4564_v16, %v4572_v61 }
 0x595   : > { %v3659_v18 = vpop.f32.mrf.mxu0 }
 0x596   : > { %v3780_v25 = vmax.f32 %v3658_v11, 0.0  ;;  %v20711_v18 = vld [vmem:[#allocation15] ss:$0 sm:$0xff] }
 0x597   : > { %v3660_v12 = vpop.f32.mrf.mxu0 }
 0x598   : > { %v3846_v22 = vmax.f32 %v3842_v35, %v3780_v25  ;;  %v3661_v34 = vadd.f32 %v20573_v15, %v3660_v12  ;;  %v4604_v35 = vld [vmem:[#allocation20 + $0x3c0] sm:$0xff] }
 0x599   : > { %v3662_v55 = vpop.f32.mrf.mxu0  ;;  %v16043_v31 = vcombine.low %v4596_v58, %v4604_v35 }
 0x59a   : > { %v3781_v52 = vmax.f32 %v3661_v34, 0.0 }
 0x59b   : > { %v3665_v53 = vpop.f32.mrf.mxu0 }
 0x59c   : > { %v3847_v27 = vmax.f32 %v3843_v36, %v3781_v52  ;;  %v3666_v49 = vadd.f32 %v20573_v15, %v3665_v53  ;;  %v16044_v36 = vcombine.high %v4596_v58, %v4604_v35 }
 0x59d   : > { %v3667_v33 = vpop.f32.mrf.mxu0 }
 0x59e   : > { %v3782_v2 = vmax.f32 %v3666_v49, 0.0  ;;  %10712 = vmatprep.subr.bf16.mxu0 %v16044_v36  ;;  %v4548_v33 = vld [vmem:[#allocation20 + $0x200] sm:$0xff] }
 0x59f   : > { %v3668_v9 = vpop.f32.mrf.mxu0  ;;  %10713 = vmatpush1.bf16.msra.mxu0 %v16043_v31  ;;  %v4508_v31 = vld [vmem:[#allocation20 + $0xc0] sm:$0xff] }
 0x5a0   : > { %v3848_v17 = vmax.f32 %v3844_v26, %v3782_v2  ;;  %v3669_v6 = vadd.f32 %v20573_v15, %v3668_v9  ;;  %10714 = vmatprep.subr.bf16.mxu0 %v16028_v60  ;;  %v4556_v2 = vld [vmem:[#allocation20 + $0x240] sm:$0xff] }
 0x5a1   : > { %v3670_v10 = vpop.f32.mrf.mxu0 }
 0x5a2   : > { %v3783_v43 = vmax.f32 %v3669_v6, 0.0  ;;  %v15995_v6 = vcombine.low %v4548_v33, %v4556_v2  ;;  %v15996_v10 = vcombine.high %v4548_v33, %v4556_v2 }
 0x5a3   : > { %10715 = vmatpush1.bf16.msra.mxu0 %v16027_v40 }
 0x5a4   : > { %v3849_v38 = vmax.f32 %v3845_v19, %v3783_v43  ;;  %10716 = vmatprep.subr.bf16.mxu0 %v16012_v14 }
 0x5b8   : > { %v3673_v23 = vpop.f32.mrf.mxu0 }
 0x5b9   : > { %v3674_v7 = vadd.f32 %v20573_v15, %v3673_v23 }
 0x5ba   : > { %v3675_v1 = vpop.f32.mrf.mxu0 }
 0x5bb   : > { %v3784_v8 = vmax.f32 %v3674_v7, 0.0 }
 0x5bc   : > { %v3676_v63 = vpop.f32.mrf.mxu0 }
 0x5bd   : > { %v3850_v54 = vmax.f32 %v3846_v22, %v3784_v8  ;;  %v3677_v20 = vadd.f32 %v20573_v15, %v3676_v63 }
 0x5be   : > { %v3678_v13 = vpop.f32.mrf.mxu0 }
 0x5bf   : > { %v3785_v56 = vmax.f32 %v3677_v20, 0.0  ;;  %v4532_v20 = vld [vmem:[#allocation20 + $0x180] sm:$0xff] }
 0x5c0   : > { %v3681_v4 = vpop.f32.mrf.mxu0  ;;  %v4540_v13 = vld [vmem:[#allocation20 + $0x1c0] sm:$0xff] }
 0x5c1   : > { %v3851_v29 = vmax.f32 %v3847_v27, %v3785_v56  ;;  %v3682_v3 = vadd.f32 %v20573_v15, %v3681_v4  ;;  %v15979_v56 = vcombine.low %v4532_v20, %v4540_v13  ;;  %v15980_v4 = vcombine.high %v4532_v20, %v4540_v13  ;;  %v4708_v20 = vld [vmem:[#allocation20 + $0x700] sm:$0xff] }
 0x5c2   : > { %v3683_v48 = vpop.f32.mrf.mxu0 }
 0x5c3   : > { %v3786_v21 = vmax.f32 %v3682_v3, 0.0  ;;  %v4516_v48 = vld [vmem:[#allocation20 + $0x100] sm:$0xff] }
 0x5c4   : > { %v3684_v62 = vpop.f32.mrf.mxu0  ;;  %v15963_v58 = vcombine.low %v4516_v48, %v4524_v51 }
 0x5c5   : > { %v3852_v32 = vmax.f32 %v3848_v17, %v3786_v21  ;;  %v3685_v26 = vadd.f32 %v20573_v15, %v3684_v62  ;;  %v16011_v15 = vcombine.low %v4564_v16, %v4572_v61  ;;  %v15964_v21 = vcombine.high %v4516_v48, %v4524_v51  ;;  %v4500_v62 = vld [vmem:[#allocation20 + $0x80] sm:$0xff] }
 0x5c6   : > { %v3686_v28 = vpop.f32.mrf.mxu0  ;;  %v15947_v36 = vcombine.low %v4500_v62, %v4508_v31  ;;  %v15948_v60 = vcombine.high %v4500_v62, %v4508_v31  ;;  %v4492_v16 = vld [vmem:[#allocation20 + $0x40] sm:$0xff] }
 0x5c7   : > { %v3787_v19 = vmax.f32 %v3685_v26, 0.0  ;;  %10717 = vmatpush1.bf16.msra.mxu0 %v16011_v15  ;;  %v4684_v62 = vld [vmem:[#allocation20 + $0x640] sm:$0xff] }
 0x5c8   : > { %10718 = vmatprep.subr.bf16.mxu0 %v15996_v10 }
 0x5c9   : > { %v3853_v45 = vmax.f32 %v3849_v38, %v3787_v19 }
 0x5cb   : > { %10719 = vmatpush1.bf16.msra.mxu0 %v15995_v6 }
 0x5cc   : > { %10720 = vmatprep.subr.bf16.mxu0 %v15980_v4 }
 0x5cf   : > { %10721 = vmatpush1.bf16.msra.mxu0 %v15979_v56 }
 0x5d0   : > { %10722 = vmatprep.subr.bf16.mxu0 %v15964_v21  ;;  %v4700_v21 = vld [vmem:[#allocation20 + $0x6c0] sm:$0xff] }
 0x5d3   : > { %10723 = vmatpush1.bf16.msra.mxu0 %v15963_v58  ;;  %v4692_v58 = vld [vmem:[#allocation20 + $0x680] sm:$0xff] }
 0x5d4   : > { %10724 = vmatprep.subr.bf16.mxu0 %v15948_v60  ;;  %v4660_v60 = vld [vmem:[#allocation20 + $0x580] sm:$0xff] }
 0x5d7   : > { %10725 = vmatpush1.bf16.msra.mxu0 %v15947_v36  ;;  %v16139_v36 = vcombine.low %v4692_v58, %v4700_v21 }
 0x5d9   : > { %v3689_v11 = vpop.f32.mrf.mxu0 }
 0x5da   : > { %v3690_v25 = vadd.f32 %v20711_v18, %v3689_v11 }
 0x5db   : > { %v3691_v12 = vpop.f32.mrf.mxu0 }
 0x5dc   : > { %v3788_v22 = vmax.f32 %v3690_v25, 0.0 }
 0x5dd   : > { %v3692_v34 = vpop.f32.mrf.mxu0 }
 0x5de   : > { %v3854_v55 = vmax.f32 %v3850_v54, %v3788_v22  ;;  %v3693_v52 = vadd.f32 %v20711_v18, %v3692_v34 }
 0x5df   : > { %v3694_v53 = vpop.f32.mrf.mxu0 }
 0x5e0   : > { %v3789_v27 = vmax.f32 %v3693_v52, 0.0 }
 0x5e1   : > { %v3697_v49 = vpop.f32.mrf.mxu0 }
 0x5e2   : > { %v3855_v9 = vmax.f32 %v3851_v29, %v3789_v27  ;;  %v3698_v17 = vadd.f32 %v20711_v18, %v3697_v49 }
 0x5e3   : > { %v3699_v43 = vpop.f32.mrf.mxu0 }
 0x5e4   : > { %v3790_v38 = vmax.f32 %v3698_v17, 0.0 }
 0x5e5   : > { %v3700_v23 = vpop.f32.mrf.mxu0 }
 0x5e6   : > { %v20716_v7 = vmax.f32 %v3852_v32, %v3790_v38  ;;  %v3701_v1 = vadd.f32 %v20711_v18, %v3700_v23 }
 0x5e7   : > { %v3702_v8 = vpop.f32.mrf.mxu0 }
 0x5e8   : > { %v3791_v63 = vmax.f32 %v3701_v1, 0.0 }
 0x5ea   : > { %v20719_v54 = vmax.f32 %v3853_v45, %v3791_v63  ;;  %v4484_v45 = vld [vmem:[#allocation20] sm:$0xff] }
 0x5eb   : > { %v15931_v15 = vcombine.low %v4484_v45, %v4492_v16  ;;  %v15932_v14 = vcombine.high %v4484_v45, %v4492_v16  ;;  %v4724_v63 = vld [vmem:[#allocation20 + $0x780] sm:$0xff] }
 0x5ec   : > { %v4652_v45 = vld [vmem:[#allocation20 + $0x540] sm:$0xff] }
 0x5ed   : > { %10726 = vmatprep.subr.bf16.mxu0 %v15932_v14 }
 0x5ee   : > { %10727 = vmatpush1.bf16.msra.mxu0 %v15931_v15 }
 0x5fe   : > { %v3705_v29 = vpop.f32.mrf.mxu0 }
 0x5ff   : > { %v3706_v32 = vadd.f32 %v20711_v18, %v3705_v29  ;;  %v4716_v29 = vld [vmem:[#allocation20 + $0x740] sm:$0xff] }
 0x600   : > { %v3707_v3 = vpop.f32.mrf.mxu0 }
 0x601   : > { %v3792_v19 = vmax.f32 %v3706_v32, 0.0  ;;  %v4668_v32 = vld [vmem:[#allocation20 + $0x5c0] sm:$0xff] }
 0x602   : > { %v3708_v30 = vpop.f32.mrf.mxu0 }
 0x603   : > { %v3709_v26 = vadd.f32 %v20711_v18, %v3708_v30  ;;  %v3858_v22 = vmax.f32 %v3854_v55, %v3792_v19  ;;  %v16156_v30 = vcombine.high %v4708_v20, %v4716_v29 }
 0x604   : > { %v3710_v41 = vpop.f32.mrf.mxu0 }
 0x605   : > { %v3793_v61 = vmax.f32 %v3709_v26, 0.0 }
 0x606   : > { %v3713_v42 = vpop.f32.mrf.mxu0 }
 0x607   : > { %v3859_v52 = vmax.f32 %v3855_v9, %v3793_v61  ;;  %v3714_v53 = vadd.f32 %v20711_v18, %v3713_v42  ;;  %v4732_v9 = vld [vmem:[#allocation20 + $0x7c0] sm:$0xff]  ;;  %v16107_v61 = vcombine.low %v4660_v60, %v4668_v32 }
 0x608   : > { %v3715_v35 = vpop.f32.mrf.mxu0  ;;  %v16171_v56 = vcombine.low %v4724_v63, %v4732_v9  ;;  %v16172_v4 = vcombine.high %v4724_v63, %v4732_v9  ;;  %v3887_v63 = vld [vmem:[#allocation17 + $0x48] sm:$0xff] }
 0x609   : > { %v3794_v43 = vmax.f32 %v3714_v53, 0.0  ;;  %v16140_v35 = vcombine.high %v4692_v58, %v4700_v21  ;;  %v3891_v9 = vld [vmem:[#allocation17 + $0x68] sm:$0xff]  ;;  %v3928_v21 = vld [vmem:[#allocation17 + $0x190] sm:$0xff] }
 0x60a   : > { %v3716_v57 = vpop.f32.mrf.mxu0  ;;  %10728 = vmatprep.subr.bf16.mxu0 %v16172_v4  ;;  %v3883_v4 = vld [vmem:[#allocation17 + $0x28] sm:$0xff] }
 0x60b   : > { %v3717_v27 = vadd.f32 %v20711_v18, %v3716_v57  ;;  %v3860_v3 = vmax.f32 %v20716_v7, %v3794_v43  ;;  %10729 = vmatpush2.bf16.msra.mxu0 %v16171_v56  ;;  %v3879_v56 = vld [vmem:[#allocation17 + $0x8] sm:$0xff] }
 0x60c   : > { %v3718_v50 = vpop.f32.mrf.mxu0  ;;  %10730 = vmatprep.subr.bf16.mxu0 %v16156_v30  ;;  %v15869_v30 = vcombine.low %v3879_v56, %v3883_v4 }
 0x60d   : > { %v3795_v38 = vmax.f32 %v3717_v27, 0.0  ;;  %v4676_v50 = vld [vmem:[#allocation20 + $0x600] sm:$0xff] }
 0x60e   : > { %v16124_v7 = vcombine.high %v4676_v50, %v4684_v62  ;;  %v3919_v27 = vld [vmem:[#allocation17 + $0x148] sm:$0xff] }
 0x60f   : > { %v3861_v48 = vmax.f32 %v20719_v54, %v3795_v38  ;;  %v3903_v38 = vld [vmem:[#allocation17 + $0xc8] sm:$0xff] }
 0x61f   : > { %v3721_v37 = vpop.f32.mrf.mxu0 }
 0x620   : > { %v3722_v28 = vadd.f32 %v20711_v18, %v3721_v37  ;;  %v16123_v37 = vcombine.low %v4676_v50, %v4684_v62 }
 0x621   : > { %v3723_v40 = vpop.f32.mrf.mxu0 }
 0x622   : > { %v3796_v25 = vmax.f32 %v3722_v28, 0.0  ;;  %v16108_v28 = vcombine.high %v4660_v60, %v4668_v32  ;;  %v4644_v40 = vld [vmem:[#allocation20 + $0x500] sm:$0xff]  ;;  %v3904_v60 = vld [vmem:[#allocation17 + $0xd0] sm:$0xff] }
 0x623   : > { %v3724_v11 = vpop.f32.mrf.mxu0  ;;  %v16092_v15 = vcombine.high %v4644_v40, %v4652_v45  ;;  %v3908_v32 = vld [vmem:[#allocation17 + $0xf0] sm:$0xff] }
 0x624   : > { %v3725_v12 = vadd.f32 %v20711_v18, %v3724_v11  ;;  %v3862_v2 = vmax.f32 %v3858_v22, %v3796_v25  ;;  %v16091_v25 = vcombine.low %v4644_v40, %v4652_v45  ;;  %v3931_v22 = vld [vmem:[#allocation17 + $0x1a8] sm:$0xff]  ;;  %v15895_v40 = vcombine.low %v3904_v60, %v3908_v32 }
 0x625   : > { %v3726_v34 = vpop.f32.mrf.mxu0 }
 0x626   : > { %v3797_v49 = vmax.f32 %v3725_v12, 0.0  ;;  %v3927_v12 = vld [vmem:[#allocation17 + $0x188] sm:$0xff] }
 0x627   : > { %v3729_v33 = vpop.f32.mrf.mxu0  ;;  %v15918_v53 = vcombine.high %v3927_v12, %v3931_v22 }
 0x628   : > { %v3863_v17 = vmax.f32 %v3859_v52, %v3797_v49  ;;  %v3730_v6 = vadd.f32 %v20711_v18, %v3729_v33  ;;  %v3923_v49 = vld [vmem:[#allocation17 + $0x168] sm:$0xff]  ;;  %v15917_v33 = vcombine.low %v3927_v12, %v3931_v22 }
 0x629   : > { %v3731_v10 = vpop.f32.mrf.mxu0 }
 0x62a   : > { %v3866_v23 = vmax.f32 %v3862_v2, %v3863_v17  ;;  %v3798_v8 = vmax.f32 %v3730_v6, 0.0  ;;  %v15910_v2 = vcombine.high %v3919_v27, %v3923_v49  ;;  %v3911_v17 = vld [vmem:[#allocation17 + $0x108] sm:$0xff]  ;;  %v15909_v10 = vcombine.low %v3919_v27, %v3923_v49 }
 0x62b   : > { %v3732_v1 = vpop.f32.mrf.mxu0  ;;  %v3915_v6 = vld [vmem:[#allocation17 + $0x128] sm:$0xff] }
 0x62c   : > { %v3733_v55 = vadd.f32 %v20711_v18, %v3732_v1  ;;  %v3864_v41 = vmax.f32 %v3860_v3, %v3798_v8  ;;  %v16155_v18 = vcombine.low %v4708_v20, %v4716_v29  ;;  %v15902_v43 = vcombine.high %v3911_v17, %v3915_v6 }
 0x62d   : > { %v3734_v13 = vpop.f32.mrf.mxu0  ;;  %v15901_v1 = vcombine.low %v3911_v17, %v3915_v6  ;;  %v15877_v29 = vcombine.low %v3887_v63, %v3891_v9  ;;  %v15870_v3 = vcombine.high %v3879_v56, %v3883_v4 }
 0x62e   : > { %v3799_v51 = vmax.f32 %v3733_v55, 0.0  ;;  %10731 = vmatpush2.bf16.msra.mxu0 %v16155_v18  ;;  %v3895_v55 = vld [vmem:[#allocation17 + $0x88] sm:$0xff]  ;;  %v15878_v13 = vcombine.high %v3887_v63, %v3891_v9 }
 0x62f   : > { %10732 = vmatprep.subr.bf16.mxu0 %v16140_v35  ;;  %v15885_v20 = vcombine.low %v3895_v55, %v3899_v0  ;;  %v3920_v35 = vld [vmem:[#allocation17 + $0x150] sm:$0xff]  ;;  %v4612_v63 = vld [vmem:[#allocation20 + $0x400] sm:$0xff] }
 0x630   : > { %v3865_v42 = vmax.f32 %v3861_v48, %v3799_v51  ;;  %v3936_v48 = vld [vmem:[#allocation17 + $0x1d0] sm:$0xff]  ;;  %v4620_v9 = vld [vmem:[#allocation20 + $0x440] sm:$0xff] }
 0x631   : > { %v3940_v51 = vld [vmem:[#allocation17 + $0x1f0] sm:$0xff]  ;;  %v16059_v56 = vcombine.low %v4612_v63, %v4620_v9 }
 0x632   : > { %v3867_v57 = vmax.f32 %v3864_v41, %v3865_v42  ;;  %10733 = vmatpush2.bf16.msra.mxu0 %v16139_v36  ;;  %v15928_v58 = vcombine.high %v3936_v48, %v3940_v51  ;;  %v3932_v41 = vld [vmem:[#allocation17 + $0x1b0] sm:$0xff]  ;;  %v15927_v42 = vcombine.low %v3936_v48, %v3940_v51  ;;  %v20744_v48 = vld [vmem:[#allocation20 + $0x13c0] sm:$0xff] }
 0x633   : > { %10734 = vmatprep.subr.bf16.mxu0 %v16124_v7  ;;  %v15920_v18 = vcombine.high %v3928_v21, %v3932_v41  ;;  %v15919_v50 = vcombine.low %v3928_v21, %v3932_v41  ;;  %v3916_v36 = vld [vmem:[#allocation17 + $0x130] sm:$0xff]  ;;  %v3897_v41 = vld [vmem:[#allocation17 + $0x98] sm:$0xff] }
 0x634   : > { %v3868_v31 = vmax.f32 %v3866_v23, %v3867_v57  ;;  %v3907_v23 = vld [vmem:[#allocation17 + $0xe8] sm:$0xff]  ;;  %v3924_v57 = vld [vmem:[#allocation17 + $0x170] sm:$0xff] }
 0x635   : > { %v15894_v8 = vcombine.high %v3903_v38, %v3907_v23  ;;  %v15893_v59 = vcombine.low %v3903_v38, %v3907_v23  ;;  %v15912_v62 = vcombine.high %v3920_v35, %v3924_v57  ;;  %v15911_v7 = vcombine.low %v3920_v35, %v3924_v57  ;;  %v4628_v38 = vld [vmem:[#allocation20 + $0x480] sm:$0xff]  ;;  %v3889_v57 = vld [vmem:[#allocation17 + $0x58] sm:$0xff] }
 0x636   : > { %v3869_v54 = vrot.slane %v3868_v31, 4  ;;  %10735 = vmatpush2.bf16.msra.mxu0 %v16123_v37  ;;  %v15896_v37 = vcombine.high %v3904_v60, %v3908_v32  ;;  %v4636_v23 = vld [vmem:[#allocation20 + $0x4c0] sm:$0xff] }
 0x637   : > { %10736 = vmatprep.subr.bf16.mxu0 %v16108_v28  ;;  %v3896_v28 = vld [vmem:[#allocation17 + $0x90] sm:$0xff]  ;;  %v4852_v32 = vld [vmem:[#allocation20 + $0xb80] sm:$0xff] }
 0x638   : > { %v3870_v26 = vmax.f32 %v3868_v31, %v3869_v54  ;;  %v3912_v31 = vld [vmem:[#allocation17 + $0x110] sm:$0xff] }
 0x639   : > { %v15904_v54 = vcombine.high %v3912_v31, %v3916_v36 }
 0x63a   : > { %v3871_v19 = vrot.slane %v3870_v26, 2  ;;  %10737 = vmatpush2.bf16.msra.mxu0 %v16107_v61  ;;  %v3892_v61 = vld [vmem:[#allocation17 + $0x70] sm:$0xff] }
 0x63b   : > { %10738 = vmatprep.subr.bf16.mxu0 %v16092_v15 }
 0x63c   : > { %v3872_v16 = vmax.f32 %v3870_v26, %v3871_v19  ;;  %v15903_v26 = vcombine.low %v3912_v31, %v3916_v36  ;;  %v3900_v19 = vld [vmem:[#allocation17 + $0xb0] sm:$0xff]  ;;  %v3881_v36 = vld [vmem:[#allocation17 + $0x18] sm:$0xff] }
 0x63d   : > { %v15888_v45 = vcombine.high %v3896_v28, %v3900_v19  ;;  %v15887_v15 = vcombine.low %v3896_v28, %v3900_v19  ;;  %v4836_v19 = vld [vmem:[#allocation20 + $0xb00] sm:$0xff] }
 0x63e   : > { %v3873_v14 = vrot.slane %v3872_v16, 1  ;;  %10739 = vmatpush2.bf16.msra.mxu0 %v16091_v25  ;;  %v3884_v25 = vld [vmem:[#allocation17 + $0x30] sm:$0xff] }
 0x640   : > { %v3874_v11 = vmax.f32 %v3872_v16, %v3873_v14  ;;  %v3888_v16 = vld [vmem:[#allocation17 + $0x50] sm:$0xff] }
 0x641   : > { %v15880_v14 = vcombine.high %v3888_v16, %v3892_v61  ;;  %v15879_v12 = vcombine.low %v3888_v16, %v3892_v61  ;;  %v4820_v61 = vld [vmem:[#allocation20 + $0xa80] sm:$0xff] }
 0x642   : > { %3875 = vst [vmem:[#allocation25 + $0x1] sm:$0x1] %v3874_v11  ;;  %v3880_v11 = vld [vmem:[#allocation17 + $0x10] sm:$0xff] }
 0x643   : > { %v15872_v22 = vcombine.high %v3880_v11, %v3884_v25  ;;  %v15871_v27 = vcombine.low %v3880_v11, %v3884_v25  ;;  %v4804_v25 = vld [vmem:[#allocation20 + $0xa00] sm:$0xff] }
 0x649   : > { %v3876_v34 = vld [vmem:[#allocation25] sm:$0x3] }
 0x64a   : > { %v20731_v52 = vpack.c.bf16 %v3876_v34, %v3876_v34  ;;  %v3937_v34 = vld [vmem:[#allocation17 + $0x1d8] sm:$0xff] }
 0x64c   : > { %4337 = vmatmul.mubr.bf16.vlgmr.msra.gmra.mxu1 %v20731_v52 }
 0x64d   : > { %4346 = vmatpush1.bf16.msra.mxu1 %v15925_v24  ;;  %4377 = vmatprep.mubr.bf16.mxu1 %v18971_v5  ;;  %v15886_v24 = vcombine.high %v3895_v55, %v3899_v0  ;;  %v16075_v55 = vcombine.low %v4628_v38, %v4636_v23 }
 0x64e   : > { %4347 = vmatprep.subr.bf16.mxu1 %v15918_v53  ;;  %v3941_v53 = vld [vmem:[#allocation17 + $0x1f8] sm:$0xff] }
 0x64f   : > { %v15930_v49 = vcombine.high %v3937_v34, %v3941_v53  ;;  %v15929_v17 = vcombine.low %v3937_v34, %v3941_v53  ;;  %v20751_v53 = vld [vmem:[#allocation20 + $0x1b80] sm:$0xff] }
 0x651   : > { %4348 = vmatpush1.bf16.msra.mxu1 %v15917_v33  ;;  %v3929_v33 = vld [vmem:[#allocation17 + $0x198] sm:$0xff] }
 0x652   : > { %4349 = vmatprep.subr.bf16.mxu1 %v15910_v2  ;;  %v3933_v2 = vld [vmem:[#allocation17 + $0x1b8] sm:$0xff] }
 0x653   : > { %v15922_v6 = vcombine.high %v3929_v33, %v3933_v2 }
 0x655   : > { %4350 = vmatpush1.bf16.msra.mxu1 %v15909_v10  ;;  %v3921_v10 = vld [vmem:[#allocation17 + $0x158] sm:$0xff] }
 0x656   : > { %4351 = vmatprep.subr.bf16.mxu1 %v15902_v43  ;;  %v3925_v43 = vld [vmem:[#allocation17 + $0x178] sm:$0xff] }
 0x657   : > { %v15914_v0 = vcombine.high %v3921_v10, %v3925_v43 }
 0x659   : > { %4352 = vmatpush1.bf16.msra.mxu1 %v15901_v1  ;;  %v16076_v1 = vcombine.high %v4628_v38, %v4636_v23  ;;  %v4756_v23 = vld [vmem:[#allocation20 + $0x880] sm:$0xff] }
 0x65a   : > { %4353 = vmatprep.subr.bf16.mxu1 %v15894_v8  ;;  %v15921_v8 = vcombine.low %v3929_v33, %v3933_v2  ;;  %v4796_v33 = vld [vmem:[#allocation20 + $0x9c0] sm:$0xff] }
 0x65b   : > { %10740 = vmatprep.subr.bf16.mxu0 %v16076_v1  ;;  %v4764_v1 = vld [vmem:[#allocation20 + $0x8c0] sm:$0xff] }
 0x65c   : > { %10741 = vmatpush2.bf16.msra.mxu0 %v16075_v55  ;;  %v16204_v55 = vcombine.high %v4756_v23, %v4764_v1 }
 0x65d   : > { %4354 = vmatpush1.bf16.msra.mxu1 %v15893_v59  ;;  %v3913_v59 = vld [vmem:[#allocation17 + $0x118] sm:$0xff] }
 0x65e   : > { %4355 = vmatprep.subr.bf16.mxu1 %v15886_v24  ;;  %v3917_v24 = vld [vmem:[#allocation17 + $0x138] sm:$0xff] }
 0x65f   : > { %v15906_v4 = vcombine.high %v3913_v59, %v3917_v24 }
 0x661   : > { %4356 = vmatpush1.bf16.msra.mxu1 %v15885_v20  ;;  %v16060_v20 = vcombine.high %v4612_v63, %v4620_v9  ;;  %v4980_v9 = vld [vmem:[#allocation20 + $0xf80] sm:$0xff] }
 0x662   : > { %4357 = vmatprep.subr.bf16.mxu1 %v15878_v13  ;;  %v15913_v13 = vcombine.low %v3921_v10, %v3925_v43  ;;  %v4780_v10 = vld [vmem:[#allocation20 + $0x940] sm:$0xff] }
 0x663   : > { %10742 = vmatprep.subr.bf16.mxu0 %v16060_v20  ;;  %v4988_v20 = vld [vmem:[#allocation20 + $0xfc0] sm:$0xff] }
 0x664   : > { %10743 = vmatpush2.bf16.msra.mxu0 %v16059_v56  ;;  %v16428_v56 = vcombine.high %v4980_v9, %v4988_v20 }
 0x665   : > { %4358 = vmatpush1.bf16.msra.mxu1 %v15877_v29  ;;  %v3905_v29 = vld [vmem:[#allocation17 + $0xd8] sm:$0xff] }
 0x666   : > { %4359 = vmatprep.subr.bf16.mxu1 %v15870_v3  ;;  %v3909_v3 = vld [vmem:[#allocation17 + $0xf8] sm:$0xff] }
 0x667   : > { %v15898_v21 = vcombine.high %v3905_v29, %v3909_v3 }
 0x669   : > { %4360 = vmatpush1.bf16.msra.mxu1 %v15869_v30  ;;  %v15905_v30 = vcombine.low %v3913_v59, %v3917_v24  ;;  %v4748_v59 = vld [vmem:[#allocation20 + $0x840] sm:$0xff]  ;;  %v16203_v24 = vcombine.low %v4756_v23, %v4764_v1 }
 0x66a   : > { %4386 = vmatprep.subr.bf16.mxu1 %v15928_v58 }
 0x66c   : > { %4378 = vmatmul.mubr.bf16.vlgmr.msra.gmra.mxu1 %v20731_v52 }
 0x66d   : > { %4387 = vmatpush1.bf16.msra.mxu1 %v15927_v42  ;;  %4418 = vmatprep.mubr.bf16.mxu1 %v18971_v5  ;;  %v3901_v42 = vld [vmem:[#allocation17 + $0xb8] sm:$0xff] }
 0x66e   : > { %4388 = vmatprep.subr.bf16.mxu1 %v15920_v18  ;;  %v15897_v18 = vcombine.low %v3905_v29, %v3909_v3  ;;  %v15890_v35 = vcombine.high %v3897_v41, %v3901_v42  ;;  %v4972_v29 = vld [vmem:[#allocation20 + $0xf40] sm:$0xff]  ;;  %v16427_v3 = vcombine.low %v4980_v9, %v4988_v20 }
 0x66f   : > { %v5060_v9 = vld [vmem:[#allocation20 + $0x1200] sm:$0xff] }
 0x670   : > { %v5068_v20 = vld [vmem:[#allocation20 + $0x1240] sm:$0xff] }
 0x671   : > { %4389 = vmatpush1.bf16.msra.mxu1 %v15919_v50  ;;  %v3893_v50 = vld [vmem:[#allocation17 + $0x78] sm:$0xff] }
 0x672   : > { %4390 = vmatprep.subr.bf16.mxu1 %v15912_v62  ;;  %v15889_v62 = vcombine.low %v3897_v41, %v3901_v42  ;;  %v15882_v31 = vcombine.high %v3889_v57, %v3893_v50 }
 0x675   : > { %4391 = vmatpush1.bf16.msra.mxu1 %v15911_v7  ;;  %v3885_v7 = vld [vmem:[#allocation17 + $0x38] sm:$0xff] }
 0x676   : > { %4392 = vmatprep.subr.bf16.mxu1 %v15904_v54  ;;  %v15881_v54 = vcombine.low %v3889_v57, %v3893_v50  ;;  %v15874_v60 = vcombine.high %v3881_v36, %v3885_v7 }
 0x679   : > { %4393 = vmatpush1.bf16.msra.mxu1 %v15903_v26  ;;  %v4860_v26 = vld [vmem:[#allocation20 + $0xbc0] sm:$0xff] }
 0x67a   : > { %4394 = vmatprep.subr.bf16.mxu1 %v15896_v37  ;;  %v15873_v37 = vcombine.low %v3881_v36, %v3885_v7  ;;  %v16300_v28 = vcombine.high %v4852_v32, %v4860_v26 }
 0x67d   : > { %4395 = vmatpush1.bf16.msra.mxu1 %v15895_v40  ;;  %v4844_v40 = vld [vmem:[#allocation20 + $0xb40] sm:$0xff] }
 0x67e   : > { %4396 = vmatprep.subr.bf16.mxu1 %v15888_v45  ;;  %v16299_v45 = vcombine.low %v4852_v32, %v4860_v26  ;;  %v16284_v16 = vcombine.high %v4836_v19, %v4844_v40 }
 0x681   : > { %4397 = vmatpush1.bf16.msra.mxu1 %v15887_v15  ;;  %v4828_v15 = vld [vmem:[#allocation20 + $0xac0] sm:$0xff] }
 0x682   : > { %4398 = vmatprep.subr.bf16.mxu1 %v15880_v14  ;;  %v16283_v14 = vcombine.low %v4836_v19, %v4844_v40  ;;  %v16268_v11 = vcombine.high %v4820_v61, %v4828_v15 }
 0x685   : > { %4399 = vmatpush1.bf16.msra.mxu1 %v15879_v12  ;;  %v4812_v12 = vld [vmem:[#allocation20 + $0xa40] sm:$0xff] }
 0x686   : > { %4400 = vmatprep.subr.bf16.mxu1 %v15872_v22  ;;  %v16267_v22 = vcombine.low %v4820_v61, %v4828_v15  ;;  %v16252_v34 = vcombine.high %v4804_v25, %v4812_v12 }
 0x689   : > { %4401 = vmatpush1.bf16.msra.mxu1 %v15871_v27  ;;  %v20753_v27 = vld [vmem:[#allocation20 + $0x1bc0] sm:$0xff] }
 0x68a   : > { %4427 = vmatprep.subr.bf16.mxu1 %v15930_v49  ;;  %v4788_v49 = vld [vmem:[#allocation20 + $0x980] sm:$0xff]  ;;  %v16811_v2 = vcombine.low %v20751_v53, %v20753_v27 }
 0x68b   : > { %v16235_v43 = vcombine.low %v4788_v49, %v4796_v33 }
 0x68c   : > { %4419 = vmatmul.mubr.bf16.vlgmr.msra.gmra.mxu1 %v20731_v52 }
 0x68d   : > { %4428 = vmatpush1.bf16.msra.mxu1 %v15929_v17  ;;  %4459 = vmatprep.mubr.bf16.mxu1 %v18971_v5  ;;  %v20742_v5 = vld [vmem:[#allocation20 + $0x1380] sm:$0xff]  ;;  %v16236_v17 = vcombine.high %v4788_v49, %v4796_v33 }
 0x68e   : > { %4429 = vmatprep.subr.bf16.mxu1 %v15922_v6  ;;  %v16556_v51 = vcombine.high %v20742_v5, %v20744_v48  ;;  %v16555_v58 = vcombine.low %v20742_v5, %v20744_v48  ;;  %v4772_v6 = vld [vmem:[#allocation20 + $0x900] sm:$0xff] }
 0x68f   : > { %v16220_v38 = vcombine.high %v4772_v6, %v4780_v10 }
 0x690   : > { %10794 = vmatprep.subr.bf16.mxu0 %v16556_v51 }
 0x691   : > { %4430 = vmatpush1.bf16.msra.mxu1 %v15921_v8  ;;  %v16219_v8 = vcombine.low %v4772_v6, %v4780_v10 }
 0x692   : > { %4431 = vmatprep.subr.bf16.mxu1 %v15914_v0  ;;  %v4740_v0 = vld [vmem:[#allocation20 + $0x800] sm:$0xff] }
 0x693   : > { %v16188_v63 = vcombine.high %v4740_v0, %v4748_v59 }
 0x695   : > { %4432 = vmatpush1.bf16.msra.mxu1 %v15913_v13  ;;  %v16187_v13 = vcombine.low %v4740_v0, %v4748_v59  ;;  %v5076_v0 = vld [vmem:[#allocation20 + $0x1280] sm:$0xff] }
 0x696   : > { %4433 = vmatprep.subr.bf16.mxu1 %v15906_v4  ;;  %v4964_v4 = vld [vmem:[#allocation20 + $0xf00] sm:$0xff] }
 0x697   : > { %v16412_v51 = vcombine.high %v4964_v4, %v4972_v29  ;;  %v16411_v41 = vcombine.low %v4964_v4, %v4972_v29  ;;  %v5084_v59 = vld [vmem:[#allocation20 + $0x12c0] sm:$0xff] }
 0x698   : > { %v5044_v4 = vld [vmem:[#allocation20 + $0x1180] sm:$0xff] }
 0x699   : > { %4434 = vmatpush1.bf16.msra.mxu1 %v15905_v30  ;;  %v4948_v30 = vld [vmem:[#allocation20 + $0xe80] sm:$0xff] }
 0x69a   : > { %4435 = vmatprep.subr.bf16.mxu1 %v15898_v21  ;;  %v4956_v21 = vld [vmem:[#allocation20 + $0xec0] sm:$0xff] }
 0x69b   : > { %v16396_v42 = vcombine.high %v4948_v30, %v4956_v21  ;;  %v16395_v57 = vcombine.low %v4948_v30, %v4956_v21  ;;  %v5052_v29 = vld [vmem:[#allocation20 + $0x11c0] sm:$0xff] }
 0x69c   : > { %v5028_v30 = vld [vmem:[#allocation20 + $0x1100] sm:$0xff]  ;;  %v16491_v5 = vcombine.low %v5044_v4, %v5052_v29 }
 0x69d   : > { %4436 = vmatpush1.bf16.msra.mxu1 %v15897_v18  ;;  %v4932_v18 = vld [vmem:[#allocation20 + $0xe00] sm:$0xff] }
 0x69e   : > { %4437 = vmatprep.subr.bf16.mxu1 %v15890_v35  ;;  %v4940_v35 = vld [vmem:[#allocation20 + $0xe40] sm:$0xff] }
 0x69f   : > { %v16380_v50 = vcombine.high %v4932_v18, %v4940_v35  ;;  %v16379_v36 = vcombine.low %v4932_v18, %v4940_v35  ;;  %v5036_v21 = vld [vmem:[#allocation20 + $0x1140] sm:$0xff]  ;;  %v20775_v18 = vsub.s32 3, %v19495_v39 }
 0x6a0   : > { %v16476_v48 = vcombine.high %v5028_v30, %v5036_v21 }
 0x6a1   : > { %4438 = vmatpush1.bf16.msra.mxu1 %v15889_v62  ;;  %v4916_v62 = vld [vmem:[#allocation20 + $0xd80] sm:$0xff] }
 0x6a2   : > { %4439 = vmatprep.subr.bf16.mxu1 %v15882_v31  ;;  %v4924_v31 = vld [vmem:[#allocation20 + $0xdc0] sm:$0xff] }
 0x6a3   : > { %v16364_v7 = vcombine.high %v4916_v62, %v4924_v31  ;;  %v16363_v32 = vcombine.low %v4916_v62, %v4924_v31  ;;  %v5004_v62 = vld [vmem:[#allocation20 + $0x1040] sm:$0xff] }
 0x6a5   : > { %4440 = vmatpush1.bf16.msra.mxu1 %v15881_v54  ;;  %v4900_v54 = vld [vmem:[#allocation20 + $0xd00] sm:$0xff] }
 0x6a6   : > { %4441 = vmatprep.subr.bf16.mxu1 %v15874_v60  ;;  %v4908_v60 = vld [vmem:[#allocation20 + $0xd40] sm:$0xff] }
 0x6a7   : > { %v16348_v26 = vcombine.high %v4900_v54, %v4908_v60  ;;  %v16347_v19 = vcombine.low %v4900_v54, %v4908_v60 }
 0x6a9   : > { %4442 = vmatpush1.bf16.msra.mxu1 %v15873_v37  ;;  %v4884_v37 = vld [vmem:[#allocation20 + $0xc80] sm:$0xff] }
 0x6aa   : > { %10753 = vmatprep.subr.bf16.mxu1 %v16300_v28  ;;  %v4892_v28 = vld [vmem:[#allocation20 + $0xcc0] sm:$0xff] }
 0x6ab   : > { %v16332_v40 = vcombine.high %v4884_v37, %v4892_v28  ;;  %v16331_v61 = vcombine.low %v4884_v37, %v4892_v28 }
 0x6ac   : > { %4460 = vmatmul.mubr.bf16.vlgmr.msra.gmra.mxu1 %v20731_v52  ;;  %v16251_v52 = vcombine.low %v4804_v25, %v4812_v12  ;;  %v20759_v25 = vld [vmem:[#allocation18] sm:$0xff] }
 0x6ad   : > { %10754 = vmatpush1.bf16.msra.mxu1 %v16299_v45  ;;  %v4868_v45 = vld [vmem:[#allocation20 + $0xc00] sm:$0xff]  ;;  %v3947_v12 = vrot.slane %v20759_v25, %v19518_v47  ;;  %v3959_v31 = vrot.slane %v20759_v25, %v20775_v18 }
 0x6ae   : > { %10755 = vmatprep.subr.bf16.mxu1 %v16284_v16  ;;  %v4876_v16 = vld [vmem:[#allocation20 + $0xc40] sm:$0xff] }
 0x6af   : > { %v16316_v15 = vcombine.high %v4868_v45, %v4876_v16 }
 0x6b1   : > { %10756 = vmatpush1.bf16.msra.mxu1 %v16283_v14  ;;  %v16315_v14 = vcombine.low %v4868_v45, %v4876_v16 }
 0x6b2   : > { %10757 = vmatprep.subr.bf16.mxu1 %v16268_v11  ;;  %v16812_v11 = vcombine.high %v20751_v53, %v20753_v27  ;;  %v5300_v27 = vld [vmem:[#allocation20 + $0x1980] sm:$0xff] }
 0x6b5   : > { %10758 = vmatpush1.bf16.msra.mxu1 %v16267_v22  ;;  %v3951_v22 = vrot.slane %v20759_v25, %v19511_v44 }
 0x6b6   : > { %10759 = vmatprep.subr.bf16.mxu1 %v16252_v34 }
 0x6b9   : > { %10760 = vmatpush1.bf16.msra.mxu1 %v16251_v52 }
 0x6ba   : > { %10761 = vmatprep.subr.bf16.mxu1 %v16236_v17 }
 0x6bd   : > { %10762 = vmatpush1.bf16.msra.mxu1 %v16235_v43  ;;  %v5092_v43 = vld [vmem:[#allocation20 + $0x1300] sm:$0xff] }
 0x6be   : > { %10763 = vmatprep.subr.bf16.mxu1 %v16220_v38  ;;  %v5100_v38 = vld [vmem:[#allocation20 + $0x1340] sm:$0xff] }
 0x6c1   : > { %10764 = vmatpush1.bf16.msra.mxu1 %v16219_v8 }
 0x6c2   : > { %10765 = vmatprep.subr.bf16.mxu1 %v16204_v55  ;;  %v16540_v55 = vcombine.high %v5092_v43, %v5100_v38 }
 0x6c5   : > { %10766 = vmatpush1.bf16.msra.mxu1 %v16203_v24  ;;  %v16539_v24 = vcombine.low %v5092_v43, %v5100_v38  ;;  %v5204_v43 = vld [vmem:[#allocation20 + $0x1680] sm:$0xff] }
 0x6c6   : > { %10767 = vmatprep.subr.bf16.mxu1 %v16188_v63  ;;  %v16524_v63 = vcombine.high %v5076_v0, %v5084_v59  ;;  %v5212_v38 = vld [vmem:[#allocation20 + $0x16c0] sm:$0xff] }
 0x6c9   : > { %10768 = vmatpush1.bf16.msra.mxu1 %v16187_v13  ;;  %v16523_v13 = vcombine.low %v5076_v0, %v5084_v59  ;;  %v16652_v59 = vcombine.high %v5204_v43, %v5212_v38 }
 0x6ca   : > { %10769 = vmatprep.subr.bf16.mxu1 %v16428_v56  ;;  %v16508_v56 = vcombine.high %v5060_v9, %v5068_v20 }
 0x6cd   : > { %10770 = vmatpush2.bf16.msra.mxu1 %v16427_v3  ;;  %v16507_v3 = vcombine.low %v5060_v9, %v5068_v20  ;;  %v5188_v9 = vld [vmem:[#allocation20 + $0x1600] sm:$0xff] }
 0x6ce   : > { %10771 = vmatprep.subr.bf16.mxu1 %v16412_v51  ;;  %v16492_v51 = vcombine.high %v5044_v4, %v5052_v29  ;;  %v5196_v20 = vld [vmem:[#allocation20 + $0x1640] sm:$0xff] }
 0x6cf   : > { %v16636_v53 = vcombine.high %v5188_v9, %v5196_v20  ;;  %v5172_v29 = vld [vmem:[#allocation20 + $0x1580] sm:$0xff] }
 0x6d1   : > { %10772 = vmatpush2.bf16.msra.mxu1 %v16411_v41  ;;  %v5020_v41 = vld [vmem:[#allocation20 + $0x10c0] sm:$0xff] }
 0x6d2   : > { %10773 = vmatprep.subr.bf16.mxu1 %v16396_v42  ;;  %v16475_v42 = vcombine.low %v5028_v30, %v5036_v21  ;;  %v16635_v30 = vcombine.low %v5188_v9, %v5196_v20 }
 0x6d5   : > { %10774 = vmatpush2.bf16.msra.mxu1 %v16395_v57  ;;  %v3955_v57 = vrot.slane %v20759_v25, %v19515_v46 }
 0x6d6   : > { %10775 = vmatprep.subr.bf16.mxu1 %v16380_v50  ;;  %v4996_v50 = vld [vmem:[#allocation20 + $0x1000] sm:$0xff] }
 0x6d7   : > { %v16444_v54 = vcombine.high %v4996_v50, %v5004_v62 }
 0x6d9   : > { %10776 = vmatpush2.bf16.msra.mxu1 %v16379_v36 }
 0x6da   : > { %10777 = vmatprep.subr.bf16.mxu1 %v16364_v7 }
 0x6dd   : > { %10778 = vmatpush2.bf16.msra.mxu1 %v16363_v32  ;;  %v5236_v32 = vld [vmem:[#allocation20 + $0x1780] sm:$0xff] }
 0x6de   : > { %10779 = vmatprep.subr.bf16.mxu1 %v16348_v26  ;;  %v5244_v26 = vld [vmem:[#allocation20 + $0x17c0] sm:$0xff] }
 0x6df   : > { %v16684_v16 = vcombine.high %v5236_v32, %v5244_v26 }
 0x6e1   : > { %10780 = vmatpush2.bf16.msra.mxu1 %v16347_v19  ;;  %v16443_v19 = vcombine.low %v4996_v50, %v5004_v62 }
 0x6e2   : > { %10781 = vmatprep.subr.bf16.mxu1 %v16332_v40 }
 0x6e5   : > { %10782 = vmatpush2.bf16.msra.mxu1 %v16331_v61  ;;  %v5348_v61 = vld [vmem:[#allocation20 + $0x1b00] sm:$0xff] }
 0x6e6   : > { %10783 = vmatprep.subr.bf16.mxu1 %v16316_v15 }
 0x6e9   : > { %10784 = vmatpush2.bf16.msra.mxu1 %v16315_v14  ;;  %v5356_v14 = vld [vmem:[#allocation20 + $0x1b40] sm:$0xff] }
 0x6ea   : > { %10835 = vmatprep.subr.bf16.mxu1 %v16812_v11  ;;  %v5220_v11 = vld [vmem:[#allocation20 + $0x1700] sm:$0xff] }
 0x70c   : > { %v4338_v34 = vpop.f32.mrf.mxu1 }
 0x70d   : > { %v4339_v49 = vadd.f32 %v4338_v34, %v3947_v12  ;;  %v5228_v12 = vld [vmem:[#allocation20 + $0x1740] sm:$0xff] }
 0x70e   : > { %v4340_v33 = vpop.f32.mrf.mxu1 }
 0x70f   : > { %v4341_v52 = vadd.f32 %v4340_v33, %v3951_v22  ;;  %v4468_v17 = vmax.f32 %v4339_v49, 0.0  ;;  %v16683_v49 = vcombine.low %v5236_v32, %v5244_v26 }
 0x710   : > { %v4342_v6 = vpop.f32.mrf.mxu1 }
 0x711   : > { %v4469_v10 = vmax.f32 %v4341_v52, 0.0  ;;  %v20767_v8 = vpack.c.bf16 %v4468_v17, %v4468_v17  ;;  %v16796_v52 = vcombine.high %v5348_v61, %v5356_v14  ;;  %v16668_v17 = vcombine.high %v5220_v11, %v5228_v12  ;;  %v5332_v6 = vld [vmem:[#allocation20 + $0x1a80] sm:$0xff] }
 0x712   : > { %v4343_v23 = vpop.f32.mrf.mxu1 }
 0x713   : > { %v20765_v1 = vpack.c.bf16 %v4469_v10, %v4469_v10  ;;  %v5340_v10 = vld [vmem:[#allocation20 + $0x1ac0] sm:$0xff]  ;;  %v16795_v23 = vcombine.low %v5348_v61, %v5356_v14 }
 0x714   : > { %v16780_v0 = vcombine.high %v5332_v6, %v5340_v10  ;;  %v5124_v61 = vld [vmem:[#allocation20 + $0x1400] sm:$0xff] }
 0x715   : > { %10744 = vmatprep.mubr.bf16.mxu0 %v20765_v1 }
 0x716   : > { %10745 = vmatmul.mubr.bf16.vlgmr.msra.gmra.mxu0 %v20767_v8 }
 0x717   : > { %10795 = vmatpush1.bf16.msra.mxu0 %v16555_v58  ;;  %v5012_v58 = vld [vmem:[#allocation20 + $0x1080] sm:$0xff] }
 0x718   : > { %10796 = vmatprep.subr.bf16.mxu0 %v16540_v55  ;;  %v16460_v35 = vcombine.high %v5012_v58, %v5020_v41  ;;  %v16459_v36 = vcombine.low %v5012_v58, %v5020_v41  ;;  %v16667_v55 = vcombine.low %v5220_v11, %v5228_v12  ;;  %v5292_v58 = vld [vmem:[#allocation20 + $0x1940] sm:$0xff] }
 0x719   : > { %v5156_v41 = vld [vmem:[#allocation20 + $0x1500] sm:$0xff] }
 0x71b   : > { %10797 = vmatpush1.bf16.msra.mxu0 %v16539_v24  ;;  %v5316_v24 = vld [vmem:[#allocation20 + $0x1a00] sm:$0xff] }
 0x71c   : > { %10798 = vmatprep.subr.bf16.mxu0 %v16524_v63  ;;  %v5324_v63 = vld [vmem:[#allocation20 + $0x1a40] sm:$0xff] }
 0x71d   : > { %v16764_v4 = vcombine.high %v5316_v24, %v5324_v63 }
 0x71f   : > { %10799 = vmatpush1.bf16.msra.mxu0 %v16523_v13  ;;  %v16779_v13 = vcombine.low %v5332_v6, %v5340_v10  ;;  %v5500_v10 = vld [vmem:[#allocation20 + $0x1fc0] sm:$0xff] }
 0x720   : > { %10800 = vmatprep.subr.bf16.mxu0 %v16508_v56  ;;  %v16651_v56 = vcombine.low %v5204_v43, %v5212_v38  ;;  %v4597_v43 = vld [vmem:[#allocation20 + $0x388] sm:$0xff] }
 0x721   : > { %v4605_v38 = vld [vmem:[#allocation20 + $0x3c8] sm:$0xff] }
 0x722   : > { %v16046_v20 = vcombine.high %v4597_v43, %v4605_v38 }
 0x723   : > { %10801 = vmatpush1.bf16.msra.mxu0 %v16507_v3  ;;  %v5180_v3 = vld [vmem:[#allocation20 + $0x15c0] sm:$0xff] }
 0x724   : > { %10802 = vmatprep.subr.bf16.mxu0 %v16492_v51  ;;  %v16763_v51 = vcombine.low %v5316_v24, %v5324_v63 }
 0x727   : > { %10803 = vmatpush1.bf16.msra.mxu0 %v16491_v5  ;;  %v16620_v5 = vcombine.high %v5172_v29, %v5180_v3 }
 0x728   : > { %10804 = vmatprep.subr.bf16.mxu0 %v16476_v48  ;;  %v5284_v48 = vld [vmem:[#allocation20 + $0x1900] sm:$0xff] }
 0x729   : > { %v16732_v50 = vcombine.high %v5284_v48, %v5292_v58  ;;  %v16731_v32 = vcombine.low %v5284_v48, %v5292_v58  ;;  %v5468_v58 = vld [vmem:[#allocation20 + $0x1ec0] sm:$0xff] }
 0x72b   : > { %10805 = vmatpush1.bf16.msra.mxu0 %v16475_v42  ;;  %v5164_v42 = vld [vmem:[#allocation20 + $0x1540] sm:$0xff] }
 0x72c   : > { %v4379_v7 = vpop.f32.mrf.mxu1  ;;  %10806 = vmatprep.subr.bf16.mxu0 %v16460_v35  ;;  %v16604_v62 = vcombine.high %v5156_v41, %v5164_v42  ;;  %v16603_v26 = vcombine.low %v5156_v41, %v5164_v42  ;;  %v4565_v41 = vld [vmem:[#allocation20 + $0x288] sm:$0xff] }
 0x72d   : > { %v4380_v60 = vadd.f32 %v4379_v7, %v3955_v57  ;;  %v16619_v57 = vcombine.low %v5172_v29, %v5180_v3  ;;  %v5276_v7 = vld [vmem:[#allocation20 + $0x18c0] sm:$0xff]  ;;  %v4573_v42 = vld [vmem:[#allocation20 + $0x2c8] sm:$0xff] }
 0x72e   : > { %v4381_v37 = vpop.f32.mrf.mxu1 }
 0x72f   : > { %v4382_v28 = vadd.f32 %v4381_v37, %v3959_v31  ;;  %10807 = vmatpush1.bf16.msra.mxu0 %v16459_v36  ;;  %v4470_v40 = vmax.f32 %v4380_v60, 0.0  ;;  %v5268_v31 = vld [vmem:[#allocation20 + $0x1880] sm:$0xff]  ;;  %v20791_v36 = vsub.s32 4, %v19495_v39  ;;  %v20794_v37 = vsub.s32 5, %v19495_v39 }
 0x730   : > { %v4383_v45 = vpop.f32.mrf.mxu1  ;;  %10808 = vmatprep.subr.bf16.mxu0 %v16444_v54  ;;  %v5140_v54 = vld [vmem:[#allocation20 + $0x1480] sm:$0xff]  ;;  %v16715_v14 = vcombine.low %v5268_v31, %v5276_v7 }
 0x731   : > { %v4471_v15 = vmax.f32 %v4382_v28, 0.0  ;;  %v20783_v33 = vpack.c.bf16 %v4470_v40, %v4470_v40  ;;  %v5148_v60 = vld [vmem:[#allocation20 + $0x14c0] sm:$0xff]  ;;  %v16716_v28 = vcombine.high %v5268_v31, %v5276_v7  ;;  %v3963_v45 = vrot.slane %v20759_v25, %v20791_v36 }
 0x732   : > { %v4384_v22 = vpop.f32.mrf.mxu1  ;;  %v5252_v40 = vld [vmem:[#allocation20 + $0x1800] sm:$0xff]  ;;  %v3967_v11 = vrot.slane %v20759_v25, %v20794_v37  ;;  %v16587_v12 = vcombine.low %v5140_v54, %v5148_v60 }
 0x733   : > { %v20781_v34 = vpack.c.bf16 %v4471_v15, %v4471_v15  ;;  %10809 = vmatpush1.bf16.msra.mxu0 %v16443_v19  ;;  %v16588_v19 = vcombine.high %v5140_v54, %v5148_v60  ;;  %v5132_v15 = vld [vmem:[#allocation20 + $0x1440] sm:$0xff]  ;;  %v4549_v54 = vld [vmem:[#allocation20 + $0x208] sm:$0xff] }
 0x734   : > { %10810 = vmatprep.subr.bf16.mxu0 %v16684_v16  ;;  %v5260_v16 = vld [vmem:[#allocation20 + $0x1840] sm:$0xff]  ;;  %v4557_v60 = vld [vmem:[#allocation20 + $0x248] sm:$0xff] }
 0x735   : > { %10785 = vmatprep.mubr.bf16.mxu1 %v20781_v34  ;;  %v5444_v31 = vld [vmem:[#allocation20 + $0x1e00] sm:$0xff] }
 0x736   : > { %10786 = vmatmul.mubr.bf16.vlgmr.msra.gmra.mxu1 %v20783_v33  ;;  %v5452_v7 = vld [vmem:[#allocation20 + $0x1e40] sm:$0xff] }
 0x737   : > { %10836 = vmatpush1.bf16.msra.mxu1 %v16811_v2  ;;  %10811 = vmatpush2.bf16.msra.mxu0 %v16683_v49  ;;  %v5308_v2 = vld [vmem:[#allocation20 + $0x19c0] sm:$0xff]  ;;  %v16700_v49 = vcombine.high %v5252_v40, %v5260_v16 }
 0x738   : > { %10837 = vmatprep.subr.bf16.mxu1 %v16796_v52  ;;  %10812 = vmatprep.subr.bf16.mxu0 %v16668_v17  ;;  %v16748_v21 = vcombine.high %v5300_v27, %v5308_v2  ;;  %v16747_v35 = vcombine.low %v5300_v27, %v5308_v2  ;;  %v16572_v52 = vcombine.high %v5124_v61, %v5132_v15  ;;  %v5492_v17 = vld [vmem:[#allocation20 + $0x1f80] sm:$0xff]  ;;  %v4581_v27 = vld [vmem:[#allocation20 + $0x308] sm:$0xff] }
 0x739   : > { %v16940_v9 = vcombine.high %v5492_v17, %v5500_v10  ;;  %v4589_v2 = vld [vmem:[#allocation20 + $0x348] sm:$0xff]  ;;  %v16939_v3 = vcombine.low %v5492_v17, %v5500_v10 }
 0x73a   : > { %v16030_v48 = vcombine.high %v4581_v27, %v4589_v2  ;;  %v4525_v17 = vld [vmem:[#allocation20 + $0x148] sm:$0xff] }
 0x73b   : > { %10838 = vmatpush1.bf16.msra.mxu1 %v16795_v23  ;;  %10813 = vmatpush2.bf16.msra.mxu0 %v16667_v55 }
 0x73c   : > { %10839 = vmatprep.subr.bf16.mxu1 %v16780_v0  ;;  %10814 = vmatprep.subr.bf16.mxu0 %v16652_v59  ;;  %v16699_v0 = vcombine.low %v5252_v40, %v5260_v16  ;;  %v16571_v59 = vcombine.low %v5124_v61, %v5132_v15  ;;  %v5428_v40 = vld [vmem:[#allocation20 + $0x1d80] sm:$0xff]  ;;  %v4533_v16 = vld [vmem:[#allocation20 + $0x188] sm:$0xff]  ;;  %v16891_v15 = vcombine.low %v5444_v31, %v5452_v7 }
 0x73d   : > { %v4541_v61 = vld [vmem:[#allocation20 + $0x1c8] sm:$0xff] }
 0x73e   : > { %v15981_v10 = vcombine.low %v4533_v16, %v4541_v61 }
 0x73f   : > { %10840 = vmatpush1.bf16.msra.mxu1 %v16779_v13  ;;  %10815 = vmatpush2.bf16.msra.mxu0 %v16651_v56  ;;  %v5476_v56 = vld [vmem:[#allocation20 + $0x1f00] sm:$0xff] }
 0x740   : > { %10841 = vmatprep.subr.bf16.mxu1 %v16764_v4  ;;  %10816 = vmatprep.subr.bf16.mxu0 %v16636_v53  ;;  %v5484_v4 = vld [vmem:[#allocation20 + $0x1f40] sm:$0xff] }
 0x743   : > { %10842 = vmatpush1.bf16.msra.mxu1 %v16763_v51  ;;  %10817 = vmatpush2.bf16.msra.mxu0 %v16635_v30  ;;  %v16045_v51 = vcombine.low %v4597_v43, %v4605_v38 }
 0x744   : > { %10843 = vmatprep.subr.bf16.mxu1 %v16748_v21  ;;  %10818 = vmatprep.subr.bf16.mxu0 %v16620_v5  ;;  %v16924_v21 = vcombine.high %v5476_v56, %v5484_v4  ;;  %v5460_v5 = vld [vmem:[#allocation20 + $0x1e80] sm:$0xff] }
 0x747   : > { %10844 = vmatpush1.bf16.msra.mxu1 %v16747_v35  ;;  %10819 = vmatpush2.bf16.msra.mxu0 %v16619_v57  ;;  %v16923_v35 = vcombine.low %v5476_v56, %v5484_v4  ;;  %v16029_v57 = vcombine.low %v4581_v27, %v4589_v2  ;;  %v5380_v4 = vld [vmem:[#allocation20 + $0x1c00] sm:$0xff]  ;;  %v4485_v2 = vld [vmem:[#allocation20 + $0x8] sm:$0xff] }
 0x748   : > { %10845 = vmatprep.subr.bf16.mxu1 %v16732_v50  ;;  %10820 = vmatprep.subr.bf16.mxu0 %v16604_v62  ;;  %v16908_v50 = vcombine.high %v5460_v5, %v5468_v58  ;;  %v16014_v62 = vcombine.high %v4565_v41, %v4573_v42  ;;  %v5388_v27 = vld [vmem:[#allocation20 + $0x1c40] sm:$0xff] }
 0x74b   : > { %10846 = vmatpush1.bf16.msra.mxu1 %v16731_v32  ;;  %10821 = vmatpush2.bf16.msra.mxu0 %v16603_v26  ;;  %v16907_v32 = vcombine.low %v5460_v5, %v5468_v58  ;;  %v16013_v26 = vcombine.low %v4565_v41, %v4573_v42  ;;  %v16828_v58 = vcombine.high %v5380_v4, %v5388_v27  ;;  %v4853_v42 = vld [vmem:[#allocation20 + $0xb88] sm:$0xff] }
 0x74c   : > { %v4420_v22 = vpop.f32.mrf.mxu1  ;;  %10847 = vmatprep.subr.bf16.mxu1 %v16716_v28  ;;  %10822 = vmatprep.subr.bf16.mxu0 %v16588_v19  ;;  %v16892_v28 = vcombine.high %v5444_v31, %v5452_v7  ;;  %v15998_v19 = vcombine.high %v4549_v54, %v4557_v60 }
 0x74d   : > { %v4421_v6 = vadd.f32 %v4420_v22, %v3963_v45  ;;  %v5436_v45 = vld [vmem:[#allocation20 + $0x1dc0] sm:$0xff] }
 0x74e   : > { %v4422_v23 = vpop.f32.mrf.mxu1  ;;  %v5412_v22 = vld [vmem:[#allocation20 + $0x1d00] sm:$0xff] }
 0x74f   : > { %v4423_v55 = vadd.f32 %v4422_v23, %v3967_v11  ;;  %10848 = vmatpush1.bf16.msra.mxu1 %v16715_v14  ;;  %10823 = vmatpush2.bf16.msra.mxu0 %v16587_v12  ;;  %v4472_v24 = vmax.f32 %v4421_v6, 0.0  ;;  %v15997_v14 = vcombine.low %v4549_v54, %v4557_v60  ;;  %v16876_v11 = vcombine.high %v5428_v40, %v5436_v45  ;;  %v5396_v23 = vld [vmem:[#allocation20 + $0x1c80] sm:$0xff] }
 0x750   : > { %v4424_v63 = vpop.f32.mrf.mxu1  ;;  %10849 = vmatprep.subr.bf16.mxu1 %v16700_v49  ;;  %10824 = vmatprep.subr.bf16.mxu0 %v16572_v52  ;;  %v15982_v12 = vcombine.high %v4533_v16, %v4541_v61  ;;  %v5420_v49 = vld [vmem:[#allocation20 + $0x1d40] sm:$0xff]  ;;  %v4517_v52 = vld [vmem:[#allocation20 + $0x108] sm:$0xff]  ;;  %v16875_v6 = vcombine.low %v5428_v40, %v5436_v45  ;;  %v16827_v54 = vcombine.low %v5380_v4, %v5388_v27 }
 0x751   : > { %v4473_v13 = vmax.f32 %v4423_v55, 0.0  ;;  %v20802_v30 = vpack.c.bf16 %v4472_v24, %v4472_v24  ;;  %v16860_v43 = vcombine.high %v5412_v22, %v5420_v49  ;;  %v15966_v38 = vcombine.high %v4517_v52, %v4525_v17  ;;  %v4509_v24 = vld [vmem:[#allocation20 + $0xc8] sm:$0xff] }
 0x752   : > { %v4425_v53 = vpop.f32.mrf.mxu1  ;;  %v20808_v55 = vsub.s32 6, %v19495_v39  ;;  %v16859_v63 = vcombine.low %v5412_v22, %v5420_v49  ;;  %v4837_v40 = vld [vmem:[#allocation20 + $0xb08] sm:$0xff] }
 0x753   : > { %v20800_v29 = vpack.c.bf16 %v4473_v13, %v4473_v13  ;;  %10850 = vmatpush1.bf16.msra.mxu1 %v16699_v0  ;;  %10825 = vmatpush2.bf16.msra.mxu0 %v16571_v59  ;;  %v5404_v0 = vld [vmem:[#allocation20 + $0x1cc0] sm:$0xff]  ;;  %v4501_v59 = vld [vmem:[#allocation20 + $0x88] sm:$0xff] }
 0x754   : > { %10851 = vmatprep.subr.bf16.mxu1 %v16940_v9  ;;  %10876 = vmatprep.subr.bf16.mxu0 %v16046_v20  ;;  %v15965_v9 = vcombine.low %v4517_v52, %v4525_v17  ;;  %v20811_v20 = vsub.s32 7, %v19495_v39  ;;  %v16844_v13 = vcombine.high %v5396_v23, %v5404_v0  ;;  %v15950_v56 = vcombine.high %v4501_v59, %v4509_v24  ;;  %v4845_v45 = vld [vmem:[#allocation20 + $0xb48] sm:$0xff] }
 0x755   : > { %10826 = vmatprep.mubr.bf16.mxu0 %v20800_v29  ;;  %v3971_v53 = vrot.slane %v20759_v25, %v20808_v55  ;;  %v15949_v5 = vcombine.low %v4501_v59, %v4509_v24  ;;  %v4709_v61 = vld [vmem:[#allocation20 + $0x708] sm:$0xff]  ;;  %v16286_v49 = vcombine.high %v4837_v40, %v4845_v45 }
 0x756   : > { %10827 = vmatmul.mubr.bf16.vlgmr.msra.gmra.mxu0 %v20802_v30  ;;  %v4821_v52 = vld [vmem:[#allocation20 + $0xa88] sm:$0xff] }
 0x757   : > { %10852 = vmatpush2.bf16.msra.mxu1 %v16939_v3  ;;  %10877 = vmatpush1.bf16.msra.mxu0 %v16045_v51  ;;  %v4493_v3 = vld [vmem:[#allocation20 + $0x48] sm:$0xff]  ;;  %v16843_v51 = vcombine.low %v5396_v23, %v5404_v0 }
 0x758   : > { %10908 = vmatprep.mubr.bf16.mxu0 %v20765_v1  ;;  %10853 = vmatprep.subr.bf16.mxu1 %v16924_v21  ;;  %v3975_v21 = vrot.slane %v20759_v25, %v20811_v20  ;;  %v15934_v41 = vcombine.high %v4485_v2, %v4493_v3  ;;  %v15933_v60 = vcombine.low %v4485_v2, %v4493_v3  ;;  %v4805_v24 = vld [vmem:[#allocation20 + $0xa08] sm:$0xff] }
 0x759   : > { %10878 = vmatprep.subr.bf16.mxu0 %v16030_v48  ;;  %v4789_v2 = vld [vmem:[#allocation20 + $0x988] sm:$0xff] }
 0x75a   : > { %v4797_v3 = vld [vmem:[#allocation20 + $0x9c8] sm:$0xff] }
 0x75b   : > { %10854 = vmatpush2.bf16.msra.mxu1 %v16923_v35  ;;  %10879 = vmatpush1.bf16.msra.mxu0 %v16029_v57  ;;  %v4861_v57 = vld [vmem:[#allocation20 + $0xbc8] sm:$0xff] }
 0x75c   : > { %10855 = vmatprep.subr.bf16.mxu1 %v16908_v50  ;;  %10880 = vmatprep.subr.bf16.mxu0 %v16014_v62  ;;  %v4725_v50 = vld [vmem:[#allocation20 + $0x788] sm:$0xff]  ;;  %v16302_v25 = vcombine.high %v4853_v42, %v4861_v57 }
 0x75d   : > { %v4733_v62 = vld [vmem:[#allocation20 + $0x7c8] sm:$0xff] }
 0x75f   : > { %10856 = vmatpush2.bf16.msra.mxu1 %v16907_v32  ;;  %10881 = vmatpush1.bf16.msra.mxu0 %v16013_v26 }
 0x760   : > { %10857 = vmatprep.subr.bf16.mxu1 %v16892_v28  ;;  %10882 = vmatprep.subr.bf16.mxu0 %v15998_v19  ;;  %v16174_v28 = vcombine.high %v4725_v50, %v4733_v62 }
 0x763   : > { %10858 = vmatpush2.bf16.msra.mxu1 %v16891_v15  ;;  %10883 = vmatpush1.bf16.msra.mxu0 %v15997_v14  ;;  %v4717_v15 = vld [vmem:[#allocation20 + $0x748] sm:$0xff] }
 0x764   : > { %10859 = vmatprep.subr.bf16.mxu1 %v16876_v11  ;;  %10884 = vmatprep.subr.bf16.mxu0 %v15982_v12  ;;  %v16301_v11 = vcombine.low %v4853_v42, %v4861_v57  ;;  %v16173_v12 = vcombine.low %v4725_v50, %v4733_v62  ;;  %v16158_v17 = vcombine.high %v4709_v61, %v4717_v15  ;;  %v4773_v42 = vld [vmem:[#allocation20 + $0x908] sm:$0xff] }
 0x765   : > { %v16157_v23 = vcombine.low %v4709_v61, %v4717_v15  ;;  %v4645_v57 = vld [vmem:[#allocation20 + $0x508] sm:$0xff]  ;;  %v16237_v62 = vcombine.low %v4789_v2, %v4797_v3 }
 0x766   : > { %v4653_v50 = vld [vmem:[#allocation20 + $0x548] sm:$0xff] }
 0x767   : > { %10860 = vmatpush2.bf16.msra.mxu1 %v16875_v6  ;;  %10885 = vmatpush1.bf16.msra.mxu0 %v15981_v10  ;;  %v4829_v6 = vld [vmem:[#allocation20 + $0xac8] sm:$0xff] }
 0x768   : > { %10861 = vmatprep.subr.bf16.mxu1 %v16860_v43  ;;  %10886 = vmatprep.subr.bf16.mxu0 %v15966_v38  ;;  %v4693_v10 = vld [vmem:[#allocation20 + $0x688] sm:$0xff]  ;;  %v16285_v38 = vcombine.low %v4837_v40, %v4845_v45  ;;  %v16270_v0 = vcombine.high %v4821_v52, %v4829_v6 }
 0x769   : > { %v4701_v43 = vld [vmem:[#allocation20 + $0x6c8] sm:$0xff] }
 0x76a   : > { %v16142_v59 = vcombine.high %v4693_v10, %v4701_v43  ;;  %v16141_v4 = vcombine.low %v4693_v10, %v4701_v43  ;;  %v4749_v61 = vld [vmem:[#allocation20 + $0x848] sm:$0xff] }
 0x76b   : > { %10862 = vmatpush2.bf16.msra.mxu1 %v16859_v63  ;;  %10887 = vmatpush1.bf16.msra.mxu0 %v15965_v9  ;;  %v4813_v63 = vld [vmem:[#allocation20 + $0xa48] sm:$0xff] }
 0x76c   : > { %v4461_v48 = vpop.f32.mrf.mxu1  ;;  %10863 = vmatprep.subr.bf16.mxu1 %v16844_v13  ;;  %10888 = vmatprep.subr.bf16.mxu0 %v15950_v56  ;;  %v4677_v9 = vld [vmem:[#allocation20 + $0x608] sm:$0xff]  ;;  %v16269_v56 = vcombine.low %v4821_v52, %v4829_v6 }
 0x76d   : > { %v4462_v35 = vadd.f32 %v4461_v48, %v3971_v53  ;;  %v4685_v13 = vld [vmem:[#allocation20 + $0x648] sm:$0xff]  ;;  %v16254_v53 = vcombine.high %v4805_v24, %v4813_v63 }
 0x76e   : > { %v4463_v31 = vpop.f32.mrf.mxu1  ;;  %v16126_v27 = vcombine.high %v4677_v9, %v4685_v13  ;;  %v16125_v48 = vcombine.low %v4677_v9, %v4685_v13  ;;  %v4613_v15 = vld [vmem:[#allocation20 + $0x408] sm:$0xff] }
 0x76f   : > { %v4464_v7 = vadd.f32 %v4463_v31, %v3975_v21  ;;  %10864 = vmatpush2.bf16.msra.mxu1 %v16843_v51  ;;  %10889 = vmatpush1.bf16.msra.mxu0 %v15949_v5  ;;  %v4474_v32 = vmax.f32 %v4462_v35, 0.0  ;;  %v4661_v51 = vld [vmem:[#allocation20 + $0x588] sm:$0xff]  ;;  %v16253_v5 = vcombine.low %v4805_v24, %v4813_v63 }
 0x770   : > { %v4465_v26 = vpop.f32.mrf.mxu1  ;;  %10865 = vmatprep.subr.bf16.mxu1 %v16828_v58  ;;  %10890 = vmatprep.subr.bf16.mxu0 %v15934_v41  ;;  %v4669_v21 = vld [vmem:[#allocation20 + $0x5c8] sm:$0xff]  ;;  %v16238_v58 = vcombine.high %v4789_v2, %v4797_v3 }
 0x771   : > { %v4475_v19 = vmax.f32 %v4464_v7, 0.0  ;;  %v20819_v22 = vpack.c.bf16 %v4474_v32, %v4474_v32  ;;  %v16110_v41 = vcombine.high %v4661_v51, %v4669_v21  ;;  %v4781_v35 = vld [vmem:[#allocation20 + $0x948] sm:$0xff]  ;;  %v16109_v31 = vcombine.low %v4661_v51, %v4669_v21 }
 0x772   : > { %v4466_v16 = vpop.f32.mrf.mxu1  ;;  %v16222_v7 = vcombine.high %v4773_v42, %v4781_v35  ;;  %v4765_v32 = vld [vmem:[#allocation20 + $0x8c8] sm:$0xff] }
 0x773   : > { %v20817_v14 = vpack.c.bf16 %v4475_v19, %v4475_v19  ;;  %10866 = vmatpush2.bf16.msra.mxu1 %v16827_v54  ;;  %10891 = vmatpush1.bf16.msra.mxu0 %v15933_v60  ;;  %v16094_v54 = vcombine.high %v4645_v57, %v4653_v50  ;;  %v4757_v60 = vld [vmem:[#allocation20 + $0x888] sm:$0xff]  ;;  %v16093_v19 = vcombine.low %v4645_v57, %v4653_v50 }
 0x774   : > { %10917 = vmatprep.subr.bf16.mxu1 %v16302_v25  ;;  %10892 = vmatprep.subr.bf16.mxu0 %v16174_v28  ;;  %v4629_v26 = vld [vmem:[#allocation20 + $0x488] sm:$0xff]  ;;  %v16221_v28 = vcombine.low %v4773_v42, %v4781_v35  ;;  %v16206_v40 = vcombine.high %v4757_v60, %v4765_v32 }
 0x775   : > { %10867 = vmatprep.mubr.bf16.mxu1 %v20817_v14  ;;  %v4637_v25 = vld [vmem:[#allocation20 + $0x4c8] sm:$0xff] }
 0x776   : > { %10868 = vmatmul.mubr.bf16.vlgmr.msra.gmra.mxu1 %v20819_v22  ;;  %v16078_v45 = vcombine.high %v4629_v26, %v4637_v25  ;;  %v4741_v16 = vld [vmem:[#allocation20 + $0x808] sm:$0xff] }
 0x777   : > { %10918 = vmatpush1.bf16.msra.mxu1 %v16301_v11  ;;  %10893 = vmatpush2.bf16.msra.mxu0 %v16173_v12  ;;  %v4621_v11 = vld [vmem:[#allocation20 + $0x448] sm:$0xff]  ;;  %v16205_v12 = vcombine.low %v4757_v60, %v4765_v32  ;;  %v16190_v52 = vcombine.high %v4741_v16, %v4749_v61 }
 0x778   : > { %10949 = vmatprep.mubr.bf16.mxu1 %v20781_v34  ;;  %10919 = vmatprep.subr.bf16.mxu1 %v16286_v49  ;;  %v16077_v49 = vcombine.low %v4629_v26, %v4637_v25  ;;  %v4981_v6 = vld [vmem:[#allocation20 + $0xf88] sm:$0xff] }
 0x779   : > { %10894 = vmatprep.subr.bf16.mxu0 %v16158_v17  ;;  %v16062_v17 = vcombine.high %v4613_v15, %v4621_v11  ;;  %v4989_v10 = vld [vmem:[#allocation20 + $0xfc8] sm:$0xff] }
 0x77a   : > { %v5109_v43 = vld [vmem:[#allocation20 + $0x1388] sm:$0xff] }
 0x77b   : > { %10920 = vmatpush1.bf16.msra.mxu1 %v16285_v38  ;;  %10895 = vmatpush2.bf16.msra.mxu0 %v16157_v23  ;;  %v5117_v38 = vld [vmem:[#allocation20 + $0x13c8] sm:$0xff]  ;;  %v16189_v23 = vcombine.low %v4741_v16, %v4749_v61 }
 0x77c   : > { %10921 = vmatprep.subr.bf16.mxu1 %v16270_v0  ;;  %10896 = vmatprep.subr.bf16.mxu0 %v16142_v59  ;;  %v16061_v0 = vcombine.low %v4613_v15, %v4621_v11  ;;  %v16430_v59 = vcombine.high %v4981_v6, %v4989_v10  ;;  %v16558_v24 = vcombine.high %v5109_v43, %v5117_v38  ;;  %v4965_v63 = vld [vmem:[#allocation20 + $0xf08] sm:$0xff] }
 0x77d   : > { %v4973_v9 = vld [vmem:[#allocation20 + $0xf48] sm:$0xff] }
 0x77e   : > { %v5093_v13 = vld [vmem:[#allocation20 + $0x1308] sm:$0xff] }
 0x77f   : > { %10922 = vmatpush1.bf16.msra.mxu1 %v16269_v56  ;;  %10897 = vmatpush2.bf16.msra.mxu0 %v16141_v4  ;;  %v5101_v56 = vld [vmem:[#allocation20 + $0x1348] sm:$0xff]  ;;  %v16429_v4 = vcombine.low %v4981_v6, %v4989_v10 }
 0x780   : > { %10923 = vmatprep.subr.bf16.mxu1 %v16254_v53  ;;  %10898 = vmatprep.subr.bf16.mxu0 %v16126_v27  ;;  %v16557_v53 = vcombine.low %v5109_v43, %v5117_v38  ;;  %v16414_v27 = vcombine.high %v4965_v63, %v4973_v9  ;;  %v4949_v2 = vld [vmem:[#allocation20 + $0xe88] sm:$0xff]  ;;  %v16542_v3 = vcombine.high %v5093_v13, %v5101_v56 }
 0x781   : > { %v4957_v51 = vld [vmem:[#allocation20 + $0xec8] sm:$0xff] }
 0x782   : > { %v5077_v21 = vld [vmem:[#allocation20 + $0x1288] sm:$0xff] }
 0x783   : > { %10924 = vmatpush1.bf16.msra.mxu1 %v16253_v5  ;;  %10899 = vmatpush2.bf16.msra.mxu0 %v16125_v48  ;;  %v5085_v5 = vld [vmem:[#allocation20 + $0x12c8] sm:$0xff]  ;;  %v16413_v48 = vcombine.low %v4965_v63, %v4973_v9 }
 0x784   : > { %10925 = vmatprep.subr.bf16.mxu1 %v16238_v58  ;;  %10900 = vmatprep.subr.bf16.mxu0 %v16110_v41  ;;  %v16541_v58 = vcombine.low %v5093_v13, %v5101_v56  ;;  %v16398_v41 = vcombine.high %v4949_v2, %v4957_v51  ;;  %v16526_v42 = vcombine.high %v5077_v21, %v5085_v5  ;;  %v4933_v35 = vld [vmem:[#allocation20 + $0xe08] sm:$0xff] }
 0x785   : > { %v4941_v57 = vld [vmem:[#allocation20 + $0xe48] sm:$0xff] }
 0x786   : > { %v5061_v50 = vld [vmem:[#allocation20 + $0x1208] sm:$0xff] }
 0x787   : > { %10926 = vmatpush1.bf16.msra.mxu1 %v16237_v62  ;;  %10901 = vmatpush2.bf16.msra.mxu0 %v16109_v31  ;;  %v5069_v62 = vld [vmem:[#allocation20 + $0x1248] sm:$0xff]  ;;  %v16397_v31 = vcombine.low %v4949_v2, %v4957_v51 }
 0x788   : > { %10927 = vmatprep.subr.bf16.mxu1 %v16222_v7  ;;  %10902 = vmatprep.subr.bf16.mxu0 %v16094_v54  ;;  %v16525_v7 = vcombine.low %v5077_v21, %v5085_v5  ;;  %v16382_v54 = vcombine.high %v4933_v35, %v4941_v57  ;;  %v16510_v60 = vcombine.high %v5061_v50, %v5069_v62  ;;  %v4917_v32 = vld [vmem:[#allocation20 + $0xd88] sm:$0xff] }
 0x789   : > { %v4925_v26 = vld [vmem:[#allocation20 + $0xdc8] sm:$0xff] }
 0x78a   : > { %v5045_v25 = vld [vmem:[#allocation20 + $0x1188] sm:$0xff] }
 0x78b   : > { %10928 = vmatpush1.bf16.msra.mxu1 %v16221_v28  ;;  %10903 = vmatpush2.bf16.msra.mxu0 %v16093_v19  ;;  %v5053_v28 = vld [vmem:[#allocation20 + $0x11c8] sm:$0xff]  ;;  %v16381_v19 = vcombine.low %v4933_v35, %v4941_v57 }
 0x78c   : > { %10929 = vmatprep.subr.bf16.mxu1 %v16206_v40  ;;  %10904 = vmatprep.subr.bf16.mxu0 %v16078_v45  ;;  %v16509_v40 = vcombine.low %v5061_v50, %v5069_v62  ;;  %v16366_v45 = vcombine.high %v4917_v32, %v4925_v26  ;;  %v16494_v16 = vcombine.high %v5045_v25, %v5053_v28  ;;  %v4901_v61 = vld [vmem:[#allocation20 + $0xd08] sm:$0xff] }
 0x78d   : > { %v4909_v15 = vld [vmem:[#allocation20 + $0xd48] sm:$0xff] }
 0x78e   : > { %v5029_v11 = vld [vmem:[#allocation20 + $0x1108] sm:$0xff] }
 0x78f   : > { %10930 = vmatpush1.bf16.msra.mxu1 %v16205_v12  ;;  %10905 = vmatpush2.bf16.msra.mxu0 %v16077_v49  ;;  %v5037_v12 = vld [vmem:[#allocation20 + $0x1148] sm:$0xff]  ;;  %v16365_v49 = vcombine.low %v4917_v32, %v4925_v26 }
 0x790   : > { %10931 = vmatprep.subr.bf16.mxu1 %v16190_v52  ;;  %10906 = vmatprep.subr.bf16.mxu0 %v16062_v17  ;;  %v16493_v52 = vcombine.low %v5045_v25, %v5053_v28  ;;  %v16350_v17 = vcombine.high %v4901_v61, %v4909_v15  ;;  %v16478_v6 = vcombine.high %v5029_v11, %v5037_v12  ;;  %v4885_v10 = vld [vmem:[#allocation20 + $0xc88] sm:$0xff] }
 0x791   : > { %v4893_v43 = vld [vmem:[#allocation20 + $0xcc8] sm:$0xff] }
 0x792   : > { %v5013_v38 = vld [vmem:[#allocation20 + $0x1088] sm:$0xff] }
 0x793   : > { %10932 = vmatpush1.bf16.msra.mxu1 %v16189_v23  ;;  %10907 = vmatpush2.bf16.msra.mxu0 %v16061_v0  ;;  %v5021_v23 = vld [vmem:[#allocation20 + $0x10c8] sm:$0xff]  ;;  %v16349_v0 = vcombine.low %v4901_v61, %v4909_v15 }
 0x794   : > { %10933 = vmatprep.subr.bf16.mxu1 %v16430_v59  ;;  %10958 = vmatprep.subr.bf16.mxu0 %v16558_v24  ;;  %v16477_v59 = vcombine.low %v5029_v11, %v5037_v12  ;;  %v16334_v24 = vcombine.high %v4885_v10, %v4893_v43  ;;  %v16462_v63 = vcombine.high %v5013_v38, %v5021_v23  ;;  %v4869_v9 = vld [vmem:[#allocation20 + $0xc08] sm:$0xff] }
 0x795   : > { %v4877_v13 = vld [vmem:[#allocation20 + $0xc48] sm:$0xff] }
 0x796   : > { %10909 = vmatmul.mubr.bf16.vlgmr.msra.gmra.mxu0 %v20767_v8  ;;  %v4997_v56 = vld [vmem:[#allocation20 + $0x1008] sm:$0xff]  ;;  %v16318_v2 = vcombine.high %v4869_v9, %v4877_v13 }
 0x797   : > { %10934 = vmatpush2.bf16.msra.mxu1 %v16429_v4  ;;  %10959 = vmatpush1.bf16.msra.mxu0 %v16557_v53  ;;  %v5005_v4 = vld [vmem:[#allocation20 + $0x1048] sm:$0xff]  ;;  %v16333_v53 = vcombine.low %v4885_v10, %v4893_v43 }
 0x798   : > { %10990 = vmatprep.mubr.bf16.mxu0 %v20800_v29  ;;  %10935 = vmatprep.subr.bf16.mxu1 %v16414_v27  ;;  %v16461_v27 = vcombine.low %v5013_v38, %v5021_v23  ;;  %v5365_v51 = vld [vmem:[#allocation20 + $0x1b88] sm:$0xff] }
 0x799   : > { %10960 = vmatprep.subr.bf16.mxu0 %v16542_v3  ;;  %v16446_v3 = vcombine.high %v4997_v56, %v5005_v4  ;;  %v5373_v21 = vld [vmem:[#allocation20 + $0x1bc8] sm:$0xff] }
 0x79a   : > { %v5237_v5 = vld [vmem:[#allocation20 + $0x1788] sm:$0xff] }
 0x79b   : > { %10936 = vmatpush2.bf16.msra.mxu1 %v16413_v48  ;;  %10961 = vmatpush1.bf16.msra.mxu0 %v16541_v58  ;;  %v5245_v48 = vld [vmem:[#allocation20 + $0x17c8] sm:$0xff]  ;;  %v16317_v58 = vcombine.low %v4869_v9, %v4877_v13 }
 0x79c   : > { %10937 = vmatprep.subr.bf16.mxu1 %v16398_v41  ;;  %10962 = vmatprep.subr.bf16.mxu0 %v16526_v42  ;;  %v16445_v41 = vcombine.low %v4997_v56, %v5005_v4  ;;  %v16814_v42 = vcombine.high %v5365_v51, %v5373_v21  ;;  %v16686_v35 = vcombine.high %v5237_v5, %v5245_v48  ;;  %v5349_v57 = vld [vmem:[#allocation20 + $0x1b08] sm:$0xff] }
 0x79d   : > { %v5357_v50 = vld [vmem:[#allocation20 + $0x1b48] sm:$0xff] }
 0x79e   : > { %v5221_v62 = vld [vmem:[#allocation20 + $0x1708] sm:$0xff] }
 0x79f   : > { %10938 = vmatpush2.bf16.msra.mxu1 %v16397_v31  ;;  %10963 = vmatpush1.bf16.msra.mxu0 %v16525_v7  ;;  %v5229_v31 = vld [vmem:[#allocation20 + $0x1748] sm:$0xff]  ;;  %v16813_v7 = vcombine.low %v5365_v51, %v5373_v21 }
 0x7a0   : > { %10939 = vmatprep.subr.bf16.mxu1 %v16382_v54  ;;  %10964 = vmatprep.subr.bf16.mxu0 %v16510_v60  ;;  %v16685_v54 = vcombine.low %v5237_v5, %v5245_v48  ;;  %v16798_v60 = vcombine.high %v5349_v57, %v5357_v50  ;;  %v16670_v32 = vcombine.high %v5221_v62, %v5229_v31  ;;  %v5333_v26 = vld [vmem:[#allocation20 + $0x1a88] sm:$0xff] }
 0x7a1   : > { %v5341_v25 = vld [vmem:[#allocation20 + $0x1ac8] sm:$0xff] }
 0x7a2   : > { %v5205_v28 = vld [vmem:[#allocation20 + $0x1688] sm:$0xff] }
 0x7a3   : > { %10940 = vmatpush2.bf16.msra.mxu1 %v16381_v19  ;;  %10965 = vmatpush1.bf16.msra.mxu0 %v16509_v40  ;;  %v5213_v19 = vld [vmem:[#allocation20 + $0x16c8] sm:$0xff]  ;;  %v16797_v40 = vcombine.low %v5349_v57, %v5357_v50 }
 0x7a4   : > { %10941 = vmatprep.subr.bf16.mxu1 %v16366_v45  ;;  %10966 = vmatprep.subr.bf16.mxu0 %v16494_v16  ;;  %v16669_v45 = vcombine.low %v5221_v62, %v5229_v31  ;;  %v16782_v16 = vcombine.high %v5333_v26, %v5341_v25  ;;  %v16654_v61 = vcombine.high %v5205_v28, %v5213_v19  ;;  %v5317_v15 = vld [vmem:[#allocation20 + $0x1a08] sm:$0xff] }
 0x7a5   : > { %v5325_v11 = vld [vmem:[#allocation20 + $0x1a48] sm:$0xff] }
 0x7a6   : > { %v5189_v12 = vld [vmem:[#allocation20 + $0x1608] sm:$0xff] }
 0x7a7   : > { %10942 = vmatpush2.bf16.msra.mxu1 %v16365_v49  ;;  %10967 = vmatpush1.bf16.msra.mxu0 %v16493_v52  ;;  %v5197_v49 = vld [vmem:[#allocation20 + $0x1648] sm:$0xff]  ;;  %v16781_v52 = vcombine.low %v5333_v26, %v5341_v25 }
 0x7a8   : > { %10943 = vmatprep.subr.bf16.mxu1 %v16350_v17  ;;  %10968 = vmatprep.subr.bf16.mxu0 %v16478_v6  ;;  %v16653_v17 = vcombine.low %v5205_v28, %v5213_v19  ;;  %v16766_v6 = vcombine.high %v5317_v15, %v5325_v11  ;;  %v16638_v10 = vcombine.high %v5189_v12, %v5197_v49  ;;  %v5301_v43 = vld [vmem:[#allocation20 + $0x1988] sm:$0xff]  ;;  %v4598_v19 = vld [vmem:[#allocation20 + $0x390] sm:$0xff] }
 0x7a9   : > { %v5309_v38 = vld [vmem:[#allocation20 + $0x19c8] sm:$0xff] }
 0x7aa   : > { %v5173_v23 = vld [vmem:[#allocation20 + $0x1588] sm:$0xff] }
 0x7ab   : > { %10944 = vmatpush2.bf16.msra.mxu1 %v16349_v0  ;;  %10969 = vmatpush1.bf16.msra.mxu0 %v16477_v59  ;;  %v5181_v0 = vld [vmem:[#allocation20 + $0x15c8] sm:$0xff]  ;;  %v16765_v59 = vcombine.low %v5317_v15, %v5325_v11 }
 0x7ac   : > { %10945 = vmatprep.subr.bf16.mxu1 %v16334_v24  ;;  %10970 = vmatprep.subr.bf16.mxu0 %v16462_v63  ;;  %v16637_v24 = vcombine.low %v5189_v12, %v5197_v49  ;;  %v16750_v63 = vcombine.high %v5301_v43, %v5309_v38  ;;  %v16622_v9 = vcombine.high %v5173_v23, %v5181_v0  ;;  %v5285_v13 = vld [vmem:[#allocation20 + $0x1908] sm:$0xff]  ;;  %v4582_v49 = vld [vmem:[#allocation20 + $0x310] sm:$0xff] }
 0x7ad   : > { %v5293_v56 = vld [vmem:[#allocation20 + $0x1948] sm:$0xff] }
 0x7ae   : > { %v5157_v4 = vld [vmem:[#allocation20 + $0x1508] sm:$0xff] }
 0x7af   : > { %10946 = vmatpush2.bf16.msra.mxu1 %v16333_v53  ;;  %10971 = vmatpush1.bf16.msra.mxu0 %v16461_v27  ;;  %v5165_v53 = vld [vmem:[#allocation20 + $0x1548] sm:$0xff]  ;;  %v16749_v27 = vcombine.low %v5301_v43, %v5309_v38 }
 0x7b0   : > { %10947 = vmatprep.subr.bf16.mxu1 %v16318_v2  ;;  %10972 = vmatprep.subr.bf16.mxu0 %v16446_v3  ;;  %v16621_v2 = vcombine.low %v5173_v23, %v5181_v0  ;;  %v16734_v3 = vcombine.high %v5285_v13, %v5293_v56  ;;  %v16606_v51 = vcombine.high %v5157_v4, %v5165_v53  ;;  %v5269_v21 = vld [vmem:[#allocation20 + $0x1888] sm:$0xff] }
 0x7b1   : > { %v5277_v5 = vld [vmem:[#allocation20 + $0x18c8] sm:$0xff] }
 0x7b2   : > { %v5141_v48 = vld [vmem:[#allocation20 + $0x1488] sm:$0xff] }
 0x7b3   : > { %10948 = vmatpush2.bf16.msra.mxu1 %v16317_v58  ;;  %10973 = vmatpush1.bf16.msra.mxu0 %v16445_v41  ;;  %v5149_v58 = vld [vmem:[#allocation20 + $0x14c8] sm:$0xff]  ;;  %v16733_v41 = vcombine.low %v5285_v13, %v5293_v56 }
 0x7b4   : > { %10999 = vmatprep.subr.bf16.mxu1 %v16814_v42  ;;  %10974 = vmatprep.subr.bf16.mxu0 %v16686_v35  ;;  %v16605_v42 = vcombine.low %v5157_v4, %v5165_v53  ;;  %v16718_v35 = vcombine.high %v5269_v21, %v5277_v5  ;;  %v16590_v57 = vcombine.high %v5141_v48, %v5149_v58  ;;  %v5253_v50 = vld [vmem:[#allocation20 + $0x1808] sm:$0xff] }
 0x7b5   : > { %v5261_v62 = vld [vmem:[#allocation20 + $0x1848] sm:$0xff] }
 0x7b6   : > { %10950 = vmatmul.mubr.bf16.vlgmr.msra.gmra.mxu1 %v20783_v33  ;;  %v5125_v31 = vld [vmem:[#allocation20 + $0x1408] sm:$0xff] }
 0x7b7   : > { %11000 = vmatpush1.bf16.msra.mxu1 %v16813_v7  ;;  %11031 = vmatprep.mubr.bf16.mxu1 %v20817_v14  ;;  %v5133_v7 = vld [vmem:[#allocation20 + $0x1448] sm:$0xff] }
 0x7b8   : > { %10975 = vmatpush2.bf16.msra.mxu0 %v16685_v54  ;;  %11001 = vmatprep.subr.bf16.mxu1 %v16798_v60  ;;  %v16717_v54 = vcombine.low %v5269_v21, %v5277_v5  ;;  %v16589_v60 = vcombine.low %v5141_v48, %v5149_v58  ;;  %v16574_v26 = vcombine.high %v5125_v31, %v5133_v7  ;;  %v5493_v25 = vld [vmem:[#allocation20 + $0x1f88] sm:$0xff] }
 0x7b9   : > { %10976 = vmatprep.subr.bf16.mxu0 %v16670_v32  ;;  %v16702_v32 = vcombine.high %v5253_v50, %v5261_v62  ;;  %v5501_v28 = vld [vmem:[#allocation20 + $0x1fc8] sm:$0xff] }
 0x7ba   : > { %v5477_v11 = vld [vmem:[#allocation20 + $0x1f08] sm:$0xff] }
 0x7bb   : > { %11002 = vmatpush1.bf16.msra.mxu1 %v16797_v40  ;;  %v4606_v40 = vld [vmem:[#allocation20 + $0x3d0] sm:$0xff]  ;;  %v5485_v12 = vld [vmem:[#allocation20 + $0x1f48] sm:$0xff] }
 0x7bc   : > { %10977 = vmatpush2.bf16.msra.mxu0 %v16669_v45  ;;  %11003 = vmatprep.subr.bf16.mxu1 %v16782_v16  ;;  %v16701_v45 = vcombine.low %v5253_v50, %v5261_v62  ;;  %v16573_v16 = vcombine.low %v5125_v31, %v5133_v7  ;;  %v16048_v15 = vcombine.high %v4598_v19, %v4606_v40  ;;  %v5461_v38 = vld [vmem:[#allocation20 + $0x1e88] sm:$0xff]  ;;  %v4542_v50 = vld [vmem:[#allocation20 + $0x1d0] sm:$0xff] }
 0x7bd   : > { %10978 = vmatprep.subr.bf16.mxu0 %v16654_v61  ;;  %v16942_v61 = vcombine.high %v5493_v25, %v5501_v28  ;;  %v5469_v23 = vld [vmem:[#allocation20 + $0x1ec8] sm:$0xff] }
 0x7be   : > { %v16910_v56 = vcombine.high %v5461_v38, %v5469_v23  ;;  %v5445_v53 = vld [vmem:[#allocation20 + $0x1e08] sm:$0xff]  ;;  %v16909_v21 = vcombine.low %v5461_v38, %v5469_v23  ;;  %v4494_v38 = vld [vmem:[#allocation20 + $0x50] sm:$0xff] }
 0x7bf   : > { %11004 = vmatpush1.bf16.msra.mxu1 %v16781_v52  ;;  %v4590_v52 = vld [vmem:[#allocation20 + $0x350] sm:$0xff] }
 0x7c0   : > { %10979 = vmatpush2.bf16.msra.mxu0 %v16653_v17  ;;  %11005 = vmatprep.subr.bf16.mxu1 %v16766_v6  ;;  %v16941_v17 = vcombine.low %v5493_v25, %v5501_v28  ;;  %v16047_v6 = vcombine.low %v4598_v19, %v4606_v40  ;;  %v16032_v43 = vcombine.high %v4582_v49, %v4590_v52  ;;  %v4526_v25 = vld [vmem:[#allocation20 + $0x150] sm:$0xff] }
 0x7c1   : > { %10980 = vmatprep.subr.bf16.mxu0 %v16638_v10  ;;  %v16926_v10 = vcombine.high %v5477_v11, %v5485_v12  ;;  %v16031_v13 = vcombine.low %v4582_v49, %v4590_v52 }
 0x7c3   : > { %11006 = vmatpush1.bf16.msra.mxu1 %v16765_v59  ;;  %v4566_v59 = vld [vmem:[#allocation20 + $0x290] sm:$0xff] }
 0x7c4   : > { %10981 = vmatpush2.bf16.msra.mxu0 %v16637_v24  ;;  %11007 = vmatprep.subr.bf16.mxu1 %v16750_v63  ;;  %v4574_v24 = vld [vmem:[#allocation20 + $0x2d0] sm:$0xff]  ;;  %v16925_v63 = vcombine.low %v5477_v11, %v5485_v12 }
 0x7c5   : > { %10982 = vmatprep.subr.bf16.mxu0 %v16622_v9  ;;  %v16016_v4 = vcombine.high %v4566_v59, %v4574_v24  ;;  %v16015_v48 = vcombine.low %v4566_v59, %v4574_v24  ;;  %v4510_v11 = vld [vmem:[#allocation20 + $0xd0] sm:$0xff] }
 0x7c7   : > { %11008 = vmatpush1.bf16.msra.mxu1 %v16749_v27  ;;  %v5453_v27 = vld [vmem:[#allocation20 + $0x1e48] sm:$0xff] }
 0x7c8   : > { %10983 = vmatpush2.bf16.msra.mxu0 %v16621_v2  ;;  %11009 = vmatprep.subr.bf16.mxu1 %v16734_v3  ;;  %v4550_v3 = vld [vmem:[#allocation20 + $0x210] sm:$0xff]  ;;  %v16894_v58 = vcombine.high %v5445_v53, %v5453_v27  ;;  %v16893_v62 = vcombine.low %v5445_v53, %v5453_v27 }
 0x7c9   : > { %10984 = vmatprep.subr.bf16.mxu0 %v16606_v51  ;;  %v4558_v51 = vld [vmem:[#allocation20 + $0x250] sm:$0xff] }
 0x7ca   : > { %v15999_v31 = vcombine.low %v4550_v3, %v4558_v51  ;;  %v4726_v53 = vld [vmem:[#allocation20 + $0x790] sm:$0xff] }
 0x7cb   : > { %11010 = vmatpush1.bf16.msra.mxu1 %v16733_v41  ;;  %v16000_v41 = vcombine.high %v4550_v3, %v4558_v51  ;;  %v4734_v27 = vld [vmem:[#allocation20 + $0x7d0] sm:$0xff] }
 0x7cc   : > { %10985 = vmatpush2.bf16.msra.mxu0 %v16605_v42  ;;  %11011 = vmatprep.subr.bf16.mxu1 %v16718_v35  ;;  %v5429_v42 = vld [vmem:[#allocation20 + $0x1d88] sm:$0xff] }
 0x7cd   : > { %10986 = vmatprep.subr.bf16.mxu0 %v16590_v57  ;;  %v5437_v35 = vld [vmem:[#allocation20 + $0x1dc8] sm:$0xff]  ;;  %v4534_v57 = vld [vmem:[#allocation20 + $0x190] sm:$0xff] }
 0x7ce   : > { %v16878_v7 = vcombine.high %v5429_v42, %v5437_v35  ;;  %v16877_v28 = vcombine.low %v5429_v42, %v5437_v35  ;;  %v15983_v19 = vcombine.low %v4534_v57, %v4542_v50  ;;  %v4718_v42 = vld [vmem:[#allocation20 + $0x750] sm:$0xff] }
 0x7cf   : > { %11012 = vmatpush1.bf16.msra.mxu1 %v16717_v54  ;;  %v15984_v54 = vcombine.high %v4534_v57, %v4542_v50  ;;  %v16175_v50 = vcombine.low %v4726_v53, %v4734_v27 }
 0x7d0   : > { %10987 = vmatpush2.bf16.msra.mxu0 %v16589_v60  ;;  %11013 = vmatprep.subr.bf16.mxu1 %v16702_v32  ;;  %v5413_v60 = vld [vmem:[#allocation20 + $0x1d08] sm:$0xff] }
 0x7d1   : > { %10988 = vmatprep.subr.bf16.mxu0 %v16574_v26  ;;  %v5421_v32 = vld [vmem:[#allocation20 + $0x1d48] sm:$0xff]  ;;  %v4518_v26 = vld [vmem:[#allocation20 + $0x110] sm:$0xff] }
 0x7d2   : > { %v16862_v40 = vcombine.high %v5413_v60, %v5421_v32  ;;  %v16861_v12 = vcombine.low %v5413_v60, %v5421_v32  ;;  %v15967_v49 = vcombine.low %v4518_v26, %v4526_v25  ;;  %v4830_v60 = vld [vmem:[#allocation20 + $0xad0] sm:$0xff] }
 0x7d3   : > { %11014 = vmatpush1.bf16.msra.mxu1 %v16701_v45  ;;  %v15968_v45 = vcombine.high %v4518_v26, %v4526_v25  ;;  %v4694_v26 = vld [vmem:[#allocation20 + $0x690] sm:$0xff] }
 0x7d4   : > { %10989 = vmatpush2.bf16.msra.mxu0 %v16573_v16  ;;  %11015 = vmatprep.subr.bf16.mxu1 %v16942_v61  ;;  %v5397_v16 = vld [vmem:[#allocation20 + $0x1c88] sm:$0xff]  ;;  %v4702_v25 = vld [vmem:[#allocation20 + $0x6d0] sm:$0xff] }
 0x7d5   : > { %11040 = vmatprep.subr.bf16.mxu0 %v16048_v15  ;;  %v5405_v61 = vld [vmem:[#allocation20 + $0x1cc8] sm:$0xff]  ;;  %v4502_v15 = vld [vmem:[#allocation20 + $0x90] sm:$0xff] }
 0x7d6   : > { %v20828_v0 = vpop.f32.mrf.mxu0  ;;  %v16846_v52 = vcombine.high %v5397_v16, %v5405_v61  ;;  %v16845_v23 = vcombine.low %v5397_v16, %v5405_v61  ;;  %v15951_v59 = vcombine.low %v4502_v15, %v4510_v11 }
 0x7d7   : > { %10991 = vmatmul.mubr.bf16.vlgmr.msra.gmra.mxu0 %v20802_v30  ;;  %11016 = vmatpush2.bf16.msra.mxu1 %v16941_v17  ;;  %v15952_v17 = vcombine.high %v4502_v15, %v4510_v11  ;;  %v16144_v15 = vcombine.high %v4694_v26, %v4702_v25  ;;  %v4806_v11 = vld [vmem:[#allocation20 + $0xa10] sm:$0xff] }
 0x7d8   : > { %11041 = vmatpush1.bf16.msra.mxu0 %v16047_v6  ;;  %11072 = vmatprep.mubr.bf16.mxu0 %v20765_v1  ;;  %v20832_v9 = vpop.f32.mrf.mxu0  ;;  %v5381_v6 = vld [vmem:[#allocation20 + $0x1c08] sm:$0xff] }
 0x7d9   : > { %11017 = vmatprep.subr.bf16.mxu1 %v16926_v10  ;;  %11042 = vmatprep.subr.bf16.mxu0 %v16032_v43  ;;  %v5389_v10 = vld [vmem:[#allocation20 + $0x1c48] sm:$0xff]  ;;  %v4486_v43 = vld [vmem:[#allocation20 + $0x10] sm:$0xff] }
 0x7da   : > { %v10750_v2 = vpop.f32.mrf.mxu0  ;;  %v16830_v24 = vcombine.high %v5381_v6, %v5389_v10  ;;  %v15935_v3 = vcombine.low %v4486_v43, %v4494_v38 }
 0x7db   : > { %11018 = vmatpush2.bf16.msra.mxu1 %v16925_v63  ;;  %v15936_v63 = vcombine.high %v4486_v43, %v4494_v38  ;;  %v16829_v2 = vcombine.low %v5381_v6, %v5389_v10  ;;  %v16143_v10 = vcombine.low %v4694_v26, %v4702_v25  ;;  %v4614_v26 = vld [vmem:[#allocation20 + $0x410] sm:$0xff] }
 0x7dc   : > { %11043 = vmatpush1.bf16.msra.mxu0 %v16031_v13  ;;  %v10751_v5 = vpop.f32.mrf.mxu0  ;;  %11019 = vmatprep.subr.bf16.mxu1 %v16910_v56  ;;  %v4854_v13 = vld [vmem:[#allocation20 + $0xb90] sm:$0xff] }
 0x7dd   : > { %11044 = vmatprep.subr.bf16.mxu0 %v16016_v4  ;;  %v4862_v56 = vld [vmem:[#allocation20 + $0xbd0] sm:$0xff]  ;;  %v20834_v4 = vld [vmem:[#allocation21] sm:$0xff]  ;;  %v16176_v5 = vcombine.high %v4726_v53, %v4734_v27 }
 0x7de   : > { %v16304_v51 = vcombine.high %v4854_v13, %v4862_v56  ;;  %v5519_v35 = vrot.slane %v20834_v4, %v19511_v44  ;;  %v16303_v57 = vcombine.low %v4854_v13, %v4862_v56  ;;  %v4622_v25 = vld [vmem:[#allocation20 + $0x450] sm:$0xff] }
 0x7df   : > { %11020 = vmatpush2.bf16.msra.mxu1 %v16909_v21  ;;  %v5515_v21 = vrot.slane %v20834_v4, %v19518_v47 }
 0x7e0   : > { %11045 = vmatpush1.bf16.msra.mxu0 %v16015_v48  ;;  %11021 = vmatprep.subr.bf16.mxu1 %v16894_v58  ;;  %v4838_v48 = vld [vmem:[#allocation20 + $0xb10] sm:$0xff] }
 0x7e1   : > { %11046 = vmatprep.subr.bf16.mxu0 %v16000_v41  ;;  %v4846_v58 = vld [vmem:[#allocation20 + $0xb50] sm:$0xff] }
 0x7e2   : > { %v4710_v41 = vld [vmem:[#allocation20 + $0x710] sm:$0xff] }
 0x7e3   : > { %11022 = vmatpush2.bf16.msra.mxu1 %v16893_v62  ;;  %v16288_v62 = vcombine.high %v4838_v48, %v4846_v58 }
 0x7e4   : > { %11047 = vmatpush1.bf16.msra.mxu0 %v15999_v31  ;;  %11023 = vmatprep.subr.bf16.mxu1 %v16878_v7  ;;  %v10747_v31 = vadd.f32 %v20828_v0, %v5515_v21  ;;  %v16160_v7 = vcombine.high %v4710_v41, %v4718_v42  ;;  %v16159_v0 = vcombine.low %v4710_v41, %v4718_v42  ;;  %v4654_v21 = vld [vmem:[#allocation20 + $0x550] sm:$0xff] }
 0x7e5   : > { %11048 = vmatprep.subr.bf16.mxu0 %v15984_v54  ;;  %v4822_v54 = vld [vmem:[#allocation20 + $0xa90] sm:$0xff] }
 0x7e6   : > { %v16272_v16 = vcombine.high %v4822_v54, %v4830_v60  ;;  %v4758_v42 = vld [vmem:[#allocation20 + $0x890] sm:$0xff] }
 0x7e7   : > { %11024 = vmatpush2.bf16.msra.mxu1 %v16877_v28  ;;  %v10749_v28 = vadd.f32 %v20832_v9, %v5519_v35  ;;  %v4686_v9 = vld [vmem:[#allocation20 + $0x650] sm:$0xff] }
 0x7e8   : > { %11049 = vmatpush1.bf16.msra.mxu0 %v15983_v19  ;;  %11025 = vmatprep.subr.bf16.mxu1 %v16862_v40  ;;  %v16287_v40 = vcombine.low %v4838_v48, %v4846_v58  ;;  %v4766_v35 = vld [vmem:[#allocation20 + $0x8d0] sm:$0xff] }
 0x7e9   : > { %11050 = vmatprep.subr.bf16.mxu0 %v15968_v45 }
 0x7eb   : > { %11026 = vmatpush2.bf16.msra.mxu1 %v16861_v12  ;;  %v4814_v12 = vld [vmem:[#allocation20 + $0xa50] sm:$0xff] }
 0x7ec   : > { %11051 = vmatpush1.bf16.msra.mxu0 %v15967_v49  ;;  %11027 = vmatprep.subr.bf16.mxu1 %v16846_v52  ;;  %v4678_v52 = vld [vmem:[#allocation20 + $0x610] sm:$0xff]  ;;  %v16256_v43 = vcombine.high %v4806_v11, %v4814_v12  ;;  %v16255_v13 = vcombine.low %v4806_v11, %v4814_v12 }
 0x7ed   : > { %11052 = vmatprep.subr.bf16.mxu0 %v15952_v17  ;;  %v16271_v17 = vcombine.low %v4822_v54, %v4830_v60  ;;  %v16128_v38 = vcombine.high %v4678_v52, %v4686_v9  ;;  %v16127_v56 = vcombine.low %v4678_v52, %v4686_v9  ;;  %v4742_v60 = vld [vmem:[#allocation20 + $0x810] sm:$0xff]  ;;  %v16063_v52 = vcombine.low %v4614_v26, %v4622_v25 }
 0x7ee   : > { %v5110_v11 = vld [vmem:[#allocation20 + $0x1390] sm:$0xff] }
 0x7ef   : > { %11028 = vmatpush2.bf16.msra.mxu1 %v16845_v23  ;;  %v4790_v23 = vld [vmem:[#allocation20 + $0x990] sm:$0xff] }
 0x7f0   : > { %11053 = vmatpush1.bf16.msra.mxu0 %v15951_v59  ;;  %11029 = vmatprep.subr.bf16.mxu1 %v16830_v24  ;;  %v4798_v59 = vld [vmem:[#allocation20 + $0x9d0] sm:$0xff] }
 0x7f1   : > { %11054 = vmatprep.subr.bf16.mxu0 %v15936_v63  ;;  %v4662_v24 = vld [vmem:[#allocation20 + $0x590] sm:$0xff]  ;;  %v16240_v53 = vcombine.high %v4790_v23, %v4798_v59 }
 0x7f2   : > { %v4670_v63 = vld [vmem:[#allocation20 + $0x5d0] sm:$0xff] }
 0x7f3   : > { %11030 = vmatpush2.bf16.msra.mxu1 %v16829_v2  ;;  %v16112_v27 = vcombine.high %v4662_v24, %v4670_v63  ;;  %v4774_v2 = vld [vmem:[#allocation20 + $0x910] sm:$0xff]  ;;  %v16111_v48 = vcombine.low %v4662_v24, %v4670_v63 }
 0x7f4   : > { %11055 = vmatpush1.bf16.msra.mxu0 %v15935_v3  ;;  %11081 = vmatprep.subr.bf16.mxu1 %v16304_v51  ;;  %v4782_v3 = vld [vmem:[#allocation20 + $0x950] sm:$0xff] }
 0x7f5   : > { %11056 = vmatprep.subr.bf16.mxu0 %v16176_v5  ;;  %v4646_v51 = vld [vmem:[#allocation20 + $0x510] sm:$0xff]  ;;  %v16239_v5 = vcombine.low %v4790_v23, %v4798_v59  ;;  %v16224_v58 = vcombine.high %v4774_v2, %v4782_v3 }
 0x7f6   : > { %11032 = vmatmul.mubr.bf16.vlgmr.msra.gmra.mxu1 %v20819_v22  ;;  %v10787_v32 = vpop.f32.mrf.mxu1  ;;  %v16096_v41 = vcombine.high %v4646_v51, %v4654_v21  ;;  %v5118_v12 = vld [vmem:[#allocation20 + $0x13d0] sm:$0xff] }
 0x7f7   : > { %v20843_v19 = vadd.f32 %v10787_v32, %v10747_v31  ;;  %11082 = vmatpush1.bf16.msra.mxu1 %v16303_v57  ;;  %11113 = vmatprep.mubr.bf16.mxu1 %v20781_v34  ;;  %v4630_v57 = vld [vmem:[#allocation20 + $0x490] sm:$0xff]  ;;  %v16095_v31 = vcombine.low %v4646_v51, %v4654_v21  ;;  %v16559_v59 = vcombine.low %v5110_v11, %v5118_v12 }
 0x7f8   : > { %11057 = vmatpush2.bf16.msra.mxu0 %v16175_v50  ;;  %v10789_v45 = vpop.f32.mrf.mxu1  ;;  %11083 = vmatprep.subr.bf16.mxu1 %v16288_v62  ;;  %v4638_v50 = vld [vmem:[#allocation20 + $0x4d0] sm:$0xff]  ;;  %v16223_v62 = vcombine.low %v4774_v2, %v4782_v3 }
 0x7f9   : > { %v20846_v61 = vadd.f32 %v10789_v45, %v10749_v28  ;;  %11058 = vmatprep.subr.bf16.mxu0 %v16160_v7  ;;  %v16208_v7 = vcombine.high %v4758_v42, %v4766_v35  ;;  %v16080_v54 = vcombine.high %v4630_v57, %v4638_v50  ;;  %v4750_v32 = vld [vmem:[#allocation20 + $0x850] sm:$0xff]  ;;  %v16207_v28 = vcombine.low %v4758_v42, %v4766_v35 }
 0x7fa   : > { %v10791_v49 = vpop.f32.mrf.mxu1  ;;  %v16192_v45 = vcombine.high %v4742_v60, %v4750_v32  ;;  %v5086_v2 = vld [vmem:[#allocation20 + $0x12d0] sm:$0xff] }
 0x7fb   : > { %11084 = vmatpush1.bf16.msra.mxu1 %v16287_v40  ;;  %v16079_v40 = vcombine.low %v4630_v57, %v4638_v50  ;;  %v16191_v49 = vcombine.low %v4742_v60, %v4750_v32  ;;  %v4934_v42 = vld [vmem:[#allocation20 + $0xe10] sm:$0xff] }
 0x7fc   : > { %11059 = vmatpush2.bf16.msra.mxu0 %v16159_v0  ;;  %v10792_v6 = vpop.f32.mrf.mxu1  ;;  %11085 = vmatprep.subr.bf16.mxu1 %v16272_v16  ;;  %v16064_v0 = vcombine.high %v4614_v26, %v4622_v25  ;;  %v4982_v16 = vld [vmem:[#allocation20 + $0xf90] sm:$0xff] }
 0x7fd   : > { %11060 = vmatprep.subr.bf16.mxu0 %v16144_v15  ;;  %v4990_v15 = vld [vmem:[#allocation20 + $0xfd0] sm:$0xff] }
 0x7fe   : > { %v16432_v9 = vcombine.high %v4982_v16, %v4990_v15  ;;  %v4966_v6 = vld [vmem:[#allocation20 + $0xf10] sm:$0xff]  ;;  %v16431_v23 = vcombine.low %v4982_v16, %v4990_v15 }
 0x7ff   : > { %11086 = vmatpush1.bf16.msra.mxu1 %v16271_v17  ;;  %v16560_v17 = vcombine.high %v5110_v11, %v5118_v12  ;;  %v4942_v35 = vld [vmem:[#allocation20 + $0xe50] sm:$0xff] }
 0x800   : > { %11061 = vmatpush2.bf16.msra.mxu0 %v16143_v10  ;;  %11087 = vmatprep.subr.bf16.mxu1 %v16256_v43  ;;  %v4974_v10 = vld [vmem:[#allocation20 + $0xf50] sm:$0xff] }
 0x801   : > { %11062 = vmatprep.subr.bf16.mxu0 %v16128_v38  ;;  %v5094_v43 = vld [vmem:[#allocation20 + $0x1310] sm:$0xff]  ;;  %v16416_v24 = vcombine.high %v4966_v6, %v4974_v10  ;;  %v16415_v51 = vcombine.low %v4966_v6, %v4974_v10 }
 0x802   : > { %v5102_v38 = vld [vmem:[#allocation20 + $0x1350] sm:$0xff] }
 0x803   : > { %11088 = vmatpush1.bf16.msra.mxu1 %v16255_v13  ;;  %v16544_v63 = vcombine.high %v5094_v43, %v5102_v38  ;;  %v4950_v13 = vld [vmem:[#allocation20 + $0xe90] sm:$0xff] }
 0x804   : > { %11063 = vmatpush2.bf16.msra.mxu0 %v16127_v56  ;;  %11089 = vmatprep.subr.bf16.mxu1 %v16240_v53  ;;  %v4958_v56 = vld [vmem:[#allocation20 + $0xed0] sm:$0xff] }
 0x805   : > { %11064 = vmatprep.subr.bf16.mxu0 %v16112_v27  ;;  %v5078_v27 = vld [vmem:[#allocation20 + $0x1290] sm:$0xff] }
 0x806   : > { %v5062_v57 = vld [vmem:[#allocation20 + $0x1210] sm:$0xff] }
 0x807   : > { %11090 = vmatpush1.bf16.msra.mxu1 %v16239_v5  ;;  %v16543_v5 = vcombine.low %v5094_v43, %v5102_v38  ;;  %v5070_v50 = vld [vmem:[#allocation20 + $0x1250] sm:$0xff] }
 0x808   : > { %11065 = vmatpush2.bf16.msra.mxu0 %v16111_v48  ;;  %11091 = vmatprep.subr.bf16.mxu1 %v16224_v58  ;;  %v16400_v48 = vcombine.high %v4950_v13, %v4958_v56  ;;  %v16512_v60 = vcombine.high %v5062_v57, %v5070_v50  ;;  %v4918_v32 = vld [vmem:[#allocation20 + $0xd90] sm:$0xff] }
 0x809   : > { %11066 = vmatprep.subr.bf16.mxu0 %v16096_v41  ;;  %v16528_v41 = vcombine.high %v5078_v27, %v5086_v2  ;;  %v5046_v26 = vld [vmem:[#allocation20 + $0x1190] sm:$0xff] }
 0x80a   : > { %v5054_v25 = vld [vmem:[#allocation20 + $0x11d0] sm:$0xff] }
 0x80b   : > { %11092 = vmatpush1.bf16.msra.mxu1 %v16223_v62  ;;  %v16399_v62 = vcombine.low %v4950_v13, %v4958_v56  ;;  %v4902_v16 = vld [vmem:[#allocation20 + $0xd10] sm:$0xff] }
 0x80c   : > { %11067 = vmatpush2.bf16.msra.mxu0 %v16095_v31  ;;  %11093 = vmatprep.subr.bf16.mxu1 %v16208_v7  ;;  %v16527_v7 = vcombine.low %v5078_v27, %v5086_v2  ;;  %v4910_v15 = vld [vmem:[#allocation20 + $0xd50] sm:$0xff] }
 0x80d   : > { %11068 = vmatprep.subr.bf16.mxu0 %v16080_v54  ;;  %v16384_v54 = vcombine.high %v4934_v42, %v4942_v35  ;;  %v5030_v11 = vld [vmem:[#allocation20 + $0x1110] sm:$0xff] }
 0x80e   : > { %v5038_v12 = vld [vmem:[#allocation20 + $0x1150] sm:$0xff] }
 0x80f   : > { %11094 = vmatpush1.bf16.msra.mxu1 %v16207_v28  ;;  %v16383_v28 = vcombine.low %v4934_v42, %v4942_v35  ;;  %v4886_v6 = vld [vmem:[#allocation20 + $0xc90] sm:$0xff] }
 0x810   : > { %11069 = vmatpush2.bf16.msra.mxu0 %v16079_v40  ;;  %11095 = vmatprep.subr.bf16.mxu1 %v16192_v45  ;;  %v16511_v40 = vcombine.low %v5062_v57, %v5070_v50  ;;  %v4894_v10 = vld [vmem:[#allocation20 + $0xcd0] sm:$0xff] }
 0x811   : > { %11070 = vmatprep.subr.bf16.mxu0 %v16064_v0  ;;  %v16496_v0 = vcombine.high %v5046_v26, %v5054_v25  ;;  %v5014_v43 = vld [vmem:[#allocation20 + $0x1090] sm:$0xff]  ;;  %v16335_v2 = vcombine.low %v4886_v6, %v4894_v10 }
 0x812   : > { %v5022_v38 = vld [vmem:[#allocation20 + $0x10d0] sm:$0xff] }
 0x813   : > { %11096 = vmatpush1.bf16.msra.mxu1 %v16191_v49  ;;  %v4870_v13 = vld [vmem:[#allocation20 + $0xc10] sm:$0xff] }
 0x814   : > { %11071 = vmatpush2.bf16.msra.mxu0 %v16063_v52  ;;  %11097 = vmatprep.subr.bf16.mxu1 %v16432_v9  ;;  %v16495_v52 = vcombine.low %v5046_v26, %v5054_v25  ;;  %v16352_v9 = vcombine.high %v4902_v16, %v4910_v15  ;;  %v4878_v56 = vld [vmem:[#allocation20 + $0xc50] sm:$0xff] }
 0x815   : > { %11122 = vmatprep.subr.bf16.mxu0 %v16560_v17  ;;  %v16480_v17 = vcombine.high %v5030_v11, %v5038_v12  ;;  %v5006_v27 = vld [vmem:[#allocation20 + $0x1050] sm:$0xff] }
 0x816   : > { %v10828_v53 = vpop.f32.mrf.mxu0  ;;  %v5238_v42 = vld [vmem:[#allocation20 + $0x1790] sm:$0xff] }
 0x817   : > { %v20849_v3 = vadd.f32 %v10828_v53, %v20843_v19  ;;  %11073 = vmatmul.mubr.bf16.vlgmr.msra.gmra.mxu0 %v20767_v8  ;;  %11098 = vmatpush2.bf16.msra.mxu1 %v16431_v23  ;;  %v16351_v23 = vcombine.low %v4902_v16, %v4910_v15  ;;  %v4998_v53 = vld [vmem:[#allocation20 + $0x1010] sm:$0xff] }
 0x818   : > { %11123 = vmatpush1.bf16.msra.mxu0 %v16559_v59  ;;  %11154 = vmatprep.mubr.bf16.mxu0 %v20800_v29  ;;  %v10830_v21 = vpop.f32.mrf.mxu0  ;;  %v16479_v59 = vcombine.low %v5030_v11, %v5038_v12  ;;  %v5246_v35 = vld [vmem:[#allocation20 + $0x17d0] sm:$0xff]  ;;  %v16447_v57 = vcombine.low %v4998_v53, %v5006_v27 }
 0x819   : > { %v20854_v58 = vadd.f32 %v10830_v21, %v20846_v61  ;;  %11099 = vmatprep.subr.bf16.mxu1 %v16416_v24  ;;  %11124 = vmatprep.subr.bf16.mxu0 %v16544_v63  ;;  %v4926_v61 = vld [vmem:[#allocation20 + $0xdd0] sm:$0xff]  ;;  %v16336_v24 = vcombine.high %v4886_v6, %v4894_v10  ;;  %v16464_v63 = vcombine.high %v5014_v43, %v5022_v38 }
 0x81a   : > { %v10832_v19 = vpop.f32.mrf.mxu0  ;;  %v16368_v45 = vcombine.high %v4918_v32, %v4926_v61  ;;  %v16367_v49 = vcombine.low %v4918_v32, %v4926_v61  ;;  %v16320_v21 = vcombine.high %v4870_v13, %v4878_v56  ;;  %v16687_v61 = vcombine.low %v5238_v42, %v5246_v35  ;;  %v5214_v16 = vld [vmem:[#allocation20 + $0x16d0] sm:$0xff] }
 0x81b   : > { %11100 = vmatpush2.bf16.msra.mxu1 %v16415_v51  ;;  %v16463_v51 = vcombine.low %v5014_v43, %v5022_v38  ;;  %v16319_v19 = vcombine.low %v4870_v13, %v4878_v56  ;;  %v5318_v6 = vld [vmem:[#allocation20 + $0x1a10] sm:$0xff] }
 0x81c   : > { %11125 = vmatpush1.bf16.msra.mxu0 %v16543_v5  ;;  %v10833_v31 = vpop.f32.mrf.mxu0  ;;  %11101 = vmatprep.subr.bf16.mxu1 %v16400_v48  ;;  %v16448_v5 = vcombine.high %v4998_v53, %v5006_v27  ;;  %v5366_v48 = vld [vmem:[#allocation20 + $0x1b90] sm:$0xff] }
 0x81d   : > { %11126 = vmatprep.subr.bf16.mxu0 %v16528_v41  ;;  %v5374_v41 = vld [vmem:[#allocation20 + $0x1bd0] sm:$0xff] }
 0x81e   : > { %v16816_v50 = vcombine.high %v5366_v48, %v5374_v41  ;;  %v5350_v31 = vld [vmem:[#allocation20 + $0x1b10] sm:$0xff]  ;;  %v16815_v32 = vcombine.low %v5366_v48, %v5374_v41 }
 0x81f   : > { %11102 = vmatpush2.bf16.msra.mxu1 %v16399_v62  ;;  %v16688_v62 = vcombine.high %v5238_v42, %v5246_v35  ;;  %v5326_v10 = vld [vmem:[#allocation20 + $0x1a50] sm:$0xff] }
 0x820   : > { %11127 = vmatpush1.bf16.msra.mxu0 %v16527_v7  ;;  %11103 = vmatprep.subr.bf16.mxu1 %v16384_v54  ;;  %v5358_v7 = vld [vmem:[#allocation20 + $0x1b50] sm:$0xff]  ;;  %v16768_v56 = vcombine.high %v5318_v6, %v5326_v10 }
 0x821   : > { %11128 = vmatprep.subr.bf16.mxu0 %v16512_v60  ;;  %v5222_v54 = vld [vmem:[#allocation20 + $0x1710] sm:$0xff]  ;;  %v16800_v26 = vcombine.high %v5350_v31, %v5358_v7  ;;  %v16799_v11 = vcombine.low %v5350_v31, %v5358_v7 }
 0x822   : > { %v5230_v60 = vld [vmem:[#allocation20 + $0x1750] sm:$0xff] }
 0x823   : > { %11104 = vmatpush2.bf16.msra.mxu1 %v16383_v28  ;;  %v16672_v25 = vcombine.high %v5222_v54, %v5230_v60  ;;  %v5334_v28 = vld [vmem:[#allocation20 + $0x1a90] sm:$0xff] }
 0x824   : > { %11129 = vmatpush1.bf16.msra.mxu0 %v16511_v40  ;;  %11105 = vmatprep.subr.bf16.mxu1 %v16368_v45  ;;  %v5342_v40 = vld [vmem:[#allocation20 + $0x1ad0] sm:$0xff] }
 0x825   : > { %11130 = vmatprep.subr.bf16.mxu0 %v16496_v0  ;;  %v5206_v0 = vld [vmem:[#allocation20 + $0x1690] sm:$0xff] }
 0x826   : > { %v5190_v38 = vld [vmem:[#allocation20 + $0x1610] sm:$0xff]  ;;  %v16655_v13 = vcombine.low %v5206_v0, %v5214_v16 }
 0x827   : > { %11106 = vmatpush2.bf16.msra.mxu1 %v16367_v49  ;;  %v16671_v49 = vcombine.low %v5222_v54, %v5230_v60  ;;  %v5302_v27 = vld [vmem:[#allocation20 + $0x1990] sm:$0xff] }
 0x828   : > { %11131 = vmatpush1.bf16.msra.mxu0 %v16495_v52  ;;  %11107 = vmatprep.subr.bf16.mxu1 %v16352_v9  ;;  %v16784_v52 = vcombine.high %v5334_v28, %v5342_v40  ;;  %v5286_v35 = vld [vmem:[#allocation20 + $0x1910] sm:$0xff] }
 0x829   : > { %11132 = vmatprep.subr.bf16.mxu0 %v16480_v17  ;;  %v16656_v17 = vcombine.high %v5206_v0, %v5214_v16  ;;  %v5270_v60 = vld [vmem:[#allocation20 + $0x1890] sm:$0xff] }
 0x82a   : > { %v5254_v0 = vld [vmem:[#allocation20 + $0x1810] sm:$0xff] }
 0x82b   : > { %11108 = vmatpush2.bf16.msra.mxu1 %v16351_v23  ;;  %v5198_v23 = vld [vmem:[#allocation20 + $0x1650] sm:$0xff] }
 0x82c   : > { %11133 = vmatpush1.bf16.msra.mxu0 %v16479_v59  ;;  %11109 = vmatprep.subr.bf16.mxu1 %v16336_v24  ;;  %v16783_v24 = vcombine.low %v5334_v28, %v5342_v40  ;;  %v16639_v48 = vcombine.low %v5190_v38, %v5198_v23  ;;  %v5262_v16 = vld [vmem:[#allocation20 + $0x1850] sm:$0xff] }
 0x82d   : > { %11134 = vmatprep.subr.bf16.mxu0 %v16464_v63 }
 0x82f   : > { %11110 = vmatpush2.bf16.msra.mxu1 %v16335_v2  ;;  %v5310_v2 = vld [vmem:[#allocation20 + $0x19d0] sm:$0xff] }
 0x830   : > { %11135 = vmatpush1.bf16.msra.mxu0 %v16463_v51  ;;  %11111 = vmatprep.subr.bf16.mxu1 %v16320_v21  ;;  %v5174_v51 = vld [vmem:[#allocation20 + $0x1590] sm:$0xff]  ;;  %v16752_v41 = vcombine.high %v5302_v27, %v5310_v2 }
 0x831   : > { %11136 = vmatprep.subr.bf16.mxu0 %v16448_v5  ;;  %v5182_v21 = vld [vmem:[#allocation20 + $0x15d0] sm:$0xff]  ;;  %v16767_v5 = vcombine.low %v5318_v6, %v5326_v10  ;;  %v4599_v10 = vld [vmem:[#allocation20 + $0x398] sm:$0xff] }
 0x832   : > { %v16624_v42 = vcombine.high %v5174_v51, %v5182_v21  ;;  %v16623_v31 = vcombine.low %v5174_v51, %v5182_v21  ;;  %v5502_v6 = vld [vmem:[#allocation20 + $0x1fd0] sm:$0xff] }
 0x833   : > { %11112 = vmatpush2.bf16.msra.mxu1 %v16319_v19  ;;  %v5294_v19 = vld [vmem:[#allocation20 + $0x1950] sm:$0xff] }
 0x834   : > { %11137 = vmatpush1.bf16.msra.mxu0 %v16447_v57  ;;  %11163 = vmatprep.subr.bf16.mxu1 %v16816_v50  ;;  %v5158_v57 = vld [vmem:[#allocation20 + $0x1510] sm:$0xff]  ;;  %v16736_v7 = vcombine.high %v5286_v35, %v5294_v19 }
 0x835   : > { %11138 = vmatprep.subr.bf16.mxu0 %v16688_v62  ;;  %v5166_v50 = vld [vmem:[#allocation20 + $0x1550] sm:$0xff]  ;;  %v16751_v62 = vcombine.low %v5302_v27, %v5310_v2 }
 0x836   : > { %11114 = vmatmul.mubr.bf16.vlgmr.msra.gmra.mxu1 %v20783_v33  ;;  %v10869_v45 = vpop.f32.mrf.mxu1  ;;  %v16608_v54 = vcombine.high %v5158_v57, %v5166_v50  ;;  %v16607_v28 = vcombine.low %v5158_v57, %v5166_v50  ;;  %v5462_v21 = vld [vmem:[#allocation20 + $0x1e90] sm:$0xff] }
 0x837   : > { %v10870_v15 = vadd.f32 %v10869_v45, %v20849_v3  ;;  %11164 = vmatpush1.bf16.msra.mxu1 %v16815_v32  ;;  %11195 = vmatprep.mubr.bf16.mxu1 %v20817_v14  ;;  %v5278_v32 = vld [vmem:[#allocation20 + $0x18d0] sm:$0xff] }
 0x838   : > { %11139 = vmatpush2.bf16.msra.mxu0 %v16687_v61  ;;  %v10871_v12 = vpop.f32.mrf.mxu1  ;;  %11165 = vmatprep.subr.bf16.mxu1 %v16800_v26  ;;  %v5142_v61 = vld [vmem:[#allocation20 + $0x1490] sm:$0xff]  ;;  %v16720_v40 = vcombine.high %v5270_v60, %v5278_v32 }
 0x839   : > { %v10872_v9 = vadd.f32 %v10871_v12, %v20854_v58  ;;  %11140 = vmatprep.subr.bf16.mxu0 %v16672_v25  ;;  %v12024_v59 = vmax.f32 %v10870_v15, 0.0  ;;  %v16640_v58 = vcombine.high %v5190_v38, %v5198_v23  ;;  %v5150_v26 = vld [vmem:[#allocation20 + $0x14d0] sm:$0xff]  ;;  %v16735_v25 = vcombine.low %v5286_v35, %v5294_v19 }
 0x83a   : > { %v10873_v43 = vpop.f32.mrf.mxu1  ;;  %v16592_v45 = vcombine.high %v5142_v61, %v5150_v26  ;;  %v5126_v15 = vld [vmem:[#allocation20 + $0x1410] sm:$0xff]  ;;  %v16719_v12 = vcombine.low %v5270_v60, %v5278_v32  ;;  %v16703_v38 = vcombine.low %v5254_v0, %v5262_v16  ;;  %v4551_v60 = vld [vmem:[#allocation20 + $0x218] sm:$0xff] }
 0x83b   : > { %v12025_v3 = vmax.f32 %v10872_v9, 0.0  ;;  %11166 = vmatpush1.bf16.msra.mxu1 %v16799_v11  ;;  %v5134_v11 = vld [vmem:[#allocation20 + $0x1450] sm:$0xff]  ;;  %v4607_v43 = vld [vmem:[#allocation20 + $0x3d8] sm:$0xff] }
 0x83c   : > { %11141 = vmatpush2.bf16.msra.mxu0 %v16671_v49  ;;  %v10874_v63 = vpop.f32.mrf.mxu1  ;;  %11167 = vmatprep.subr.bf16.mxu1 %v16784_v52  ;;  %v16591_v49 = vcombine.low %v5142_v61, %v5150_v26  ;;  %v16704_v52 = vcombine.high %v5254_v0, %v5262_v16  ;;  %v16576_v9 = vcombine.high %v5126_v15, %v5134_v11  ;;  %v4559_v32 = vld [vmem:[#allocation20 + $0x258] sm:$0xff]  ;;  %v5438_v0 = vld [vmem:[#allocation20 + $0x1dd0] sm:$0xff] }
 0x83d   : > { %v20860_v53 = vpack.c.bf16 %v12025_v3, %v12024_v59  ;;  %11142 = vmatprep.subr.bf16.mxu0 %v16656_v17  ;;  %v5494_v17 = vld [vmem:[#allocation20 + $0x1f90] sm:$0xff]  ;;  %v16575_v23 = vcombine.low %v5126_v15, %v5134_v11  ;;  %v16050_v3 = vcombine.high %v4599_v10, %v4607_v43  ;;  %v16049_v27 = vcombine.low %v4599_v10, %v4607_v43  ;;  %v4535_v16 = vld [vmem:[#allocation20 + $0x198] sm:$0xff] }
 0x83e   : > { %v16944_v59 = vcombine.high %v5494_v17, %v5502_v6  ;;  %v5486_v63 = vld [vmem:[#allocation20 + $0x1f50] sm:$0xff]  ;;  %v4543_v15 = vld [vmem:[#allocation20 + $0x1d8] sm:$0xff] }
 0x83f   : > { %11168 = vmatpush1.bf16.msra.mxu1 %v16783_v24  ;;  %v5478_v24 = vld [vmem:[#allocation20 + $0x1f10] sm:$0xff]  ;;  %v4527_v10 = vld [vmem:[#allocation20 + $0x158] sm:$0xff] }
 0x840   : > { %11143 = vmatpush2.bf16.msra.mxu0 %v16655_v13  ;;  %11169 = vmatprep.subr.bf16.mxu1 %v16768_v56  ;;  %v4583_v13 = vld [vmem:[#allocation20 + $0x318] sm:$0xff]  ;;  %v16928_v2 = vcombine.high %v5478_v24, %v5486_v63  ;;  %v16927_v35 = vcombine.low %v5478_v24, %v5486_v63  ;;  %v5406_v24 = vld [vmem:[#allocation20 + $0x1cd0] sm:$0xff] }
 0x841   : > { %11144 = vmatprep.subr.bf16.mxu0 %v16640_v58  ;;  %v4591_v56 = vld [vmem:[#allocation20 + $0x358] sm:$0xff]  ;;  %v16943_v58 = vcombine.low %v5494_v17, %v5502_v6  ;;  %v5422_v17 = vld [vmem:[#allocation20 + $0x1d50] sm:$0xff] }
 0x842   : > { %v16034_v51 = vcombine.high %v4583_v13, %v4591_v56  ;;  %v16033_v57 = vcombine.low %v4583_v13, %v4591_v56  ;;  %v4519_v6 = vld [vmem:[#allocation20 + $0x118] sm:$0xff] }
 0x843   : > { %11170 = vmatpush1.bf16.msra.mxu1 %v16767_v5  ;;  %v5470_v5 = vld [vmem:[#allocation20 + $0x1ed0] sm:$0xff]  ;;  %v4503_v63 = vld [vmem:[#allocation20 + $0x98] sm:$0xff] }
 0x844   : > { %11145 = vmatpush2.bf16.msra.mxu0 %v16639_v48  ;;  %11171 = vmatprep.subr.bf16.mxu1 %v16752_v41  ;;  %v4567_v41 = vld [vmem:[#allocation20 + $0x298] sm:$0xff]  ;;  %v16912_v50 = vcombine.high %v5462_v21, %v5470_v5  ;;  %v16911_v61 = vcombine.low %v5462_v21, %v5470_v5  ;;  %v5390_v21 = vld [vmem:[#allocation20 + $0x1c50] sm:$0xff] }
 0x845   : > { %11146 = vmatprep.subr.bf16.mxu0 %v16624_v42  ;;  %v4575_v42 = vld [vmem:[#allocation20 + $0x2d8] sm:$0xff] }
 0x846   : > { %v4511_v13 = vld [vmem:[#allocation20 + $0xd8] sm:$0xff] }
 0x847   : > { %11172 = vmatpush1.bf16.msra.mxu1 %v16751_v62  ;;  %v16018_v62 = vcombine.high %v4567_v41, %v4575_v42  ;;  %v4487_v5 = vld [vmem:[#allocation20 + $0x18] sm:$0xff] }
 0x848   : > { %11147 = vmatpush2.bf16.msra.mxu0 %v16623_v31  ;;  %11173 = vmatprep.subr.bf16.mxu1 %v16736_v7  ;;  %v5446_v31 = vld [vmem:[#allocation20 + $0x1e10] sm:$0xff] }
 0x849   : > { %11148 = vmatprep.subr.bf16.mxu0 %v16608_v54  ;;  %v5454_v7 = vld [vmem:[#allocation20 + $0x1e50] sm:$0xff] }
 0x84a   : > { %v16895_v11 = vcombine.low %v5446_v31, %v5454_v7 }
 0x84b   : > { %11174 = vmatpush1.bf16.msra.mxu1 %v16735_v25  ;;  %v16017_v25 = vcombine.low %v4567_v41, %v4575_v42  ;;  %v4495_v41 = vld [vmem:[#allocation20 + $0x58] sm:$0xff] }
 0x84c   : > { %11149 = vmatpush2.bf16.msra.mxu0 %v16607_v28  ;;  %11175 = vmatprep.subr.bf16.mxu1 %v16720_v40  ;;  %v16896_v28 = vcombine.high %v5446_v31, %v5454_v7  ;;  %v16002_v40 = vcombine.high %v4551_v60, %v4559_v32  ;;  %v4863_v31 = vld [vmem:[#allocation20 + $0xbd8] sm:$0xff] }
 0x84d   : > { %11150 = vmatprep.subr.bf16.mxu0 %v16592_v45  ;;  %v5430_v45 = vld [vmem:[#allocation20 + $0x1d90] sm:$0xff]  ;;  %v4727_v7 = vld [vmem:[#allocation20 + $0x798] sm:$0xff] }
 0x84e   : > { %v16879_v43 = vcombine.low %v5430_v45, %v5438_v0 }
 0x84f   : > { %11176 = vmatpush1.bf16.msra.mxu1 %v16719_v12  ;;  %v16001_v12 = vcombine.low %v4551_v60, %v4559_v32  ;;  %v15937_v32 = vcombine.low %v4487_v5, %v4495_v41 }
 0x850   : > { %11151 = vmatpush2.bf16.msra.mxu0 %v16591_v49  ;;  %11177 = vmatprep.subr.bf16.mxu1 %v16704_v52  ;;  %v16880_v49 = vcombine.high %v5430_v45, %v5438_v0  ;;  %v15986_v52 = vcombine.high %v4535_v16, %v4543_v15  ;;  %v4711_v45 = vld [vmem:[#allocation20 + $0x718] sm:$0xff] }
 0x851   : > { %11152 = vmatprep.subr.bf16.mxu0 %v16576_v9  ;;  %v5414_v9 = vld [vmem:[#allocation20 + $0x1d10] sm:$0xff]  ;;  %v4719_v0 = vld [vmem:[#allocation20 + $0x758] sm:$0xff] }
 0x852   : > { %v16863_v56 = vcombine.low %v5414_v9, %v5422_v17 }
 0x853   : > { %11178 = vmatpush1.bf16.msra.mxu1 %v16703_v38  ;;  %v15985_v38 = vcombine.low %v4535_v16, %v4543_v15  ;;  %v5527_v16 = vrot.slane %v20834_v4, %v20775_v18 }
 0x854   : > { %11153 = vmatpush2.bf16.msra.mxu0 %v16575_v23  ;;  %11179 = vmatprep.subr.bf16.mxu1 %v16944_v59  ;;  %v16864_v23 = vcombine.high %v5414_v9, %v5422_v17  ;;  %v15970_v59 = vcombine.high %v4519_v6, %v4527_v10  ;;  %v4823_v9 = vld [vmem:[#allocation20 + $0xa98] sm:$0xff] }
 0x855   : > { %11204 = vmatprep.subr.bf16.mxu0 %v16050_v3  ;;  %v5398_v3 = vld [vmem:[#allocation20 + $0x1c90] sm:$0xff]  ;;  %v4831_v17 = vld [vmem:[#allocation20 + $0xad8] sm:$0xff] }
 0x856   : > { %v20862_v48 = vpop.f32.mrf.mxu0  ;;  %v16847_v42 = vcombine.low %v5398_v3, %v5406_v24 }
 0x857   : > { %11155 = vmatmul.mubr.bf16.vlgmr.msra.gmra.mxu0 %v20802_v30  ;;  %11180 = vmatpush2.bf16.msra.mxu1 %v16943_v58  ;;  %v15969_v58 = vcombine.low %v4519_v6, %v4527_v10  ;;  %v4695_v10 = vld [vmem:[#allocation20 + $0x698] sm:$0xff] }
 0x858   : > { %11205 = vmatpush1.bf16.msra.mxu0 %v16049_v27  ;;  %11236 = vmatprep.mubr.bf16.mxu0 %v20765_v1  ;;  %v20866_v19 = vpop.f32.mrf.mxu0  ;;  %v16848_v27 = vcombine.high %v5398_v3, %v5406_v24  ;;  %v16274_v3 = vcombine.high %v4823_v9, %v4831_v17 }
 0x859   : > { %11181 = vmatprep.subr.bf16.mxu1 %v16928_v2  ;;  %11206 = vmatprep.subr.bf16.mxu0 %v16034_v51  ;;  %v15954_v2 = vcombine.high %v4503_v63, %v4511_v13  ;;  %v5382_v51 = vld [vmem:[#allocation20 + $0x1c10] sm:$0xff] }
 0x85a   : > { %v10914_v54 = vpop.f32.mrf.mxu0  ;;  %v16831_v60 = vcombine.low %v5382_v51, %v5390_v21 }
 0x85b   : > { %11182 = vmatpush2.bf16.msra.mxu1 %v16927_v35  ;;  %v15953_v35 = vcombine.low %v4503_v63, %v4511_v13  ;;  %v4735_v54 = vld [vmem:[#allocation20 + $0x7d8] sm:$0xff] }
 0x85c   : > { %11207 = vmatpush1.bf16.msra.mxu0 %v16033_v57  ;;  %v10915_v26 = vpop.f32.mrf.mxu0  ;;  %11183 = vmatprep.subr.bf16.mxu1 %v16912_v50  ;;  %v16832_v57 = vcombine.high %v5382_v51, %v5390_v21  ;;  %v15938_v50 = vcombine.high %v4487_v5, %v4495_v41  ;;  %v4807_v13 = vld [vmem:[#allocation20 + $0xa18] sm:$0xff] }
 0x85d   : > { %11208 = vmatprep.subr.bf16.mxu0 %v16018_v62  ;;  %v4855_v62 = vld [vmem:[#allocation20 + $0xb98] sm:$0xff]  ;;  %v5523_v26 = vrot.slane %v20834_v4, %v19515_v46 }
 0x85e   : > { %v16305_v15 = vcombine.low %v4855_v62, %v4863_v31 }
 0x85f   : > { %11184 = vmatpush2.bf16.msra.mxu1 %v16911_v61  ;;  %v16306_v61 = vcombine.high %v4855_v62, %v4863_v31 }
 0x860   : > { %11209 = vmatpush1.bf16.msra.mxu0 %v16017_v25  ;;  %11185 = vmatprep.subr.bf16.mxu1 %v16896_v28  ;;  %v16178_v25 = vcombine.high %v4727_v7, %v4735_v54  ;;  %v4839_v28 = vld [vmem:[#allocation20 + $0xb18] sm:$0xff] }
 0x861   : > { %11210 = vmatprep.subr.bf16.mxu0 %v16002_v40  ;;  %v4847_v40 = vld [vmem:[#allocation20 + $0xb58] sm:$0xff] }
 0x863   : > { %11186 = vmatpush2.bf16.msra.mxu1 %v16895_v11  ;;  %v16177_v11 = vcombine.low %v4727_v7, %v4735_v54 }
 0x864   : > { %11211 = vmatpush1.bf16.msra.mxu0 %v16001_v12  ;;  %11187 = vmatprep.subr.bf16.mxu1 %v16880_v49  ;;  %v16290_v12 = vcombine.high %v4839_v28, %v4847_v40  ;;  %v10911_v49 = vadd.f32 %v20862_v48, %v5523_v26  ;;  %v16161_v48 = vcombine.low %v4711_v45, %v4719_v0  ;;  %v4655_v26 = vld [vmem:[#allocation20 + $0x558] sm:$0xff] }
 0x865   : > { %11212 = vmatprep.subr.bf16.mxu0 %v15986_v52  ;;  %v16162_v52 = vcombine.high %v4711_v45, %v4719_v0  ;;  %v4759_v0 = vld [vmem:[#allocation20 + $0x898] sm:$0xff] }
 0x867   : > { %11188 = vmatpush2.bf16.msra.mxu1 %v16879_v43  ;;  %v4703_v43 = vld [vmem:[#allocation20 + $0x6d8] sm:$0xff] }
 0x868   : > { %11213 = vmatpush1.bf16.msra.mxu0 %v15985_v38  ;;  %11189 = vmatprep.subr.bf16.mxu1 %v16864_v23  ;;  %v10913_v38 = vadd.f32 %v20866_v19, %v5527_v16  ;;  %v16289_v23 = vcombine.low %v4839_v28, %v4847_v40  ;;  %v16146_v63 = vcombine.high %v4695_v10, %v4703_v43  ;;  %v4687_v19 = vld [vmem:[#allocation20 + $0x658] sm:$0xff] }
 0x869   : > { %11214 = vmatprep.subr.bf16.mxu0 %v15970_v59  ;;  %v16145_v21 = vcombine.low %v4695_v10, %v4703_v43  ;;  %v4767_v16 = vld [vmem:[#allocation20 + $0x8d8] sm:$0xff] }
 0x86a   : > { %v4615_v10 = vld [vmem:[#allocation20 + $0x418] sm:$0xff] }
 0x86b   : > { %11190 = vmatpush2.bf16.msra.mxu1 %v16863_v56  ;;  %v4815_v56 = vld [vmem:[#allocation20 + $0xa58] sm:$0xff] }
 0x86c   : > { %11215 = vmatpush1.bf16.msra.mxu0 %v15969_v58  ;;  %11191 = vmatprep.subr.bf16.mxu1 %v16848_v27  ;;  %v4679_v27 = vld [vmem:[#allocation20 + $0x618] sm:$0xff]  ;;  %v16258_v5 = vcombine.high %v4807_v13, %v4815_v56  ;;  %v16257_v62 = vcombine.low %v4807_v13, %v4815_v56 }
 0x86d   : > { %11216 = vmatprep.subr.bf16.mxu0 %v15954_v2  ;;  %v16273_v2 = vcombine.low %v4823_v9, %v4831_v17  ;;  %v16130_v41 = vcombine.high %v4679_v27, %v4687_v19  ;;  %v16129_v31 = vcombine.low %v4679_v27, %v4687_v19  ;;  %v4743_v17 = vld [vmem:[#allocation20 + $0x818] sm:$0xff] }
 0x86e   : > { %v4623_v43 = vld [vmem:[#allocation20 + $0x458] sm:$0xff] }
 0x86f   : > { %11192 = vmatpush2.bf16.msra.mxu1 %v16847_v42  ;;  %v4791_v42 = vld [vmem:[#allocation20 + $0x998] sm:$0xff]  ;;  %v16065_v27 = vcombine.low %v4615_v10, %v4623_v43 }
 0x870   : > { %11217 = vmatpush1.bf16.msra.mxu0 %v15953_v35  ;;  %11193 = vmatprep.subr.bf16.mxu1 %v16832_v57  ;;  %v4799_v35 = vld [vmem:[#allocation20 + $0x9d8] sm:$0xff] }
 0x871   : > { %11218 = vmatprep.subr.bf16.mxu0 %v15938_v50  ;;  %v4663_v57 = vld [vmem:[#allocation20 + $0x598] sm:$0xff]  ;;  %v16242_v7 = vcombine.high %v4791_v42, %v4799_v35 }
 0x872   : > { %v4671_v50 = vld [vmem:[#allocation20 + $0x5d8] sm:$0xff] }
 0x873   : > { %11194 = vmatpush2.bf16.msra.mxu1 %v16831_v60  ;;  %v16114_v54 = vcombine.high %v4663_v57, %v4671_v50  ;;  %v4775_v60 = vld [vmem:[#allocation20 + $0x918] sm:$0xff]  ;;  %v16113_v28 = vcombine.low %v4663_v57, %v4671_v50 }
 0x874   : > { %11219 = vmatpush1.bf16.msra.mxu0 %v15937_v32  ;;  %11245 = vmatprep.subr.bf16.mxu1 %v16306_v61  ;;  %v4783_v32 = vld [vmem:[#allocation20 + $0x958] sm:$0xff] }
 0x875   : > { %11220 = vmatprep.subr.bf16.mxu0 %v16178_v25  ;;  %v4647_v61 = vld [vmem:[#allocation20 + $0x518] sm:$0xff]  ;;  %v16241_v25 = vcombine.low %v4791_v42, %v4799_v35  ;;  %v16226_v40 = vcombine.high %v4775_v60, %v4783_v32 }
 0x876   : > { %v10951_v6 = vpop.f32.mrf.mxu1  ;;  %11196 = vmatmul.mubr.bf16.vlgmr.msra.gmra.mxu1 %v20819_v22  ;;  %v16098_v45 = vcombine.high %v4647_v61, %v4655_v26  ;;  %v5111_v13 = vld [vmem:[#allocation20 + $0x1398] sm:$0xff] }
 0x877   : > { %v20875_v4 = vadd.f32 %v10951_v6, %v10911_v49  ;;  %11246 = vmatpush1.bf16.msra.mxu1 %v16305_v15  ;;  %11277 = vmatprep.mubr.bf16.mxu1 %v20781_v34  ;;  %v4631_v15 = vld [vmem:[#allocation20 + $0x498] sm:$0xff]  ;;  %v16097_v49 = vcombine.low %v4647_v61, %v4655_v26 }
 0x878   : > { %v10953_v59 = vpop.f32.mrf.mxu1  ;;  %11221 = vmatpush2.bf16.msra.mxu0 %v16177_v11  ;;  %11247 = vmatprep.subr.bf16.mxu1 %v16290_v12  ;;  %v4639_v11 = vld [vmem:[#allocation20 + $0x4d8] sm:$0xff]  ;;  %v16225_v12 = vcombine.low %v4775_v60, %v4783_v32 }
 0x879   : > { %v20878_v24 = vadd.f32 %v10953_v59, %v10913_v38  ;;  %11222 = vmatprep.subr.bf16.mxu0 %v16162_v52  ;;  %v16210_v52 = vcombine.high %v4759_v0, %v4767_v16  ;;  %v16082_v9 = vcombine.high %v4631_v15, %v4639_v11  ;;  %v4751_v6 = vld [vmem:[#allocation20 + $0x858] sm:$0xff]  ;;  %v16209_v38 = vcombine.low %v4759_v0, %v4767_v16 }
 0x87a   : > { %v10955_v58 = vpop.f32.mrf.mxu1  ;;  %v16194_v59 = vcombine.high %v4743_v17, %v4751_v6  ;;  %v5119_v56 = vld [vmem:[#allocation20 + $0x13d8] sm:$0xff] }
 0x87b   : > { %11248 = vmatpush1.bf16.msra.mxu1 %v16289_v23  ;;  %v16081_v23 = vcombine.low %v4631_v15, %v4639_v11  ;;  %v16193_v58 = vcombine.low %v4743_v17, %v4751_v6  ;;  %v16561_v35 = vcombine.low %v5111_v13, %v5119_v56  ;;  %v4943_v0 = vld [vmem:[#allocation20 + $0xe58] sm:$0xff] }
 0x87c   : > { %v10956_v51 = vpop.f32.mrf.mxu1  ;;  %11223 = vmatpush2.bf16.msra.mxu0 %v16161_v48  ;;  %11249 = vmatprep.subr.bf16.mxu1 %v16274_v3  ;;  %v16066_v48 = vcombine.high %v4615_v10, %v4623_v43  ;;  %v4983_v3 = vld [vmem:[#allocation20 + $0xf98] sm:$0xff] }
 0x87d   : > { %11224 = vmatprep.subr.bf16.mxu0 %v16146_v63  ;;  %v4991_v63 = vld [vmem:[#allocation20 + $0xfd8] sm:$0xff] }
 0x87e   : > { %v16434_v19 = vcombine.high %v4983_v3, %v4991_v63  ;;  %v4967_v51 = vld [vmem:[#allocation20 + $0xf18] sm:$0xff]  ;;  %v16433_v42 = vcombine.low %v4983_v3, %v4991_v63 }
 0x87f   : > { %11250 = vmatpush1.bf16.msra.mxu1 %v16273_v2  ;;  %v16562_v2 = vcombine.high %v5111_v13, %v5119_v56  ;;  %v5063_v15 = vld [vmem:[#allocation20 + $0x1218] sm:$0xff] }
 0x880   : > { %11225 = vmatpush2.bf16.msra.mxu0 %v16145_v21  ;;  %11251 = vmatprep.subr.bf16.mxu1 %v16258_v5  ;;  %v4975_v21 = vld [vmem:[#allocation20 + $0xf58] sm:$0xff] }
 0x881   : > { %11226 = vmatprep.subr.bf16.mxu0 %v16130_v41  ;;  %v5095_v5 = vld [vmem:[#allocation20 + $0x1318] sm:$0xff]  ;;  %v16418_v57 = vcombine.high %v4967_v51, %v4975_v21  ;;  %v16417_v32 = vcombine.low %v4967_v51, %v4975_v21 }
 0x882   : > { %v5103_v41 = vld [vmem:[#allocation20 + $0x1358] sm:$0xff] }
 0x883   : > { %11252 = vmatpush1.bf16.msra.mxu1 %v16257_v62  ;;  %v16546_v50 = vcombine.high %v5095_v5, %v5103_v41  ;;  %v4951_v62 = vld [vmem:[#allocation20 + $0xe98] sm:$0xff]  ;;  %v16545_v26 = vcombine.low %v5095_v5, %v5103_v41 }
 0x884   : > { %11227 = vmatpush2.bf16.msra.mxu0 %v16129_v31  ;;  %11253 = vmatprep.subr.bf16.mxu1 %v16242_v7  ;;  %v4959_v31 = vld [vmem:[#allocation20 + $0xed8] sm:$0xff] }
 0x885   : > { %11228 = vmatprep.subr.bf16.mxu0 %v16114_v54  ;;  %v5079_v7 = vld [vmem:[#allocation20 + $0x1298] sm:$0xff] }
 0x886   : > { %v5087_v54 = vld [vmem:[#allocation20 + $0x12d8] sm:$0xff] }
 0x887   : > { %11254 = vmatpush1.bf16.msra.mxu1 %v16241_v25  ;;  %v16402_v25 = vcombine.high %v4951_v62, %v4959_v31  ;;  %v5071_v11 = vld [vmem:[#allocation20 + $0x1258] sm:$0xff] }
 0x888   : > { %11229 = vmatpush2.bf16.msra.mxu0 %v16113_v28  ;;  %11255 = vmatprep.subr.bf16.mxu1 %v16226_v40  ;;  %v16530_v40 = vcombine.high %v5079_v7, %v5087_v54  ;;  %v16514_v17 = vcombine.high %v5063_v15, %v5071_v11  ;;  %v4919_v6 = vld [vmem:[#allocation20 + $0xd98] sm:$0xff] }
 0x889   : > { %11230 = vmatprep.subr.bf16.mxu0 %v16098_v45  ;;  %v4935_v45 = vld [vmem:[#allocation20 + $0xe18] sm:$0xff] }
 0x88a   : > { %v4927_v10 = vld [vmem:[#allocation20 + $0xdd8] sm:$0xff] }
 0x88b   : > { %11256 = vmatpush1.bf16.msra.mxu1 %v16225_v12  ;;  %v5047_v43 = vld [vmem:[#allocation20 + $0x1198] sm:$0xff] }
 0x88c   : > { %11231 = vmatpush2.bf16.msra.mxu0 %v16097_v49  ;;  %11257 = vmatprep.subr.bf16.mxu1 %v16210_v52  ;;  %v16529_v49 = vcombine.low %v5079_v7, %v5087_v54  ;;  %v16386_v52 = vcombine.high %v4935_v45, %v4943_v0  ;;  %v4903_v3 = vld [vmem:[#allocation20 + $0xd18] sm:$0xff] }
 0x88d   : > { %11232 = vmatprep.subr.bf16.mxu0 %v16082_v9  ;;  %v4911_v63 = vld [vmem:[#allocation20 + $0xd58] sm:$0xff] }
 0x88e   : > { %v5031_v13 = vld [vmem:[#allocation20 + $0x1118] sm:$0xff] }
 0x88f   : > { %11258 = vmatpush1.bf16.msra.mxu1 %v16209_v38  ;;  %v5055_v38 = vld [vmem:[#allocation20 + $0x11d8] sm:$0xff] }
 0x890   : > { %11233 = vmatpush2.bf16.msra.mxu0 %v16081_v23  ;;  %11259 = vmatprep.subr.bf16.mxu1 %v16194_v59  ;;  %v16385_v23 = vcombine.low %v4935_v45, %v4943_v0  ;;  %v16370_v59 = vcombine.high %v4919_v6, %v4927_v10  ;;  %v5039_v56 = vld [vmem:[#allocation20 + $0x1158] sm:$0xff] }
 0x891   : > { %11234 = vmatprep.subr.bf16.mxu0 %v16066_v48  ;;  %v16498_v48 = vcombine.high %v5047_v43, %v5055_v38  ;;  %v4887_v51 = vld [vmem:[#allocation20 + $0xc98] sm:$0xff] }
 0x892   : > { %v4895_v21 = vld [vmem:[#allocation20 + $0xcd8] sm:$0xff] }
 0x893   : > { %11260 = vmatpush1.bf16.msra.mxu1 %v16193_v58  ;;  %v16369_v58 = vcombine.low %v4919_v6, %v4927_v10  ;;  %v5015_v5 = vld [vmem:[#allocation20 + $0x1098] sm:$0xff]  ;;  %v18972_v6 = vmov 1966171168  }
 0x894   : > { %11235 = vmatpush2.bf16.msra.mxu0 %v16065_v27  ;;  %11261 = vmatprep.subr.bf16.mxu1 %v16434_v19  ;;  %v16497_v27 = vcombine.low %v5047_v43, %v5055_v38  ;;  %v16354_v19 = vcombine.high %v4903_v3, %v4911_v63  ;;  %v5023_v41 = vld [vmem:[#allocation20 + $0x10d8] sm:$0xff]  ;;  %v12077_v10 = vunpack.c.l.s4 %v18972_v6 }
 0x895   : > { %11286 = vmatprep.subr.bf16.mxu0 %v16562_v2  ;;  %v16482_v2 = vcombine.high %v5031_v13, %v5039_v56  ;;  %v4999_v7 = vld [vmem:[#allocation20 + $0x1018] sm:$0xff] }
 0x896   : > { %v5007_v54 = vld [vmem:[#allocation20 + $0x1058] sm:$0xff] }
 0x897   : > { %v10992_v60 = vpop.f32.mrf.mxu0  ;;  %11237 = vmatmul.mubr.bf16.vlgmr.msra.gmra.mxu0 %v20767_v8  ;;  %11262 = vmatpush2.bf16.msra.mxu1 %v16433_v42  ;;  %v16353_v42 = vcombine.low %v4903_v3, %v4911_v63  ;;  %v5239_v45 = vld [vmem:[#allocation20 + $0x1798] sm:$0xff] }
 0x898   : > { %v20882_v61 = vadd.f32 %v10992_v60, %v20875_v4  ;;  %11287 = vmatpush1.bf16.msra.mxu0 %v16561_v35  ;;  %11318 = vmatprep.mubr.bf16.mxu0 %v20800_v29  ;;  %v16401_v4 = vcombine.low %v4951_v62, %v4959_v31  ;;  %v16481_v35 = vcombine.low %v5031_v13, %v5039_v56  ;;  %v4871_v62 = vld [vmem:[#allocation20 + $0xc18] sm:$0xff]  ;;  %v12078_v56 = vunpack.c.0.s8 %v12077_v10 }
 0x899   : > { %v10994_v28 = vpop.f32.mrf.mxu0  ;;  %11263 = vmatprep.subr.bf16.mxu1 %v16418_v57  ;;  %11288 = vmatprep.subr.bf16.mxu0 %v16546_v50  ;;  %v16338_v57 = vcombine.high %v4887_v51, %v4895_v21  ;;  %v16466_v50 = vcombine.high %v5015_v5, %v5023_v41  ;;  %v4879_v31 = vld [vmem:[#allocation20 + $0xc58] sm:$0xff]  ;;  %v16337_v60 = vcombine.low %v4887_v51, %v4895_v21 }
 0x89a   : > { %v20886_v16 = vadd.f32 %v10994_v28, %v20878_v24  ;;  %v16513_v24 = vcombine.low %v5063_v15, %v5071_v11  ;;  %v5367_v28 = vld [vmem:[#allocation20 + $0x1b98] sm:$0xff]  ;;  %v16321_v15 = vcombine.low %v4871_v62, %v4879_v31  ;;  %v16449_v11 = vcombine.low %v4999_v7, %v5007_v54 }
 0x89b   : > { %v10996_v12 = vpop.f32.mrf.mxu0  ;;  %11264 = vmatpush2.bf16.msra.mxu1 %v16417_v32  ;;  %v16465_v32 = vcombine.low %v5015_v5, %v5023_v41  ;;  %v5247_v0 = vld [vmem:[#allocation20 + $0x17d8] sm:$0xff] }
 0x89c   : > { %11289 = vmatpush1.bf16.msra.mxu0 %v16545_v26  ;;  %11265 = vmatprep.subr.bf16.mxu1 %v16402_v25  ;;  %v16322_v26 = vcombine.high %v4871_v62, %v4879_v31  ;;  %v16450_v25 = vcombine.high %v4999_v7, %v5007_v54  ;;  %v16689_v38 = vcombine.low %v5239_v45, %v5247_v0  ;;  %v5207_v63 = vld [vmem:[#allocation20 + $0x1698] sm:$0xff] }
 0x89d   : > { %v10997_v9 = vpop.f32.mrf.mxu0  ;;  %11290 = vmatprep.subr.bf16.mxu0 %v16530_v40  ;;  %v5375_v40 = vld [vmem:[#allocation20 + $0x1bd8] sm:$0xff] }
 0x89e   : > { %v16818_v12 = vcombine.high %v5367_v28, %v5375_v40  ;;  %v5223_v9 = vld [vmem:[#allocation20 + $0x1718] sm:$0xff]  ;;  %v16817_v43 = vcombine.low %v5367_v28, %v5375_v40 }
 0x89f   : > { %11266 = vmatpush2.bf16.msra.mxu1 %v16401_v4  ;;  %v16690_v4 = vcombine.high %v5239_v45, %v5247_v0  ;;  %v5215_v13 = vld [vmem:[#allocation20 + $0x16d8] sm:$0xff] }
 0x8a0   : > { %11291 = vmatpush1.bf16.msra.mxu0 %v16529_v49  ;;  %11267 = vmatprep.subr.bf16.mxu1 %v16386_v52  ;;  %v5351_v49 = vld [vmem:[#allocation20 + $0x1b18] sm:$0xff]  ;;  %v16658_v5 = vcombine.high %v5207_v63, %v5215_v13 }
 0x8a1   : > { %11292 = vmatprep.subr.bf16.mxu0 %v16514_v17  ;;  %v5359_v52 = vld [vmem:[#allocation20 + $0x1b58] sm:$0xff] }
 0x8a2   : > { %v5231_v17 = vld [vmem:[#allocation20 + $0x1758] sm:$0xff] }
 0x8a3   : > { %11268 = vmatpush2.bf16.msra.mxu1 %v16385_v23  ;;  %v16802_v23 = vcombine.high %v5351_v49, %v5359_v52  ;;  %v5319_v41 = vld [vmem:[#allocation20 + $0x1a18] sm:$0xff] }
 0x8a4   : > { %11293 = vmatpush1.bf16.msra.mxu0 %v16513_v24  ;;  %11269 = vmatprep.subr.bf16.mxu1 %v16370_v59  ;;  %v16674_v24 = vcombine.high %v5223_v9, %v5231_v17  ;;  %v5335_v59 = vld [vmem:[#allocation20 + $0x1a98] sm:$0xff] }
 0x8a5   : > { %11294 = vmatprep.subr.bf16.mxu0 %v16498_v48  ;;  %v5343_v48 = vld [vmem:[#allocation20 + $0x1ad8] sm:$0xff] }
 0x8a6   : > { %v16786_v51 = vcombine.high %v5335_v59, %v5343_v48  ;;  %v16785_v7 = vcombine.low %v5335_v59, %v5343_v48  ;;  %v5311_v28 = vld [vmem:[#allocation20 + $0x19d8] sm:$0xff] }
 0x8a7   : > { %11270 = vmatpush2.bf16.msra.mxu1 %v16369_v58  ;;  %v5175_v40 = vld [vmem:[#allocation20 + $0x1598] sm:$0xff] }
 0x8a8   : > { %11295 = vmatpush1.bf16.msra.mxu0 %v16497_v27  ;;  %11271 = vmatprep.subr.bf16.mxu1 %v16354_v19  ;;  %v16801_v27 = vcombine.low %v5351_v49, %v5359_v52  ;;  %v5183_v45 = vld [vmem:[#allocation20 + $0x15d8] sm:$0xff] }
 0x8a9   : > { %11296 = vmatprep.subr.bf16.mxu0 %v16482_v2  ;;  %v16673_v2 = vcombine.low %v5223_v9, %v5231_v17  ;;  %v16626_v49 = vcombine.high %v5175_v40, %v5183_v45  ;;  %v5287_v52 = vld [vmem:[#allocation20 + $0x1918] sm:$0xff] }
 0x8aa   : > { %v5295_v9 = vld [vmem:[#allocation20 + $0x1958] sm:$0xff] }
 0x8ab   : > { %11272 = vmatpush2.bf16.msra.mxu1 %v16353_v42  ;;  %v5327_v42 = vld [vmem:[#allocation20 + $0x1a58] sm:$0xff] }
 0x8ac   : > { %11297 = vmatpush1.bf16.msra.mxu0 %v16481_v35  ;;  %11273 = vmatprep.subr.bf16.mxu1 %v16338_v57  ;;  %v5191_v57 = vld [vmem:[#allocation20 + $0x1618] sm:$0xff] }
 0x8ad   : > { %11298 = vmatprep.subr.bf16.mxu0 %v16466_v50  ;;  %v5199_v50 = vld [vmem:[#allocation20 + $0x1658] sm:$0xff] }
 0x8ae   : > { %v5159_v17 = vld [vmem:[#allocation20 + $0x1518] sm:$0xff] }
 0x8af   : > { %11274 = vmatpush2.bf16.msra.mxu1 %v16337_v60  ;;  %v16657_v60 = vcombine.low %v5207_v63, %v5215_v13  ;;  %v5167_v6 = vld [vmem:[#allocation20 + $0x1558] sm:$0xff] }
 0x8b0   : > { %11299 = vmatpush1.bf16.msra.mxu0 %v16465_v32  ;;  %11275 = vmatprep.subr.bf16.mxu1 %v16322_v26  ;;  %v16770_v32 = vcombine.high %v5319_v41, %v5327_v42  ;;  %v16642_v26 = vcombine.high %v5191_v57, %v5199_v50  ;;  %v5143_v59 = vld [vmem:[#allocation20 + $0x1498] sm:$0xff]  ;;  %v16609_v63 = vcombine.low %v5159_v17, %v5167_v6 }
 0x8b1   : > { %11300 = vmatprep.subr.bf16.mxu0 %v16450_v25  ;;  %v5303_v25 = vld [vmem:[#allocation20 + $0x1998] sm:$0xff] }
 0x8b2   : > { %v16753_v10 = vcombine.low %v5303_v25, %v5311_v28  ;;  %v5151_v48 = vld [vmem:[#allocation20 + $0x14d8] sm:$0xff] }
 0x8b3   : > { %11276 = vmatpush2.bf16.msra.mxu1 %v16321_v15  ;;  %v16769_v15 = vcombine.low %v5319_v41, %v5327_v42  ;;  %v5495_v42 = vld [vmem:[#allocation20 + $0x1f98] sm:$0xff] }
 0x8b4   : > { %11301 = vmatpush1.bf16.msra.mxu0 %v16449_v11  ;;  %11327 = vmatprep.subr.bf16.mxu1 %v16818_v12  ;;  %v16641_v11 = vcombine.low %v5191_v57, %v5199_v50  ;;  %v16754_v12 = vcombine.high %v5303_v25, %v5311_v28  ;;  %v4600_v57 = vld [vmem:[#allocation20 + $0x3a0] sm:$0xff] }
 0x8b5   : > { %11302 = vmatprep.subr.bf16.mxu0 %v16690_v4  ;;  %v4608_v50 = vld [vmem:[#allocation20 + $0x3e0] sm:$0xff] }
 0x8b6   : > { %v11033_v3 = vpop.f32.mrf.mxu1  ;;  %11278 = vmatmul.mubr.bf16.vlgmr.msra.gmra.mxu1 %v20783_v33  ;;  %v16051_v28 = vcombine.low %v4600_v57, %v4608_v50 }
 0x8b7   : > { %v11034_v58 = vadd.f32 %v11033_v3, %v20882_v61  ;;  %11328 = vmatpush1.bf16.msra.mxu1 %v16817_v43  ;;  %11359 = vmatprep.mubr.bf16.mxu1 %v20817_v14  ;;  %v20893_v61 = vsub.s32 %v12078_v56, %v19495_v39  ;;  %v16738_v43 = vcombine.high %v5287_v52, %v5295_v9 }
 0x8b8   : > { %v11035_v19 = vpop.f32.mrf.mxu1  ;;  %11303 = vmatpush2.bf16.msra.mxu0 %v16689_v38  ;;  %11329 = vmatprep.subr.bf16.mxu1 %v16802_v23  ;;  %v16610_v38 = vcombine.high %v5159_v17, %v5167_v6  ;;  %v5271_v23 = vld [vmem:[#allocation20 + $0x1898] sm:$0xff]  ;;  %v16737_v3 = vcombine.low %v5287_v52, %v5295_v9  ;;  %v16594_v56 = vcombine.high %v5143_v59, %v5151_v48 }
 0x8b9   : > { %v11036_v21 = vadd.f32 %v11035_v19, %v20886_v16  ;;  %11304 = vmatprep.subr.bf16.mxu0 %v16674_v24  ;;  %v12026_v62 = vmax.f32 %v11034_v58, 0.0  ;;  %v12082_v39 = vrot.slane %v20860_v53, %v20893_v61  ;;  %v16625_v53 = vcombine.low %v5175_v40, %v5183_v45  ;;  %v5279_v24 = vld [vmem:[#allocation20 + $0x18d8] sm:$0xff] }
 0x8ba   : > { %v11037_v35 = vpop.f32.mrf.mxu1  ;;  %v16722_v13 = vcombine.high %v5271_v23, %v5279_v24  ;;  %v5255_v58 = vld [vmem:[#allocation20 + $0x1818] sm:$0xff] }
 0x8bb   : > { %v12027_v31 = vmax.f32 %v11036_v21, 0.0  ;;  %11330 = vmatpush1.bf16.msra.mxu1 %v16801_v27  ;;  %v5263_v27 = vld [vmem:[#allocation20 + $0x1858] sm:$0xff]  ;;  %v16593_v21 = vcombine.low %v5143_v59, %v5151_v48 }
 0x8bc   : > { %v11038_v54 = vpop.f32.mrf.mxu1  ;;  %11305 = vmatpush2.bf16.msra.mxu0 %v16673_v2  ;;  %11331 = vmatprep.subr.bf16.mxu1 %v16786_v51  ;;  %v5127_v19 = vld [vmem:[#allocation20 + $0x1418] sm:$0xff]  ;;  %v16721_v51 = vcombine.low %v5271_v23, %v5279_v24 }
 0x8bd   : > { %v16956_v16 = vpack.c.bf16 %v12027_v31, %v12026_v62  ;;  %11306 = vmatprep.subr.bf16.mxu0 %v16658_v5  ;;  %v5135_v2 = vld [vmem:[#allocation20 + $0x1458] sm:$0xff]  ;;  %v16706_v5 = vcombine.high %v5255_v58, %v5263_v27  ;;  %v16705_v62 = vcombine.low %v5255_v58, %v5263_v27  ;;  %v16052_v54 = vcombine.high %v4600_v57, %v4608_v50  ;;  %v4536_v58 = vld [vmem:[#allocation20 + $0x1a0] sm:$0xff] }
 0x8be   : > { %v16578_v41 = vcombine.high %v5127_v19, %v5135_v2  ;;  %v5503_v35 = vld [vmem:[#allocation20 + $0x1fd8] sm:$0xff]  ;;  %v16577_v31 = vcombine.low %v5127_v19, %v5135_v2  ;;  %v4544_v27 = vld [vmem:[#allocation20 + $0x1e0] sm:$0xff] }
 0x8bf   : > { %v12089_v0 = vrot.slane %v16956_v16, %v20893_v61  ;;  %11332 = vmatpush1.bf16.msra.mxu1 %v16785_v7  ;;  %v16946_v7 = vcombine.high %v5495_v42, %v5503_v35  ;;  %v4584_v16 = vld [vmem:[#allocation20 + $0x320] sm:$0xff]  ;;  %v16945_v25 = vcombine.low %v5495_v42, %v5503_v35  ;;  %v15987_v50 = vcombine.low %v4536_v58, %v4544_v27 }
 0x8c0   : > { %11307 = vmatpush2.bf16.msra.mxu0 %v16657_v60  ;;  %11333 = vmatprep.subr.bf16.mxu1 %v16770_v32  ;;  %v5479_v60 = vld [vmem:[#allocation20 + $0x1f18] sm:$0xff]  ;;  %v4520_v42 = vld [vmem:[#allocation20 + $0x120] sm:$0xff] }
 0x8c1   : > { %v20898_v4 = vcombine.low %v12082_v39, %v12089_v0  ;;  %11308 = vmatprep.subr.bf16.mxu0 %v16642_v26  ;;  %v5487_v32 = vld [vmem:[#allocation20 + $0x1f58] sm:$0xff]  ;;  %v4592_v26 = vld [vmem:[#allocation20 + $0x360] sm:$0xff] }
 0x8c2   : > { %v16930_v40 = vcombine.high %v5479_v60, %v5487_v32  ;;  %v16036_v45 = vcombine.high %v4584_v16, %v4592_v26  ;;  %v5463_v39 = vld [vmem:[#allocation20 + $0x1e98] sm:$0xff]  ;;  %v16035_v52 = vcombine.low %v4584_v16, %v4592_v26  ;;  %v4528_v35 = vld [vmem:[#allocation20 + $0x160] sm:$0xff] }
 0x8c3   : > { %11334 = vmatpush1.bf16.msra.mxu1 %v16769_v15  ;;  %v5471_v0 = vld [vmem:[#allocation20 + $0x1ed8] sm:$0xff]  ;;  %v4568_v15 = vld [vmem:[#allocation20 + $0x2a0] sm:$0xff]  ;;  %v15971_v26 = vcombine.low %v4520_v42, %v4528_v35 }
 0x8c4   : > { %11309 = vmatpush2.bf16.msra.mxu0 %v16641_v11  ;;  %11335 = vmatprep.subr.bf16.mxu1 %v16754_v12  ;;  %v4576_v11 = vld [vmem:[#allocation20 + $0x2e0] sm:$0xff]  ;;  %v16914_v9 = vcombine.high %v5463_v39, %v5471_v0  ;;  %v16913_v24 = vcombine.low %v5463_v39, %v5471_v0 }
 0x8c5   : > { %11310 = vmatprep.subr.bf16.mxu0 %v16626_v49  ;;  %v16929_v49 = vcombine.low %v5479_v60, %v5487_v32  ;;  %v16020_v6 = vcombine.high %v4568_v15, %v4576_v11  ;;  %v16019_v59 = vcombine.low %v4568_v15, %v4576_v11  ;;  %v4504_v60 = vld [vmem:[#allocation20 + $0xa0] sm:$0xff] }
 0x8c6   : > { %v4512_v32 = vld [vmem:[#allocation20 + $0xe0] sm:$0xff] }
 0x8c7   : > { %11336 = vmatpush1.bf16.msra.mxu1 %v16753_v10  ;;  %v5447_v10 = vld [vmem:[#allocation20 + $0x1e18] sm:$0xff]  ;;  %v4488_v39 = vld [vmem:[#allocation20 + $0x20] sm:$0xff]  ;;  %v15955_v11 = vcombine.low %v4504_v60, %v4512_v32 }
 0x8c8   : > { %11311 = vmatpush2.bf16.msra.mxu0 %v16625_v53  ;;  %11337 = vmatprep.subr.bf16.mxu1 %v16738_v43  ;;  %v5455_v53 = vld [vmem:[#allocation20 + $0x1e58] sm:$0xff]  ;;  %v4552_v43 = vld [vmem:[#allocation20 + $0x220] sm:$0xff] }
 0x8c9   : > { %11312 = vmatprep.subr.bf16.mxu0 %v16610_v38  ;;  %v4560_v38 = vld [vmem:[#allocation20 + $0x260] sm:$0xff]  ;;  %v16898_v48 = vcombine.high %v5447_v10, %v5455_v53  ;;  %v16897_v19 = vcombine.low %v5447_v10, %v5455_v53 }
 0x8ca   : > { %v16003_v2 = vcombine.low %v4552_v43, %v4560_v38  ;;  %v4496_v0 = vld [vmem:[#allocation20 + $0x60] sm:$0xff] }
 0x8cb   : > { %11338 = vmatpush1.bf16.msra.mxu1 %v16737_v3  ;;  %v4728_v10 = vld [vmem:[#allocation20 + $0x7a0] sm:$0xff] }
 0x8cc   : > { %11313 = vmatpush2.bf16.msra.mxu0 %v16609_v63  ;;  %11339 = vmatprep.subr.bf16.mxu1 %v16722_v13  ;;  %v16004_v63 = vcombine.high %v4552_v43, %v4560_v38  ;;  %v5431_v13 = vld [vmem:[#allocation20 + $0x1d98] sm:$0xff]  ;;  %v4736_v53 = vld [vmem:[#allocation20 + $0x7e0] sm:$0xff]  ;;  %v15939_v38 = vcombine.low %v4488_v39, %v4496_v0 }
 0x8cd   : > { %11314 = vmatprep.subr.bf16.mxu0 %v16594_v56  ;;  %v5439_v56 = vld [vmem:[#allocation20 + $0x1dd8] sm:$0xff] }
 0x8ce   : > { %v16881_v57 = vcombine.low %v5431_v13, %v5439_v56 }
 0x8cf   : > { %11340 = vmatpush1.bf16.msra.mxu1 %v16721_v51  ;;  %v16882_v51 = vcombine.high %v5431_v13, %v5439_v56  ;;  %v4712_v13 = vld [vmem:[#allocation20 + $0x720] sm:$0xff] }
 0x8d0   : > { %11315 = vmatpush2.bf16.msra.mxu0 %v16593_v21  ;;  %11341 = vmatprep.subr.bf16.mxu1 %v16706_v5  ;;  %v15988_v21 = vcombine.high %v4536_v58, %v4544_v27  ;;  %v5415_v5 = vld [vmem:[#allocation20 + $0x1d18] sm:$0xff]  ;;  %v4720_v56 = vld [vmem:[#allocation20 + $0x760] sm:$0xff] }
 0x8d1   : > { %11316 = vmatprep.subr.bf16.mxu0 %v16578_v41  ;;  %v5423_v41 = vld [vmem:[#allocation20 + $0x1d58] sm:$0xff] }
 0x8d2   : > { %v16865_v16 = vcombine.low %v5415_v5, %v5423_v41 }
 0x8d3   : > { %11342 = vmatpush1.bf16.msra.mxu1 %v16705_v62  ;;  %v16866_v62 = vcombine.high %v5415_v5, %v5423_v41  ;;  %v4824_v5 = vld [vmem:[#allocation20 + $0xaa0] sm:$0xff] }
 0x8d4   : > { %11317 = vmatpush2.bf16.msra.mxu0 %v16577_v31  ;;  %11343 = vmatprep.subr.bf16.mxu1 %v16946_v7  ;;  %v15972_v31 = vcombine.high %v4520_v42, %v4528_v35  ;;  %v5399_v7 = vld [vmem:[#allocation20 + $0x1c98] sm:$0xff]  ;;  %v4832_v41 = vld [vmem:[#allocation20 + $0xae0] sm:$0xff] }
 0x8d5   : > { %11368 = vmatprep.subr.bf16.mxu0 %v16052_v54  ;;  %v5407_v54 = vld [vmem:[#allocation20 + $0x1cd8] sm:$0xff]  ;;  %v4696_v35 = vld [vmem:[#allocation20 + $0x6a0] sm:$0xff] }
 0x8d6   : > { %v16849_v15 = vcombine.low %v5399_v7, %v5407_v54 }
 0x8d7   : > { %v20900_v12 = vpop.f32.mrf.mxu0  ;;  %11319 = vmatmul.mubr.bf16.vlgmr.msra.gmra.mxu0 %v20802_v30  ;;  %11344 = vmatpush2.bf16.msra.mxu1 %v16945_v25  ;;  %v16850_v25 = vcombine.high %v5399_v7, %v5407_v54  ;;  %v16276_v54 = vcombine.high %v4824_v5, %v4832_v41 }
 0x8d8   : > { %11369 = vmatpush1.bf16.msra.mxu0 %v16051_v28  ;;  %11400 = vmatprep.mubr.bf16.mxu0 %v20765_v1  ;;  %v15956_v28 = vcombine.high %v4504_v60, %v4512_v32 }
 0x8d9   : > { %v20904_v17 = vpop.f32.mrf.mxu0  ;;  %11345 = vmatprep.subr.bf16.mxu1 %v16930_v40  ;;  %11370 = vmatprep.subr.bf16.mxu0 %v16036_v45  ;;  %v5383_v40 = vld [vmem:[#allocation20 + $0x1c18] sm:$0xff] }
 0x8da   : > { %v5391_v45 = vld [vmem:[#allocation20 + $0x1c58] sm:$0xff] }
 0x8db   : > { %v11078_v23 = vpop.f32.mrf.mxu0  ;;  %11346 = vmatpush2.bf16.msra.mxu1 %v16929_v49  ;;  %v16834_v49 = vcombine.high %v5383_v40, %v5391_v45  ;;  %v16833_v43 = vcombine.low %v5383_v40, %v5391_v45  ;;  %v16275_v40 = vcombine.low %v4824_v5, %v4832_v41  ;;  %v4744_v41 = vld [vmem:[#allocation20 + $0x820] sm:$0xff] }
 0x8dc   : > { %11371 = vmatpush1.bf16.msra.mxu0 %v16035_v52  ;;  %11347 = vmatprep.subr.bf16.mxu1 %v16914_v9  ;;  %v15940_v52 = vcombine.high %v4488_v39, %v4496_v0  ;;  %v4856_v9 = vld [vmem:[#allocation20 + $0xba0] sm:$0xff] }
 0x8dd   : > { %v11079_v3 = vpop.f32.mrf.mxu0  ;;  %11372 = vmatprep.subr.bf16.mxu0 %v16020_v6  ;;  %v4864_v6 = vld [vmem:[#allocation20 + $0xbe0] sm:$0xff] }
 0x8de   : > { %v16308_v23 = vcombine.high %v4856_v9, %v4864_v6  ;;  %v4840_v3 = vld [vmem:[#allocation20 + $0xb20] sm:$0xff]  ;;  %v16307_v27 = vcombine.low %v4856_v9, %v4864_v6 }
 0x8df   : > { %11348 = vmatpush2.bf16.msra.mxu1 %v16913_v24  ;;  %v17968_v24 = vld [vmem:[#allocation21] sm:$0xff] }
 0x8e0   : > { %11373 = vmatpush1.bf16.msra.mxu0 %v16019_v59  ;;  %11349 = vmatprep.subr.bf16.mxu1 %v16898_v48  ;;  %v5531_v59 = vrot.slane %v17968_v24, %v20791_v36  ;;  %v16180_v48 = vcombine.high %v4728_v10, %v4736_v53  ;;  %v5535_v58 = vrot.slane %v17968_v24, %v20794_v37  ;;  %v4672_v9 = vld [vmem:[#allocation20 + $0x5e0] sm:$0xff] }
 0x8e1   : > { %11374 = vmatprep.subr.bf16.mxu0 %v16004_v63  ;;  %v4848_v63 = vld [vmem:[#allocation20 + $0xb60] sm:$0xff] }
 0x8e2   : > { %v4648_v24 = vld [vmem:[#allocation20 + $0x520] sm:$0xff] }
 0x8e3   : > { %11350 = vmatpush2.bf16.msra.mxu1 %v16897_v19  ;;  %v16179_v19 = vcombine.low %v4728_v10, %v4736_v53 }
 0x8e4   : > { %11375 = vmatpush1.bf16.msra.mxu0 %v16003_v2  ;;  %11351 = vmatprep.subr.bf16.mxu1 %v16882_v51  ;;  %v16292_v2 = vcombine.high %v4840_v3, %v4848_v63  ;;  %v11075_v51 = vadd.f32 %v20900_v12, %v5531_v59  ;;  %v16163_v12 = vcombine.low %v4712_v13, %v4720_v56  ;;  %v4656_v59 = vld [vmem:[#allocation20 + $0x560] sm:$0xff] }
 0x8e5   : > { %11376 = vmatprep.subr.bf16.mxu0 %v15988_v21  ;;  %v16164_v21 = vcombine.high %v4712_v13, %v4720_v56  ;;  %v16100_v13 = vcombine.high %v4648_v24, %v4656_v59  ;;  %v4760_v56 = vld [vmem:[#allocation20 + $0x8a0] sm:$0xff] }
 0x8e7   : > { %11352 = vmatpush2.bf16.msra.mxu1 %v16881_v57  ;;  %v4704_v57 = vld [vmem:[#allocation20 + $0x6e0] sm:$0xff] }
 0x8e8   : > { %11377 = vmatpush1.bf16.msra.mxu0 %v15987_v50  ;;  %11353 = vmatprep.subr.bf16.mxu1 %v16866_v62  ;;  %v11077_v50 = vadd.f32 %v20904_v17, %v5535_v58  ;;  %v16148_v32 = vcombine.high %v4696_v35, %v4704_v57  ;;  %v4688_v17 = vld [vmem:[#allocation20 + $0x660] sm:$0xff]  ;;  %v16147_v39 = vcombine.low %v4696_v35, %v4704_v57 }
 0x8e9   : > { %11378 = vmatprep.subr.bf16.mxu0 %v15972_v31  ;;  %v16291_v31 = vcombine.low %v4840_v3, %v4848_v63  ;;  %v4768_v58 = vld [vmem:[#allocation20 + $0x8e0] sm:$0xff] }
 0x8ea   : > { %v4616_v35 = vld [vmem:[#allocation20 + $0x420] sm:$0xff] }
 0x8eb   : > { %11354 = vmatpush2.bf16.msra.mxu1 %v16865_v16  ;;  %v4808_v16 = vld [vmem:[#allocation20 + $0xa20] sm:$0xff] }
 0x8ec   : > { %11379 = vmatpush1.bf16.msra.mxu0 %v15971_v26  ;;  %11355 = vmatprep.subr.bf16.mxu1 %v16850_v25  ;;  %v4816_v26 = vld [vmem:[#allocation20 + $0xa60] sm:$0xff] }
 0x8ed   : > { %11380 = vmatprep.subr.bf16.mxu0 %v15956_v28  ;;  %v4680_v28 = vld [vmem:[#allocation20 + $0x620] sm:$0xff]  ;;  %v16260_v0 = vcombine.high %v4808_v16, %v4816_v26  ;;  %v16259_v6 = vcombine.low %v4808_v16, %v4816_v26 }
 0x8ee   : > { %v16131_v10 = vcombine.low %v4680_v28, %v4688_v17  ;;  %v4624_v57 = vld [vmem:[#allocation20 + $0x460] sm:$0xff] }
 0x8ef   : > { %11356 = vmatpush2.bf16.msra.mxu1 %v16849_v15  ;;  %v16132_v15 = vcombine.high %v4680_v28, %v4688_v17  ;;  %v5112_v16 = vld [vmem:[#allocation20 + $0x13a0] sm:$0xff]  ;;  %v16067_v28 = vcombine.low %v4616_v35, %v4624_v57 }
 0x8f0   : > { %11381 = vmatpush1.bf16.msra.mxu0 %v15955_v11  ;;  %11357 = vmatprep.subr.bf16.mxu1 %v16834_v49  ;;  %v4792_v11 = vld [vmem:[#allocation20 + $0x9a0] sm:$0xff] }
 0x8f1   : > { %11382 = vmatprep.subr.bf16.mxu0 %v15940_v52  ;;  %v4800_v49 = vld [vmem:[#allocation20 + $0x9e0] sm:$0xff] }
 0x8f2   : > { %v4664_v52 = vld [vmem:[#allocation20 + $0x5a0] sm:$0xff]  ;;  %v16244_v53 = vcombine.high %v4792_v11, %v4800_v49 }
 0x8f3   : > { %11358 = vmatpush2.bf16.msra.mxu1 %v16833_v43  ;;  %v16116_v43 = vcombine.high %v4664_v52, %v4672_v9  ;;  %v16115_v3 = vcombine.low %v4664_v52, %v4672_v9  ;;  %v5120_v26 = vld [vmem:[#allocation20 + $0x13e0] sm:$0xff] }
 0x8f4   : > { %11383 = vmatpush1.bf16.msra.mxu0 %v15939_v38  ;;  %11409 = vmatprep.subr.bf16.mxu1 %v16308_v23  ;;  %v4776_v38 = vld [vmem:[#allocation20 + $0x920] sm:$0xff] }
 0x8f5   : > { %11384 = vmatprep.subr.bf16.mxu0 %v16180_v48  ;;  %v4784_v23 = vld [vmem:[#allocation20 + $0x960] sm:$0xff]  ;;  %v16243_v48 = vcombine.low %v4792_v11, %v4800_v49  ;;  %v16563_v49 = vcombine.low %v5112_v16, %v5120_v26 }
 0x8f6   : > { %v11115_v42 = vpop.f32.mrf.mxu1  ;;  %11360 = vmatmul.mubr.bf16.vlgmr.msra.gmra.mxu1 %v20819_v22  ;;  %v16228_v63 = vcombine.high %v4776_v38, %v4784_v23 }
 0x8f7   : > { %v20911_v62 = vadd.f32 %v11115_v42, %v11075_v51  ;;  %11410 = vmatpush1.bf16.msra.mxu1 %v16307_v27  ;;  %11441 = vmatprep.mubr.bf16.mxu1 %v20781_v34  ;;  %v4632_v27 = vld [vmem:[#allocation20 + $0x4a0] sm:$0xff]  ;;  %v16099_v51 = vcombine.low %v4648_v24, %v4656_v59 }
 0x8f8   : > { %v11117_v7 = vpop.f32.mrf.mxu1  ;;  %11385 = vmatpush2.bf16.msra.mxu0 %v16179_v19  ;;  %11411 = vmatprep.subr.bf16.mxu1 %v16292_v2  ;;  %v4640_v19 = vld [vmem:[#allocation20 + $0x4e0] sm:$0xff]  ;;  %v16227_v2 = vcombine.low %v4776_v38, %v4784_v23 }
 0x8f9   : > { %v20914_v60 = vadd.f32 %v11117_v7, %v11077_v50  ;;  %11386 = vmatprep.subr.bf16.mxu0 %v16164_v21  ;;  %v16212_v21 = vcombine.high %v4760_v56, %v4768_v58  ;;  %v16084_v5 = vcombine.high %v4632_v27, %v4640_v19  ;;  %v4752_v42 = vld [vmem:[#allocation20 + $0x860] sm:$0xff]  ;;  %v16211_v50 = vcombine.low %v4760_v56, %v4768_v58 }
 0x8fa   : > { %v11119_v25 = vpop.f32.mrf.mxu1  ;;  %v16196_v7 = vcombine.high %v4744_v41, %v4752_v42  ;;  %v4944_v56 = vld [vmem:[#allocation20 + $0xe60] sm:$0xff] }
 0x8fb   : > { %11412 = vmatpush1.bf16.msra.mxu1 %v16291_v31  ;;  %v16083_v31 = vcombine.low %v4632_v27, %v4640_v19  ;;  %v16195_v25 = vcombine.low %v4744_v41, %v4752_v42  ;;  %v5064_v27 = vld [vmem:[#allocation20 + $0x1220] sm:$0xff] }
 0x8fc   : > { %v11120_v45 = vpop.f32.mrf.mxu1  ;;  %11387 = vmatpush2.bf16.msra.mxu0 %v16163_v12  ;;  %11413 = vmatprep.subr.bf16.mxu1 %v16276_v54  ;;  %v16068_v12 = vcombine.high %v4616_v35, %v4624_v57  ;;  %v4984_v54 = vld [vmem:[#allocation20 + $0xfa0] sm:$0xff] }
 0x8fd   : > { %11388 = vmatprep.subr.bf16.mxu0 %v16148_v32  ;;  %v4992_v32 = vld [vmem:[#allocation20 + $0xfe0] sm:$0xff] }
 0x8fe   : > { %v16436_v17 = vcombine.high %v4984_v54, %v4992_v32  ;;  %v4968_v45 = vld [vmem:[#allocation20 + $0xf20] sm:$0xff]  ;;  %v16435_v11 = vcombine.low %v4984_v54, %v4992_v32 }
 0x8ff   : > { %11414 = vmatpush1.bf16.msra.mxu1 %v16275_v40  ;;  %v16564_v40 = vcombine.high %v5112_v16, %v5120_v26  ;;  %v5072_v19 = vld [vmem:[#allocation20 + $0x1260] sm:$0xff] }
 0x900   : > { %11389 = vmatpush2.bf16.msra.mxu0 %v16147_v39  ;;  %11415 = vmatprep.subr.bf16.mxu1 %v16260_v0  ;;  %v4976_v39 = vld [vmem:[#allocation20 + $0xf60] sm:$0xff]  ;;  %v16516_v41 = vcombine.high %v5064_v27, %v5072_v19 }
 0x901   : > { %11390 = vmatprep.subr.bf16.mxu0 %v16132_v15  ;;  %v5096_v0 = vld [vmem:[#allocation20 + $0x1320] sm:$0xff]  ;;  %v16420_v52 = vcombine.high %v4968_v45, %v4976_v39  ;;  %v16419_v23 = vcombine.low %v4968_v45, %v4976_v39 }
 0x902   : > { %v5104_v15 = vld [vmem:[#allocation20 + $0x1360] sm:$0xff] }
 0x903   : > { %11416 = vmatpush1.bf16.msra.mxu1 %v16259_v6  ;;  %v16548_v9 = vcombine.high %v5096_v0, %v5104_v15  ;;  %v4952_v6 = vld [vmem:[#allocation20 + $0xea0] sm:$0xff]  ;;  %v16547_v59 = vcombine.low %v5096_v0, %v5104_v15 }
 0x904   : > { %11391 = vmatpush2.bf16.msra.mxu0 %v16131_v10  ;;  %11417 = vmatprep.subr.bf16.mxu1 %v16244_v53  ;;  %v4960_v10 = vld [vmem:[#allocation20 + $0xee0] sm:$0xff] }
 0x905   : > { %11392 = vmatprep.subr.bf16.mxu0 %v16116_v43  ;;  %v5080_v53 = vld [vmem:[#allocation20 + $0x12a0] sm:$0xff] }
 0x906   : > { %v5088_v43 = vld [vmem:[#allocation20 + $0x12e0] sm:$0xff] }
 0x907   : > { %11418 = vmatpush1.bf16.msra.mxu1 %v16243_v48  ;;  %v16404_v48 = vcombine.high %v4952_v6, %v4960_v10  ;;  %v4920_v42 = vld [vmem:[#allocation20 + $0xda0] sm:$0xff] }
 0x908   : > { %11393 = vmatpush2.bf16.msra.mxu0 %v16115_v3  ;;  %11419 = vmatprep.subr.bf16.mxu1 %v16228_v63  ;;  %v16532_v63 = vcombine.high %v5080_v53, %v5088_v43  ;;  %v4928_v35 = vld [vmem:[#allocation20 + $0xde0] sm:$0xff] }
 0x909   : > { %11394 = vmatprep.subr.bf16.mxu0 %v16100_v13  ;;  %v4936_v13 = vld [vmem:[#allocation20 + $0xe20] sm:$0xff] }
 0x90a   : > { %v5048_v57 = vld [vmem:[#allocation20 + $0x11a0] sm:$0xff] }
 0x90b   : > { %11420 = vmatpush1.bf16.msra.mxu1 %v16227_v2  ;;  %v4904_v54 = vld [vmem:[#allocation20 + $0xd20] sm:$0xff] }
 0x90c   : > { %11395 = vmatpush2.bf16.msra.mxu0 %v16099_v51  ;;  %11421 = vmatprep.subr.bf16.mxu1 %v16212_v21  ;;  %v16531_v51 = vcombine.low %v5080_v53, %v5088_v43  ;;  %v16388_v21 = vcombine.high %v4936_v13, %v4944_v56  ;;  %v4912_v32 = vld [vmem:[#allocation20 + $0xd60] sm:$0xff] }
 0x90d   : > { %11396 = vmatprep.subr.bf16.mxu0 %v16084_v5  ;;  %v5032_v16 = vld [vmem:[#allocation20 + $0x1120] sm:$0xff] }
 0x90e   : > { %v5040_v26 = vld [vmem:[#allocation20 + $0x1160] sm:$0xff] }
 0x90f   : > { %11422 = vmatpush1.bf16.msra.mxu1 %v16211_v50  ;;  %v5056_v50 = vld [vmem:[#allocation20 + $0x11e0] sm:$0xff] }
 0x910   : > { %11397 = vmatpush2.bf16.msra.mxu0 %v16083_v31  ;;  %11423 = vmatprep.subr.bf16.mxu1 %v16196_v7  ;;  %v16387_v31 = vcombine.low %v4936_v13, %v4944_v56  ;;  %v16372_v7 = vcombine.high %v4920_v42, %v4928_v35  ;;  %v4888_v45 = vld [vmem:[#allocation20 + $0xca0] sm:$0xff] }
 0x911   : > { %11398 = vmatprep.subr.bf16.mxu0 %v16068_v12  ;;  %v16500_v12 = vcombine.high %v5048_v57, %v5056_v50  ;;  %v4896_v39 = vld [vmem:[#allocation20 + $0xce0] sm:$0xff] }
 0x912   : > { %v5016_v0 = vld [vmem:[#allocation20 + $0x10a0] sm:$0xff] }
 0x913   : > { %11424 = vmatpush1.bf16.msra.mxu1 %v16195_v25  ;;  %v16371_v25 = vcombine.low %v4920_v42, %v4928_v35  ;;  %v5024_v15 = vld [vmem:[#allocation20 + $0x10e0] sm:$0xff] }
 0x914   : > { %11399 = vmatpush2.bf16.msra.mxu0 %v16067_v28  ;;  %11425 = vmatprep.subr.bf16.mxu1 %v16436_v17  ;;  %v16499_v28 = vcombine.low %v5048_v57, %v5056_v50  ;;  %v16356_v17 = vcombine.high %v4904_v54, %v4912_v32  ;;  %v5000_v53 = vld [vmem:[#allocation20 + $0x1020] sm:$0xff] }
 0x915   : > { %11450 = vmatprep.subr.bf16.mxu0 %v16564_v40  ;;  %v16484_v40 = vcombine.high %v5032_v16, %v5040_v26  ;;  %v5008_v43 = vld [vmem:[#allocation20 + $0x1060] sm:$0xff] }
 0x916   : > { %v5240_v13 = vld [vmem:[#allocation20 + $0x17a0] sm:$0xff] }
 0x917   : > { %v11156_v38 = vpop.f32.mrf.mxu0  ;;  %11401 = vmatmul.mubr.bf16.vlgmr.msra.gmra.mxu0 %v20767_v8  ;;  %11426 = vmatpush2.bf16.msra.mxu1 %v16435_v11  ;;  %v16355_v11 = vcombine.low %v4904_v54, %v4912_v32  ;;  %v5248_v56 = vld [vmem:[#allocation20 + $0x17e0] sm:$0xff] }
 0x918   : > { %v20918_v24 = vadd.f32 %v11156_v38, %v20911_v62  ;;  %11451 = vmatpush1.bf16.msra.mxu0 %v16563_v49  ;;  %11482 = vmatprep.mubr.bf16.mxu0 %v20800_v29  ;;  %v16403_v62 = vcombine.low %v4952_v6, %v4960_v10  ;;  %v16483_v49 = vcombine.low %v5032_v16, %v5040_v26  ;;  %v4872_v6 = vld [vmem:[#allocation20 + $0xc20] sm:$0xff] }
 0x919   : > { %v11158_v3 = vpop.f32.mrf.mxu0  ;;  %11427 = vmatprep.subr.bf16.mxu1 %v16420_v52  ;;  %11452 = vmatprep.subr.bf16.mxu0 %v16548_v9  ;;  %v16340_v52 = vcombine.high %v4888_v45, %v4896_v39  ;;  %v16468_v9 = vcombine.high %v5016_v0, %v5024_v15  ;;  %v4880_v10 = vld [vmem:[#allocation20 + $0xc60] sm:$0xff]  ;;  %v16339_v38 = vcombine.low %v4888_v45, %v4896_v39 }
 0x91a   : > { %v20922_v58 = vadd.f32 %v11158_v3, %v20914_v60  ;;  %v16515_v60 = vcombine.low %v5064_v27, %v5072_v19  ;;  %v5368_v3 = vld [vmem:[#allocation20 + $0x1ba0] sm:$0xff]  ;;  %v16323_v27 = vcombine.low %v4872_v6, %v4880_v10  ;;  %v16451_v19 = vcombine.low %v5000_v53, %v5008_v43 }
 0x91b   : > { %v11160_v2 = vpop.f32.mrf.mxu0  ;;  %11428 = vmatpush2.bf16.msra.mxu1 %v16419_v23  ;;  %v16467_v23 = vcombine.low %v5016_v0, %v5024_v15  ;;  %v16691_v35 = vcombine.low %v5240_v13, %v5248_v56  ;;  %v5216_v54 = vld [vmem:[#allocation20 + $0x16e0] sm:$0xff] }
 0x91c   : > { %11453 = vmatpush1.bf16.msra.mxu0 %v16547_v59  ;;  %11429 = vmatprep.subr.bf16.mxu1 %v16404_v48  ;;  %v16324_v59 = vcombine.high %v4872_v6, %v4880_v10  ;;  %v16452_v48 = vcombine.high %v5000_v53, %v5008_v43  ;;  %v5320_v45 = vld [vmem:[#allocation20 + $0x1a20] sm:$0xff] }
 0x91d   : > { %v11161_v5 = vpop.f32.mrf.mxu0  ;;  %11454 = vmatprep.subr.bf16.mxu0 %v16532_v63  ;;  %v5376_v63 = vld [vmem:[#allocation20 + $0x1be0] sm:$0xff] }
 0x91e   : > { %v16820_v2 = vcombine.high %v5368_v3, %v5376_v63  ;;  %v5224_v5 = vld [vmem:[#allocation20 + $0x1720] sm:$0xff]  ;;  %v16819_v42 = vcombine.low %v5368_v3, %v5376_v63 }
 0x91f   : > { %11430 = vmatpush2.bf16.msra.mxu1 %v16403_v62  ;;  %v16692_v62 = vcombine.high %v5240_v13, %v5248_v56  ;;  %v5328_v39 = vld [vmem:[#allocation20 + $0x1a60] sm:$0xff] }
 0x920   : > { %11455 = vmatpush1.bf16.msra.mxu0 %v16531_v51  ;;  %11431 = vmatprep.subr.bf16.mxu1 %v16388_v21  ;;  %v5352_v51 = vld [vmem:[#allocation20 + $0x1b20] sm:$0xff]  ;;  %v16772_v10 = vcombine.high %v5320_v45, %v5328_v39 }
 0x921   : > { %11456 = vmatprep.subr.bf16.mxu0 %v16516_v41  ;;  %v5360_v21 = vld [vmem:[#allocation20 + $0x1b60] sm:$0xff] }
 0x922   : > { %v5232_v41 = vld [vmem:[#allocation20 + $0x1760] sm:$0xff]  ;;  %v16804_v57 = vcombine.high %v5352_v51, %v5360_v21  ;;  %v16803_v16 = vcombine.low %v5352_v51, %v5360_v21 }
 0x923   : > { %11432 = vmatpush2.bf16.msra.mxu1 %v16387_v31  ;;  %v16676_v50 = vcombine.high %v5224_v5, %v5232_v41  ;;  %v5336_v31 = vld [vmem:[#allocation20 + $0x1aa0] sm:$0xff] }
 0x924   : > { %11457 = vmatpush1.bf16.msra.mxu0 %v16515_v60  ;;  %11433 = vmatprep.subr.bf16.mxu1 %v16372_v7  ;;  %v5344_v60 = vld [vmem:[#allocation20 + $0x1ae0] sm:$0xff] }
 0x925   : > { %11458 = vmatprep.subr.bf16.mxu0 %v16500_v12  ;;  %v5208_v12 = vld [vmem:[#allocation20 + $0x16a0] sm:$0xff] }
 0x926   : > { %v5192_v15 = vld [vmem:[#allocation20 + $0x1620] sm:$0xff]  ;;  %v16659_v6 = vcombine.low %v5208_v12, %v5216_v54 }
 0x927   : > { %11434 = vmatpush2.bf16.msra.mxu1 %v16371_v25  ;;  %v16675_v25 = vcombine.low %v5224_v5, %v5232_v41  ;;  %v5304_v43 = vld [vmem:[#allocation20 + $0x19a0] sm:$0xff] }
 0x928   : > { %11459 = vmatpush1.bf16.msra.mxu0 %v16499_v28  ;;  %11435 = vmatprep.subr.bf16.mxu1 %v16356_v17  ;;  %v16788_v28 = vcombine.high %v5336_v31, %v5344_v60  ;;  %v5288_v56 = vld [vmem:[#allocation20 + $0x1920] sm:$0xff] }
 0x929   : > { %11460 = vmatprep.subr.bf16.mxu0 %v16484_v40  ;;  %v16660_v40 = vcombine.high %v5208_v12, %v5216_v54  ;;  %v5272_v41 = vld [vmem:[#allocation20 + $0x18a0] sm:$0xff] }
 0x92a   : > { %v5256_v12 = vld [vmem:[#allocation20 + $0x1820] sm:$0xff] }
 0x92b   : > { %11436 = vmatpush2.bf16.msra.mxu1 %v16355_v11  ;;  %v5200_v11 = vld [vmem:[#allocation20 + $0x1660] sm:$0xff] }
 0x92c   : > { %11461 = vmatpush1.bf16.msra.mxu0 %v16483_v49  ;;  %11437 = vmatprep.subr.bf16.mxu1 %v16340_v52  ;;  %v16787_v52 = vcombine.low %v5336_v31, %v5344_v60  ;;  %v16643_v3 = vcombine.low %v5192_v15, %v5200_v11  ;;  %v5264_v54 = vld [vmem:[#allocation20 + $0x1860] sm:$0xff] }
 0x92d   : > { %11462 = vmatprep.subr.bf16.mxu0 %v16468_v9 }
 0x92f   : > { %11438 = vmatpush2.bf16.msra.mxu1 %v16339_v38  ;;  %v5312_v38 = vld [vmem:[#allocation20 + $0x19e0] sm:$0xff] }
 0x930   : > { %11463 = vmatpush1.bf16.msra.mxu0 %v16467_v23  ;;  %11439 = vmatprep.subr.bf16.mxu1 %v16324_v59  ;;  %v5176_v23 = vld [vmem:[#allocation20 + $0x15a0] sm:$0xff]  ;;  %v16756_v63 = vcombine.high %v5304_v43, %v5312_v38 }
 0x931   : > { %11464 = vmatprep.subr.bf16.mxu0 %v16452_v48  ;;  %v5184_v59 = vld [vmem:[#allocation20 + $0x15e0] sm:$0xff]  ;;  %v16771_v48 = vcombine.low %v5320_v45, %v5328_v39  ;;  %v4601_v39 = vld [vmem:[#allocation20 + $0x3a8] sm:$0xff] }
 0x932   : > { %v16628_v13 = vcombine.high %v5176_v23, %v5184_v59  ;;  %v16627_v51 = vcombine.low %v5176_v23, %v5184_v59  ;;  %v5504_v45 = vld [vmem:[#allocation20 + $0x1fe0] sm:$0xff] }
 0x933   : > { %11440 = vmatpush2.bf16.msra.mxu1 %v16323_v27  ;;  %v5296_v27 = vld [vmem:[#allocation20 + $0x1960] sm:$0xff] }
 0x934   : > { %11465 = vmatpush1.bf16.msra.mxu0 %v16451_v19  ;;  %11491 = vmatprep.subr.bf16.mxu1 %v16820_v2  ;;  %v5160_v19 = vld [vmem:[#allocation20 + $0x1520] sm:$0xff]  ;;  %v16740_v21 = vcombine.high %v5288_v56, %v5296_v27 }
 0x935   : > { %11466 = vmatprep.subr.bf16.mxu0 %v16692_v62  ;;  %v5168_v2 = vld [vmem:[#allocation20 + $0x1560] sm:$0xff]  ;;  %v16755_v62 = vcombine.low %v5304_v43, %v5312_v38 }
 0x936   : > { %v11197_v7 = vpop.f32.mrf.mxu1  ;;  %11442 = vmatmul.mubr.bf16.vlgmr.msra.gmra.mxu1 %v20783_v33  ;;  %v16612_v5 = vcombine.high %v5160_v19, %v5168_v2  ;;  %v16611_v31 = vcombine.low %v5160_v19, %v5168_v2  ;;  %v5464_v59 = vld [vmem:[#allocation20 + $0x1ea0] sm:$0xff] }
 0x937   : > { %v11198_v32 = vadd.f32 %v11197_v7, %v20918_v24  ;;  %11492 = vmatpush1.bf16.msra.mxu1 %v16819_v42  ;;  %11523 = vmatprep.mubr.bf16.mxu1 %v20817_v14  ;;  %v5280_v42 = vld [vmem:[#allocation20 + $0x18e0] sm:$0xff] }
 0x938   : > { %v11199_v26 = vpop.f32.mrf.mxu1  ;;  %11467 = vmatpush2.bf16.msra.mxu0 %v16691_v35  ;;  %11493 = vmatprep.subr.bf16.mxu1 %v16804_v57  ;;  %v5144_v35 = vld [vmem:[#allocation20 + $0x14a0] sm:$0xff]  ;;  %v16724_v60 = vcombine.high %v5272_v41, %v5280_v42 }
 0x939   : > { %v11200_v17 = vadd.f32 %v11199_v26, %v20922_v58  ;;  %11468 = vmatprep.subr.bf16.mxu0 %v16676_v50  ;;  %v12028_v49 = vmax.f32 %v11198_v32, 0.0  ;;  %v16644_v58 = vcombine.high %v5192_v15, %v5200_v11  ;;  %v5152_v57 = vld [vmem:[#allocation20 + $0x14e0] sm:$0xff]  ;;  %v16739_v50 = vcombine.low %v5288_v56, %v5296_v27 }
 0x93a   : > { %v11201_v0 = vpop.f32.mrf.mxu1  ;;  %v16596_v7 = vcombine.high %v5144_v35, %v5152_v57  ;;  %v5128_v32 = vld [vmem:[#allocation20 + $0x1420] sm:$0xff]  ;;  %v16723_v26 = vcombine.low %v5272_v41, %v5280_v42  ;;  %v16707_v15 = vcombine.low %v5256_v12, %v5264_v54  ;;  %v4561_v41 = vld [vmem:[#allocation20 + $0x268] sm:$0xff] }
 0x93b   : > { %v12029_v24 = vmax.f32 %v11200_v17, 0.0  ;;  %11494 = vmatpush1.bf16.msra.mxu1 %v16803_v16  ;;  %v5136_v16 = vld [vmem:[#allocation20 + $0x1460] sm:$0xff]  ;;  %v4609_v0 = vld [vmem:[#allocation20 + $0x3e8] sm:$0xff] }
 0x93c   : > { %v11202_v9 = vpop.f32.mrf.mxu1  ;;  %11469 = vmatpush2.bf16.msra.mxu0 %v16675_v25  ;;  %11495 = vmatprep.subr.bf16.mxu1 %v16788_v28  ;;  %v16595_v25 = vcombine.low %v5144_v35, %v5152_v57  ;;  %v16708_v28 = vcombine.high %v5256_v12, %v5264_v54  ;;  %v16580_v17 = vcombine.high %v5128_v32, %v5136_v16  ;;  %v5440_v12 = vld [vmem:[#allocation20 + $0x1de0] sm:$0xff]  ;;  %v4537_v54 = vld [vmem:[#allocation20 + $0x1a8] sm:$0xff] }
 0x93d   : > { %v20928_v53 = vpack.c.bf16 %v12029_v24, %v12028_v49  ;;  %11470 = vmatprep.subr.bf16.mxu0 %v16660_v40  ;;  %v5496_v40 = vld [vmem:[#allocation20 + $0x1fa0] sm:$0xff]  ;;  %v16579_v11 = vcombine.low %v5128_v32, %v5136_v16  ;;  %v16054_v24 = vcombine.high %v4601_v39, %v4609_v0  ;;  %v16053_v43 = vcombine.low %v4601_v39, %v4609_v0  ;;  %v4545_v32 = vld [vmem:[#allocation20 + $0x1e8] sm:$0xff] }
 0x93e   : > { %v16948_v49 = vcombine.high %v5496_v40, %v5504_v45  ;;  %v5488_v9 = vld [vmem:[#allocation20 + $0x1f60] sm:$0xff]  ;;  %v4529_v39 = vld [vmem:[#allocation20 + $0x168] sm:$0xff] }
 0x93f   : > { %11496 = vmatpush1.bf16.msra.mxu1 %v16787_v52  ;;  %v5480_v52 = vld [vmem:[#allocation20 + $0x1f20] sm:$0xff] }
 0x940   : > { %11471 = vmatpush2.bf16.msra.mxu0 %v16659_v6  ;;  %11497 = vmatprep.subr.bf16.mxu1 %v16772_v10  ;;  %v4585_v6 = vld [vmem:[#allocation20 + $0x328] sm:$0xff]  ;;  %v16932_v38 = vcombine.high %v5480_v52, %v5488_v9  ;;  %v16931_v56 = vcombine.low %v5480_v52, %v5488_v9  ;;  %v5408_v52 = vld [vmem:[#allocation20 + $0x1ce0] sm:$0xff] }
 0x941   : > { %11472 = vmatprep.subr.bf16.mxu0 %v16644_v58  ;;  %v4593_v10 = vld [vmem:[#allocation20 + $0x368] sm:$0xff]  ;;  %v16947_v58 = vcombine.low %v5496_v40, %v5504_v45  ;;  %v5424_v40 = vld [vmem:[#allocation20 + $0x1d60] sm:$0xff] }
 0x942   : > { %v16038_v23 = vcombine.high %v4585_v6, %v4593_v10  ;;  %v16037_v27 = vcombine.low %v4585_v6, %v4593_v10  ;;  %v4521_v45 = vld [vmem:[#allocation20 + $0x128] sm:$0xff] }
 0x943   : > { %11498 = vmatpush1.bf16.msra.mxu1 %v16771_v48  ;;  %v5472_v48 = vld [vmem:[#allocation20 + $0x1ee0] sm:$0xff]  ;;  %v4505_v9 = vld [vmem:[#allocation20 + $0xa8] sm:$0xff] }
 0x944   : > { %11473 = vmatpush2.bf16.msra.mxu0 %v16643_v3  ;;  %11499 = vmatprep.subr.bf16.mxu1 %v16756_v63  ;;  %v4569_v3 = vld [vmem:[#allocation20 + $0x2a8] sm:$0xff]  ;;  %v16916_v19 = vcombine.high %v5464_v59, %v5472_v48  ;;  %v16915_v35 = vcombine.low %v5464_v59, %v5472_v48  ;;  %v5392_v59 = vld [vmem:[#allocation20 + $0x1c60] sm:$0xff] }
 0x945   : > { %11474 = vmatprep.subr.bf16.mxu0 %v16628_v13  ;;  %v4577_v63 = vld [vmem:[#allocation20 + $0x2e8] sm:$0xff] }
 0x946   : > { %v16021_v57 = vcombine.low %v4569_v3, %v4577_v63  ;;  %v4513_v6 = vld [vmem:[#allocation20 + $0xe8] sm:$0xff] }
 0x947   : > { %11500 = vmatpush1.bf16.msra.mxu1 %v16755_v62  ;;  %v16022_v62 = vcombine.high %v4569_v3, %v4577_v63  ;;  %v4489_v48 = vld [vmem:[#allocation20 + $0x28] sm:$0xff] }
 0x948   : > { %11475 = vmatpush2.bf16.msra.mxu0 %v16627_v51  ;;  %11501 = vmatprep.subr.bf16.mxu1 %v16740_v21  ;;  %v5448_v51 = vld [vmem:[#allocation20 + $0x1e20] sm:$0xff]  ;;  %v4497_v3 = vld [vmem:[#allocation20 + $0x68] sm:$0xff] }
 0x949   : > { %11476 = vmatprep.subr.bf16.mxu0 %v16612_v5  ;;  %v5456_v21 = vld [vmem:[#allocation20 + $0x1e60] sm:$0xff]  ;;  %v4553_v5 = vld [vmem:[#allocation20 + $0x228] sm:$0xff] }
 0x94a   : > { %v16899_v16 = vcombine.low %v5448_v51, %v5456_v21 }
 0x94b   : > { %11502 = vmatpush1.bf16.msra.mxu1 %v16739_v50  ;;  %v16900_v50 = vcombine.high %v5448_v51, %v5456_v21  ;;  %v4865_v51 = vld [vmem:[#allocation20 + $0xbe8] sm:$0xff] }
 0x94c   : > { %11477 = vmatpush2.bf16.msra.mxu0 %v16611_v31  ;;  %11503 = vmatprep.subr.bf16.mxu1 %v16724_v60  ;;  %v16006_v60 = vcombine.high %v4553_v5, %v4561_v41  ;;  %v4729_v21 = vld [vmem:[#allocation20 + $0x7a8] sm:$0xff] }
 0x94d   : > { %11478 = vmatprep.subr.bf16.mxu0 %v16596_v7  ;;  %v5432_v7 = vld [vmem:[#allocation20 + $0x1da0] sm:$0xff] }
 0x94e   : > { %v16883_v0 = vcombine.low %v5432_v7, %v5440_v12 }
 0x94f   : > { %11504 = vmatpush1.bf16.msra.mxu1 %v16723_v26  ;;  %v16005_v26 = vcombine.low %v4553_v5, %v4561_v41  ;;  %v4737_v5 = vld [vmem:[#allocation20 + $0x7e8] sm:$0xff] }
 0x950   : > { %11479 = vmatpush2.bf16.msra.mxu0 %v16595_v25  ;;  %11505 = vmatprep.subr.bf16.mxu1 %v16708_v28  ;;  %v16884_v25 = vcombine.high %v5432_v7, %v5440_v12  ;;  %v15990_v28 = vcombine.high %v4537_v54, %v4545_v32  ;;  %v4721_v7 = vld [vmem:[#allocation20 + $0x768] sm:$0xff] }
 0x951   : > { %11480 = vmatprep.subr.bf16.mxu0 %v16580_v17  ;;  %v5416_v17 = vld [vmem:[#allocation20 + $0x1d20] sm:$0xff] }
 0x952   : > { %v16867_v10 = vcombine.low %v5416_v17, %v5424_v40 }
 0x953   : > { %11506 = vmatpush1.bf16.msra.mxu1 %v16707_v15  ;;  %v15989_v15 = vcombine.low %v4537_v54, %v4545_v32  ;;  %v16181_v54 = vcombine.low %v4729_v21, %v4737_v5 }
 0x954   : > { %11481 = vmatpush2.bf16.msra.mxu0 %v16579_v11  ;;  %11507 = vmatprep.subr.bf16.mxu1 %v16948_v49  ;;  %v16868_v11 = vcombine.high %v5416_v17, %v5424_v40  ;;  %v15974_v49 = vcombine.high %v4521_v45, %v4529_v39  ;;  %v4697_v17 = vld [vmem:[#allocation20 + $0x6a8] sm:$0xff] }
 0x955   : > { %11532 = vmatprep.subr.bf16.mxu0 %v16054_v24  ;;  %v5400_v24 = vld [vmem:[#allocation20 + $0x1ca0] sm:$0xff]  ;;  %v4705_v40 = vld [vmem:[#allocation20 + $0x6e8] sm:$0xff] }
 0x956   : > { %v16851_v63 = vcombine.low %v5400_v24, %v5408_v52 }
 0x957   : > { %v20930_v13 = vpop.f32.mrf.mxu0  ;;  %11483 = vmatmul.mubr.bf16.vlgmr.msra.gmra.mxu0 %v20802_v30  ;;  %11508 = vmatpush2.bf16.msra.mxu1 %v16947_v58  ;;  %v15973_v58 = vcombine.low %v4521_v45, %v4529_v39 }
 0x958   : > { %11533 = vmatpush1.bf16.msra.mxu0 %v16053_v43  ;;  %11564 = vmatprep.mubr.bf16.mxu0 %v20765_v1  ;;  %v16852_v43 = vcombine.high %v5400_v24, %v5408_v52  ;;  %v4817_v24 = vld [vmem:[#allocation20 + $0xa68] sm:$0xff] }
 0x959   : > { %v20934_v2 = vpop.f32.mrf.mxu0  ;;  %11509 = vmatprep.subr.bf16.mxu1 %v16932_v38  ;;  %11534 = vmatprep.subr.bf16.mxu0 %v16038_v23  ;;  %v15958_v38 = vcombine.high %v4505_v9, %v4513_v6  ;;  %v5384_v23 = vld [vmem:[#allocation20 + $0x1c20] sm:$0xff] }
 0x95a   : > { %v16835_v41 = vcombine.low %v5384_v23, %v5392_v59 }
 0x95b   : > { %v11242_v42 = vpop.f32.mrf.mxu0  ;;  %11510 = vmatpush2.bf16.msra.mxu1 %v16931_v56  ;;  %v15957_v56 = vcombine.low %v4505_v9, %v4513_v6  ;;  %v4681_v9 = vld [vmem:[#allocation20 + $0x628] sm:$0xff] }
 0x95c   : > { %11535 = vmatpush1.bf16.msra.mxu0 %v16037_v27  ;;  %11511 = vmatprep.subr.bf16.mxu1 %v16916_v19  ;;  %v16836_v27 = vcombine.high %v5384_v23, %v5392_v59  ;;  %v15942_v19 = vcombine.high %v4489_v48, %v4497_v3  ;;  %v15941_v42 = vcombine.low %v4489_v48, %v4497_v3  ;;  %v4689_v6 = vld [vmem:[#allocation20 + $0x668] sm:$0xff] }
 0x95d   : > { %v11243_v31 = vpop.f32.mrf.mxu0  ;;  %11536 = vmatprep.subr.bf16.mxu0 %v16022_v62  ;;  %v4857_v62 = vld [vmem:[#allocation20 + $0xba8] sm:$0xff]  ;;  %v16134_v23 = vcombine.high %v4681_v9, %v4689_v6 }
 0x95e   : > { %v4849_v31 = vld [vmem:[#allocation20 + $0xb68] sm:$0xff]  ;;  %v16309_v12 = vcombine.low %v4857_v62, %v4865_v51 }
 0x95f   : > { %11512 = vmatpush2.bf16.msra.mxu1 %v16915_v35  ;;  %v16310_v35 = vcombine.high %v4857_v62, %v4865_v51  ;;  %v4793_v59 = vld [vmem:[#allocation20 + $0x9a8] sm:$0xff] }
 0x960   : > { %11537 = vmatpush1.bf16.msra.mxu0 %v16021_v57  ;;  %11513 = vmatprep.subr.bf16.mxu1 %v16900_v50  ;;  %v16182_v57 = vcombine.high %v4729_v21, %v4737_v5  ;;  %v4841_v50 = vld [vmem:[#allocation20 + $0xb28] sm:$0xff] }
 0x961   : > { %11538 = vmatprep.subr.bf16.mxu0 %v16006_v60  ;;  %v4713_v60 = vld [vmem:[#allocation20 + $0x728] sm:$0xff]  ;;  %v16294_v32 = vcombine.high %v4841_v50, %v4849_v31  ;;  %v16293_v45 = vcombine.low %v4841_v50, %v4849_v31 }
 0x962   : > { %v4801_v48 = vld [vmem:[#allocation20 + $0x9e8] sm:$0xff] }
 0x963   : > { %11514 = vmatpush2.bf16.msra.mxu1 %v16899_v16  ;;  %v16166_v16 = vcombine.high %v4713_v60, %v4721_v7  ;;  %v4665_v3 = vld [vmem:[#allocation20 + $0x5a8] sm:$0xff] }
 0x964   : > { %11539 = vmatpush1.bf16.msra.mxu0 %v16005_v26  ;;  %11515 = vmatprep.subr.bf16.mxu1 %v16884_v25  ;;  %v4825_v26 = vld [vmem:[#allocation20 + $0xaa8] sm:$0xff] }
 0x965   : > { %11540 = vmatprep.subr.bf16.mxu0 %v15990_v28  ;;  %v4833_v25 = vld [vmem:[#allocation20 + $0xae8] sm:$0xff] }
 0x966   : > { %v4777_v51 = vld [vmem:[#allocation20 + $0x928] sm:$0xff] }
 0x967   : > { %11516 = vmatpush2.bf16.msra.mxu1 %v16883_v0  ;;  %v16165_v0 = vcombine.low %v4713_v60, %v4721_v7  ;;  %v4785_v21 = vld [vmem:[#allocation20 + $0x968] sm:$0xff] }
 0x968   : > { %11541 = vmatpush1.bf16.msra.mxu0 %v15989_v15  ;;  %11517 = vmatprep.subr.bf16.mxu1 %v16868_v11  ;;  %v16278_v15 = vcombine.high %v4825_v26, %v4833_v25  ;;  %v16150_v11 = vcombine.high %v4697_v17, %v4705_v40  ;;  %v4649_v5 = vld [vmem:[#allocation20 + $0x528] sm:$0xff] }
 0x969   : > { %11542 = vmatprep.subr.bf16.mxu0 %v15974_v49  ;;  %v4809_v49 = vld [vmem:[#allocation20 + $0xa28] sm:$0xff] }
 0x96a   : > { %v4761_v31 = vld [vmem:[#allocation20 + $0x8a8] sm:$0xff] }
 0x96b   : > { %11518 = vmatpush2.bf16.msra.mxu1 %v16867_v10  ;;  %v16277_v10 = vcombine.low %v4825_v26, %v4833_v25  ;;  %v4769_v60 = vld [vmem:[#allocation20 + $0x8e8] sm:$0xff] }
 0x96c   : > { %11543 = vmatpush1.bf16.msra.mxu0 %v15973_v58  ;;  %11519 = vmatprep.subr.bf16.mxu1 %v16852_v43  ;;  %v16149_v43 = vcombine.low %v4697_v17, %v4705_v40  ;;  %v4633_v7 = vld [vmem:[#allocation20 + $0x4a8] sm:$0xff] }
 0x96d   : > { %11544 = vmatprep.subr.bf16.mxu0 %v15958_v38  ;;  %v16262_v38 = vcombine.high %v4809_v49, %v4817_v24  ;;  %v4745_v25 = vld [vmem:[#allocation20 + $0x828] sm:$0xff] }
 0x96e   : > { %v4753_v17 = vld [vmem:[#allocation20 + $0x868] sm:$0xff] }
 0x96f   : > { %11520 = vmatpush2.bf16.msra.mxu1 %v16851_v63  ;;  %v4673_v63 = vld [vmem:[#allocation20 + $0x5e8] sm:$0xff] }
 0x970   : > { %11545 = vmatpush1.bf16.msra.mxu0 %v15957_v56  ;;  %11521 = vmatprep.subr.bf16.mxu1 %v16836_v27  ;;  %v16261_v56 = vcombine.low %v4809_v49, %v4817_v24  ;;  %v16133_v27 = vcombine.low %v4681_v9, %v4689_v6  ;;  %v16118_v62 = vcombine.high %v4665_v3, %v4673_v63  ;;  %v4617_v40 = vld [vmem:[#allocation20 + $0x428] sm:$0xff] }
 0x971   : > { %11546 = vmatprep.subr.bf16.mxu0 %v15942_v19  ;;  %v16246_v19 = vcombine.high %v4793_v59, %v4801_v48  ;;  %v4985_v24 = vld [vmem:[#allocation20 + $0xfa8] sm:$0xff] }
 0x972   : > { %v5113_v9 = vld [vmem:[#allocation20 + $0x13a8] sm:$0xff] }
 0x973   : > { %11522 = vmatpush2.bf16.msra.mxu1 %v16835_v41  ;;  %v4657_v41 = vld [vmem:[#allocation20 + $0x568] sm:$0xff] }
 0x974   : > { %11547 = vmatpush1.bf16.msra.mxu0 %v15941_v42  ;;  %11573 = vmatprep.subr.bf16.mxu1 %v16310_v35  ;;  %v16245_v42 = vcombine.low %v4793_v59, %v4801_v48  ;;  %v16117_v35 = vcombine.low %v4665_v3, %v4673_v63  ;;  %v16102_v50 = vcombine.high %v4649_v5, %v4657_v41  ;;  %v5121_v6 = vld [vmem:[#allocation20 + $0x13e8] sm:$0xff] }
 0x975   : > { %11548 = vmatprep.subr.bf16.mxu0 %v16182_v57  ;;  %v16230_v57 = vcombine.high %v4777_v51, %v4785_v21  ;;  %v4977_v59 = vld [vmem:[#allocation20 + $0xf68] sm:$0xff] }
 0x976   : > { %v20936_v28 = vpop.f32.mrf.mxu1  ;;  %11524 = vmatmul.mubr.bf16.vlgmr.msra.gmra.mxu1 %v20819_v22  ;;  %v5097_v48 = vld [vmem:[#allocation20 + $0x1328] sm:$0xff] }
 0x977   : > { %11574 = vmatpush1.bf16.msra.mxu1 %v16309_v12  ;;  %11605 = vmatprep.mubr.bf16.mxu1 %v20781_v34  ;;  %v4641_v12 = vld [vmem:[#allocation20 + $0x4e8] sm:$0xff] }
 0x978   : > { %v20940_v39 = vpop.f32.mrf.mxu1  ;;  %11549 = vmatpush2.bf16.msra.mxu0 %v16181_v54  ;;  %11575 = vmatprep.subr.bf16.mxu1 %v16294_v32  ;;  %v16229_v54 = vcombine.low %v4777_v51, %v4785_v21  ;;  %v16101_v32 = vcombine.low %v4649_v5, %v4657_v41  ;;  %v16086_v26 = vcombine.high %v4633_v7, %v4641_v12  ;;  %v5105_v3 = vld [vmem:[#allocation20 + $0x1368] sm:$0xff] }
 0x979   : > { %11550 = vmatprep.subr.bf16.mxu0 %v16166_v16  ;;  %v16214_v16 = vcombine.high %v4761_v31, %v4769_v60  ;;  %v4961_v51 = vld [vmem:[#allocation20 + $0xee8] sm:$0xff] }
 0x97a   : > { %v11283_v52 = vpop.f32.mrf.mxu1  ;;  %v5081_v21 = vld [vmem:[#allocation20 + $0x12a8] sm:$0xff] }
 0x97b   : > { %11576 = vmatpush1.bf16.msra.mxu1 %v16293_v45  ;;  %v4625_v45 = vld [vmem:[#allocation20 + $0x468] sm:$0xff] }
 0x97c   : > { %v11284_v58 = vpop.f32.mrf.mxu1  ;;  %11551 = vmatpush2.bf16.msra.mxu0 %v16165_v0  ;;  %11577 = vmatprep.subr.bf16.mxu1 %v16278_v15  ;;  %v16213_v0 = vcombine.low %v4761_v31, %v4769_v60  ;;  %v16085_v15 = vcombine.low %v4633_v7, %v4641_v12  ;;  %v16070_v49 = vcombine.high %v4617_v40, %v4625_v45  ;;  %v4993_v52 = vld [vmem:[#allocation20 + $0xfe8] sm:$0xff] }
 0x97d   : > { %11552 = vmatprep.subr.bf16.mxu0 %v16150_v11  ;;  %v16198_v11 = vcombine.high %v4745_v25, %v4753_v17  ;;  %v16069_v58 = vcombine.low %v4617_v40, %v4625_v45  ;;  %v16437_v63 = vcombine.low %v4985_v24, %v4993_v52  ;;  %v5089_v5 = vld [vmem:[#allocation20 + $0x12e8] sm:$0xff] }
 0x97e   : > { %v16534_v31 = vcombine.high %v5081_v21, %v5089_v5  ;;  %v4937_v60 = vld [vmem:[#allocation20 + $0xe28] sm:$0xff] }
 0x97f   : > { %11578 = vmatpush1.bf16.msra.mxu1 %v16277_v10  ;;  %v16197_v10 = vcombine.low %v4745_v25, %v4753_v17  ;;  %v4945_v7 = vld [vmem:[#allocation20 + $0xe68] sm:$0xff] }
 0x980   : > { %11553 = vmatpush2.bf16.msra.mxu0 %v16149_v43  ;;  %11579 = vmatprep.subr.bf16.mxu1 %v16262_v38  ;;  %v16438_v43 = vcombine.high %v4985_v24, %v4993_v52  ;;  %v16566_v38 = vcombine.high %v5113_v9, %v5121_v6  ;;  %v5065_v12 = vld [vmem:[#allocation20 + $0x1228] sm:$0xff]  ;;  %v16390_v25 = vcombine.high %v4937_v60, %v4945_v7 }
 0x981   : > { %11554 = vmatprep.subr.bf16.mxu0 %v16134_v23  ;;  %v4969_v23 = vld [vmem:[#allocation20 + $0xf28] sm:$0xff] }
 0x982   : > { %v4921_v45 = vld [vmem:[#allocation20 + $0xda8] sm:$0xff] }
 0x983   : > { %11580 = vmatpush1.bf16.msra.mxu1 %v16261_v56  ;;  %v16565_v56 = vcombine.low %v5113_v9, %v5121_v6  ;;  %v4905_v6 = vld [vmem:[#allocation20 + $0xd28] sm:$0xff] }
 0x984   : > { %11555 = vmatpush2.bf16.msra.mxu0 %v16133_v27  ;;  %11581 = vmatprep.subr.bf16.mxu1 %v16246_v19  ;;  %v16422_v27 = vcombine.high %v4969_v23, %v4977_v59  ;;  %v16550_v19 = vcombine.high %v5097_v48, %v5105_v3 }
 0x985   : > { %11556 = vmatprep.subr.bf16.mxu0 %v16118_v62  ;;  %v4953_v62 = vld [vmem:[#allocation20 + $0xea8] sm:$0xff] }
 0x987   : > { %11582 = vmatpush1.bf16.msra.mxu1 %v16245_v42  ;;  %v16421_v42 = vcombine.low %v4969_v23, %v4977_v59 }
 0x988   : > { %11557 = vmatpush2.bf16.msra.mxu0 %v16117_v35  ;;  %11583 = vmatprep.subr.bf16.mxu1 %v16230_v57  ;;  %v16549_v35 = vcombine.low %v5097_v48, %v5105_v3  ;;  %v16406_v57 = vcombine.high %v4953_v62, %v4961_v51  ;;  %v4889_v3 = vld [vmem:[#allocation20 + $0xca8] sm:$0xff] }
 0x989   : > { %11558 = vmatprep.subr.bf16.mxu0 %v16102_v50 }
 0x98b   : > { %11584 = vmatpush1.bf16.msra.mxu1 %v16229_v54  ;;  %v5073_v54 = vld [vmem:[#allocation20 + $0x1268] sm:$0xff] }
 0x98c   : > { %11559 = vmatpush2.bf16.msra.mxu0 %v16101_v32  ;;  %11585 = vmatprep.subr.bf16.mxu1 %v16214_v16  ;;  %v16405_v16 = vcombine.low %v4953_v62, %v4961_v51  ;;  %v16518_v40 = vcombine.high %v5065_v12, %v5073_v54  ;;  %v16517_v24 = vcombine.low %v5065_v12, %v5073_v54  ;;  %v17969_v12 = vld [vmem:[#allocation21] sm:$0xff] }
 0x98d   : > { %11560 = vmatprep.subr.bf16.mxu0 %v16086_v26  ;;  %v16533_v26 = vcombine.low %v5081_v21, %v5089_v5  ;;  %v4873_v5 = vld [vmem:[#allocation20 + $0xc28] sm:$0xff]  ;;  %v5539_v54 = vrot.slane %v17969_v12, %v20808_v55 }
 0x98f   : > { %11586 = vmatpush1.bf16.msra.mxu1 %v16213_v0  ;;  %v4929_v0 = vld [vmem:[#allocation20 + $0xde8] sm:$0xff] }
 0x990   : > { %11561 = vmatpush2.bf16.msra.mxu0 %v16085_v15  ;;  %11587 = vmatprep.subr.bf16.mxu1 %v16198_v11  ;;  %v5049_v15 = vld [vmem:[#allocation20 + $0x11a8] sm:$0xff]  ;;  %v16374_v52 = vcombine.high %v4921_v45, %v4929_v0 }
 0x991   : > { %11562 = vmatprep.subr.bf16.mxu0 %v16070_v49  ;;  %v5057_v11 = vld [vmem:[#allocation20 + $0x11e8] sm:$0xff]  ;;  %v16389_v49 = vcombine.low %v4937_v60, %v4945_v7 }
 0x992   : > { %v16502_v9 = vcombine.high %v5049_v15, %v5057_v11  ;;  %v16501_v23 = vcombine.low %v5049_v15, %v5057_v11  ;;  %v11239_v11 = vadd.f32 %v20930_v13, %v5539_v54 }
 0x993   : > { %11588 = vmatpush1.bf16.msra.mxu1 %v16197_v10  ;;  %v4913_v10 = vld [vmem:[#allocation20 + $0xd68] sm:$0xff] }
 0x994   : > { %11563 = vmatpush2.bf16.msra.mxu0 %v16069_v58  ;;  %11589 = vmatprep.subr.bf16.mxu1 %v16438_v43  ;;  %v5033_v58 = vld [vmem:[#allocation20 + $0x1128] sm:$0xff]  ;;  %v16358_v59 = vcombine.high %v4905_v6, %v4913_v10 }
 0x995   : > { %11614 = vmatprep.subr.bf16.mxu0 %v16566_v38  ;;  %v5041_v43 = vld [vmem:[#allocation20 + $0x1168] sm:$0xff]  ;;  %v16373_v38 = vcombine.low %v4921_v45, %v4929_v0 }
 0x996   : > { %v16486_v48 = vcombine.high %v5033_v58, %v5041_v43  ;;  %v16485_v62 = vcombine.low %v5033_v58, %v5041_v43  ;;  %v11280_v58 = vadd.f32 %v20936_v28, %v11239_v11 }
 0x997   : > { %v20942_v41 = vpop.f32.mrf.mxu0  ;;  %11565 = vmatmul.mubr.bf16.vlgmr.msra.gmra.mxu0 %v20767_v8  ;;  %11590 = vmatpush2.bf16.msra.mxu1 %v16437_v63  ;;  %v4897_v63 = vld [vmem:[#allocation20 + $0xce8] sm:$0xff] }
 0x998   : > { %11615 = vmatpush1.bf16.msra.mxu0 %v16565_v56  ;;  %11646 = vmatprep.mubr.bf16.mxu0 %v20800_v29  ;;  %v5017_v56 = vld [vmem:[#allocation20 + $0x10a8] sm:$0xff]  ;;  %v16342_v51 = vcombine.high %v4889_v3, %v4897_v63  ;;  %v11321_v13 = vadd.f32 %v20942_v41, %v11280_v58 }
 0x999   : > { %v20946_v50 = vpop.f32.mrf.mxu0  ;;  %11591 = vmatprep.subr.bf16.mxu1 %v16422_v27  ;;  %11616 = vmatprep.subr.bf16.mxu0 %v16550_v19  ;;  %v5025_v27 = vld [vmem:[#allocation20 + $0x10e8] sm:$0xff]  ;;  %v16357_v19 = vcombine.low %v4905_v6, %v4913_v10 }
 0x99a   : > { %v16470_v21 = vcombine.high %v5017_v56, %v5025_v27  ;;  %v16469_v60 = vcombine.low %v5017_v56, %v5025_v27  ;;  %v5233_v6 = vld [vmem:[#allocation20 + $0x1768] sm:$0xff] }
 0x99b   : > { %v11324_v32 = vpop.f32.mrf.mxu0  ;;  %11592 = vmatpush2.bf16.msra.mxu1 %v16421_v42  ;;  %v4881_v42 = vld [vmem:[#allocation20 + $0xc68] sm:$0xff] }
 0x99c   : > { %11617 = vmatpush1.bf16.msra.mxu0 %v16549_v35  ;;  %11593 = vmatprep.subr.bf16.mxu1 %v16406_v57  ;;  %v5001_v35 = vld [vmem:[#allocation20 + $0x1028] sm:$0xff]  ;;  %v16326_v7 = vcombine.high %v4873_v5, %v4881_v42  ;;  %v16325_v45 = vcombine.low %v4873_v5, %v4881_v42 }
 0x99d   : > { %v11325_v17 = vpop.f32.mrf.mxu0  ;;  %11618 = vmatprep.subr.bf16.mxu0 %v16534_v31  ;;  %v5009_v57 = vld [vmem:[#allocation20 + $0x1068] sm:$0xff]  ;;  %v16341_v31 = vcombine.low %v4889_v3, %v4897_v63 }
 0x99e   : > { %v16454_v32 = vcombine.high %v5001_v35, %v5009_v57  ;;  %v5249_v17 = vld [vmem:[#allocation20 + $0x17e8] sm:$0xff]  ;;  %v16453_v0 = vcombine.low %v5001_v35, %v5009_v57 }
 0x99f   : > { %11594 = vmatpush2.bf16.msra.mxu1 %v16405_v16  ;;  %v5369_v16 = vld [vmem:[#allocation20 + $0x1ba8] sm:$0xff] }
 0x9a0   : > { %11619 = vmatpush1.bf16.msra.mxu0 %v16533_v26  ;;  %11595 = vmatprep.subr.bf16.mxu1 %v16390_v25  ;;  %v5377_v26 = vld [vmem:[#allocation20 + $0x1be8] sm:$0xff] }
 0x9a1   : > { %11620 = vmatprep.subr.bf16.mxu0 %v16518_v40  ;;  %v5241_v25 = vld [vmem:[#allocation20 + $0x17a8] sm:$0xff]  ;;  %v5543_v40 = vrot.slane %v17969_v12, %v20811_v20  ;;  %v16822_v15 = vcombine.high %v5369_v16, %v5377_v26  ;;  %v16821_v43 = vcombine.low %v5369_v16, %v5377_v26 }
 0x9a2   : > { %v5337_v3 = vld [vmem:[#allocation20 + $0x1aa8] sm:$0xff] }
 0x9a3   : > { %11596 = vmatpush2.bf16.msra.mxu1 %v16389_v49  ;;  %v16694_v49 = vcombine.high %v5241_v25, %v5249_v17  ;;  %v11241_v10 = vadd.f32 %v20934_v2, %v5543_v40  ;;  %v5345_v63 = vld [vmem:[#allocation20 + $0x1ae8] sm:$0xff] }
 0x9a4   : > { %11621 = vmatpush1.bf16.msra.mxu0 %v16517_v24  ;;  %11597 = vmatprep.subr.bf16.mxu1 %v16374_v52  ;;  %v5353_v24 = vld [vmem:[#allocation20 + $0x1b28] sm:$0xff]  ;;  %v16790_v41 = vcombine.high %v5337_v3, %v5345_v63  ;;  %v16789_v12 = vcombine.low %v5337_v3, %v5345_v63 }
 0x9a5   : > { %11622 = vmatprep.subr.bf16.mxu0 %v16502_v9  ;;  %v5361_v52 = vld [vmem:[#allocation20 + $0x1b68] sm:$0xff] }
 0x9a6   : > { %v5225_v9 = vld [vmem:[#allocation20 + $0x1728] sm:$0xff] }
 0x9a7   : > { %11598 = vmatpush2.bf16.msra.mxu1 %v16373_v38  ;;  %v16693_v38 = vcombine.low %v5241_v25, %v5249_v17  ;;  %v5209_v2 = vld [vmem:[#allocation20 + $0x16a8] sm:$0xff] }
 0x9a8   : > { %11623 = vmatpush1.bf16.msra.mxu0 %v16501_v23  ;;  %11599 = vmatprep.subr.bf16.mxu1 %v16358_v59  ;;  %v16806_v23 = vcombine.high %v5353_v24, %v5361_v52  ;;  %v11282_v59 = vadd.f32 %v20940_v39, %v11241_v10  ;;  %v5217_v27 = vld [vmem:[#allocation20 + $0x16e8] sm:$0xff]  ;;  %v16677_v39 = vcombine.low %v5225_v9, %v5233_v6 }
 0x9a9   : > { %11624 = vmatprep.subr.bf16.mxu0 %v16486_v48  ;;  %v16678_v48 = vcombine.high %v5225_v9, %v5233_v6  ;;  %v16662_v5 = vcombine.high %v5209_v2, %v5217_v27  ;;  %v5321_v42 = vld [vmem:[#allocation20 + $0x1a28] sm:$0xff] }
 0x9aa   : > { %v11323_v28 = vadd.f32 %v20946_v50, %v11282_v59  ;;  %v5329_v35 = vld [vmem:[#allocation20 + $0x1a68] sm:$0xff] }
 0x9ab   : > { %11600 = vmatpush2.bf16.msra.mxu1 %v16357_v19  ;;  %v16774_v16 = vcombine.high %v5321_v42, %v5329_v35  ;;  %v5305_v17 = vld [vmem:[#allocation20 + $0x19a8] sm:$0xff] }
 0x9ac   : > { %11625 = vmatpush1.bf16.msra.mxu0 %v16485_v62  ;;  %11601 = vmatprep.subr.bf16.mxu1 %v16342_v51  ;;  %v16805_v62 = vcombine.low %v5353_v24, %v5361_v52  ;;  %v5313_v40 = vld [vmem:[#allocation20 + $0x19e8] sm:$0xff] }
 0x9ad   : > { %11626 = vmatprep.subr.bf16.mxu0 %v16470_v21  ;;  %v16758_v52 = vcombine.high %v5305_v17, %v5313_v40  ;;  %v5289_v10 = vld [vmem:[#allocation20 + $0x1928] sm:$0xff]  ;;  %v16757_v59 = vcombine.low %v5305_v17, %v5313_v40  ;;  %v4586_v40 = vld [vmem:[#allocation20 + $0x330] sm:$0xff] }
 0x9ae   : > { %v5297_v58 = vld [vmem:[#allocation20 + $0x1968] sm:$0xff] }
 0x9af   : > { %11602 = vmatpush2.bf16.msra.mxu1 %v16341_v31  ;;  %v5193_v31 = vld [vmem:[#allocation20 + $0x1628] sm:$0xff] }
 0x9b0   : > { %11627 = vmatpush1.bf16.msra.mxu0 %v16469_v60  ;;  %11603 = vmatprep.subr.bf16.mxu1 %v16326_v7  ;;  %v5201_v60 = vld [vmem:[#allocation20 + $0x1668] sm:$0xff] }
 0x9b1   : > { %11628 = vmatprep.subr.bf16.mxu0 %v16454_v32  ;;  %v16661_v32 = vcombine.low %v5209_v2, %v5217_v27  ;;  %v16646_v25 = vcombine.high %v5193_v31, %v5201_v60  ;;  %v16645_v24 = vcombine.low %v5193_v31, %v5201_v60  ;;  %v5281_v2 = vld [vmem:[#allocation20 + $0x18e8] sm:$0xff] }
 0x9b2   : > { %v5145_v27 = vld [vmem:[#allocation20 + $0x14a8] sm:$0xff] }
 0x9b3   : > { %11604 = vmatpush2.bf16.msra.mxu1 %v16325_v45  ;;  %v5177_v45 = vld [vmem:[#allocation20 + $0x15a8] sm:$0xff] }
 0x9b4   : > { %11629 = vmatpush1.bf16.msra.mxu0 %v16453_v0  ;;  %11655 = vmatprep.subr.bf16.mxu1 %v16822_v15  ;;  %v5185_v0 = vld [vmem:[#allocation20 + $0x15e8] sm:$0xff]  ;;  %v12096_v15 = vrot.slane %v20928_v53, %v20893_v61 }
 0x9b5   : > { %11630 = vmatprep.subr.bf16.mxu0 %v16694_v49  ;;  %v16773_v49 = vcombine.low %v5321_v42, %v5329_v35  ;;  %v16630_v6 = vcombine.high %v5177_v45, %v5185_v0  ;;  %v5497_v60 = vld [vmem:[#allocation20 + $0x1fa8] sm:$0xff] }
 0x9b6   : > { %v11361_v56 = vpop.f32.mrf.mxu1  ;;  %11606 = vmatmul.mubr.bf16.vlgmr.msra.gmra.mxu1 %v20783_v33  ;;  %v5489_v17 = vld [vmem:[#allocation20 + $0x1f68] sm:$0xff] }
 0x9b7   : > { %v11362_v19 = vadd.f32 %v11361_v56, %v11321_v13  ;;  %11656 = vmatpush1.bf16.msra.mxu1 %v16821_v43  ;;  %11687 = vmatprep.mubr.bf16.mxu1 %v20817_v14  ;;  %v5161_v43 = vld [vmem:[#allocation20 + $0x1528] sm:$0xff]  ;;  %v16629_v13 = vcombine.low %v5177_v45, %v5185_v0  ;;  %v4594_v45 = vld [vmem:[#allocation20 + $0x370] sm:$0xff] }
 0x9b8   : > { %v11363_v51 = vpop.f32.mrf.mxu1  ;;  %11631 = vmatpush2.bf16.msra.mxu0 %v16693_v38  ;;  %11657 = vmatprep.subr.bf16.mxu1 %v16806_v23  ;;  %v5169_v38 = vld [vmem:[#allocation20 + $0x1568] sm:$0xff]  ;;  %v12112_v23 = vrot.slane %v20898_v4, %v20893_v61 }
 0x9b9   : > { %v11364_v21 = vadd.f32 %v11363_v51, %v11323_v28  ;;  %11632 = vmatprep.subr.bf16.mxu0 %v16678_v48  ;;  %v12030_v7 = vmax.f32 %v11362_v19, 0.0  ;;  %v16742_v48 = vcombine.high %v5289_v10, %v5297_v58  ;;  %v16614_v63 = vcombine.high %v5161_v43, %v5169_v38  ;;  %v5273_v56 = vld [vmem:[#allocation20 + $0x18a8] sm:$0xff] }
 0x9ba   : > { %v11365_v57 = vpop.f32.mrf.mxu1  ;;  %v5153_v28 = vld [vmem:[#allocation20 + $0x14e8] sm:$0xff]  ;;  %v16741_v19 = vcombine.low %v5289_v10, %v5297_v58  ;;  %v16613_v4 = vcombine.low %v5161_v43, %v5169_v38  ;;  %v16725_v42 = vcombine.low %v5273_v56, %v5281_v2  ;;  %v16039_v43 = vcombine.low %v4586_v40, %v4594_v45 }
 0x9bb   : > { %v12031_v50 = vmax.f32 %v11364_v21, 0.0  ;;  %11658 = vmatpush1.bf16.msra.mxu1 %v16805_v62  ;;  %v16726_v62 = vcombine.high %v5273_v56, %v5281_v2  ;;  %v16598_v51 = vcombine.high %v5145_v27, %v5153_v28  ;;  %v5129_v21 = vld [vmem:[#allocation20 + $0x1428] sm:$0xff]  ;;  %v16597_v35 = vcombine.low %v5145_v27, %v5153_v28 }
 0x9bc   : > { %v11366_v54 = vpop.f32.mrf.mxu1  ;;  %11633 = vmatpush2.bf16.msra.mxu0 %v16677_v39  ;;  %11659 = vmatprep.subr.bf16.mxu1 %v16790_v41  ;;  %v5257_v39 = vld [vmem:[#allocation20 + $0x1828] sm:$0xff] }
 0x9bd   : > { %v16958_v26 = vpack.c.bf16 %v12031_v50, %v12030_v7  ;;  %11634 = vmatprep.subr.bf16.mxu0 %v16662_v5  ;;  %v5265_v41 = vld [vmem:[#allocation20 + $0x1868] sm:$0xff]  ;;  %v4602_v50 = vld [vmem:[#allocation20 + $0x3b0] sm:$0xff] }
 0x9be   : > { %v5137_v5 = vld [vmem:[#allocation20 + $0x1468] sm:$0xff]  ;;  %v16710_v57 = vcombine.high %v5257_v39, %v5265_v41  ;;  %v16709_v54 = vcombine.low %v5257_v39, %v5265_v41  ;;  %v4546_v39 = vld [vmem:[#allocation20 + $0x1f0] sm:$0xff] }
 0x9bf   : > { %v12103_v11 = vrot.slane %v16958_v26, %v20893_v61  ;;  %11660 = vmatpush1.bf16.msra.mxu1 %v16789_v12  ;;  %v16582_v31 = vcombine.high %v5129_v21, %v5137_v5  ;;  %v5505_v7 = vld [vmem:[#allocation20 + $0x1fe8] sm:$0xff]  ;;  %v4610_v12 = vld [vmem:[#allocation20 + $0x3f0] sm:$0xff] }
 0x9c0   : > { %11635 = vmatpush2.bf16.msra.mxu0 %v16661_v32  ;;  %11661 = vmatprep.subr.bf16.mxu1 %v16774_v16  ;;  %v16581_v32 = vcombine.low %v5129_v21, %v5137_v5  ;;  %v16950_v16 = vcombine.high %v5497_v60, %v5505_v7  ;;  %v16056_v26 = vcombine.high %v4602_v50, %v4610_v12 }
 0x9c1   : > { %v12105_v9 = vcombine.low %v12096_v15, %v12103_v11  ;;  %11636 = vmatprep.subr.bf16.mxu0 %v16646_v25  ;;  %v5481_v25 = vld [vmem:[#allocation20 + $0x1f28] sm:$0xff]  ;;  %v16949_v0 = vcombine.low %v5497_v60, %v5505_v7  ;;  %v16055_v15 = vcombine.low %v4602_v50, %v4610_v12  ;;  %v4530_v60 = vld [vmem:[#allocation20 + $0x170] sm:$0xff] }
 0x9c2   : > { %v16934_v11 = vcombine.high %v5481_v25, %v5489_v17  ;;  %v16933_v58 = vcombine.low %v5481_v25, %v5489_v17  ;;  %v4514_v25 = vld [vmem:[#allocation20 + $0xf0] sm:$0xff] }
 0x9c3   : > { %v12119_v53 = vrot.slane %v12105_v9, %v20893_v61  ;;  %11662 = vmatpush1.bf16.msra.mxu1 %v16773_v49  ;;  %v16040_v49 = vcombine.high %v4586_v40, %v4594_v45  ;;  %v4570_v9 = vld [vmem:[#allocation20 + $0x2b0] sm:$0xff] }
 0x9c4   : > { %11637 = vmatpush2.bf16.msra.mxu0 %v16645_v24  ;;  %11663 = vmatprep.subr.bf16.mxu1 %v16758_v52  ;;  %v5465_v24 = vld [vmem:[#allocation20 + $0x1ea8] sm:$0xff] }
 0x9c5   : > { %v12120_v3 = vcombine.low %v12112_v23, %v12119_v53  ;;  %11638 = vmatprep.subr.bf16.mxu0 %v16630_v6  ;;  %v5473_v52 = vld [vmem:[#allocation20 + $0x1ee8] sm:$0xff]  ;;  %v4578_v6 = vld [vmem:[#allocation20 + $0x2f0] sm:$0xff] }
 0x9c6   : > { %v16918_v38 = vcombine.high %v5465_v24, %v5473_v52  ;;  %v16024_v53 = vcombine.high %v4570_v9, %v4578_v6  ;;  %v16917_v56 = vcombine.low %v5465_v24, %v5473_v52  ;;  %v16023_v2 = vcombine.low %v4570_v9, %v4578_v6  ;;  %v4498_v24 = vld [vmem:[#allocation20 + $0x70] sm:$0xff] }
 0x9c7   : > { %12172 = vst [vmem:[#allocation2] sm:$0xff] %v12120_v3  ;;  %11664 = vmatpush1.bf16.msra.mxu1 %v16757_v59  ;;  %v5449_v59 = vld [vmem:[#allocation20 + $0x1e28] sm:$0xff]  ;;  %v4562_v3 = vld [vmem:[#allocation20 + $0x270] sm:$0xff] }
 0x9c8   : > { %11639 = vmatpush2.bf16.msra.mxu0 %v16629_v13  ;;  %11665 = vmatprep.subr.bf16.mxu1 %v16742_v48  ;;  %v5457_v13 = vld [vmem:[#allocation20 + $0x1e68] sm:$0xff]  ;;  %v4554_v48 = vld [vmem:[#allocation20 + $0x230] sm:$0xff] }
 0x9c9   : > { %11640 = vmatprep.subr.bf16.mxu0 %v16614_v63  ;;  %v16902_v27 = vcombine.high %v5449_v59, %v5457_v13  ;;  %v16901_v41 = vcombine.low %v5449_v59, %v5457_v13  ;;  %v16007_v21 = vcombine.low %v4554_v48, %v4562_v3  ;;  %v4730_v59 = vld [vmem:[#allocation20 + $0x7b0] sm:$0xff] }
 0x9ca   : > { %v4738_v13 = vld [vmem:[#allocation20 + $0x7f0] sm:$0xff] }
 0x9cb   : > { %11666 = vmatpush1.bf16.msra.mxu1 %v16741_v19  ;;  %v16008_v19 = vcombine.high %v4554_v48, %v4562_v3 }
 0x9cc   : > { %11641 = vmatpush2.bf16.msra.mxu0 %v16613_v4  ;;  %11667 = vmatprep.subr.bf16.mxu1 %v16726_v62  ;;  %v5433_v4 = vld [vmem:[#allocation20 + $0x1da8] sm:$0xff] }
 0x9cd   : > { %11642 = vmatprep.subr.bf16.mxu0 %v16598_v51  ;;  %v5441_v62 = vld [vmem:[#allocation20 + $0x1de8] sm:$0xff]  ;;  %v4538_v51 = vld [vmem:[#allocation20 + $0x1b0] sm:$0xff] }
 0x9ce   : > { %v16886_v5 = vcombine.high %v5433_v4, %v5441_v62  ;;  %v16885_v7 = vcombine.low %v5433_v4, %v5441_v62  ;;  %v15991_v50 = vcombine.low %v4538_v51, %v4546_v39  ;;  %v4722_v4 = vld [vmem:[#allocation20 + $0x770] sm:$0xff] }
 0x9cf   : > { %11668 = vmatpush1.bf16.msra.mxu1 %v16725_v42  ;;  %v15992_v42 = vcombine.high %v4538_v51, %v4546_v39  ;;  %v16183_v39 = vcombine.low %v4730_v59, %v4738_v13 }
 0x9d0   : > { %11643 = vmatpush2.bf16.msra.mxu0 %v16597_v35  ;;  %11669 = vmatprep.subr.bf16.mxu1 %v16710_v57  ;;  %v5417_v35 = vld [vmem:[#allocation20 + $0x1d28] sm:$0xff] }
 0x9d1   : > { %11644 = vmatprep.subr.bf16.mxu0 %v16582_v31  ;;  %v5425_v57 = vld [vmem:[#allocation20 + $0x1d68] sm:$0xff]  ;;  %v4522_v31 = vld [vmem:[#allocation20 + $0x130] sm:$0xff] }
 0x9d2   : > { %v16870_v12 = vcombine.high %v5417_v35, %v5425_v57  ;;  %v16869_v17 = vcombine.low %v5417_v35, %v5425_v57  ;;  %v15975_v40 = vcombine.low %v4522_v31, %v4530_v60  ;;  %v4698_v57 = vld [vmem:[#allocation20 + $0x6b0] sm:$0xff] }
 0x9d3   : > { %11670 = vmatpush1.bf16.msra.mxu1 %v16709_v54  ;;  %v15976_v54 = vcombine.high %v4522_v31, %v4530_v60  ;;  %v4706_v31 = vld [vmem:[#allocation20 + $0x6f0] sm:$0xff] }
 0x9d4   : > { %11645 = vmatpush2.bf16.msra.mxu0 %v16581_v32  ;;  %11671 = vmatprep.subr.bf16.mxu1 %v16950_v16  ;;  %v5401_v32 = vld [vmem:[#allocation20 + $0x1ca8] sm:$0xff] }
 0x9d5   : > { %11696 = vmatprep.subr.bf16.mxu0 %v16056_v26  ;;  %v5409_v16 = vld [vmem:[#allocation20 + $0x1ce8] sm:$0xff]  ;;  %v4506_v26 = vld [vmem:[#allocation20 + $0xb0] sm:$0xff] }
 0x9d6   : > { %v16854_v45 = vcombine.high %v5401_v32, %v5409_v16  ;;  %v16853_v52 = vcombine.low %v5401_v32, %v5409_v16  ;;  %v15959_v9 = vcombine.low %v4506_v26, %v4514_v25  ;;  %v16152_v32 = vcombine.high %v4698_v57, %v4706_v31  ;;  %v4810_v16 = vld [vmem:[#allocation20 + $0xa30] sm:$0xff] }
 0x9d7   : > { %v20964_v10 = vpop.f32.mrf.mxu0  ;;  %11647 = vmatmul.mubr.bf16.vlgmr.msra.gmra.mxu0 %v20802_v30  ;;  %11672 = vmatpush2.bf16.msra.mxu1 %v16949_v0  ;;  %v15960_v0 = vcombine.high %v4506_v26, %v4514_v25  ;;  %v4818_v26 = vld [vmem:[#allocation20 + $0xa70] sm:$0xff] }
 0x9d8   : > { %11697 = vmatpush1.bf16.msra.mxu0 %v16055_v15  ;;  %11728 = vmatprep.mubr.bf16.mxu0 %v20765_v1  ;;  %v5385_v15 = vld [vmem:[#allocation20 + $0x1c28] sm:$0xff] }
 0x9d9   : > { %v20968_v23 = vpop.f32.mrf.mxu0  ;;  %11673 = vmatprep.subr.bf16.mxu1 %v16934_v11  ;;  %11698 = vmatprep.subr.bf16.mxu0 %v16040_v49  ;;  %v5393_v11 = vld [vmem:[#allocation20 + $0x1c68] sm:$0xff]  ;;  %v4490_v49 = vld [vmem:[#allocation20 + $0x30] sm:$0xff] }
 0x9da   : > { %v16838_v6 = vcombine.high %v5385_v15, %v5393_v11  ;;  %v16837_v48 = vcombine.low %v5385_v15, %v5393_v11  ;;  %v15943_v3 = vcombine.low %v4490_v49, %v4498_v24  ;;  %v16264_v15 = vcombine.high %v4810_v16, %v4818_v26 }
 0x9db   : > { %v11406_v63 = vpop.f32.mrf.mxu0  ;;  %11674 = vmatpush2.bf16.msra.mxu1 %v16933_v58  ;;  %v15944_v58 = vcombine.high %v4490_v49, %v4498_v24  ;;  %v4794_v49 = vld [vmem:[#allocation20 + $0x9b0] sm:$0xff] }
 0x9dc   : > { %11699 = vmatpush1.bf16.msra.mxu0 %v16039_v43  ;;  %11675 = vmatprep.subr.bf16.mxu1 %v16918_v38  ;;  %v4858_v43 = vld [vmem:[#allocation20 + $0xbb0] sm:$0xff] }
 0x9dd   : > { %v11407_v28 = vpop.f32.mrf.mxu0  ;;  %11700 = vmatprep.subr.bf16.mxu0 %v16024_v53  ;;  %v4866_v38 = vld [vmem:[#allocation20 + $0xbf0] sm:$0xff]  ;;  %v20970_v53 = vld [vmem:[#allocation21 + $0x8] sm:$0xff] }
 0x9de   : > { %v16312_v63 = vcombine.high %v4858_v43, %v4866_v38  ;;  %v4850_v28 = vld [vmem:[#allocation20 + $0xb70] sm:$0xff]  ;;  %v5551_v62 = vrot.slane %v20970_v53, %v19511_v44  ;;  %v16311_v51 = vcombine.low %v4858_v43, %v4866_v38 }
 0x9df   : > { %11676 = vmatpush2.bf16.msra.mxu1 %v16917_v56  ;;  %v5547_v56 = vrot.slane %v20970_v53, %v19518_v47  ;;  %v4826_v47 = vld [vmem:[#allocation20 + $0xab0] sm:$0xff] }
 0x9e0   : > { %11701 = vmatpush1.bf16.msra.mxu0 %v16023_v2  ;;  %11677 = vmatprep.subr.bf16.mxu1 %v16902_v27  ;;  %v16184_v2 = vcombine.high %v4730_v59, %v4738_v13  ;;  %v4842_v27 = vld [vmem:[#allocation20 + $0xb30] sm:$0xff]  ;;  %v11405_v60 = vadd.f32 %v20968_v23, %v5551_v62 }
 0x9e1   : > { %11702 = vmatprep.subr.bf16.mxu0 %v16008_v19  ;;  %v4714_v19 = vld [vmem:[#allocation20 + $0x730] sm:$0xff] }
 0x9e2   : > { %v4690_v23 = vld [vmem:[#allocation20 + $0x670] sm:$0xff] }
 0x9e3   : > { %11678 = vmatpush2.bf16.msra.mxu1 %v16901_v41  ;;  %v16296_v41 = vcombine.high %v4842_v27, %v4850_v28  ;;  %v4802_v24 = vld [vmem:[#allocation20 + $0x9f0] sm:$0xff] }
 0x9e4   : > { %11703 = vmatpush1.bf16.msra.mxu0 %v16007_v21  ;;  %11679 = vmatprep.subr.bf16.mxu1 %v16886_v5  ;;  %v11403_v21 = vadd.f32 %v20964_v10, %v5547_v56  ;;  %v16168_v5 = vcombine.high %v4714_v19, %v4722_v4  ;;  %v16167_v10 = vcombine.low %v4714_v19, %v4722_v4  ;;  %v4778_v59 = vld [vmem:[#allocation20 + $0x930] sm:$0xff] }
 0x9e5   : > { %11704 = vmatprep.subr.bf16.mxu0 %v15992_v42  ;;  %v4834_v42 = vld [vmem:[#allocation20 + $0xaf0] sm:$0xff]  ;;  %v16248_v43 = vcombine.high %v4794_v49, %v4802_v24 }
 0x9e6   : > { %v4786_v13 = vld [vmem:[#allocation20 + $0x970] sm:$0xff] }
 0x9e7   : > { %11680 = vmatpush2.bf16.msra.mxu1 %v16885_v7  ;;  %v16295_v7 = vcombine.low %v4842_v27, %v4850_v28  ;;  %v4762_v28 = vld [vmem:[#allocation20 + $0x8b0] sm:$0xff] }
 0x9e8   : > { %11705 = vmatpush1.bf16.msra.mxu0 %v15991_v50  ;;  %11681 = vmatprep.subr.bf16.mxu1 %v16870_v12  ;;  %v16280_v12 = vcombine.high %v4826_v47, %v4834_v42  ;;  %v4770_v19 = vld [vmem:[#allocation20 + $0x8f0] sm:$0xff] }
 0x9e9   : > { %11706 = vmatprep.subr.bf16.mxu0 %v15976_v54  ;;  %v4634_v4 = vld [vmem:[#allocation20 + $0x4b0] sm:$0xff] }
 0x9ea   : > { %v4642_v62 = vld [vmem:[#allocation20 + $0x4f0] sm:$0xff] }
 0x9eb   : > { %11682 = vmatpush2.bf16.msra.mxu1 %v16869_v17  ;;  %v4682_v17 = vld [vmem:[#allocation20 + $0x630] sm:$0xff] }
 0x9ec   : > { %11707 = vmatpush1.bf16.msra.mxu0 %v15975_v40  ;;  %11683 = vmatprep.subr.bf16.mxu1 %v16854_v45  ;;  %v16279_v40 = vcombine.low %v4826_v47, %v4834_v42  ;;  %v16136_v11 = vcombine.high %v4682_v17, %v4690_v23  ;;  %v4754_v47 = vld [vmem:[#allocation20 + $0x870] sm:$0xff] }
 0x9ed   : > { %11708 = vmatprep.subr.bf16.mxu0 %v15960_v0  ;;  %v16151_v0 = vcombine.low %v4698_v57, %v4706_v31  ;;  %v4618_v42 = vld [vmem:[#allocation20 + $0x430] sm:$0xff]  ;;  %v16215_v57 = vcombine.low %v4762_v28, %v4770_v19  ;;  %v16087_v31 = vcombine.low %v4634_v4, %v4642_v62 }
 0x9ef   : > { %11684 = vmatpush2.bf16.msra.mxu1 %v16853_v52  ;;  %v4666_v52 = vld [vmem:[#allocation20 + $0x5b0] sm:$0xff] }
 0x9f0   : > { %11709 = vmatpush1.bf16.msra.mxu0 %v15959_v9  ;;  %11685 = vmatprep.subr.bf16.mxu1 %v16838_v6  ;;  %v4674_v9 = vld [vmem:[#allocation20 + $0x5f0] sm:$0xff]  ;;  %v16263_v6 = vcombine.low %v4810_v16, %v4818_v26 }
 0x9f1   : > { %11710 = vmatprep.subr.bf16.mxu0 %v15944_v58  ;;  %v16135_v58 = vcombine.low %v4682_v17, %v4690_v23  ;;  %v16120_v38 = vcombine.high %v4666_v52, %v4674_v9  ;;  %v16119_v56 = vcombine.low %v4666_v52, %v4674_v9  ;;  %v4970_v23 = vld [vmem:[#allocation20 + $0xf30] sm:$0xff] }
 0x9f2   : > { %v4954_v52 = vld [vmem:[#allocation20 + $0xeb0] sm:$0xff] }
 0x9f3   : > { %11686 = vmatpush2.bf16.msra.mxu1 %v16837_v48  ;;  %v4650_v48 = vld [vmem:[#allocation20 + $0x530] sm:$0xff] }
 0x9f4   : > { %11711 = vmatpush1.bf16.msra.mxu0 %v15943_v3  ;;  %11737 = vmatprep.subr.bf16.mxu1 %v16312_v63  ;;  %v4658_v3 = vld [vmem:[#allocation20 + $0x570] sm:$0xff]  ;;  %v16247_v63 = vcombine.low %v4794_v49, %v4802_v24 }
 0x9f5   : > { %11712 = vmatprep.subr.bf16.mxu0 %v16184_v2  ;;  %v16232_v2 = vcombine.high %v4778_v59, %v4786_v13  ;;  %v16104_v27 = vcombine.high %v4650_v48, %v4658_v3  ;;  %v4962_v9 = vld [vmem:[#allocation20 + $0xef0] sm:$0xff] }
 0x9f6   : > { %v11443_v35 = vpop.f32.mrf.mxu1  ;;  %11688 = vmatmul.mubr.bf16.vlgmr.msra.gmra.mxu1 %v20819_v22 }
 0x9f7   : > { %v20979_v44 = vadd.f32 %v11443_v35, %v11403_v21  ;;  %11738 = vmatpush1.bf16.msra.mxu1 %v16311_v51  ;;  %11769 = vmatprep.mubr.bf16.mxu1 %v20781_v34  ;;  %v16231_v51 = vcombine.low %v4778_v59, %v4786_v13  ;;  %v16088_v21 = vcombine.high %v4634_v4, %v4642_v62  ;;  %v4626_v35 = vld [vmem:[#allocation20 + $0x470] sm:$0xff] }
 0x9f8   : > { %v11445_v50 = vpop.f32.mrf.mxu1  ;;  %11713 = vmatpush2.bf16.msra.mxu0 %v16183_v39  ;;  %11739 = vmatprep.subr.bf16.mxu1 %v16296_v41  ;;  %v16103_v39 = vcombine.low %v4650_v48, %v4658_v3  ;;  %v16216_v41 = vcombine.high %v4762_v28, %v4770_v19  ;;  %v16071_v26 = vcombine.low %v4618_v42, %v4626_v35  ;;  %v5066_v28 = vld [vmem:[#allocation20 + $0x1230] sm:$0xff] }
 0x9f9   : > { %v20982_v54 = vadd.f32 %v11445_v50, %v11405_v60  ;;  %11714 = vmatprep.subr.bf16.mxu0 %v16168_v5  ;;  %v4746_v5 = vld [vmem:[#allocation20 + $0x830] sm:$0xff]  ;;  %v16408_v48 = vcombine.high %v4954_v52, %v4962_v9 }
 0x9fa   : > { %v11447_v25 = vpop.f32.mrf.mxu1  ;;  %v16200_v60 = vcombine.high %v4746_v5, %v4754_v47  ;;  %v4986_v50 = vld [vmem:[#allocation20 + $0xfb0] sm:$0xff]  ;;  %v16199_v16 = vcombine.low %v4746_v5, %v4754_v47 }
 0x9fb   : > { %11740 = vmatpush1.bf16.msra.mxu1 %v16295_v7  ;;  %v16072_v7 = vcombine.high %v4618_v42, %v4626_v35  ;;  %v5074_v19 = vld [vmem:[#allocation20 + $0x1270] sm:$0xff] }
 0x9fc   : > { %v11448_v45 = vpop.f32.mrf.mxu1  ;;  %11715 = vmatpush2.bf16.msra.mxu0 %v16167_v10  ;;  %11741 = vmatprep.subr.bf16.mxu1 %v16280_v12  ;;  %v4994_v10 = vld [vmem:[#allocation20 + $0xff0] sm:$0xff] }
 0x9fd   : > { %11716 = vmatprep.subr.bf16.mxu0 %v16152_v32  ;;  %v5114_v12 = vld [vmem:[#allocation20 + $0x13b0] sm:$0xff]  ;;  %v16440_v25 = vcombine.high %v4986_v50, %v4994_v10 }
 0x9fe   : > { %v5122_v32 = vld [vmem:[#allocation20 + $0x13f0] sm:$0xff] }
 0x9ff   : > { %11742 = vmatpush1.bf16.msra.mxu1 %v16279_v40  ;;  %v16568_v17 = vcombine.high %v5114_v12, %v5122_v32  ;;  %v4978_v40 = vld [vmem:[#allocation20 + $0xf70] sm:$0xff] }
 0xa00   : > { %11717 = vmatpush2.bf16.msra.mxu0 %v16151_v0  ;;  %11743 = vmatprep.subr.bf16.mxu1 %v16264_v15  ;;  %v5098_v45 = vld [vmem:[#allocation20 + $0x1330] sm:$0xff]  ;;  %v16439_v15 = vcombine.low %v4986_v50, %v4994_v10  ;;  %v16424_v49 = vcombine.high %v4970_v23, %v4978_v40 }
 0xa01   : > { %11718 = vmatprep.subr.bf16.mxu0 %v16136_v11  ;;  %v5106_v0 = vld [vmem:[#allocation20 + $0x1370] sm:$0xff]  ;;  %v16567_v11 = vcombine.low %v5114_v12, %v5122_v32 }
 0xa02   : > { %v16552_v24 = vcombine.high %v5098_v45, %v5106_v0  ;;  %v16551_v13 = vcombine.low %v5098_v45, %v5106_v0  ;;  %v4930_v5 = vld [vmem:[#allocation20 + $0xdf0] sm:$0xff] }
 0xa03   : > { %11744 = vmatpush1.bf16.msra.mxu1 %v16263_v6  ;;  %v5082_v6 = vld [vmem:[#allocation20 + $0x12b0] sm:$0xff] }
 0xa04   : > { %11719 = vmatpush2.bf16.msra.mxu0 %v16135_v58  ;;  %11745 = vmatprep.subr.bf16.mxu1 %v16248_v43  ;;  %v5090_v58 = vld [vmem:[#allocation20 + $0x12f0] sm:$0xff] }
 0xa05   : > { %11720 = vmatprep.subr.bf16.mxu0 %v16120_v38  ;;  %v16423_v38 = vcombine.low %v4970_v23, %v4978_v40  ;;  %v16535_v62 = vcombine.low %v5082_v6, %v5090_v58  ;;  %v5050_v47 = vld [vmem:[#allocation20 + $0x11b0] sm:$0xff] }
 0xa06   : > { %v5058_v42 = vld [vmem:[#allocation20 + $0x11f0] sm:$0xff] }
 0xa07   : > { %11746 = vmatpush1.bf16.msra.mxu1 %v16247_v63  ;;  %v16536_v63 = vcombine.high %v5082_v6, %v5090_v58  ;;  %v5034_v50 = vld [vmem:[#allocation20 + $0x1130] sm:$0xff]  ;;  %v16503_v32 = vcombine.low %v5050_v47, %v5058_v42 }
 0xa08   : > { %11721 = vmatpush2.bf16.msra.mxu0 %v16119_v56  ;;  %11747 = vmatprep.subr.bf16.mxu1 %v16232_v2  ;;  %v4938_v56 = vld [vmem:[#allocation20 + $0xe30] sm:$0xff] }
 0xa09   : > { %11722 = vmatprep.subr.bf16.mxu0 %v16104_v27  ;;  %v4946_v2 = vld [vmem:[#allocation20 + $0xe70] sm:$0xff] }
 0xa0a   : > { %v16391_v35 = vcombine.low %v4938_v56, %v4946_v2  ;;  %v5042_v10 = vld [vmem:[#allocation20 + $0x1170] sm:$0xff] }
 0xa0b   : > { %11748 = vmatpush1.bf16.msra.mxu1 %v16231_v51  ;;  %v16392_v51 = vcombine.high %v4938_v56, %v4946_v2  ;;  %v5018_v23 = vld [vmem:[#allocation20 + $0x10b0] sm:$0xff]  ;;  %v16487_v0 = vcombine.low %v5034_v50, %v5042_v10 }
 0xa0c   : > { %11723 = vmatpush2.bf16.msra.mxu0 %v16103_v39  ;;  %11749 = vmatprep.subr.bf16.mxu1 %v16216_v41  ;;  %v16520_v41 = vcombine.high %v5066_v28, %v5074_v19  ;;  %v5026_v40 = vld [vmem:[#allocation20 + $0x10f0] sm:$0xff] }
 0xa0d   : > { %11724 = vmatprep.subr.bf16.mxu0 %v16088_v21  ;;  %v4922_v21 = vld [vmem:[#allocation20 + $0xdb0] sm:$0xff]  ;;  %v16471_v58 = vcombine.low %v5018_v23, %v5026_v40 }
 0xa0e   : > { %v16375_v12 = vcombine.low %v4922_v21, %v4930_v5 }
 0xa0f   : > { %11750 = vmatpush1.bf16.msra.mxu1 %v16215_v57  ;;  %v16376_v57 = vcombine.high %v4922_v21, %v4930_v5 }
 0xa10   : > { %11725 = vmatpush2.bf16.msra.mxu0 %v16087_v31  ;;  %11751 = vmatprep.subr.bf16.mxu1 %v16200_v60  ;;  %v16504_v31 = vcombine.high %v5050_v47, %v5058_v42  ;;  %v4906_v60 = vld [vmem:[#allocation20 + $0xd30] sm:$0xff] }
 0xa11   : > { %11726 = vmatprep.subr.bf16.mxu0 %v16072_v7  ;;  %v4914_v7 = vld [vmem:[#allocation20 + $0xd70] sm:$0xff] }
 0xa12   : > { %v16359_v45 = vcombine.low %v4906_v60, %v4914_v7  ;;  %v5338_v47 = vld [vmem:[#allocation20 + $0x1ab0] sm:$0xff] }
 0xa13   : > { %11752 = vmatpush1.bf16.msra.mxu1 %v16199_v16  ;;  %v16360_v16 = vcombine.high %v4906_v60, %v4914_v7  ;;  %v5346_v42 = vld [vmem:[#allocation20 + $0x1af0] sm:$0xff] }
 0xa14   : > { %11727 = vmatpush2.bf16.msra.mxu0 %v16071_v26  ;;  %11753 = vmatprep.subr.bf16.mxu1 %v16440_v25  ;;  %v16488_v26 = vcombine.high %v5034_v50, %v5042_v10  ;;  %v4890_v25 = vld [vmem:[#allocation20 + $0xcb0] sm:$0xff]  ;;  %v16792_v10 = vcombine.high %v5338_v47, %v5346_v42 }
 0xa15   : > { %11778 = vmatprep.subr.bf16.mxu0 %v16568_v17  ;;  %v4898_v17 = vld [vmem:[#allocation20 + $0xcf0] sm:$0xff] }
 0xa16   : > { %v16343_v6 = vcombine.low %v4890_v25, %v4898_v17 }
 0xa17   : > { %v11484_v43 = vpop.f32.mrf.mxu0  ;;  %11729 = vmatmul.mubr.bf16.vlgmr.msra.gmra.mxu0 %v20767_v8  ;;  %11754 = vmatpush2.bf16.msra.mxu1 %v16439_v15  ;;  %v16344_v15 = vcombine.high %v4890_v25, %v4898_v17  ;;  %v5194_v17 = vld [vmem:[#allocation20 + $0x1630] sm:$0xff] }
 0xa18   : > { %v20986_v59 = vadd.f32 %v11484_v43, %v20979_v44  ;;  %11779 = vmatpush1.bf16.msra.mxu0 %v16567_v11  ;;  %11810 = vmatprep.mubr.bf16.mxu0 %v20800_v29  ;;  %v16407_v44 = vcombine.low %v4954_v52, %v4962_v9  ;;  %v16472_v11 = vcombine.high %v5018_v23, %v5026_v40  ;;  %v5002_v52 = vld [vmem:[#allocation20 + $0x1030] sm:$0xff] }
 0xa19   : > { %v11486_v3 = vpop.f32.mrf.mxu0  ;;  %11755 = vmatprep.subr.bf16.mxu1 %v16424_v49  ;;  %11780 = vmatprep.subr.bf16.mxu0 %v16552_v24  ;;  %v4874_v49 = vld [vmem:[#allocation20 + $0xc30] sm:$0xff] }
 0xa1a   : > { %v20990_v27 = vadd.f32 %v11486_v3, %v20982_v54  ;;  %v16519_v54 = vcombine.low %v5066_v28, %v5074_v19  ;;  %v4882_v24 = vld [vmem:[#allocation20 + $0xc70] sm:$0xff] }
 0xa1b   : > { %v11488_v4 = vpop.f32.mrf.mxu0  ;;  %11756 = vmatpush2.bf16.msra.mxu1 %v16423_v38  ;;  %v5010_v9 = vld [vmem:[#allocation20 + $0x1070] sm:$0xff]  ;;  %v16328_v43 = vcombine.high %v4874_v49, %v4882_v24  ;;  %v16327_v56 = vcombine.low %v4874_v49, %v4882_v24 }
 0xa1c   : > { %11781 = vmatpush1.bf16.msra.mxu0 %v16551_v13  ;;  %11757 = vmatprep.subr.bf16.mxu1 %v16408_v48  ;;  %v16456_v38 = vcombine.high %v5002_v52, %v5010_v9  ;;  %v5370_v13 = vld [vmem:[#allocation20 + $0x1bb0] sm:$0xff]  ;;  %v16455_v2 = vcombine.low %v5002_v52, %v5010_v9 }
 0xa1d   : > { %v11489_v39 = vpop.f32.mrf.mxu0  ;;  %11782 = vmatprep.subr.bf16.mxu0 %v16536_v63  ;;  %v5378_v48 = vld [vmem:[#allocation20 + $0x1bf0] sm:$0xff] }
 0xa1e   : > { %v5242_v3 = vld [vmem:[#allocation20 + $0x17b0] sm:$0xff]  ;;  %v16824_v28 = vcombine.high %v5370_v13, %v5378_v48  ;;  %v16823_v39 = vcombine.low %v5370_v13, %v5378_v48 }
 0xa1f   : > { %11758 = vmatpush2.bf16.msra.mxu1 %v16407_v44  ;;  %v5250_v63 = vld [vmem:[#allocation20 + $0x17f0] sm:$0xff] }
 0xa20   : > { %11783 = vmatpush1.bf16.msra.mxu0 %v16535_v62  ;;  %11759 = vmatprep.subr.bf16.mxu1 %v16392_v51  ;;  %v16696_v19 = vcombine.high %v5242_v3, %v5250_v63  ;;  %v5354_v4 = vld [vmem:[#allocation20 + $0x1b30] sm:$0xff] }
 0xa21   : > { %11784 = vmatprep.subr.bf16.mxu0 %v16520_v41  ;;  %v5362_v44 = vld [vmem:[#allocation20 + $0x1b70] sm:$0xff]  ;;  %v16695_v41 = vcombine.low %v5242_v3, %v5250_v63 }
 0xa22   : > { %v5226_v62 = vld [vmem:[#allocation20 + $0x1730] sm:$0xff]  ;;  %v16808_v21 = vcombine.high %v5354_v4, %v5362_v44  ;;  %v16807_v60 = vcombine.low %v5354_v4, %v5362_v44 }
 0xa23   : > { %11760 = vmatpush2.bf16.msra.mxu1 %v16391_v35  ;;  %v5234_v51 = vld [vmem:[#allocation20 + $0x1770] sm:$0xff] }
 0xa24   : > { %11785 = vmatpush1.bf16.msra.mxu0 %v16519_v54  ;;  %11761 = vmatprep.subr.bf16.mxu1 %v16376_v57  ;;  %v16680_v5 = vcombine.high %v5226_v62, %v5234_v51  ;;  %v5210_v54 = vld [vmem:[#allocation20 + $0x16b0] sm:$0xff]  ;;  %v16679_v50 = vcombine.low %v5226_v62, %v5234_v51 }
 0xa25   : > { %11786 = vmatprep.subr.bf16.mxu0 %v16504_v31  ;;  %v5218_v57 = vld [vmem:[#allocation20 + $0x16f0] sm:$0xff] }
 0xa26   : > { %v5202_v23 = vld [vmem:[#allocation20 + $0x1670] sm:$0xff] }
 0xa27   : > { %11762 = vmatpush2.bf16.msra.mxu1 %v16375_v12  ;;  %v5306_v24 = vld [vmem:[#allocation20 + $0x19b0] sm:$0xff] }
 0xa28   : > { %11787 = vmatpush1.bf16.msra.mxu0 %v16503_v32  ;;  %11763 = vmatprep.subr.bf16.mxu1 %v16360_v16  ;;  %v16664_v32 = vcombine.high %v5210_v54, %v5218_v57  ;;  %v5322_v16 = vld [vmem:[#allocation20 + $0x1a30] sm:$0xff] }
 0xa29   : > { %11788 = vmatprep.subr.bf16.mxu0 %v16488_v26  ;;  %v5330_v26 = vld [vmem:[#allocation20 + $0x1a70] sm:$0xff] }
 0xa2a   : > { %v5314_v52 = vld [vmem:[#allocation20 + $0x19f0] sm:$0xff] }
 0xa2b   : > { %11764 = vmatpush2.bf16.msra.mxu1 %v16359_v45  ;;  %v16791_v45 = vcombine.low %v5338_v47, %v5346_v42  ;;  %v5178_v9 = vld [vmem:[#allocation20 + $0x15b0] sm:$0xff] }
 0xa2c   : > { %11789 = vmatpush1.bf16.msra.mxu0 %v16487_v0  ;;  %11765 = vmatprep.subr.bf16.mxu1 %v16344_v15  ;;  %v16663_v15 = vcombine.low %v5210_v54, %v5218_v57  ;;  %v5290_v48 = vld [vmem:[#allocation20 + $0x1930] sm:$0xff] }
 0xa2d   : > { %11790 = vmatprep.subr.bf16.mxu0 %v16472_v11  ;;  %v16776_v11 = vcombine.high %v5322_v16, %v5330_v26  ;;  %v5298_v3 = vld [vmem:[#allocation20 + $0x1970] sm:$0xff] }
 0xa2e   : > { %v5162_v63 = vld [vmem:[#allocation20 + $0x1530] sm:$0xff] }
 0xa2f   : > { %11766 = vmatpush2.bf16.msra.mxu1 %v16343_v6  ;;  %v5186_v6 = vld [vmem:[#allocation20 + $0x15f0] sm:$0xff] }
 0xa30   : > { %11791 = vmatpush1.bf16.msra.mxu0 %v16471_v58  ;;  %11767 = vmatprep.subr.bf16.mxu1 %v16328_v43  ;;  %v16775_v58 = vcombine.low %v5322_v16, %v5330_v26  ;;  %v16647_v43 = vcombine.low %v5194_v17, %v5202_v23  ;;  %v16632_v13 = vcombine.high %v5178_v9, %v5186_v6  ;;  %v5274_v44 = vld [vmem:[#allocation20 + $0x18b0] sm:$0xff]  ;;  %v4611_v16 = vld [vmem:[#allocation20 + $0x3f8] sm:$0xff] }
 0xa31   : > { %11792 = vmatprep.subr.bf16.mxu0 %v16456_v38  ;;  %v16760_v38 = vcombine.high %v5306_v24, %v5314_v52  ;;  %v5282_v62 = vld [vmem:[#allocation20 + $0x18f0] sm:$0xff] }
 0xa32   : > { %v5146_v51 = vld [vmem:[#allocation20 + $0x14b0] sm:$0xff] }
 0xa33   : > { %11768 = vmatpush2.bf16.msra.mxu1 %v16327_v56  ;;  %v5170_v56 = vld [vmem:[#allocation20 + $0x1570] sm:$0xff] }
 0xa34   : > { %11793 = vmatpush1.bf16.msra.mxu0 %v16455_v2  ;;  %11819 = vmatprep.subr.bf16.mxu1 %v16824_v28  ;;  %v16759_v2 = vcombine.low %v5306_v24, %v5314_v52  ;;  %v16631_v28 = vcombine.low %v5178_v9, %v5186_v6  ;;  %v16616_v4 = vcombine.high %v5162_v63, %v5170_v56  ;;  %v5258_v42 = vld [vmem:[#allocation20 + $0x1830] sm:$0xff]  ;;  %v4571_v6 = vld [vmem:[#allocation20 + $0x2b8] sm:$0xff] }
 0xa35   : > { %11794 = vmatprep.subr.bf16.mxu0 %v16696_v19  ;;  %v16744_v19 = vcombine.high %v5290_v48, %v5298_v3  ;;  %v5130_v54 = vld [vmem:[#allocation20 + $0x1430] sm:$0xff] }
 0xa36   : > { %v11525_v35 = vpop.f32.mrf.mxu1  ;;  %11770 = vmatmul.mubr.bf16.vlgmr.msra.gmra.mxu1 %v20783_v33  ;;  %v5138_v57 = vld [vmem:[#allocation20 + $0x1470] sm:$0xff] }
 0xa37   : > { %v11526_v31 = vadd.f32 %v11525_v35, %v20986_v59  ;;  %11820 = vmatpush1.bf16.msra.mxu1 %v16823_v39  ;;  %11851 = vmatprep.mubr.bf16.mxu1 %v20817_v14  ;;  %v5154_v39 = vld [vmem:[#allocation20 + $0x14f0] sm:$0xff] }
 0xa38   : > { %v11527_v7 = vpop.f32.mrf.mxu1  ;;  %11795 = vmatpush2.bf16.msra.mxu0 %v16695_v41  ;;  %11821 = vmatprep.subr.bf16.mxu1 %v16808_v21  ;;  %v16743_v41 = vcombine.low %v5290_v48, %v5298_v3  ;;  %v16615_v21 = vcombine.low %v5162_v63, %v5170_v56  ;;  %v16600_v47 = vcombine.high %v5146_v51, %v5154_v39  ;;  %v5266_v35 = vld [vmem:[#allocation20 + $0x1870] sm:$0xff] }
 0xa39   : > { %v11528_v12 = vadd.f32 %v11527_v7, %v20990_v27  ;;  %11796 = vmatprep.subr.bf16.mxu0 %v16680_v5  ;;  %v12032_v40 = vmax.f32 %v11526_v31, 0.0  ;;  %v16648_v27 = vcombine.high %v5194_v17, %v5202_v23  ;;  %v16728_v5 = vcombine.high %v5274_v44, %v5282_v62  ;;  %v5466_v52 = vld [vmem:[#allocation20 + $0x1eb0] sm:$0xff] }
 0xa3a   : > { %v11529_v25 = vpop.f32.mrf.mxu1  ;;  %v16727_v31 = vcombine.low %v5274_v44, %v5282_v62  ;;  %v16712_v7 = vcombine.high %v5258_v42, %v5266_v35  ;;  %v16711_v26 = vcombine.low %v5258_v42, %v5266_v35  ;;  %v5474_v9 = vld [vmem:[#allocation20 + $0x1ef0] sm:$0xff] }
 0xa3b   : > { %v12033_v59 = vmax.f32 %v11528_v12, 0.0  ;;  %11822 = vmatpush1.bf16.msra.mxu1 %v16807_v60  ;;  %v16599_v60 = vcombine.low %v5146_v51, %v5154_v39  ;;  %v5506_v12 = vld [vmem:[#allocation20 + $0x1ff0] sm:$0xff]  ;;  %v16583_v25 = vcombine.low %v5130_v54, %v5138_v57  ;;  %v16920_v48 = vcombine.high %v5466_v52, %v5474_v9 }
 0xa3c   : > { %v11530_v0 = vpop.f32.mrf.mxu1  ;;  %11797 = vmatpush2.bf16.msra.mxu0 %v16679_v50  ;;  %11823 = vmatprep.subr.bf16.mxu1 %v16792_v10  ;;  %v16584_v50 = vcombine.high %v5130_v54, %v5138_v57  ;;  %v5498_v10 = vld [vmem:[#allocation20 + $0x1fb0] sm:$0xff]  ;;  %v16919_v44 = vcombine.low %v5466_v52, %v5474_v9 }
 0xa3d   : > { %v20996_v49 = vpack.c.bf16 %v12033_v59, %v12032_v40  ;;  %11798 = vmatprep.subr.bf16.mxu0 %v16664_v32  ;;  %v4603_v32 = vld [vmem:[#allocation20 + $0x3b8] sm:$0xff]  ;;  %v16952_v17 = vcombine.high %v5498_v10, %v5506_v12  ;;  %v5482_v40 = vld [vmem:[#allocation20 + $0x1f30] sm:$0xff] }
 0xa3e   : > { %v16058_v23 = vcombine.high %v4603_v32, %v4611_v16  ;;  %v5490_v59 = vld [vmem:[#allocation20 + $0x1f70] sm:$0xff]  ;;  %v4595_v0 = vld [vmem:[#allocation20 + $0x378] sm:$0xff] }
 0xa3f   : > { %11824 = vmatpush1.bf16.msra.mxu1 %v16791_v45  ;;  %v4587_v45 = vld [vmem:[#allocation20 + $0x338] sm:$0xff]  ;;  %v5450_v56 = vld [vmem:[#allocation20 + $0x1e30] sm:$0xff] }
 0xa40   : > { %11799 = vmatpush2.bf16.msra.mxu0 %v16663_v15  ;;  %11825 = vmatprep.subr.bf16.mxu1 %v16776_v11  ;;  %v16951_v15 = vcombine.low %v5498_v10, %v5506_v12  ;;  %v16057_v11 = vcombine.low %v4603_v32, %v4611_v16  ;;  %v16042_v24 = vcombine.high %v4587_v45, %v4595_v0 }
 0xa41   : > { %11800 = vmatprep.subr.bf16.mxu0 %v16648_v27  ;;  %v16936_v27 = vcombine.high %v5482_v40, %v5490_v59 }
 0xa43   : > { %11826 = vmatpush1.bf16.msra.mxu1 %v16775_v58  ;;  %v4579_v58 = vld [vmem:[#allocation20 + $0x2f8] sm:$0xff] }
 0xa44   : > { %11801 = vmatpush2.bf16.msra.mxu0 %v16647_v43  ;;  %11827 = vmatprep.subr.bf16.mxu1 %v16760_v38  ;;  %v16935_v38 = vcombine.low %v5482_v40, %v5490_v59  ;;  %v16026_v63 = vcombine.high %v4571_v6, %v4579_v58  ;;  %v16025_v62 = vcombine.low %v4571_v6, %v4579_v58 }
 0xa45   : > { %11802 = vmatprep.subr.bf16.mxu0 %v16632_v13  ;;  %v16041_v13 = vcombine.low %v4587_v45, %v4595_v0 }
 0xa47   : > { %11828 = vmatpush1.bf16.msra.mxu1 %v16759_v2  ;;  %v5458_v2 = vld [vmem:[#allocation20 + $0x1e70] sm:$0xff] }
 0xa48   : > { %11803 = vmatpush2.bf16.msra.mxu0 %v16631_v28  ;;  %11829 = vmatprep.subr.bf16.mxu1 %v16744_v19  ;;  %v4555_v28 = vld [vmem:[#allocation20 + $0x238] sm:$0xff]  ;;  %v16904_v51 = vcombine.high %v5450_v56, %v5458_v2  ;;  %v16903_v42 = vcombine.low %v5450_v56, %v5458_v2 }
 0xa49   : > { %11804 = vmatprep.subr.bf16.mxu0 %v16616_v4  ;;  %v4563_v19 = vld [vmem:[#allocation20 + $0x278] sm:$0xff] }
 0xa4a   : > { %v16009_v35 = vcombine.low %v4555_v28, %v4563_v19 }
 0xa4b   : > { %11830 = vmatpush1.bf16.msra.mxu1 %v16743_v41  ;;  %v5434_v41 = vld [vmem:[#allocation20 + $0x1db0] sm:$0xff] }
 0xa4c   : > { %11805 = vmatpush2.bf16.msra.mxu0 %v16615_v21  ;;  %11831 = vmatprep.subr.bf16.mxu1 %v16728_v5  ;;  %v5442_v21 = vld [vmem:[#allocation20 + $0x1df0] sm:$0xff]  ;;  %v4539_v5 = vld [vmem:[#allocation20 + $0x1b8] sm:$0xff] }
 0xa4d   : > { %11806 = vmatprep.subr.bf16.mxu0 %v16600_v47  ;;  %v4547_v47 = vld [vmem:[#allocation20 + $0x1f8] sm:$0xff]  ;;  %v16888_v54 = vcombine.high %v5434_v41, %v5442_v21  ;;  %v16887_v10 = vcombine.low %v5434_v41, %v5442_v21 }
 0xa4e   : > { %v15994_v57 = vcombine.high %v4539_v5, %v4547_v47  ;;  %v15993_v12 = vcombine.low %v4539_v5, %v4547_v47 }
 0xa4f   : > { %11832 = vmatpush1.bf16.msra.mxu1 %v16727_v31  ;;  %v5418_v31 = vld [vmem:[#allocation20 + $0x1d30] sm:$0xff] }
 0xa50   : > { %11807 = vmatpush2.bf16.msra.mxu0 %v16599_v60  ;;  %11833 = vmatprep.subr.bf16.mxu1 %v16712_v7  ;;  %v5426_v60 = vld [vmem:[#allocation20 + $0x1d70] sm:$0xff]  ;;  %v4523_v7 = vld [vmem:[#allocation20 + $0x138] sm:$0xff] }
 0xa51   : > { %11808 = vmatprep.subr.bf16.mxu0 %v16584_v50  ;;  %v4531_v50 = vld [vmem:[#allocation20 + $0x178] sm:$0xff]  ;;  %v16872_v32 = vcombine.high %v5418_v31, %v5426_v60  ;;  %v16871_v40 = vcombine.low %v5418_v31, %v5426_v60 }
 0xa52   : > { %v15978_v16 = vcombine.high %v4523_v7, %v4531_v50  ;;  %v15977_v59 = vcombine.low %v4523_v7, %v4531_v50  ;;  %v4707_v31 = vld [vmem:[#allocation20 + $0x6f8] sm:$0xff] }
 0xa53   : > { %11834 = vmatpush1.bf16.msra.mxu1 %v16711_v26  ;;  %v5402_v26 = vld [vmem:[#allocation20 + $0x1cb0] sm:$0xff] }
 0xa54   : > { %11809 = vmatpush2.bf16.msra.mxu0 %v16583_v25  ;;  %11835 = vmatprep.subr.bf16.mxu1 %v16952_v17  ;;  %v5410_v25 = vld [vmem:[#allocation20 + $0x1cf0] sm:$0xff]  ;;  %v4507_v17 = vld [vmem:[#allocation20 + $0xb8] sm:$0xff] }
 0xa55   : > { %11860 = vmatprep.subr.bf16.mxu0 %v16058_v23  ;;  %v4515_v23 = vld [vmem:[#allocation20 + $0xf8] sm:$0xff]  ;;  %v16856_v45 = vcombine.high %v5402_v26, %v5410_v25  ;;  %v16855_v52 = vcombine.low %v5402_v26, %v5410_v25 }
 0xa56   : > { %v15962_v0 = vcombine.high %v4507_v17, %v4515_v23  ;;  %v15961_v9 = vcombine.low %v4507_v17, %v4515_v23  ;;  %v4683_v25 = vld [vmem:[#allocation20 + $0x638] sm:$0xff] }
 0xa57   : > { %v20998_v43 = vpop.f32.mrf.mxu0  ;;  %11811 = vmatmul.mubr.bf16.vlgmr.msra.gmra.mxu0 %v20802_v30  ;;  %11836 = vmatpush2.bf16.msra.mxu1 %v16951_v15  ;;  %v5386_v15 = vld [vmem:[#allocation20 + $0x1c30] sm:$0xff] }
 0xa58   : > { %11861 = vmatpush1.bf16.msra.mxu0 %v16057_v11  ;;  %11892 = vmatprep.mubr.bf16.mxu0 %v20765_v1  ;;  %v16010_v1 = vcombine.high %v4555_v28, %v4563_v19  ;;  %v5394_v11 = vld [vmem:[#allocation20 + $0x1c70] sm:$0xff]  ;;  %v5555_v19 = vrot.slane %v20970_v53, %v19515_v46  ;;  %v4827_v46 = vld [vmem:[#allocation20 + $0xab8] sm:$0xff] }
 0xa59   : > { %v21002_v3 = vpop.f32.mrf.mxu0  ;;  %11837 = vmatprep.subr.bf16.mxu1 %v16936_v27  ;;  %11862 = vmatprep.subr.bf16.mxu0 %v16042_v24  ;;  %v4491_v27 = vld [vmem:[#allocation20 + $0x38] sm:$0xff]  ;;  %v16840_v6 = vcombine.high %v5386_v15, %v5394_v11  ;;  %v16839_v56 = vcombine.low %v5386_v15, %v5394_v11 }
 0xa5a   : > { %v4499_v24 = vld [vmem:[#allocation20 + $0x78] sm:$0xff]  ;;  %v11567_v47 = vadd.f32 %v20998_v43, %v5555_v19 }
 0xa5b   : > { %v11570_v4 = vpop.f32.mrf.mxu0  ;;  %11838 = vmatpush2.bf16.msra.mxu1 %v16935_v38  ;;  %v15946_v58 = vcombine.high %v4491_v27, %v4499_v24  ;;  %v4859_v38 = vld [vmem:[#allocation20 + $0xbb8] sm:$0xff]  ;;  %v15945_v2 = vcombine.low %v4491_v27, %v4499_v24 }
 0xa5c   : > { %11863 = vmatpush1.bf16.msra.mxu0 %v16041_v13  ;;  %11839 = vmatprep.subr.bf16.mxu1 %v16920_v48  ;;  %v4867_v13 = vld [vmem:[#allocation20 + $0xbf8] sm:$0xff] }
 0xa5d   : > { %v11571_v39 = vpop.f32.mrf.mxu0  ;;  %11864 = vmatprep.subr.bf16.mxu0 %v16026_v63  ;;  %v4731_v48 = vld [vmem:[#allocation20 + $0x7b8] sm:$0xff]  ;;  %v16314_v28 = vcombine.high %v4859_v38, %v4867_v13  ;;  %v16313_v41 = vcombine.low %v4859_v38, %v4867_v13 }
 0xa5e   : > { %v4739_v63 = vld [vmem:[#allocation20 + $0x7f8] sm:$0xff] }
 0xa5f   : > { %11840 = vmatpush2.bf16.msra.mxu1 %v16919_v44  ;;  %v16186_v4 = vcombine.high %v4731_v48, %v4739_v63  ;;  %v4843_v44 = vld [vmem:[#allocation20 + $0xb38] sm:$0xff]  ;;  %v16185_v21 = vcombine.low %v4731_v48, %v4739_v63 }
 0xa60   : > { %11865 = vmatpush1.bf16.msra.mxu0 %v16025_v62  ;;  %11841 = vmatprep.subr.bf16.mxu1 %v16904_v51  ;;  %v4851_v62 = vld [vmem:[#allocation20 + $0xb78] sm:$0xff] }
 0xa61   : > { %11866 = vmatprep.subr.bf16.mxu0 %v16010_v1  ;;  %v4715_v51 = vld [vmem:[#allocation20 + $0x738] sm:$0xff]  ;;  %v5559_v1 = vrot.slane %v20970_v53, %v20775_v18  ;;  %v16298_v5 = vcombine.high %v4843_v44, %v4851_v62  ;;  %v16297_v53 = vcombine.low %v4843_v44, %v4851_v62 }
 0xa62   : > { %v4723_v39 = vld [vmem:[#allocation20 + $0x778] sm:$0xff] }
 0xa63   : > { %11842 = vmatpush2.bf16.msra.mxu1 %v16903_v42  ;;  %v16170_v42 = vcombine.high %v4715_v51, %v4723_v39  ;;  %v11569_v60 = vadd.f32 %v21002_v3, %v5559_v1  ;;  %v16169_v43 = vcombine.low %v4715_v51, %v4723_v39  ;;  %v4691_v3 = vld [vmem:[#allocation20 + $0x678] sm:$0xff] }
 0xa64   : > { %11867 = vmatpush1.bf16.msra.mxu0 %v16009_v35  ;;  %11843 = vmatprep.subr.bf16.mxu1 %v16888_v54  ;;  %v4835_v35 = vld [vmem:[#allocation20 + $0xaf8] sm:$0xff]  ;;  %v16137_v24 = vcombine.low %v4683_v25, %v4691_v3 }
 0xa65   : > { %11868 = vmatprep.subr.bf16.mxu0 %v15994_v57  ;;  %v4699_v57 = vld [vmem:[#allocation20 + $0x6b8] sm:$0xff]  ;;  %v16282_v50 = vcombine.high %v4827_v46, %v4835_v35  ;;  %v16281_v17 = vcombine.low %v4827_v46, %v4835_v35 }
 0xa66   : > { %v4667_v15 = vld [vmem:[#allocation20 + $0x5b8] sm:$0xff] }
 0xa67   : > { %11844 = vmatpush2.bf16.msra.mxu1 %v16887_v10  ;;  %v4675_v11 = vld [vmem:[#allocation20 + $0x5f8] sm:$0xff] }
 0xa68   : > { %11869 = vmatpush1.bf16.msra.mxu0 %v15993_v12  ;;  %11845 = vmatprep.subr.bf16.mxu1 %v16872_v32  ;;  %v16154_v12 = vcombine.high %v4699_v57, %v4707_v31  ;;  %v4811_v32 = vld [vmem:[#allocation20 + $0xa38] sm:$0xff]  ;;  %v16121_v63 = vcombine.low %v4667_v15, %v4675_v11 }
 0xa69   : > { %11870 = vmatprep.subr.bf16.mxu0 %v15978_v16  ;;  %v4819_v16 = vld [vmem:[#allocation20 + $0xa78] sm:$0xff] }
 0xa6a   : > { %v16265_v27 = vcombine.low %v4811_v32, %v4819_v16  ;;  %v4651_v38 = vld [vmem:[#allocation20 + $0x538] sm:$0xff] }
 0xa6b   : > { %11846 = vmatpush2.bf16.msra.mxu1 %v16871_v40  ;;  %v16266_v40 = vcombine.high %v4811_v32, %v4819_v16  ;;  %v4659_v13 = vld [vmem:[#allocation20 + $0x578] sm:$0xff] }
 0xa6c   : > { %11871 = vmatpush1.bf16.msra.mxu0 %v15977_v59  ;;  %11847 = vmatprep.subr.bf16.mxu1 %v16856_v45  ;;  %v16138_v59 = vcombine.high %v4683_v25, %v4691_v3  ;;  %v4795_v45 = vld [vmem:[#allocation20 + $0x9b8] sm:$0xff]  ;;  %v16105_v51 = vcombine.low %v4651_v38, %v4659_v13 }
 0xa6d   : > { %11872 = vmatprep.subr.bf16.mxu0 %v15962_v0  ;;  %v4803_v0 = vld [vmem:[#allocation20 + $0x9f8] sm:$0xff] }
 0xa6e   : > { %v16249_v48 = vcombine.low %v4795_v45, %v4803_v0  ;;  %v4771_v19 = vld [vmem:[#allocation20 + $0x8f8] sm:$0xff] }
 0xa6f   : > { %11848 = vmatpush2.bf16.msra.mxu1 %v16855_v52  ;;  %v16250_v52 = vcombine.high %v4795_v45, %v4803_v0  ;;  %v4643_v44 = vld [vmem:[#allocation20 + $0x4f8] sm:$0xff] }
 0xa70   : > { %11873 = vmatpush1.bf16.msra.mxu0 %v15961_v9  ;;  %11849 = vmatprep.subr.bf16.mxu1 %v16840_v6  ;;  %v16122_v9 = vcombine.high %v4667_v15, %v4675_v11  ;;  %v4779_v6 = vld [vmem:[#allocation20 + $0x938] sm:$0xff] }
 0xa71   : > { %11874 = vmatprep.subr.bf16.mxu0 %v15946_v58  ;;  %v4787_v58 = vld [vmem:[#allocation20 + $0x978] sm:$0xff] }
 0xa72   : > { %v16233_v62 = vcombine.low %v4779_v6, %v4787_v58  ;;  %v4971_v32 = vld [vmem:[#allocation20 + $0xf38] sm:$0xff] }
 0xa73   : > { %11850 = vmatpush2.bf16.msra.mxu1 %v16839_v56  ;;  %v16234_v56 = vcombine.high %v4779_v6, %v4787_v58  ;;  %v4979_v16 = vld [vmem:[#allocation20 + $0xf78] sm:$0xff] }
 0xa74   : > { %11875 = vmatpush1.bf16.msra.mxu0 %v15945_v2  ;;  %11901 = vmatprep.subr.bf16.mxu1 %v16314_v28  ;;  %v16106_v2 = vcombine.high %v4651_v38, %v4659_v13  ;;  %v4763_v28 = vld [vmem:[#allocation20 + $0x8b8] sm:$0xff]  ;;  %v16425_v11 = vcombine.low %v4971_v32, %v4979_v16 }
 0xa75   : > { %11876 = vmatprep.subr.bf16.mxu0 %v16186_v4  ;;  %v4635_v4 = vld [vmem:[#allocation20 + $0x4b8] sm:$0xff]  ;;  %v16218_v39 = vcombine.high %v4763_v28, %v4771_v19 }
 0xa76   : > { %v11607_v54 = vpop.f32.mrf.mxu1  ;;  %11852 = vmatmul.mubr.bf16.vlgmr.msra.gmra.mxu1 %v20819_v22  ;;  %v16090_v1 = vcombine.high %v4635_v4, %v4643_v44  ;;  %v16089_v46 = vcombine.low %v4635_v4, %v4643_v44  ;;  %v5107_v25 = vld [vmem:[#allocation20 + $0x1378] sm:$0xff] }
 0xa77   : > { %v21011_v18 = vadd.f32 %v11607_v54, %v11567_v47  ;;  %11902 = vmatpush1.bf16.msra.mxu1 %v16313_v41  ;;  %11933 = vmatprep.mubr.bf16.mxu1 %v20781_v34  ;;  %v16153_v34 = vcombine.low %v4699_v57, %v4707_v31  ;;  %v4747_v41 = vld [vmem:[#allocation20 + $0x838] sm:$0xff] }
 0xa78   : > { %v11609_v7 = vpop.f32.mrf.mxu1  ;;  %11877 = vmatpush2.bf16.msra.mxu0 %v16185_v21  ;;  %11903 = vmatprep.subr.bf16.mxu1 %v16298_v5  ;;  %v4755_v21 = vld [vmem:[#allocation20 + $0x878] sm:$0xff] }
 0xa79   : > { %v21014_v10 = vadd.f32 %v11609_v7, %v11569_v60  ;;  %11878 = vmatprep.subr.bf16.mxu0 %v16170_v42  ;;  %v4619_v5 = vld [vmem:[#allocation20 + $0x438] sm:$0xff]  ;;  %v16217_v42 = vcombine.low %v4763_v28, %v4771_v19  ;;  %v16202_v35 = vcombine.high %v4747_v41, %v4755_v21  ;;  %v16201_v7 = vcombine.low %v4747_v41, %v4755_v21 }
 0xa7a   : > { %v11611_v26 = vpop.f32.mrf.mxu1  ;;  %v4627_v47 = vld [vmem:[#allocation20 + $0x478] sm:$0xff] }
 0xa7b   : > { %11904 = vmatpush1.bf16.msra.mxu1 %v16297_v53  ;;  %v16074_v54 = vcombine.high %v4619_v5, %v4627_v47  ;;  %v4987_v57 = vld [vmem:[#allocation20 + $0xfb8] sm:$0xff] }
 0xa7c   : > { %v11612_v23 = vpop.f32.mrf.mxu1  ;;  %11879 = vmatpush2.bf16.msra.mxu0 %v16169_v43  ;;  %11905 = vmatprep.subr.bf16.mxu1 %v16282_v50  ;;  %v4995_v31 = vld [vmem:[#allocation20 + $0xff8] sm:$0xff]  ;;  %v16073_v43 = vcombine.low %v4619_v5, %v4627_v47 }
 0xa7d   : > { %11880 = vmatprep.subr.bf16.mxu0 %v16154_v12  ;;  %v5115_v60 = vld [vmem:[#allocation20 + $0x13b8] sm:$0xff]  ;;  %v16442_v50 = vcombine.high %v4987_v57, %v4995_v31  ;;  %v16441_v3 = vcombine.low %v4987_v57, %v4995_v31  ;;  %v16426_v23 = vcombine.high %v4971_v32, %v4979_v16 }
 0xa7e   : > { %v5123_v53 = vld [vmem:[#allocation20 + $0x13f8] sm:$0xff] }
 0xa7f   : > { %11906 = vmatpush1.bf16.msra.mxu1 %v16281_v17  ;;  %v16570_v12 = vcombine.high %v5115_v60, %v5123_v53  ;;  %v5099_v26 = vld [vmem:[#allocation20 + $0x1338] sm:$0xff]  ;;  %v16569_v17 = vcombine.low %v5115_v60, %v5123_v53 }
 0xa80   : > { %11881 = vmatpush2.bf16.msra.mxu0 %v16153_v34  ;;  %11907 = vmatprep.subr.bf16.mxu1 %v16266_v40  ;;  %v16554_v34 = vcombine.high %v5099_v26, %v5107_v25  ;;  %v4955_v40 = vld [vmem:[#allocation20 + $0xeb8] sm:$0xff] }
 0xa81   : > { %11882 = vmatprep.subr.bf16.mxu0 %v16138_v59  ;;  %v4963_v59 = vld [vmem:[#allocation20 + $0xef8] sm:$0xff] }
 0xa82   : > { %v5083_v45 = vld [vmem:[#allocation20 + $0x12b8] sm:$0xff] }
 0xa83   : > { %11908 = vmatpush1.bf16.msra.mxu1 %v16265_v27  ;;  %v5091_v0 = vld [vmem:[#allocation20 + $0x12f8] sm:$0xff] }
 0xa84   : > { %11883 = vmatpush2.bf16.msra.mxu0 %v16137_v24  ;;  %11909 = vmatprep.subr.bf16.mxu1 %v16250_v52  ;;  %v16553_v24 = vcombine.low %v5099_v26, %v5107_v25  ;;  %v16410_v52 = vcombine.high %v4955_v40, %v4963_v59  ;;  %v16538_v6 = vcombine.high %v5083_v45, %v5091_v0  ;;  %v4939_v58 = vld [vmem:[#allocation20 + $0xe38] sm:$0xff] }
 0xa85   : > { %11884 = vmatprep.subr.bf16.mxu0 %v16122_v9  ;;  %v4947_v38 = vld [vmem:[#allocation20 + $0xe78] sm:$0xff] }
 0xa86   : > { %v4923_v19 = vld [vmem:[#allocation20 + $0xdb8] sm:$0xff] }
 0xa87   : > { %11910 = vmatpush1.bf16.msra.mxu1 %v16249_v48  ;;  %v5075_v48 = vld [vmem:[#allocation20 + $0x1278] sm:$0xff] }
 0xa88   : > { %11885 = vmatpush2.bf16.msra.mxu0 %v16121_v63  ;;  %11911 = vmatprep.subr.bf16.mxu1 %v16234_v56  ;;  %v16537_v56 = vcombine.low %v5083_v45, %v5091_v0  ;;  %v4931_v4 = vld [vmem:[#allocation20 + $0xdf8] sm:$0xff] }
 0xa89   : > { %11886 = vmatprep.subr.bf16.mxu0 %v16106_v2  ;;  %v5051_v44 = vld [vmem:[#allocation20 + $0x11b8] sm:$0xff] }
 0xa8a   : > { %v4907_v41 = vld [vmem:[#allocation20 + $0xd38] sm:$0xff] }
 0xa8b   : > { %11912 = vmatpush1.bf16.msra.mxu1 %v16233_v62  ;;  %v5059_v62 = vld [vmem:[#allocation20 + $0x11f8] sm:$0xff] }
 0xa8c   : > { %11887 = vmatpush2.bf16.msra.mxu0 %v16105_v51  ;;  %11913 = vmatprep.subr.bf16.mxu1 %v16218_v39  ;;  %v16393_v51 = vcombine.low %v4939_v58, %v4947_v38  ;;  %v16378_v39 = vcombine.high %v4923_v19, %v4931_v4  ;;  %v4915_v21 = vld [vmem:[#allocation20 + $0xd78] sm:$0xff] }
 0xa8d   : > { %11888 = vmatprep.subr.bf16.mxu0 %v16090_v1  ;;  %v16506_v1 = vcombine.high %v5051_v44, %v5059_v62  ;;  %v5035_v5 = vld [vmem:[#allocation20 + $0x1138] sm:$0xff] }
 0xa8e   : > { %v5043_v47 = vld [vmem:[#allocation20 + $0x1178] sm:$0xff] }
 0xa8f   : > { %11914 = vmatpush1.bf16.msra.mxu1 %v16217_v42  ;;  %v16377_v42 = vcombine.low %v4923_v19, %v4931_v4  ;;  %v4891_v57 = vld [vmem:[#allocation20 + $0xcb8] sm:$0xff] }
 0xa90   : > { %11889 = vmatpush2.bf16.msra.mxu0 %v16089_v46  ;;  %11915 = vmatprep.subr.bf16.mxu1 %v16202_v35  ;;  %v16505_v46 = vcombine.low %v5051_v44, %v5059_v62  ;;  %v16362_v35 = vcombine.high %v4907_v41, %v4915_v21  ;;  %v4899_v31 = vld [vmem:[#allocation20 + $0xcf8] sm:$0xff] }
 0xa91   : > { %11890 = vmatprep.subr.bf16.mxu0 %v16074_v54  ;;  %v16490_v54 = vcombine.high %v5035_v5, %v5043_v47  ;;  %v5019_v60 = vld [vmem:[#allocation20 + $0x10b8] sm:$0xff] }
 0xa92   : > { %v5027_v53 = vld [vmem:[#allocation20 + $0x10f8] sm:$0xff] }
 0xa93   : > { %11916 = vmatpush1.bf16.msra.mxu1 %v16201_v7  ;;  %v16361_v7 = vcombine.low %v4907_v41, %v4915_v21  ;;  %v4875_v32 = vld [vmem:[#allocation20 + $0xc38] sm:$0xff] }
 0xa94   : > { %11891 = vmatpush2.bf16.msra.mxu0 %v16073_v43  ;;  %11917 = vmatprep.subr.bf16.mxu1 %v16442_v50  ;;  %v16489_v43 = vcombine.low %v5035_v5, %v5043_v47  ;;  %v16346_v50 = vcombine.high %v4891_v57, %v4899_v31  ;;  %v4883_v16 = vld [vmem:[#allocation20 + $0xc78] sm:$0xff] }
 0xa95   : > { %11942 = vmatprep.subr.bf16.mxu0 %v16570_v12  ;;  %v16474_v12 = vcombine.high %v5019_v60, %v5027_v53  ;;  %v5003_v26 = vld [vmem:[#allocation20 + $0x1038] sm:$0xff] }
 0xa96   : > { %v5011_v25 = vld [vmem:[#allocation20 + $0x1078] sm:$0xff] }
 0xa97   : > { %v11648_v15 = vpop.f32.mrf.mxu0  ;;  %11893 = vmatmul.mubr.bf16.vlgmr.msra.gmra.mxu0 %v20767_v8  ;;  %11918 = vmatpush2.bf16.msra.mxu1 %v16441_v3  ;;  %v5067_v8 = vld [vmem:[#allocation20 + $0x1238] sm:$0xff]  ;;  %v16345_v3 = vcombine.low %v4891_v57, %v4899_v31 }
 0xa98   : > { %v21018_v27 = vadd.f32 %v11648_v15, %v21011_v18  ;;  %11943 = vmatpush1.bf16.msra.mxu0 %v16569_v17  ;;  %11974 = vmatprep.mubr.bf16.mxu0 %v20800_v29  ;;  %v16409_v18 = vcombine.low %v4955_v40, %v4963_v59  ;;  %v16394_v29 = vcombine.high %v4939_v58, %v4947_v38  ;;  %v5371_v40 = vld [vmem:[#allocation20 + $0x1bb8] sm:$0xff] }
 0xa99   : > { %v11650_v9 = vpop.f32.mrf.mxu0  ;;  %11919 = vmatprep.subr.bf16.mxu1 %v16426_v23  ;;  %11944 = vmatprep.subr.bf16.mxu0 %v16554_v34  ;;  %v16522_v28 = vcombine.high %v5067_v8, %v5075_v48  ;;  %v16473_v17 = vcombine.low %v5019_v60, %v5027_v53  ;;  %v16330_v23 = vcombine.high %v4875_v32, %v4883_v16  ;;  %v5379_v59 = vld [vmem:[#allocation20 + $0x1bf8] sm:$0xff] }
 0xa9a   : > { %v21022_v13 = vadd.f32 %v11650_v9, %v21014_v10  ;;  %v16521_v10 = vcombine.low %v5067_v8, %v5075_v48  ;;  %v16458_v34 = vcombine.high %v5003_v26, %v5011_v25  ;;  %v5243_v45 = vld [vmem:[#allocation20 + $0x17b8] sm:$0xff]  ;;  %v16329_v15 = vcombine.low %v4875_v32, %v4883_v16 }
 0xa9b   : > { %v11652_v63 = vpop.f32.mrf.mxu0  ;;  %11920 = vmatpush2.bf16.msra.mxu1 %v16425_v11  ;;  %v5251_v0 = vld [vmem:[#allocation20 + $0x17f8] sm:$0xff]  ;;  %v16457_v11 = vcombine.low %v5003_v26, %v5011_v25  ;;  %v16825_v8 = vcombine.low %v5371_v40, %v5379_v59 }
 0xa9c   : > { %11945 = vmatpush1.bf16.msra.mxu0 %v16553_v24  ;;  %11921 = vmatprep.subr.bf16.mxu1 %v16410_v52  ;;  %v16826_v24 = vcombine.high %v5371_v40, %v5379_v59  ;;  %v16698_v52 = vcombine.high %v5243_v45, %v5251_v0  ;;  %v5355_v9 = vld [vmem:[#allocation20 + $0x1b38] sm:$0xff]  ;;  %v16697_v48 = vcombine.low %v5243_v45, %v5251_v0 }
 0xa9d   : > { %v11653_v2 = vpop.f32.mrf.mxu0  ;;  %11946 = vmatprep.subr.bf16.mxu0 %v16538_v6  ;;  %v5363_v6 = vld [vmem:[#allocation20 + $0x1b78] sm:$0xff] }
 0xa9e   : > { %v5227_v58 = vld [vmem:[#allocation20 + $0x1738] sm:$0xff]  ;;  %v16810_v63 = vcombine.high %v5355_v9, %v5363_v6  ;;  %v16809_v44 = vcombine.low %v5355_v9, %v5363_v6 }
 0xa9f   : > { %11922 = vmatpush2.bf16.msra.mxu1 %v16409_v18  ;;  %v5235_v38 = vld [vmem:[#allocation20 + $0x1778] sm:$0xff] }
 0xaa0   : > { %11947 = vmatpush1.bf16.msra.mxu0 %v16537_v56  ;;  %11923 = vmatprep.subr.bf16.mxu1 %v16394_v29  ;;  %v16682_v18 = vcombine.high %v5227_v58, %v5235_v38  ;;  %v5339_v56 = vld [vmem:[#allocation20 + $0x1ab8] sm:$0xff] }
 0xaa1   : > { %11948 = vmatprep.subr.bf16.mxu0 %v16522_v28  ;;  %v5347_v29 = vld [vmem:[#allocation20 + $0x1af8] sm:$0xff] }
 0xaa2   : > { %v5211_v28 = vld [vmem:[#allocation20 + $0x16b8] sm:$0xff] }
 0xaa3   : > { %11924 = vmatpush2.bf16.msra.mxu1 %v16393_v51  ;;  %v5219_v19 = vld [vmem:[#allocation20 + $0x16f8] sm:$0xff]  ;;  %v16681_v51 = vcombine.low %v5227_v58, %v5235_v38 }
 0xaa4   : > { %11949 = vmatpush1.bf16.msra.mxu0 %v16521_v10  ;;  %11925 = vmatprep.subr.bf16.mxu1 %v16378_v39  ;;  %v16794_v10 = vcombine.high %v5339_v56, %v5347_v29  ;;  %v5323_v41 = vld [vmem:[#allocation20 + $0x1a38] sm:$0xff] }
 0xaa5   : > { %11950 = vmatprep.subr.bf16.mxu0 %v16506_v1  ;;  %v16666_v1 = vcombine.high %v5211_v28, %v5219_v19  ;;  %v5331_v21 = vld [vmem:[#allocation20 + $0x1a78] sm:$0xff] }
 0xaa6   : > { %v5195_v5 = vld [vmem:[#allocation20 + $0x1638] sm:$0xff] }
 0xaa7   : > { %11926 = vmatpush2.bf16.msra.mxu1 %v16377_v42  ;;  %v5203_v47 = vld [vmem:[#allocation20 + $0x1678] sm:$0xff] }
 0xaa8   : > { %11951 = vmatpush1.bf16.msra.mxu0 %v16505_v46  ;;  %11927 = vmatprep.subr.bf16.mxu1 %v16362_v35  ;;  %v16793_v46 = vcombine.low %v5339_v56, %v5347_v29  ;;  %v16665_v35 = vcombine.low %v5211_v28, %v5219_v19  ;;  %v16650_v31 = vcombine.high %v5195_v5, %v5203_v47  ;;  %v5315_v60 = vld [vmem:[#allocation20 + $0x19f8] sm:$0xff] }
 0xaa9   : > { %11952 = vmatprep.subr.bf16.mxu0 %v16490_v54  ;;  %v16778_v54 = vcombine.high %v5323_v41, %v5331_v21  ;;  %v5179_v53 = vld [vmem:[#allocation20 + $0x15b8] sm:$0xff]  ;;  %v16649_v32 = vcombine.low %v5195_v5, %v5203_v47 }
 0xaaa   : > { %v5275_v0 = vld [vmem:[#allocation20 + $0x18b8] sm:$0xff] }
 0xaab   : > { %11928 = vmatpush2.bf16.msra.mxu1 %v16361_v7  ;;  %v5187_v7 = vld [vmem:[#allocation20 + $0x15f8] sm:$0xff] }
 0xaac   : > { %11953 = vmatpush1.bf16.msra.mxu0 %v16489_v43  ;;  %11929 = vmatprep.subr.bf16.mxu1 %v16346_v50  ;;  %v12131_v43 = vrot.slane %v20996_v49, %v20893_v61  ;;  %v16634_v25 = vcombine.high %v5179_v53, %v5187_v7  ;;  %v16633_v49 = vcombine.low %v5179_v53, %v5187_v7  ;;  %v5259_v38 = vld [vmem:[#allocation20 + $0x1838] sm:$0xff] }
 0xaad   : > { %11954 = vmatprep.subr.bf16.mxu0 %v16474_v12  ;;  %v16777_v12 = vcombine.low %v5323_v41, %v5331_v21  ;;  %v5499_v28 = vld [vmem:[#allocation20 + $0x1fb8] sm:$0xff] }
 0xaae   : > { %v5507_v19 = vld [vmem:[#allocation20 + $0x1ff8] sm:$0xff] }
 0xaaf   : > { %11930 = vmatpush2.bf16.msra.mxu1 %v16345_v3  ;;  %v5291_v3 = vld [vmem:[#allocation20 + $0x1938] sm:$0xff] }
 0xab0   : > { %11955 = vmatpush1.bf16.msra.mxu0 %v16473_v17  ;;  %11931 = vmatprep.subr.bf16.mxu1 %v16330_v23  ;;  %v5299_v17 = vld [vmem:[#allocation20 + $0x1978] sm:$0xff] }
 0xab1   : > { %11956 = vmatprep.subr.bf16.mxu0 %v16458_v34  ;;  %v5163_v23 = vld [vmem:[#allocation20 + $0x1538] sm:$0xff]  ;;  %v16746_v59 = vcombine.high %v5291_v3, %v5299_v17 }
 0xab2   : > { %v5171_v34 = vld [vmem:[#allocation20 + $0x1578] sm:$0xff] }
 0xab3   : > { %11932 = vmatpush2.bf16.msra.mxu1 %v16329_v15  ;;  %v16618_v45 = vcombine.high %v5163_v23, %v5171_v34  ;;  %v5283_v15 = vld [vmem:[#allocation20 + $0x18f8] sm:$0xff]  ;;  %v16617_v9 = vcombine.low %v5163_v23, %v5171_v34 }
 0xab4   : > { %11957 = vmatpush1.bf16.msra.mxu0 %v16457_v11  ;;  %11983 = vmatprep.subr.bf16.mxu1 %v16826_v24  ;;  %v5147_v11 = vld [vmem:[#allocation20 + $0x14b8] sm:$0xff]  ;;  %v16730_v6 = vcombine.high %v5275_v0, %v5283_v15 }
 0xab5   : > { %11958 = vmatprep.subr.bf16.mxu0 %v16698_v52  ;;  %v5155_v24 = vld [vmem:[#allocation20 + $0x14f8] sm:$0xff]  ;;  %v16745_v52 = vcombine.low %v5291_v3, %v5299_v17 }
 0xab6   : > { %v11689_v2 = vpop.f32.mrf.mxu1  ;;  %11934 = vmatmul.mubr.bf16.vlgmr.msra.gmra.mxu1 %v20783_v33  ;;  %v16602_v58 = vcombine.high %v5147_v11, %v5155_v24  ;;  %v16601_v56 = vcombine.low %v5147_v11, %v5155_v24  ;;  %v5467_v41 = vld [vmem:[#allocation20 + $0x1eb8] sm:$0xff] }
 0xab7   : > { %v11690_v4 = vadd.f32 %v11689_v2, %v21018_v27  ;;  %11984 = vmatpush1.bf16.msra.mxu1 %v16825_v8  ;;  %12015 = vmatprep.mubr.bf16.mxu1 %v20817_v14  ;;  %v5267_v8 = vld [vmem:[#allocation20 + $0x1878] sm:$0xff] }
 0xab8   : > { %v11691_v62 = vpop.f32.mrf.mxu1  ;;  %11959 = vmatpush2.bf16.msra.mxu0 %v16697_v48  ;;  %11985 = vmatprep.subr.bf16.mxu1 %v16810_v63  ;;  %v5131_v48 = vld [vmem:[#allocation20 + $0x1438] sm:$0xff]  ;;  %v16714_v29 = vcombine.high %v5259_v38, %v5267_v8 }
 0xab9   : > { %v11692_v39 = vadd.f32 %v11691_v62, %v21022_v13  ;;  %11960 = vmatprep.subr.bf16.mxu0 %v16682_v18  ;;  %v12034_v42 = vmax.f32 %v11690_v4, 0.0  ;;  %v5307_v13 = vld [vmem:[#allocation20 + $0x19b8] sm:$0xff]  ;;  %v16729_v18 = vcombine.low %v5275_v0, %v5283_v15  ;;  %v16713_v4 = vcombine.low %v5259_v38, %v5267_v8 }
 0xaba   : > { %v11693_v33 = vpop.f32.mrf.mxu1  ;;  %v16762_v16 = vcombine.high %v5307_v13, %v5315_v60  ;;  %v16761_v40 = vcombine.low %v5307_v13, %v5315_v60  ;;  %v5139_v63 = vld [vmem:[#allocation20 + $0x1478] sm:$0xff]  ;;  %v16954_v62 = vcombine.high %v5499_v28, %v5507_v19 }
 0xabb   : > { %v12035_v27 = vmax.f32 %v11692_v39, 0.0  ;;  %11986 = vmatpush1.bf16.msra.mxu1 %v16809_v44  ;;  %v16586_v2 = vcombine.high %v5131_v48, %v5139_v63  ;;  %v16585_v44 = vcombine.low %v5131_v48, %v5139_v63  ;;  %v16953_v39 = vcombine.low %v5499_v28, %v5507_v19  ;;  %v5475_v21 = vld [vmem:[#allocation20 + $0x1ef8] sm:$0xff] }
 0xabc   : > { %v11694_v14 = vpop.f32.mrf.mxu1  ;;  %11961 = vmatpush2.bf16.msra.mxu0 %v16681_v51  ;;  %11987 = vmatprep.subr.bf16.mxu1 %v16794_v10  ;;  %v5483_v51 = vld [vmem:[#allocation20 + $0x1f38] sm:$0xff]  ;;  %v16922_v47 = vcombine.high %v5467_v41, %v5475_v21 }
 0xabd   : > { %v16960_v57 = vpack.c.bf16 %v12035_v27, %v12034_v42  ;;  %11962 = vmatprep.subr.bf16.mxu0 %v16666_v1  ;;  %v5491_v10 = vld [vmem:[#allocation20 + $0x1f78] sm:$0xff] }
 0xabe   : > { %v16938_v1 = vcombine.high %v5483_v51, %v5491_v10  ;;  %v16937_v5 = vcombine.low %v5483_v51, %v5491_v10  ;;  %v5451_v27 = vld [vmem:[#allocation20 + $0x1e38] sm:$0xff] }
 0xabf   : > { %v12138_v50 = vrot.slane %v16960_v57, %v20893_v61  ;;  %11988 = vmatpush1.bf16.msra.mxu1 %v16793_v46  ;;  %v5459_v46 = vld [vmem:[#allocation20 + $0x1e78] sm:$0xff] }
 0xac0   : > { %11963 = vmatpush2.bf16.msra.mxu0 %v16665_v35  ;;  %11989 = vmatprep.subr.bf16.mxu1 %v16778_v54  ;;  %v16921_v35 = vcombine.low %v5467_v41, %v5475_v21  ;;  %v16906_v54 = vcombine.high %v5451_v27, %v5459_v46  ;;  %v5443_v13 = vld [vmem:[#allocation20 + $0x1df8] sm:$0xff]  ;;  %v16905_v60 = vcombine.low %v5451_v27, %v5459_v46 }
 0xac1   : > { %v21031_v26 = vcombine.low %v12131_v43, %v12138_v50  ;;  %11964 = vmatprep.subr.bf16.mxu0 %v16650_v31  ;;  %v5435_v31 = vld [vmem:[#allocation20 + $0x1db8] sm:$0xff] }
 0xac2   : > { %v16890_v53 = vcombine.high %v5435_v31, %v5443_v13  ;;  %v5427_v7 = vld [vmem:[#allocation20 + $0x1d78] sm:$0xff]  ;;  %v16889_v43 = vcombine.low %v5435_v31, %v5443_v13 }
 0xac3   : > { %11990 = vmatpush1.bf16.msra.mxu1 %v16777_v12  ;;  %v5403_v12 = vld [vmem:[#allocation20 + $0x1cb8] sm:$0xff] }
 0xac4   : > { %11965 = vmatpush2.bf16.msra.mxu0 %v16649_v32  ;;  %11991 = vmatprep.subr.bf16.mxu1 %v16762_v16  ;;  %v5411_v32 = vld [vmem:[#allocation20 + $0x1cf8] sm:$0xff] }
 0xac5   : > { %11966 = vmatprep.subr.bf16.mxu0 %v16634_v25  ;;  %v16858_v25 = vcombine.high %v5403_v12, %v5411_v32  ;;  %v5387_v3 = vld [vmem:[#allocation20 + $0x1c38] sm:$0xff]  ;;  %v16857_v23 = vcombine.low %v5403_v12, %v5411_v32 }
 0xac6   : > { %v5395_v17 = vld [vmem:[#allocation20 + $0x1c78] sm:$0xff] }
 0xac7   : > { %11992 = vmatpush1.bf16.msra.mxu1 %v16761_v40  ;;  %v16842_v34 = vcombine.high %v5387_v3, %v5395_v17  ;;  %v16841_v40 = vcombine.low %v5387_v3, %v5395_v17  ;;  %v12161_v17 = vrot.slane %v21031_v26, %v20893_v61 }
 0xac8   : > { %11967 = vmatpush2.bf16.msra.mxu0 %v16633_v49  ;;  %11993 = vmatprep.subr.bf16.mxu1 %v16746_v59  ;;  %v17970_v49 = vld [vmem:[#allocation21 + $0x8] sm:$0xff] }
 0xac9   : > { %11968 = vmatprep.subr.bf16.mxu0 %v16618_v45  ;;  %v5563_v59 = vrot.slane %v17970_v49, %v20791_v36  ;;  %v5567_v45 = vrot.slane %v17970_v49, %v20794_v37  ;;  %v5571_v46 = vrot.slane %v17970_v49, %v20808_v55 }
 0xacb   : > { %11994 = vmatpush1.bf16.msra.mxu1 %v16745_v52 }
 0xacc   : > { %11969 = vmatpush2.bf16.msra.mxu0 %v16617_v9  ;;  %11995 = vmatprep.subr.bf16.mxu1 %v16730_v6 }
 0xacd   : > { %11970 = vmatprep.subr.bf16.mxu0 %v16602_v58 }
 0xacf   : > { %11996 = vmatpush1.bf16.msra.mxu1 %v16729_v18 }
 0xad0   : > { %11971 = vmatpush2.bf16.msra.mxu0 %v16601_v56  ;;  %11997 = vmatprep.subr.bf16.mxu1 %v16714_v29 }
 0xad1   : > { %11972 = vmatprep.subr.bf16.mxu0 %v16586_v2 }
 0xad3   : > { %11998 = vmatpush1.bf16.msra.mxu1 %v16713_v4 }
 0xad4   : > { %11973 = vmatpush2.bf16.msra.mxu0 %v16585_v44  ;;  %11999 = vmatprep.subr.bf16.mxu1 %v16954_v62 }
 0xad7   : > { %v11730_v33 = vpop.f32.mrf.mxu0  ;;  %11975 = vmatmul.mubr.bf16.vlgmr.msra.gmra.mxu0 %v20802_v30  ;;  %12000 = vmatpush2.bf16.msra.mxu1 %v16953_v39  ;;  %v5419_v30 = vld [vmem:[#allocation20 + $0x1d38] sm:$0xff] }
 0xad8   : > { %12001 = vmatprep.subr.bf16.mxu1 %v16938_v1  ;;  %v16874_v50 = vcombine.high %v5419_v30, %v5427_v7  ;;  %v16873_v16 = vcombine.low %v5419_v30, %v5427_v7  ;;  %v11731_v0 = vadd.f32 %v11730_v33, %v5563_v59 }
 0xad9   : > { %v11732_v42 = vpop.f32.mrf.mxu0 }
 0xada   : > { %v11733_v11 = vadd.f32 %v11732_v42, %v5567_v45 }
 0xadb   : > { %v11734_v14 = vpop.f32.mrf.mxu0  ;;  %12002 = vmatpush2.bf16.msra.mxu1 %v16937_v5 }
 0xadc   : > { %12003 = vmatprep.subr.bf16.mxu1 %v16922_v47  ;;  %v5575_v14 = vrot.slane %v17970_v49, %v20811_v20 }
 0xadd   : > { %v11735_v57 = vpop.f32.mrf.mxu0 }
 0xadf   : > { %12004 = vmatpush2.bf16.msra.mxu1 %v16921_v35 }
 0xae0   : > { %12005 = vmatprep.subr.bf16.mxu1 %v16906_v54 }
 0xae3   : > { %12006 = vmatpush2.bf16.msra.mxu1 %v16905_v60 }
 0xae4   : > { %12007 = vmatprep.subr.bf16.mxu1 %v16890_v53 }
 0xae7   : > { %12008 = vmatpush2.bf16.msra.mxu1 %v16889_v43 }
 0xae8   : > { %12009 = vmatprep.subr.bf16.mxu1 %v16874_v50 }
 0xaeb   : > { %12010 = vmatpush2.bf16.msra.mxu1 %v16873_v16 }
 0xaec   : > { %12011 = vmatprep.subr.bf16.mxu1 %v16858_v25 }
 0xaef   : > { %12012 = vmatpush2.bf16.msra.mxu1 %v16857_v23 }
 0xaf0   : > { %12013 = vmatprep.subr.bf16.mxu1 %v16842_v34 }
 0xaf3   : > { %12014 = vmatpush2.bf16.msra.mxu1 %v16841_v40 }
 0xaf6   : > { %v11771_v15 = vpop.f32.mrf.mxu1  ;;  %12016 = vmatmul.mubr.bf16.vlgmr.msra.gmra.mxu1 %v20819_v22 }
 0xaf7   : > { %v11772_v24 = vadd.f32 %v11771_v15, %v11731_v0 }
 0xaf8   : > { %v11773_v52 = vpop.f32.mrf.mxu1 }
 0xaf9   : > { %v11774_v9 = vadd.f32 %v11773_v52, %v11733_v11 }
 0xafa   : > { %v11775_v6 = vpop.f32.mrf.mxu1 }
 0xafc   : > { %v11776_v58 = vpop.f32.mrf.mxu1 }
 0xb17   : > { %v11812_v38 = vpop.f32.mrf.mxu0 }
 0xb18   : > { %v11813_v8 = vadd.f32 %v11812_v38, %v11772_v24 }
 0xb19   : > { %v11814_v48 = vpop.f32.mrf.mxu0 }
 0xb1a   : > { %v11815_v63 = vadd.f32 %v11814_v48, %v11774_v9 }
 0xb1b   : > { %v11816_v18 = vpop.f32.mrf.mxu0 }
 0xb1d   : > { %v11817_v56 = vpop.f32.mrf.mxu0 }
 0xb36   : > { %v11853_v36 = vpop.f32.mrf.mxu1 }
 0xb37   : > { %v11854_v29 = vadd.f32 %v11853_v36, %v11813_v8 }
 0xb38   : > { %v11855_v37 = vpop.f32.mrf.mxu1 }
 0xb39   : > { %v11856_v2 = vadd.f32 %v11855_v37, %v11815_v63  ;;  %v12036_v19 = vmax.f32 %v11854_v29, 0.0 }
 0xb3a   : > { %v11857_v28 = vpop.f32.mrf.mxu1 }
 0xb3b   : > { %v12037_v4 = vmax.f32 %v11856_v2, 0.0 }
 0xb3c   : > { %v11858_v22 = vpop.f32.mrf.mxu1 }
 0xb3d   : > { %v16961_v44 = vpack.c.bf16 %v12037_v4, %v12036_v19 }
 0xb3f   : > { %v12145_v3 = vrot.slane %v16961_v44, %v20893_v61 }
 0xb57   : > { %v11894_v62 = vpop.f32.mrf.mxu0 }
 0xb58   : > { %v11895_v35 = vadd.f32 %v11894_v62, %v5571_v46 }
 0xb59   : > { %v11896_v51 = vpop.f32.mrf.mxu0 }
 0xb5a   : > { %v11897_v54 = vadd.f32 %v11896_v51, %v5575_v14 }
 0xb5b   : > { %v11898_v10 = vpop.f32.mrf.mxu0 }
 0xb5d   : > { %v11899_v39 = vpop.f32.mrf.mxu0 }
 0xb76   : > { %v11935_v1 = vpop.f32.mrf.mxu1 }
 0xb77   : > { %v11936_v57 = vadd.f32 %v11935_v1, %v11895_v35 }
 0xb78   : > { %v11937_v41 = vpop.f32.mrf.mxu1 }
 0xb79   : > { %v11938_v31 = vadd.f32 %v11937_v41, %v11897_v54 }
 0xb7a   : > { %v11939_v21 = vpop.f32.mrf.mxu1 }
 0xb7c   : > { %v11940_v33 = vpop.f32.mrf.mxu1 }
 0xb97   : > { %v11976_v5 = vpop.f32.mrf.mxu0 }
 0xb98   : > { %v11977_v13 = vadd.f32 %v11976_v5, %v11936_v57 }
 0xb99   : > { %v11978_v47 = vpop.f32.mrf.mxu0 }
 0xb9a   : > { %v11979_v53 = vadd.f32 %v11978_v47, %v11938_v31 }
 0xb9b   : > { %v11980_v42 = vpop.f32.mrf.mxu0 }
 0xb9d   : > { %v11981_v27 = vpop.f32.mrf.mxu0 }
 0xbb6   : > { %v12017_v60 = vpop.f32.mrf.mxu1 }
 0xbb7   : > { %v12018_v30 = vadd.f32 %v12017_v60, %v11977_v13 }
 0xbb8   : > { %v12019_v7 = vpop.f32.mrf.mxu1 }
 0xbb9   : > { %v12020_v43 = vadd.f32 %v12019_v7, %v11979_v53  ;;  %v12038_v12 = vmax.f32 %v12018_v30, 0.0 }
 0xbba   : > { %v12021_v50 = vpop.f32.mrf.mxu1 }
 0xbbb   : > { %v12039_v32 = vmax.f32 %v12020_v43, 0.0 }
 0xbbc   : > { %v12022_v16 = vpop.f32.mrf.mxu1 }
 0xbbd   : > { %v16962_v25 = vpack.c.bf16 %v12039_v32, %v12038_v12 }
 0xbbf   : > { %v12152_v55 = vrot.slane %v16962_v25, %v20893_v61 }
 0xbc1   : > { %v12154_v20 = vcombine.low %v12145_v3, %v12152_v55 }
 0xbc3   : > { %v12168_v23 = vrot.slane %v12154_v20, %v20893_v61 }
 0xbc5   : > { %v12169_v34 = vcombine.low %v12161_v17, %v12168_v23 }
 0xbc7   : > { %12173 = vst [vmem:[#allocation2 + $0x8] sm:$0xff] %v12169_v34 }
 0xbc8 PF: > { %v17971_v40 = vld [vmem:[%s19325_s25 + $0xac] ss:$12 sps:$4 sm:$0xff]   ;;  %v17975_v26 = vld [vmem:[%s19325_s25 + $0xa8] ss:$12 sps:$4 sm:$0xff]   ;;  %v17981_v0 = vld [vmem:[%s19325_s25 + $0x90] ss:$12 sps:$4 sm:$0xff]   ;;  %v12690_v33 = vlaneseq }
 0xbc9   : > { %v17973_v49 = vld [vmem:[%s19325_s25 + $0x22c] ss:$12 sps:$4 sm:$0xff]   ;;  %14869 = vmatprep.subr.bf16.mxu0 %v17971_v40  ;;  %v17976_v61 = vld [vmem:[%s19325_s25 + $0x228] ss:$12 sps:$4 sm:$0xff]   ;;  %v17982_v15 = vld [vmem:[%s19325_s25 + $0x210] ss:$12 sps:$4 sm:$0xff]  }
 0xbca   : > { %14910 = vmatprep.subr.bf16.mxu1 %v17973_v49  ;;  %v17977_v59 = vld [vmem:[%s19325_s25 + $0x94] ss:$12 sps:$4 sm:$0xff]   ;;  %14870 = vmatpush1.bf16.msra.mxu0 %v17975_v26  ;;  %v17983_v11 = vld [vmem:[%s19325_s25 + $0x7c] ss:$12 sps:$4 sm:$0xff]   ;;  %v17987_v52 = vld [vmem:[%s19325_s25 + $0x78] ss:$12 sps:$4 sm:$0xff]  }
 0xbcb   : > { %14911 = vmatpush1.bf16.msra.mxu1 %v17976_v61  ;;  %v17979_v45 = vld [vmem:[%s19325_s25 + $0x214] ss:$12 sps:$4 sm:$0xff]   ;;  %14871 = vmatprep.subr.bf16.mxu0 %v17977_v59  ;;  %v17985_v24 = vld [vmem:[%s19325_s25 + $0x1fc] ss:$12 sps:$4 sm:$0xff]   ;;  %v17988_v9 = vld [vmem:[%s19325_s25 + $0x1f8] ss:$12 sps:$4 sm:$0xff]  }
 0xbcc   : > { %14912 = vmatprep.subr.bf16.mxu1 %v17979_v45  ;;  %v17989_v6 = vld [vmem:[%s19325_s25 + $0x64] ss:$12 sps:$4 sm:$0xff]   ;;  %v17993_v38 = vld [vmem:[%s19325_s25 + $0x60] ss:$12 sps:$4 sm:$0xff]   ;;  %v17999_v18 = vld [vmem:[%s19325_s25 + $0x48] ss:$12 sps:$4 sm:$0xff]  }
 0xbcd   : > { %v17991_v58 = vld [vmem:[%s19325_s25 + $0x1e4] ss:$12 sps:$4 sm:$0xff]   ;;  %v17994_v8 = vld [vmem:[%s19325_s25 + $0x1e0] ss:$12 sps:$4 sm:$0xff]   ;;  %v18000_v56 = vld [vmem:[%s19325_s25 + $0x1c8] ss:$12 sps:$4 sm:$0xff]  }
 0xbce   : > { %14872 = vmatpush1.bf16.msra.mxu0 %v17981_v0  ;;  %v17995_v48 = vld [vmem:[%s19325_s25 + $0x4c] ss:$12 sps:$4 sm:$0xff]   ;;  %v18001_v36 = vld [vmem:[%s19325_s25 + $0x34] ss:$12 sps:$4 sm:$0xff]   ;;  %v18005_v37 = vld [vmem:[%s19325_s25 + $0x30] ss:$12 sps:$4 sm:$0xff]  }
 0xbcf   : > { %14913 = vmatpush1.bf16.msra.mxu1 %v17982_v15  ;;  %14873 = vmatprep.subr.bf16.mxu0 %v17983_v11  ;;  %v17997_v63 = vld [vmem:[%s19325_s25 + $0x1cc] ss:$12 sps:$4 sm:$0xff]   ;;  %v18003_v29 = vld [vmem:[%s19325_s25 + $0x1b4] ss:$12 sps:$4 sm:$0xff]   ;;  %v18006_v2 = vld [vmem:[%s19325_s25 + $0x1b0] ss:$12 sps:$4 sm:$0xff]  }
 0xbd0   : > { %14914 = vmatprep.subr.bf16.mxu1 %v17985_v24  ;;  %v18007_v28 = vld [vmem:[%s19325_s25 + $0x1c] ss:$12 sps:$4 sm:$0xff]   ;;  %v18011_v4 = vld [vmem:[%s19325_s25 + $0x18] ss:$12 sps:$4 sm:$0xff]   ;;  %v18017_v51 = vld [vmem:[%s19325_s25] ss:$12 sps:$4 sm:$0xff]  }
 0xbd1   : > { %v18009_v19 = vld [vmem:[%s19325_s25 + $0x19c] ss:$12 sps:$4 sm:$0xff]   ;;  %v18012_v22 = vld [vmem:[%s19325_s25 + $0x198] ss:$12 sps:$4 sm:$0xff]   ;;  %v18018_v10 = vld [vmem:[%s19325_s25 + $0x180] ss:$12 sps:$4 sm:$0xff]  }
 0xbd2   : > { %14874 = vmatpush1.bf16.msra.mxu0 %v17987_v52  ;;  %v18013_v44 = vld [vmem:[%s19325_s25 + $0x4] ss:$12 sps:$4 sm:$0xff]   ;;  %v18019_v39 = vld [vmem:[%s19325_s25 + $0x16c] ss:$12 sps:$4 sm:$0xff]   ;;  %v18023_v41 = vld [vmem:[%s19325_s25 + $0x168] ss:$12 sps:$4 sm:$0xff]  }
 0xbd3   : > { %14915 = vmatpush1.bf16.msra.mxu1 %v17988_v9  ;;  %14875 = vmatprep.subr.bf16.mxu0 %v17989_v6  ;;  %v18015_v62 = vld [vmem:[%s19325_s25 + $0x184] ss:$12 sps:$4 sm:$0xff]   ;;  %v18021_v1 = vld [vmem:[%s19325_s25 + $0x2ec] ss:$12 sps:$4 sm:$0xff]   ;;  %v18024_v21 = vld [vmem:[%s19325_s25 + $0x2e8] ss:$12 sps:$4 sm:$0xff]  }
 0xbd4   : > { %14916 = vmatprep.subr.bf16.mxu1 %v17991_v58  ;;  %v18973_v5 = vmov 1966171168   ;;  %v18025_v42 = vld [vmem:[%s19325_s25 + $0x154] ss:$12 sps:$4 sm:$0xff]   ;;  %v18029_v46 = vld [vmem:[%s19325_s25 + $0x150] ss:$12 sps:$4 sm:$0xff]  }
 0xbd5   : > { %v12709_v47 = vunpack.c.l.s4 %v18973_v5  ;;  %v18027_v27 = vld [vmem:[%s19325_s25 + $0x2d4] ss:$12 sps:$4 sm:$0xff]   ;;  %v21083_v14 = vshrl.u32 %v12690_v33, 7  ;;  %v18030_v54 = vld [vmem:[%s19325_s25 + $0x2d0] ss:$12 sps:$4 sm:$0xff]   ;;  %p17766_p2 = scmp.eq.s32.totalorder %s19082_s27, 1 }
 0xbd6   : > { %14876 = vmatpush1.bf16.msra.mxu0 %v17993_v38  ;;  %v18031_v57 = vld [vmem:[%s19325_s25 + $0x13c] ss:$12 sps:$4 sm:$0xff]   ;;  %v18035_v13 = vld [vmem:[%s19325_s25 + $0x138] ss:$12 sps:$4 sm:$0xff]   ;;  %v12174_v43 = vld [vmem:[#allocation2] sm:$0xff] }
 0xbd7   : > { %14917 = vmatpush1.bf16.msra.mxu1 %v17994_v8  ;;  %14877 = vmatprep.subr.bf16.mxu0 %v17995_v48  ;;  %v12710_v35 = vunpack.c.0.s8 %v12709_v47  ;;  %v18033_v31 = vld [vmem:[%s19325_s25 + $0x2bc] ss:$12 sps:$4 sm:$0xff]   ;;  %v18036_v60 = vld [vmem:[%s19325_s25 + $0x2b8] ss:$12 sps:$4 sm:$0xff]   ;;  %v18041_v50 = vld [vmem:[%s19325_s25 + $0x120] ss:$12 sps:$4 sm:$0xff]   ;;  %v12707_v49 = vcombine.high %v12174_v43, %v12174_v43 }
 0xbd8   : > { %14918 = vmatprep.subr.bf16.mxu1 %v17997_v63  ;;  %v18037_v30 = vld [vmem:[%s19325_s25 + $0x124] ss:$12 sps:$4 sm:$0xff]   ;;  %v18042_v32 = vld [vmem:[%s19325_s25 + $0x2a0] ss:$12 sps:$4 sm:$0xff]   ;;  %v18047_v55 = vld [vmem:[%s19325_s25 + $0x108] ss:$12 sps:$4 sm:$0xff]  }
 0xbd9   : > { %v21091_v53 = vsub.s32 %v12710_v35, %v21083_v14  ;;  %v18039_v7 = vld [vmem:[%s19325_s25 + $0x2a4] ss:$12 sps:$4 sm:$0xff]   ;;  %v18043_v16 = vld [vmem:[%s19325_s25 + $0x10c] ss:$12 sps:$4 sm:$0xff]   ;;  %v18048_v17 = vld [vmem:[%s19325_s25 + $0x288] ss:$12 sps:$4 sm:$0xff]  }
 0xbda   : > { %14878 = vmatpush1.bf16.msra.mxu0 %v17999_v18  ;;  %v18045_v25 = vld [vmem:[%s19325_s25 + $0x28c] ss:$12 sps:$4 sm:$0xff]   ;;  %v18049_v23 = vld [vmem:[%s19325_s25 + $0xf4] ss:$12 sps:$4 sm:$0xff]   ;;  %v18053_v26 = vld [vmem:[%s19325_s25 + $0xf0] ss:$12 sps:$4 sm:$0xff]  }
 0xbdb   : > { %14919 = vmatpush1.bf16.msra.mxu1 %v18000_v56  ;;  %14879 = vmatprep.subr.bf16.mxu0 %v18001_v36  ;;  %v12714_v12 = vrot.slane %v12174_v43, %v21091_v53  ;;  %v18051_v34 = vld [vmem:[%s19325_s25 + $0x274] ss:$12 sps:$4 sm:$0xff]   ;;  %v18054_v61 = vld [vmem:[%s19325_s25 + $0x270] ss:$12 sps:$4 sm:$0xff]   ;;  %v21118_v0 = vrot.slane %v12707_v49, %v21091_v53  ;;  %v18059_v15 = vld [vmem:[%s19325_s25 + $0xd8] ss:$12 sps:$4 sm:$0xff]  }
 0xbdc   : > { %14920 = vmatprep.subr.bf16.mxu1 %v18003_v29  ;;  %v18055_v59 = vld [vmem:[%s19325_s25 + $0xdc] ss:$12 sps:$4 sm:$0xff]   ;;  %v18060_v11 = vld [vmem:[%s19325_s25 + $0x258] ss:$12 sps:$4 sm:$0xff]   ;;  %v18065_v6 = vld [vmem:[%s19325_s25 + $0xc0] ss:$12 sps:$4 sm:$0xff]  }
 0xbdd   : > { %v12722_v3 = vcombine.high %v12714_v12, %v12714_v12  ;;  %v18057_v45 = vld [vmem:[%s19325_s25 + $0x25c] ss:$12 sps:$4 sm:$0xff]   ;;  %v18061_v24 = vld [vmem:[%s19325_s25 + $0xc4] ss:$12 sps:$4 sm:$0xff]   ;;  %v12723_v9 = vcombine.high %v21118_v0, %v21118_v0  ;;  %v21128_v58 = vrot.slane %v12714_v12, %v21091_v53  ;;  %v18066_v38 = vld [vmem:[%s19325_s25 + $0x240] ss:$12 sps:$4 sm:$0xff]  }
 0xbde   : > { %14880 = vmatpush1.bf16.msra.mxu0 %v18005_v37  ;;  %v18063_v52 = vld [vmem:[%s19325_s25 + $0x244] ss:$12 sps:$4 sm:$0xff]   ;;  %v18069_v8 = vld [vmem:[%s19325_s25 + $0x3ac] ss:$12 sps:$4 sm:$0xff]   ;;  %v18067_v56 = vld [vmem:[%s19325_s25 + $0x3a8] ss:$12 sps:$4 sm:$0xff]  }
 0xbdf   : > { %14921 = vmatpush1.bf16.msra.mxu1 %v18006_v2  ;;  %14881 = vmatprep.subr.bf16.mxu0 %v18007_v28  ;;  %v21102_v20 = vrot.slane %v12722_v3, %v21091_v53  ;;  %v18072_v48 = vld [vmem:[%s19325_s25 + $0x52c] ss:$12 sps:$4 sm:$0xff]   ;;  %v21134_v63 = vrot.slane %v12723_v9, %v21091_v53  ;;  %v21138_v18 = vcombine.high %v21128_v58, %v21128_v58  ;;  %v18070_v36 = vld [vmem:[%s19325_s25 + $0x528] ss:$12 sps:$4 sm:$0xff]   ;;  %v18073_v28 = vld [vmem:[%s19325_s25 + $0x390] ss:$12 sps:$4 sm:$0xff]  }
 0xbe0   : > { %14922 = vmatprep.subr.bf16.mxu1 %v18009_v19  ;;  %v18075_v29 = vld [vmem:[%s19325_s25 + $0x394] ss:$12 sps:$4 sm:$0xff]   ;;  %v18076_v19 = vld [vmem:[%s19325_s25 + $0x510] ss:$12 sps:$4 sm:$0xff]   ;;  %v18117_v43 = vld [vmem:[%s19325_s25 + $0x46c] ss:$12 sps:$4 sm:$0xff]  }
 0xbe1   : > { %v21109_v40 = vcombine.high %v21102_v20, %v21102_v20  ;;  %14901 = vmatprep.mubr.bf16.mxu0 %v21102_v20  ;;  %v18078_v37 = vld [vmem:[%s19325_s25 + $0x514] ss:$12 sps:$4 sm:$0xff]   ;;  %v21146_v2 = vcombine.high %v21134_v63, %v21134_v63  ;;  %v18105_v35 = vld [vmem:[%s19325_s25 + $0x31c] ss:$12 sps:$4 sm:$0xff]   ;;  %v18130_v49 = vld [vmem:[%s19325_s25 + $0x5b8] ss:$12 sps:$4 sm:$0xff]  }
 0xbe2   : > { %14882 = vmatpush1.bf16.msra.mxu0 %v18011_v4  ;;  %v18081_v4 = vld [vmem:[%s19325_s25 + $0x37c] ss:$12 sps:$4 sm:$0xff]   ;;  %v18099_v47 = vld [vmem:[%s19325_s25 + $0x334] ss:$12 sps:$4 sm:$0xff]  }
 0xbe3   : > { %14923 = vmatpush1.bf16.msra.mxu1 %v18012_v22  ;;  %14883 = vmatprep.subr.bf16.mxu0 %v18013_v44  ;;  %v18084_v22 = vld [vmem:[%s19325_s25 + $0x4fc] ss:$12 sps:$4 sm:$0xff]   ;;  %v18079_v44 = vld [vmem:[%s19325_s25 + $0x378] ss:$12 sps:$4 sm:$0xff]   ;;  %v18147_v9 = vld [vmem:[%s19325_s25 + $0x3f4] ss:$12 sps:$4 sm:$0xff]  }
 0xbe4   : > { %14924 = vmatprep.subr.bf16.mxu1 %v18015_v62  ;;  %14942 = vmatprep.mubr.bf16.mxu1 %v21109_v40  ;;  %v18082_v62 = vld [vmem:[%s19325_s25 + $0x4f8] ss:$12 sps:$4 sm:$0xff]   ;;  %v18091_v33 = vld [vmem:[%s19325_s25 + $0x348] ss:$12 sps:$4 sm:$0xff]   ;;  %v18121_v3 = vld [vmem:[%s19325_s25 + $0x450] ss:$12 sps:$4 sm:$0xff]  }
 0xbe5   : > { %v18094_v5 = vld [vmem:[%s19325_s25 + $0x4c8] ss:$12 sps:$4 sm:$0xff]  }
 0xbe6   : > { %14884 = vmatpush1.bf16.msra.mxu0 %v18017_v51  ;;  %v18087_v51 = vld [vmem:[%s19325_s25 + $0x364] ss:$12 sps:$4 sm:$0xff]   ;;  %v18115_v12 = vld [vmem:[%s19325_s25 + $0x468] ss:$12 sps:$4 sm:$0xff]  }
 0xbe7   : > { %14925 = vmatpush1.bf16.msra.mxu1 %v18018_v10  ;;  %14885 = vmatprep.subr.bf16.mxu0 %v18019_v39  ;;  %v18090_v10 = vld [vmem:[%s19325_s25 + $0x4e4] ss:$12 sps:$4 sm:$0xff]   ;;  %v18085_v39 = vld [vmem:[%s19325_s25 + $0x360] ss:$12 sps:$4 sm:$0xff]  }
 0xbe8   : > { %14926 = vmatprep.subr.bf16.mxu1 %v18021_v1  ;;  %v18088_v1 = vld [vmem:[%s19325_s25 + $0x4e0] ss:$12 sps:$4 sm:$0xff]  }
 0xbea   : > { %14886 = vmatpush2.bf16.msra.mxu0 %v18023_v41  ;;  %v18093_v41 = vld [vmem:[%s19325_s25 + $0x34c] ss:$12 sps:$4 sm:$0xff]  }
 0xbeb   : > { %14927 = vmatpush2.bf16.msra.mxu1 %v18024_v21  ;;  %14887 = vmatprep.subr.bf16.mxu0 %v18025_v42  ;;  %v18096_v21 = vld [vmem:[%s19325_s25 + $0x4cc] ss:$12 sps:$4 sm:$0xff]   ;;  %v18102_v42 = vld [vmem:[%s19325_s25 + $0x4b4] ss:$12 sps:$4 sm:$0xff]  }
 0xbec   : > { %14928 = vmatprep.subr.bf16.mxu1 %v18027_v27  ;;  %v18097_v27 = vld [vmem:[%s19325_s25 + $0x330] ss:$12 sps:$4 sm:$0xff]  }
 0xbee   : > { %14888 = vmatpush2.bf16.msra.mxu0 %v18029_v46  ;;  %v18100_v46 = vld [vmem:[%s19325_s25 + $0x4b0] ss:$12 sps:$4 sm:$0xff]  }
 0xbef   : > { %14929 = vmatpush2.bf16.msra.mxu1 %v18030_v54  ;;  %14889 = vmatprep.subr.bf16.mxu0 %v18031_v57  ;;  %v18108_v54 = vld [vmem:[%s19325_s25 + $0x49c] ss:$12 sps:$4 sm:$0xff]   ;;  %v18103_v57 = vld [vmem:[%s19325_s25 + $0x318] ss:$12 sps:$4 sm:$0xff]  }
 0xbf0   : > { %14930 = vmatprep.subr.bf16.mxu1 %v18033_v31  ;;  %v18106_v31 = vld [vmem:[%s19325_s25 + $0x498] ss:$12 sps:$4 sm:$0xff]  }
 0xbf2   : > { %14890 = vmatpush2.bf16.msra.mxu0 %v18035_v13  ;;  %v18111_v13 = vld [vmem:[%s19325_s25 + $0x304] ss:$12 sps:$4 sm:$0xff]  }
 0xbf3   : > { %14931 = vmatpush2.bf16.msra.mxu1 %v18036_v60  ;;  %14891 = vmatprep.subr.bf16.mxu0 %v18037_v30  ;;  %v18114_v60 = vld [vmem:[%s19325_s25 + $0x484] ss:$12 sps:$4 sm:$0xff]   ;;  %v18109_v30 = vld [vmem:[%s19325_s25 + $0x300] ss:$12 sps:$4 sm:$0xff]  }
 0xbf4   : > { %14932 = vmatprep.subr.bf16.mxu1 %v18039_v7  ;;  %v18112_v7 = vld [vmem:[%s19325_s25 + $0x480] ss:$12 sps:$4 sm:$0xff]  }
 0xbf6   : > { %14892 = vmatpush2.bf16.msra.mxu0 %v18041_v50  ;;  %v18120_v50 = vld [vmem:[%s19325_s25 + $0x5ec] ss:$12 sps:$4 sm:$0xff]  }
 0xbf7   : > { %14933 = vmatpush2.bf16.msra.mxu1 %v18042_v32  ;;  %14893 = vmatprep.subr.bf16.mxu0 %v18043_v16  ;;  %v18118_v32 = vld [vmem:[%s19325_s25 + $0x5e8] ss:$12 sps:$4 sm:$0xff]  }
 0xbf8   : > { %14934 = vmatprep.subr.bf16.mxu1 %v18045_v25  ;;  %v18123_v16 = vld [vmem:[%s19325_s25 + $0x454] ss:$12 sps:$4 sm:$0xff]  }
 0xbf9   : > { %v18126_v25 = vld [vmem:[%s19325_s25 + $0x5d4] ss:$12 sps:$4 sm:$0xff]  }
 0xbfa   : > { %14894 = vmatpush2.bf16.msra.mxu0 %v18047_v55  ;;  %v18124_v55 = vld [vmem:[%s19325_s25 + $0x5d0] ss:$12 sps:$4 sm:$0xff]  }
 0xbfb   : > { %14935 = vmatpush2.bf16.msra.mxu1 %v18048_v17  ;;  %14895 = vmatprep.subr.bf16.mxu0 %v18049_v23  ;;  %v18129_v17 = vld [vmem:[%s19325_s25 + $0x43c] ss:$12 sps:$4 sm:$0xff]  }
 0xbfc   : > { %14936 = vmatprep.subr.bf16.mxu1 %v18051_v34  ;;  %v18132_v23 = vld [vmem:[%s19325_s25 + $0x5bc] ss:$12 sps:$4 sm:$0xff]   ;;  %v18127_v34 = vld [vmem:[%s19325_s25 + $0x438] ss:$12 sps:$4 sm:$0xff]  }
 0xbfe   : > { %14896 = vmatpush2.bf16.msra.mxu0 %v18053_v26  ;;  %v18135_v26 = vld [vmem:[%s19325_s25 + $0x424] ss:$12 sps:$4 sm:$0xff]  }
 0xbff   : > { %14937 = vmatpush2.bf16.msra.mxu1 %v18054_v61  ;;  %14897 = vmatprep.subr.bf16.mxu0 %v18055_v59  ;;  %v18138_v61 = vld [vmem:[%s19325_s25 + $0x5a4] ss:$12 sps:$4 sm:$0xff]   ;;  %v18133_v59 = vld [vmem:[%s19325_s25 + $0x420] ss:$12 sps:$4 sm:$0xff]  }
 0xc00   : > { %14938 = vmatprep.subr.bf16.mxu1 %v18057_v45  ;;  %v18136_v45 = vld [vmem:[%s19325_s25 + $0x5a0] ss:$12 sps:$4 sm:$0xff]  }
 0xc02   : > { %14898 = vmatpush2.bf16.msra.mxu0 %v18059_v15  ;;  %v18141_v15 = vld [vmem:[%s19325_s25 + $0x40c] ss:$12 sps:$4 sm:$0xff]  }
 0xc03   : > { %14939 = vmatpush2.bf16.msra.mxu1 %v18060_v11  ;;  %14899 = vmatprep.subr.bf16.mxu0 %v18061_v24  ;;  %v18144_v11 = vld [vmem:[%s19325_s25 + $0x58c] ss:$12 sps:$4 sm:$0xff]   ;;  %v18139_v24 = vld [vmem:[%s19325_s25 + $0x408] ss:$12 sps:$4 sm:$0xff]  }
 0xc04   : > { %14940 = vmatprep.subr.bf16.mxu1 %v18063_v52  ;;  %v18142_v52 = vld [vmem:[%s19325_s25 + $0x588] ss:$12 sps:$4 sm:$0xff]  }
 0xc06   : > { %14900 = vmatpush2.bf16.msra.mxu0 %v18065_v6  ;;  %v18150_v6 = vld [vmem:[%s19325_s25 + $0x574] ss:$12 sps:$4 sm:$0xff]  }
 0xc07   : > { %14941 = vmatpush2.bf16.msra.mxu1 %v18066_v38  ;;  %14951 = vmatprep.subr.bf16.mxu0 %v18069_v8  ;;  %v18145_v38 = vld [vmem:[%s19325_s25 + $0x3f0] ss:$12 sps:$4 sm:$0xff]  }
 0xc08   : > { %14992 = vmatprep.subr.bf16.mxu1 %v18072_v48  ;;  %v18148_v8 = vld [vmem:[%s19325_s25 + $0x570] ss:$12 sps:$4 sm:$0xff]  }
 0xc09   : > { %14902 = vmatmul.mubr.bf16.vlgmr.msra.gmra.mxu0 %v21128_v58  ;;  %v18153_v48 = vld [vmem:[%s19325_s25 + $0x3dc] ss:$12 sps:$4 sm:$0xff]  }
 0xc0a   : > { %14943 = vmatmul.mubr.bf16.vlgmr.msra.gmra.mxu1 %v21138_v18  ;;  %14952 = vmatpush1.bf16.msra.mxu0 %v18067_v56  ;;  %v18156_v56 = vld [vmem:[%s19325_s25 + $0x55c] ss:$12 sps:$4 sm:$0xff]  }
 0xc0b   : > { %14993 = vmatpush1.bf16.msra.mxu1 %v18070_v36  ;;  %14953 = vmatprep.subr.bf16.mxu0 %v18075_v29  ;;  %v18151_v36 = vld [vmem:[%s19325_s25 + $0x3d8] ss:$12 sps:$4 sm:$0xff]  }
 0xc0c   : > { %14994 = vmatprep.subr.bf16.mxu1 %v18078_v37  ;;  %14983 = vmatprep.mubr.bf16.mxu0 %v21134_v63  ;;  %v18154_v29 = vld [vmem:[%s19325_s25 + $0x558] ss:$12 sps:$4 sm:$0xff]  }
 0xc0d   : > { %15024 = vmatprep.mubr.bf16.mxu1 %v21146_v2  ;;  %v18159_v37 = vld [vmem:[%s19325_s25 + $0x3c4] ss:$12 sps:$4 sm:$0xff]  }
 0xc0e   : > { %14954 = vmatpush1.bf16.msra.mxu0 %v18073_v28  ;;  %v18162_v28 = vld [vmem:[%s19325_s25 + $0x544] ss:$12 sps:$4 sm:$0xff]  }
 0xc0f   : > { %14995 = vmatpush1.bf16.msra.mxu1 %v18076_v19  ;;  %14955 = vmatprep.subr.bf16.mxu0 %v18081_v4  ;;  %v18157_v19 = vld [vmem:[%s19325_s25 + $0x3c0] ss:$12 sps:$4 sm:$0xff]   ;;  %v21211_v4 = vrot.slane %v21118_v0, %v21091_v53  ;;  %v18167_v0 = vld [vmem:[%s19325_s25 + $0x828] ss:$12 sps:$4 sm:$0xff]  }
 0xc10   : > { %14996 = vmatprep.subr.bf16.mxu1 %v18084_v22  ;;  %v18160_v22 = vld [vmem:[%s19325_s25 + $0x540] ss:$12 sps:$4 sm:$0xff]  }
 0xc12   : > { %14956 = vmatpush1.bf16.msra.mxu0 %v18079_v44  ;;  %v18166_v44 = vld [vmem:[%s19325_s25 + $0x6ac] ss:$12 sps:$4 sm:$0xff]  }
 0xc13   : > { %14997 = vmatpush1.bf16.msra.mxu1 %v18082_v62  ;;  %14957 = vmatprep.subr.bf16.mxu0 %v18087_v51  ;;  %v18169_v62 = vld [vmem:[%s19325_s25 + $0x82c] ss:$12 sps:$4 sm:$0xff]   ;;  %v21218_v51 = vcombine.high %v21211_v4, %v21211_v4 }
 0xc14   : > { %14998 = vmatprep.subr.bf16.mxu1 %v18090_v10  ;;  %v18164_v10 = vld [vmem:[%s19325_s25 + $0x6a8] ss:$12 sps:$4 sm:$0xff]  }
 0xc16   : > { %14958 = vmatpush1.bf16.msra.mxu0 %v18085_v39  ;;  %v21222_v39 = vld [vmem:[#allocation2 + $0x8] sm:$0xff] }
 0xc17   : > { %14999 = vmatpush1.bf16.msra.mxu1 %v18088_v1  ;;  %14959 = vmatprep.subr.bf16.mxu0 %v18093_v41  ;;  %v18172_v1 = vld [vmem:[%s19325_s25 + $0x694] ss:$12 sps:$4 sm:$0xff]  }
 0xc18   : > { %15000 = vmatprep.subr.bf16.mxu1 %v18096_v21  ;;  %v18175_v41 = vld [vmem:[%s19325_s25 + $0x814] ss:$12 sps:$4 sm:$0xff]   ;;  %v21228_v21 = vrot.slane %v21222_v39, %v21091_v53 }
 0xc1a   : > { %14960 = vmatpush1.bf16.msra.mxu0 %v18091_v33  ;;  %v12771_v33 = vcombine.high %v21228_v21, %v21228_v21 }
 0xc1b   : > { %15001 = vmatpush1.bf16.msra.mxu1 %v18094_v5  ;;  %14961 = vmatprep.subr.bf16.mxu0 %v18099_v47  ;;  %v18170_v5 = vld [vmem:[%s19325_s25 + $0x690] ss:$12 sps:$4 sm:$0xff]  }
 0xc1c   : > { %15002 = vmatprep.subr.bf16.mxu1 %v18102_v42  ;;  %v18173_v47 = vld [vmem:[%s19325_s25 + $0x810] ss:$12 sps:$4 sm:$0xff]  }
 0xc1d   : > { %v18178_v42 = vld [vmem:[%s19325_s25 + $0x67c] ss:$12 sps:$4 sm:$0xff]  }
 0xc1e   : > { %14962 = vmatpush1.bf16.msra.mxu0 %v18097_v27  ;;  %v18181_v27 = vld [vmem:[%s19325_s25 + $0x7fc] ss:$12 sps:$4 sm:$0xff]  }
 0xc1f   : > { %15003 = vmatpush1.bf16.msra.mxu1 %v18100_v46  ;;  %14963 = vmatprep.subr.bf16.mxu0 %v18105_v35  ;;  %v21239_v46 = vrot.slane %v12771_v33, %v21091_v53  ;;  %v12756_v33 = vcombine.high %v21222_v39, %v21222_v39  ;;  %v18256_v39 = vld [vmem:[%s19325_s25 + $0x6c4] ss:$12 sps:$4 sm:$0xff]  }
 0xc20   : > { %15004 = vmatprep.subr.bf16.mxu1 %v18108_v54  ;;  %v18176_v54 = vld [vmem:[%s19325_s25 + $0x678] ss:$12 sps:$4 sm:$0xff]  }
 0xc21   : > { %v21244_v35 = vcombine.high %v21239_v46, %v21239_v46 }
 0xc22   : > { %14964 = vmatpush1.bf16.msra.mxu0 %v18103_v57  ;;  %v18179_v57 = vld [vmem:[%s19325_s25 + $0x7f8] ss:$12 sps:$4 sm:$0xff]  }
 0xc23   : > { %15005 = vmatpush1.bf16.msra.mxu1 %v18106_v31  ;;  %14965 = vmatprep.subr.bf16.mxu0 %v18111_v13  ;;  %v18184_v31 = vld [vmem:[%s19325_s25 + $0x664] ss:$12 sps:$4 sm:$0xff]  }
 0xc24   : > { %15006 = vmatprep.subr.bf16.mxu1 %v18114_v60  ;;  %v18187_v13 = vld [vmem:[%s19325_s25 + $0x7e4] ss:$12 sps:$4 sm:$0xff]   ;;  %v18182_v60 = vld [vmem:[%s19325_s25 + $0x660] ss:$12 sps:$4 sm:$0xff]  }
 0xc26   : > { %14966 = vmatpush1.bf16.msra.mxu0 %v18109_v30  ;;  %v18185_v30 = vld [vmem:[%s19325_s25 + $0x7e0] ss:$12 sps:$4 sm:$0xff]  }
 0xc27   : > { %15007 = vmatpush1.bf16.msra.mxu1 %v18112_v7  ;;  %14967 = vmatprep.subr.bf16.mxu0 %v18117_v43  ;;  %v18190_v7 = vld [vmem:[%s19325_s25 + $0x64c] ss:$12 sps:$4 sm:$0xff]  }
 0xc28   : > { %15008 = vmatprep.subr.bf16.mxu1 %v18120_v50  ;;  %v18193_v43 = vld [vmem:[%s19325_s25 + $0x7cc] ss:$12 sps:$4 sm:$0xff]   ;;  %v18188_v50 = vld [vmem:[%s19325_s25 + $0x648] ss:$12 sps:$4 sm:$0xff]  }
 0xc2a   : > { %14968 = vmatpush2.bf16.msra.mxu0 %v18115_v12  ;;  %v18191_v12 = vld [vmem:[%s19325_s25 + $0x7c8] ss:$12 sps:$4 sm:$0xff]  }
 0xc2b   : > { %15009 = vmatpush2.bf16.msra.mxu1 %v18118_v32  ;;  %14969 = vmatprep.subr.bf16.mxu0 %v18123_v16  ;;  %v18196_v32 = vld [vmem:[%s19325_s25 + $0x634] ss:$12 sps:$4 sm:$0xff]  }
 0xc2c   : > { %15010 = vmatprep.subr.bf16.mxu1 %v18126_v25  ;;  %v18199_v16 = vld [vmem:[%s19325_s25 + $0x7b4] ss:$12 sps:$4 sm:$0xff]   ;;  %v18194_v25 = vld [vmem:[%s19325_s25 + $0x630] ss:$12 sps:$4 sm:$0xff]  }
 0xc2e   : > { %14970 = vmatpush2.bf16.msra.mxu0 %v18121_v3  ;;  %v18197_v3 = vld [vmem:[%s19325_s25 + $0x7b0] ss:$12 sps:$4 sm:$0xff]  }
 0xc2f   : > { %15011 = vmatpush2.bf16.msra.mxu1 %v18124_v55  ;;  %14971 = vmatprep.subr.bf16.mxu0 %v18129_v17  ;;  %v18202_v55 = vld [vmem:[%s19325_s25 + $0x61c] ss:$12 sps:$4 sm:$0xff]  }
 0xc30   : > { %15012 = vmatprep.subr.bf16.mxu1 %v18132_v23  ;;  %v18205_v17 = vld [vmem:[%s19325_s25 + $0x79c] ss:$12 sps:$4 sm:$0xff]   ;;  %v18200_v23 = vld [vmem:[%s19325_s25 + $0x618] ss:$12 sps:$4 sm:$0xff]  }
 0xc32   : > { %14972 = vmatpush2.bf16.msra.mxu0 %v18127_v34  ;;  %v18203_v34 = vld [vmem:[%s19325_s25 + $0x798] ss:$12 sps:$4 sm:$0xff]  }
 0xc33   : > { %15013 = vmatpush2.bf16.msra.mxu1 %v18130_v49  ;;  %14973 = vmatprep.subr.bf16.mxu0 %v18135_v26  ;;  %v18208_v49 = vld [vmem:[%s19325_s25 + $0x604] ss:$12 sps:$4 sm:$0xff]  }
 0xc34   : > { %15014 = vmatprep.subr.bf16.mxu1 %v18138_v61  ;;  %v18211_v26 = vld [vmem:[%s19325_s25 + $0x784] ss:$12 sps:$4 sm:$0xff]   ;;  %v18206_v61 = vld [vmem:[%s19325_s25 + $0x600] ss:$12 sps:$4 sm:$0xff]  }
 0xc36   : > { %14974 = vmatpush2.bf16.msra.mxu0 %v18133_v59  ;;  %v18209_v59 = vld [vmem:[%s19325_s25 + $0x780] ss:$12 sps:$4 sm:$0xff]  }
 0xc37   : > { %15015 = vmatpush2.bf16.msra.mxu1 %v18136_v45  ;;  %14975 = vmatprep.subr.bf16.mxu0 %v18141_v15  ;;  %v18214_v45 = vld [vmem:[%s19325_s25 + $0x76c] ss:$12 sps:$4 sm:$0xff]  }
 0xc38   : > { %15016 = vmatprep.subr.bf16.mxu1 %v18144_v11  ;;  %v18217_v15 = vld [vmem:[%s19325_s25 + $0x8ec] ss:$12 sps:$4 sm:$0xff]   ;;  %v18212_v11 = vld [vmem:[%s19325_s25 + $0x768] ss:$12 sps:$4 sm:$0xff]  }
 0xc3a   : > { %14976 = vmatpush2.bf16.msra.mxu0 %v18139_v24  ;;  %v18215_v24 = vld [vmem:[%s19325_s25 + $0x8e8] ss:$12 sps:$4 sm:$0xff]  }
 0xc3b   : > { %15017 = vmatpush2.bf16.msra.mxu1 %v18142_v52  ;;  %14977 = vmatprep.subr.bf16.mxu0 %v18147_v9  ;;  %v18220_v52 = vld [vmem:[%s19325_s25 + $0x754] ss:$12 sps:$4 sm:$0xff]  }
 0xc3c   : > { %15018 = vmatprep.subr.bf16.mxu1 %v18150_v6  ;;  %v18223_v9 = vld [vmem:[%s19325_s25 + $0x8d4] ss:$12 sps:$4 sm:$0xff]   ;;  %v18218_v6 = vld [vmem:[%s19325_s25 + $0x750] ss:$12 sps:$4 sm:$0xff]  }
 0xc3e   : > { %14978 = vmatpush2.bf16.msra.mxu0 %v18145_v38  ;;  %v18221_v38 = vld [vmem:[%s19325_s25 + $0x8d0] ss:$12 sps:$4 sm:$0xff]  }
 0xc3f   : > { %15019 = vmatpush2.bf16.msra.mxu1 %v18148_v8  ;;  %14979 = vmatprep.subr.bf16.mxu0 %v18153_v48  ;;  %v18226_v8 = vld [vmem:[%s19325_s25 + $0x73c] ss:$12 sps:$4 sm:$0xff]  }
 0xc40   : > { %15020 = vmatprep.subr.bf16.mxu1 %v18156_v56  ;;  %v18229_v48 = vld [vmem:[%s19325_s25 + $0x8bc] ss:$12 sps:$4 sm:$0xff]   ;;  %v18224_v56 = vld [vmem:[%s19325_s25 + $0x738] ss:$12 sps:$4 sm:$0xff]  }
 0xc42   : > { %14980 = vmatpush2.bf16.msra.mxu0 %v18151_v36  ;;  %v18227_v36 = vld [vmem:[%s19325_s25 + $0x8b8] ss:$12 sps:$4 sm:$0xff]  }
 0xc43   : > { %15021 = vmatpush2.bf16.msra.mxu1 %v18154_v29  ;;  %14981 = vmatprep.subr.bf16.mxu0 %v18159_v37  ;;  %v18232_v29 = vld [vmem:[%s19325_s25 + $0x724] ss:$12 sps:$4 sm:$0xff]  }
 0xc44   : > { %15022 = vmatprep.subr.bf16.mxu1 %v18162_v28  ;;  %v18235_v37 = vld [vmem:[%s19325_s25 + $0x8a4] ss:$12 sps:$4 sm:$0xff]   ;;  %v18230_v28 = vld [vmem:[%s19325_s25 + $0x720] ss:$12 sps:$4 sm:$0xff]  }
 0xc46   : > { %14982 = vmatpush2.bf16.msra.mxu0 %v18157_v19  ;;  %v18233_v19 = vld [vmem:[%s19325_s25 + $0x8a0] ss:$12 sps:$4 sm:$0xff]  }
 0xc47   : > { %15023 = vmatpush2.bf16.msra.mxu1 %v18160_v22  ;;  %15033 = vmatprep.subr.bf16.mxu0 %v18166_v44  ;;  %v18238_v22 = vld [vmem:[%s19325_s25 + $0x70c] ss:$12 sps:$4 sm:$0xff]  }
 0xc48   : > { %15074 = vmatprep.subr.bf16.mxu1 %v18169_v62  ;;  %v18241_v44 = vld [vmem:[%s19325_s25 + $0x88c] ss:$12 sps:$4 sm:$0xff]   ;;  %v18236_v62 = vld [vmem:[%s19325_s25 + $0x708] ss:$12 sps:$4 sm:$0xff]  }
 0xc49   : > { %14984 = vmatmul.mubr.bf16.vlgmr.msra.gmra.mxu0 %v21211_v4 }
 0xc4a   : > { %15025 = vmatmul.mubr.bf16.vlgmr.msra.gmra.mxu1 %v21218_v51  ;;  %15034 = vmatpush1.bf16.msra.mxu0 %v18164_v10  ;;  %v18239_v10 = vld [vmem:[%s19325_s25 + $0x888] ss:$12 sps:$4 sm:$0xff]  }
 0xc4b   : > { %15075 = vmatpush1.bf16.msra.mxu1 %v18167_v0  ;;  %15035 = vmatprep.subr.bf16.mxu0 %v18172_v1  ;;  %v18244_v0 = vld [vmem:[%s19325_s25 + $0x6f4] ss:$12 sps:$4 sm:$0xff]  }
 0xc4c   : > { %15076 = vmatprep.subr.bf16.mxu1 %v18175_v41  ;;  %15065 = vmatprep.mubr.bf16.mxu0 %v21239_v46  ;;  %v18247_v1 = vld [vmem:[%s19325_s25 + $0x874] ss:$12 sps:$4 sm:$0xff]   ;;  %v18242_v41 = vld [vmem:[%s19325_s25 + $0x6f0] ss:$12 sps:$4 sm:$0xff]  }
 0xc4d   : > { %15106 = vmatprep.mubr.bf16.mxu1 %v21244_v35 }
 0xc4e   : > { %15036 = vmatpush1.bf16.msra.mxu0 %v18170_v5  ;;  %v18245_v5 = vld [vmem:[%s19325_s25 + $0x870] ss:$12 sps:$4 sm:$0xff]  }
 0xc4f   : > { %15077 = vmatpush1.bf16.msra.mxu1 %v18173_v47  ;;  %15037 = vmatprep.subr.bf16.mxu0 %v18178_v42  ;;  %v18250_v47 = vld [vmem:[%s19325_s25 + $0x6dc] ss:$12 sps:$4 sm:$0xff]  }
 0xc50   : > { %15078 = vmatprep.subr.bf16.mxu1 %v18181_v27  ;;  %v18253_v42 = vld [vmem:[%s19325_s25 + $0x85c] ss:$12 sps:$4 sm:$0xff]   ;;  %v18248_v27 = vld [vmem:[%s19325_s25 + $0x6d8] ss:$12 sps:$4 sm:$0xff]  }
 0xc52   : > { %15038 = vmatpush1.bf16.msra.mxu0 %v18176_v54  ;;  %v21299_v54 = vrot.slane %v12756_v33, %v21091_v53  ;;  %v18308_v33 = vld [vmem:[%s19325_s25 + $0xa68] ss:$12 sps:$4 sm:$0xff]  }
 0xc53   : > { %15079 = vmatpush1.bf16.msra.mxu1 %v18179_v57  ;;  %15039 = vmatprep.subr.bf16.mxu0 %v18184_v31  ;;  %v18251_v57 = vld [vmem:[%s19325_s25 + $0x858] ss:$12 sps:$4 sm:$0xff]  }
 0xc54   : > { %15080 = vmatprep.subr.bf16.mxu1 %v18187_v13  ;;  %v18259_v31 = vld [vmem:[%s19325_s25 + $0x844] ss:$12 sps:$4 sm:$0xff]   ;;  %v18254_v13 = vld [vmem:[%s19325_s25 + $0x6c0] ss:$12 sps:$4 sm:$0xff]  }
 0xc56   : > { %15040 = vmatpush1.bf16.msra.mxu0 %v18182_v60  ;;  %v12772_v60 = vcombine.high %v21299_v54, %v21299_v54 }
 0xc57   : > { %15081 = vmatpush1.bf16.msra.mxu1 %v18185_v30  ;;  %15041 = vmatprep.subr.bf16.mxu0 %v18190_v7  ;;  %v18257_v30 = vld [vmem:[%s19325_s25 + $0x840] ss:$12 sps:$4 sm:$0xff]   ;;  %v21310_v7 = vrot.slane %v21228_v21, %v21091_v53  ;;  %v12692_v21 = vsub.s32 0, %v21083_v14 }
 0xc58   : > { %15082 = vmatprep.subr.bf16.mxu1 %v18193_v43  ;;  %v18262_v43 = vld [vmem:[%s19325_s25 + $0x9ac] ss:$12 sps:$4 sm:$0xff]  }
 0xc5a   : > { %15042 = vmatpush1.bf16.msra.mxu0 %v18188_v50  ;;  %v18265_v50 = vld [vmem:[%s19325_s25 + $0xb2c] ss:$12 sps:$4 sm:$0xff]  }
 0xc5b   : > { %15083 = vmatpush1.bf16.msra.mxu1 %v18191_v12  ;;  %15043 = vmatprep.subr.bf16.mxu0 %v18196_v32  ;;  %v18260_v12 = vld [vmem:[%s19325_s25 + $0x9a8] ss:$12 sps:$4 sm:$0xff]  }
 0xc5c   : > { %15084 = vmatprep.subr.bf16.mxu1 %v18199_v16  ;;  %v18263_v32 = vld [vmem:[%s19325_s25 + $0xb28] ss:$12 sps:$4 sm:$0xff]   ;;  %v21317_v16 = vrot.slane %v12772_v60, %v21091_v53  ;;  %v18323_v60 = vld [vmem:[%s19325_s25 + $0xbb8] ss:$12 sps:$4 sm:$0xff]  }
 0xc5e   : > { %15044 = vmatpush1.bf16.msra.mxu0 %v18194_v25  ;;  %v21321_v25 = vcombine.high %v21310_v7, %v21310_v7 }
 0xc5f   : > { %15085 = vmatpush1.bf16.msra.mxu1 %v18197_v3  ;;  %15045 = vmatprep.subr.bf16.mxu0 %v18202_v55  ;;  %v12696_v3 = vsub.s32 1, %v21083_v14  ;;  %v18268_v55 = vld [vmem:[%s19325_s25 + $0x994] ss:$12 sps:$4 sm:$0xff]  }
 0xc60   : > { %15086 = vmatprep.subr.bf16.mxu1 %v18205_v17  ;;  %v18271_v17 = vld [vmem:[%s19325_s25 + $0xb14] ss:$12 sps:$4 sm:$0xff]  }
 0xc62   : > { %15046 = vmatpush1.bf16.msra.mxu0 %v18200_v23  ;;  %v18266_v23 = vld [vmem:[%s19325_s25 + $0x990] ss:$12 sps:$4 sm:$0xff]  }
 0xc63   : > { %15087 = vmatpush1.bf16.msra.mxu1 %v18203_v34  ;;  %15047 = vmatprep.subr.bf16.mxu0 %v18208_v49  ;;  %v21330_v34 = vcombine.high %v21317_v16, %v21317_v16  ;;  %v18269_v49 = vld [vmem:[%s19325_s25 + $0xb10] ss:$12 sps:$4 sm:$0xff]  }
 0xc64   : > { %15088 = vmatprep.subr.bf16.mxu1 %v18211_v26  ;;  %v18274_v26 = vld [vmem:[%s19325_s25 + $0x97c] ss:$12 sps:$4 sm:$0xff]  }
 0xc66   : > { %15048 = vmatpush1.bf16.msra.mxu0 %v18206_v61  ;;  %v18277_v61 = vld [vmem:[%s19325_s25 + $0xafc] ss:$12 sps:$4 sm:$0xff]  }
 0xc67   : > { %15089 = vmatpush1.bf16.msra.mxu1 %v18209_v59  ;;  %15049 = vmatprep.subr.bf16.mxu0 %v18214_v45  ;;  %v18272_v59 = vld [vmem:[%s19325_s25 + $0x978] ss:$12 sps:$4 sm:$0xff]  }
 0xc68   : > { %15090 = vmatprep.subr.bf16.mxu1 %v18217_v15  ;;  %v18275_v45 = vld [vmem:[%s19325_s25 + $0xaf8] ss:$12 sps:$4 sm:$0xff]  }
 0xc69   : > { %v18280_v15 = vld [vmem:[%s19325_s25 + $0x964] ss:$12 sps:$4 sm:$0xff]  }
 0xc6a   : > { %15050 = vmatpush2.bf16.msra.mxu0 %v18212_v11  ;;  %v18283_v11 = vld [vmem:[%s19325_s25 + $0xae4] ss:$12 sps:$4 sm:$0xff]  }
 0xc6b   : > { %15091 = vmatpush2.bf16.msra.mxu1 %v18215_v24  ;;  %15051 = vmatprep.subr.bf16.mxu0 %v18220_v52  ;;  %v18278_v24 = vld [vmem:[%s19325_s25 + $0x960] ss:$12 sps:$4 sm:$0xff]  }
 0xc6c   : > { %15092 = vmatprep.subr.bf16.mxu1 %v18223_v9  ;;  %v18281_v52 = vld [vmem:[%s19325_s25 + $0xae0] ss:$12 sps:$4 sm:$0xff]  }
 0xc6d   : > { %v18286_v9 = vld [vmem:[%s19325_s25 + $0x94c] ss:$12 sps:$4 sm:$0xff]  }
 0xc6e   : > { %15052 = vmatpush2.bf16.msra.mxu0 %v18218_v6  ;;  %v18289_v6 = vld [vmem:[%s19325_s25 + $0xacc] ss:$12 sps:$4 sm:$0xff]  }
 0xc6f   : > { %15093 = vmatpush2.bf16.msra.mxu1 %v18221_v38  ;;  %15053 = vmatprep.subr.bf16.mxu0 %v18226_v8  ;;  %v18284_v38 = vld [vmem:[%s19325_s25 + $0x948] ss:$12 sps:$4 sm:$0xff]  }
 0xc70   : > { %15094 = vmatprep.subr.bf16.mxu1 %v18229_v48  ;;  %v18287_v8 = vld [vmem:[%s19325_s25 + $0xac8] ss:$12 sps:$4 sm:$0xff]  }
 0xc71   : > { %v18292_v48 = vld [vmem:[%s19325_s25 + $0x934] ss:$12 sps:$4 sm:$0xff]  }
 0xc72   : > { %15054 = vmatpush2.bf16.msra.mxu0 %v18224_v56  ;;  %v18295_v56 = vld [vmem:[%s19325_s25 + $0xab4] ss:$12 sps:$4 sm:$0xff]  }
 0xc73   : > { %15095 = vmatpush2.bf16.msra.mxu1 %v18227_v36  ;;  %15055 = vmatprep.subr.bf16.mxu0 %v18232_v29  ;;  %v18290_v36 = vld [vmem:[%s19325_s25 + $0x930] ss:$12 sps:$4 sm:$0xff]  }
 0xc74   : > { %15096 = vmatprep.subr.bf16.mxu1 %v18235_v37  ;;  %v18293_v29 = vld [vmem:[%s19325_s25 + $0xab0] ss:$12 sps:$4 sm:$0xff]  }
 0xc75   : > { %v18298_v37 = vld [vmem:[%s19325_s25 + $0x91c] ss:$12 sps:$4 sm:$0xff]  }
 0xc76   : > { %15056 = vmatpush2.bf16.msra.mxu0 %v18230_v28  ;;  %v18301_v28 = vld [vmem:[%s19325_s25 + $0xa9c] ss:$12 sps:$4 sm:$0xff]  }
 0xc77   : > { %15097 = vmatpush2.bf16.msra.mxu1 %v18233_v19  ;;  %15057 = vmatprep.subr.bf16.mxu0 %v18238_v22  ;;  %v18296_v19 = vld [vmem:[%s19325_s25 + $0x918] ss:$12 sps:$4 sm:$0xff]  }
 0xc78   : > { %15098 = vmatprep.subr.bf16.mxu1 %v18241_v44  ;;  %v18299_v22 = vld [vmem:[%s19325_s25 + $0xa98] ss:$12 sps:$4 sm:$0xff]  }
 0xc79   : > { %v18304_v44 = vld [vmem:[%s19325_s25 + $0x904] ss:$12 sps:$4 sm:$0xff]  }
 0xc7a   : > { %15058 = vmatpush2.bf16.msra.mxu0 %v18236_v62  ;;  %v18307_v62 = vld [vmem:[%s19325_s25 + $0xa84] ss:$12 sps:$4 sm:$0xff]  }
 0xc7b   : > { %15099 = vmatpush2.bf16.msra.mxu1 %v18239_v10  ;;  %15059 = vmatprep.subr.bf16.mxu0 %v18244_v0  ;;  %v18302_v10 = vld [vmem:[%s19325_s25 + $0x900] ss:$12 sps:$4 sm:$0xff]  }
 0xc7c   : > { %15100 = vmatprep.subr.bf16.mxu1 %v18247_v1  ;;  %v18305_v0 = vld [vmem:[%s19325_s25 + $0xa80] ss:$12 sps:$4 sm:$0xff]  }
 0xc7d   : > { %v18310_v1 = vld [vmem:[%s19325_s25 + $0xa6c] ss:$12 sps:$4 sm:$0xff]  }
 0xc7e   : > { %15060 = vmatpush2.bf16.msra.mxu0 %v18242_v41  ;;  %v18313_v41 = vld [vmem:[%s19325_s25 + $0xbec] ss:$12 sps:$4 sm:$0xff]  }
 0xc7f   : > { %15101 = vmatpush2.bf16.msra.mxu1 %v18245_v5  ;;  %15061 = vmatprep.subr.bf16.mxu0 %v18250_v47  ;;  %v18311_v5 = vld [vmem:[%s19325_s25 + $0xbe8] ss:$12 sps:$4 sm:$0xff]  }
 0xc80   : > { %15102 = vmatprep.subr.bf16.mxu1 %v18253_v42  ;;  %v18316_v47 = vld [vmem:[%s19325_s25 + $0xa54] ss:$12 sps:$4 sm:$0xff]  }
 0xc81   : > { %v18319_v42 = vld [vmem:[%s19325_s25 + $0xbd4] ss:$12 sps:$4 sm:$0xff]  }
 0xc82   : > { %15062 = vmatpush2.bf16.msra.mxu0 %v18248_v27  ;;  %v18314_v27 = vld [vmem:[%s19325_s25 + $0xa50] ss:$12 sps:$4 sm:$0xff]  }
 0xc83   : > { %15103 = vmatpush2.bf16.msra.mxu1 %v18251_v57  ;;  %15063 = vmatprep.subr.bf16.mxu0 %v18256_v39  ;;  %v18317_v57 = vld [vmem:[%s19325_s25 + $0xbd0] ss:$12 sps:$4 sm:$0xff]  }
 0xc84   : > { %15104 = vmatprep.subr.bf16.mxu1 %v18259_v31  ;;  %v18322_v39 = vld [vmem:[%s19325_s25 + $0xa3c] ss:$12 sps:$4 sm:$0xff]  }
 0xc85   : > { %v18325_v31 = vld [vmem:[%s19325_s25 + $0xbbc] ss:$12 sps:$4 sm:$0xff]  }
 0xc86   : > { %15064 = vmatpush2.bf16.msra.mxu0 %v18254_v13  ;;  %v18320_v13 = vld [vmem:[%s19325_s25 + $0xa38] ss:$12 sps:$4 sm:$0xff]  }
 0xc87   : > { %15105 = vmatpush2.bf16.msra.mxu1 %v18257_v30  ;;  %15115 = vmatprep.subr.bf16.mxu0 %v18262_v43  ;;  %v18328_v30 = vld [vmem:[%s19325_s25 + $0xa24] ss:$12 sps:$4 sm:$0xff]  }
 0xc88   : > { %15156 = vmatprep.subr.bf16.mxu1 %v18265_v50  ;;  %v18331_v43 = vld [vmem:[%s19325_s25 + $0xba4] ss:$12 sps:$4 sm:$0xff]   ;;  %v18326_v50 = vld [vmem:[%s19325_s25 + $0xa20] ss:$12 sps:$4 sm:$0xff]  }
 0xc89   : > { %15066 = vmatmul.mubr.bf16.vlgmr.msra.gmra.mxu0 %v21310_v7 }
 0xc8a   : > { %15107 = vmatmul.mubr.bf16.vlgmr.msra.gmra.mxu1 %v21321_v25  ;;  %15116 = vmatpush1.bf16.msra.mxu0 %v18260_v12  ;;  %v18329_v12 = vld [vmem:[%s19325_s25 + $0xba0] ss:$12 sps:$4 sm:$0xff]  }
 0xc8b   : > { %15157 = vmatpush1.bf16.msra.mxu1 %v18263_v32  ;;  %15117 = vmatprep.subr.bf16.mxu0 %v18268_v55  ;;  %v18334_v32 = vld [vmem:[%s19325_s25 + $0xa0c] ss:$12 sps:$4 sm:$0xff]  }
 0xc8c   : > { %15158 = vmatprep.subr.bf16.mxu1 %v18271_v17  ;;  %15147 = vmatprep.mubr.bf16.mxu0 %v21317_v16  ;;  %v18337_v55 = vld [vmem:[%s19325_s25 + $0xb8c] ss:$12 sps:$4 sm:$0xff]   ;;  %v18332_v17 = vld [vmem:[%s19325_s25 + $0xa08] ss:$12 sps:$4 sm:$0xff]  }
 0xc8d   : > { %15188 = vmatprep.mubr.bf16.mxu1 %v21330_v34 }
 0xc8e   : > { %15118 = vmatpush1.bf16.msra.mxu0 %v18266_v23  ;;  %v18335_v23 = vld [vmem:[%s19325_s25 + $0xb88] ss:$12 sps:$4 sm:$0xff]  }
 0xc8f   : > { %15159 = vmatpush1.bf16.msra.mxu1 %v18269_v49  ;;  %15119 = vmatprep.subr.bf16.mxu0 %v18274_v26  ;;  %v18340_v49 = vld [vmem:[%s19325_s25 + $0x9f4] ss:$12 sps:$4 sm:$0xff]  }
 0xc90   : > { %15160 = vmatprep.subr.bf16.mxu1 %v18277_v61  ;;  %v18343_v26 = vld [vmem:[%s19325_s25 + $0xb74] ss:$12 sps:$4 sm:$0xff]   ;;  %v18338_v61 = vld [vmem:[%s19325_s25 + $0x9f0] ss:$12 sps:$4 sm:$0xff]  }
 0xc92   : > { %15120 = vmatpush1.bf16.msra.mxu0 %v18272_v59  ;;  %v18341_v59 = vld [vmem:[%s19325_s25 + $0xb70] ss:$12 sps:$4 sm:$0xff]  }
 0xc93   : > { %15161 = vmatpush1.bf16.msra.mxu1 %v18275_v45  ;;  %15121 = vmatprep.subr.bf16.mxu0 %v18280_v15  ;;  %v18346_v45 = vld [vmem:[%s19325_s25 + $0x9dc] ss:$12 sps:$4 sm:$0xff]  }
 0xc94   : > { %15162 = vmatprep.subr.bf16.mxu1 %v18283_v11  ;;  %v18349_v15 = vld [vmem:[%s19325_s25 + $0xb5c] ss:$12 sps:$4 sm:$0xff]   ;;  %v18344_v11 = vld [vmem:[%s19325_s25 + $0x9d8] ss:$12 sps:$4 sm:$0xff]  }
 0xc96   : > { %15122 = vmatpush1.bf16.msra.mxu0 %v18278_v24  ;;  %v18347_v24 = vld [vmem:[%s19325_s25 + $0xb58] ss:$12 sps:$4 sm:$0xff]  }
 0xc97   : > { %15163 = vmatpush1.bf16.msra.mxu1 %v18281_v52  ;;  %15123 = vmatprep.subr.bf16.mxu0 %v18286_v9  ;;  %v18352_v52 = vld [vmem:[%s19325_s25 + $0x9c4] ss:$12 sps:$4 sm:$0xff]  }
 0xc98   : > { %15164 = vmatprep.subr.bf16.mxu1 %v18289_v6  ;;  %v18355_v9 = vld [vmem:[%s19325_s25 + $0xb44] ss:$12 sps:$4 sm:$0xff]   ;;  %v18350_v6 = vld [vmem:[%s19325_s25 + $0x9c0] ss:$12 sps:$4 sm:$0xff]  }
 0xc9a   : > { %15124 = vmatpush1.bf16.msra.mxu0 %v18284_v38  ;;  %v18353_v38 = vld [vmem:[%s19325_s25 + $0xb40] ss:$12 sps:$4 sm:$0xff]  }
 0xc9b   : > { %15165 = vmatpush1.bf16.msra.mxu1 %v18287_v8  ;;  %15125 = vmatprep.subr.bf16.mxu0 %v18292_v48  ;;  %v21395_v8 = vld [vmem:[%s675_s24] sm:$0x7]  ;;  %v21399_v48 = vrot.slane %v21299_v54, %v21091_v53 }
 0xc9c   : > { %15166 = vmatprep.subr.bf16.mxu1 %v18295_v56  ;;  %v18357_v56 = vld [vmem:[%s19325_s25 + $0x170] ss:$12 sps:$4 sm:$0xff]   ;;  %v12693_v53 = vrot.slane %v21395_v8, %v12692_v21  ;;  %v18361_v54 = vld [vmem:[%s19325_s25 + $0x158] ss:$12 sps:$4 sm:$0xff]   ;;  %v18365_v21 = vld [vmem:[%s19325_s25 + $0x140] ss:$12 sps:$4 sm:$0xff]  }
 0xc9e   : > { %15126 = vmatpush1.bf16.msra.mxu0 %v18290_v36  ;;  %v18358_v36 = vld [vmem:[%s19325_s25 + $0x2f0] ss:$12 sps:$4 sm:$0xff]  }
 0xc9f   : > { %15167 = vmatpush1.bf16.msra.mxu1 %v18293_v29  ;;  %15127 = vmatprep.subr.bf16.mxu0 %v18298_v37  ;;  %v18359_v29 = vld [vmem:[%s19325_s25 + $0xb0] ss:$12 sps:$4 sm:$0xff]   ;;  %v21406_v37 = vcombine.high %v21399_v48, %v21399_v48 }
 0xca0   : > { %15168 = vmatprep.subr.bf16.mxu1 %v18301_v28  ;;  %v18360_v28 = vld [vmem:[%s19325_s25 + $0x230] ss:$12 sps:$4 sm:$0xff]  }
 0xca2   : > { %15128 = vmatpush1.bf16.msra.mxu0 %v18296_v19  ;;  %v18362_v19 = vld [vmem:[%s19325_s25 + $0x2d8] ss:$12 sps:$4 sm:$0xff]  }
 0xca3   : > { %15169 = vmatpush1.bf16.msra.mxu1 %v18299_v22  ;;  %15129 = vmatprep.subr.bf16.mxu0 %v18304_v44  ;;  %v12697_v22 = vrot.slane %v21395_v8, %v12696_v3  ;;  %v18363_v44 = vld [vmem:[%s19325_s25 + $0x98] ss:$12 sps:$4 sm:$0xff]   ;;  %v18366_v3 = vld [vmem:[%s19325_s25 + $0x2c0] ss:$12 sps:$4 sm:$0xff]  }
 0xca4   : > { %15170 = vmatprep.subr.bf16.mxu1 %v18307_v62 }
 0xca6   : > { %15130 = vmatpush1.bf16.msra.mxu0 %v18302_v10 }
 0xca7   : > { %15171 = vmatpush1.bf16.msra.mxu1 %v18305_v0  ;;  %15131 = vmatprep.subr.bf16.mxu0 %v18310_v1  ;;  %v18364_v0 = vld [vmem:[%s19325_s25 + $0x218] ss:$12 sps:$4 sm:$0xff]  }
 0xca8   : > { %15172 = vmatprep.subr.bf16.mxu1 %v18313_v41 }
 0xcaa   : > { %15132 = vmatpush2.bf16.msra.mxu0 %v18308_v33 }
 0xcab   : > { %15173 = vmatpush2.bf16.msra.mxu1 %v18311_v5  ;;  %15133 = vmatprep.subr.bf16.mxu0 %v18316_v47 }
 0xcac   : > { %15174 = vmatprep.subr.bf16.mxu1 %v18319_v42  ;;  %v18367_v42 = vld [vmem:[%s19325_s25 + $0x80] ss:$12 sps:$4 sm:$0xff]  }
 0xcae   : > { %15134 = vmatpush2.bf16.msra.mxu0 %v18314_v27 }
 0xcaf   : > { %15175 = vmatpush2.bf16.msra.mxu1 %v18317_v57  ;;  %15135 = vmatprep.subr.bf16.mxu0 %v18322_v39  ;;  %v18368_v39 = vld [vmem:[%s19325_s25 + $0x200] ss:$12 sps:$4 sm:$0xff]  }
 0xcb0   : > { %15176 = vmatprep.subr.bf16.mxu1 %v18325_v31 }
 0xcb2   : > { %15136 = vmatpush2.bf16.msra.mxu0 %v18320_v13  ;;  %v18369_v13 = vld [vmem:[%s19325_s25 + $0x128] ss:$12 sps:$4 sm:$0xff]  }
 0xcb3   : > { %15177 = vmatpush2.bf16.msra.mxu1 %v18323_v60  ;;  %15137 = vmatprep.subr.bf16.mxu0 %v18328_v30 }
 0xcb4   : > { %15178 = vmatprep.subr.bf16.mxu1 %v18331_v43  ;;  %v18372_v43 = vld [vmem:[%s19325_s25 + $0x1e8] ss:$12 sps:$4 sm:$0xff]  }
 0xcb6   : > { %15138 = vmatpush2.bf16.msra.mxu0 %v18326_v50  ;;  %v18373_v50 = vld [vmem:[%s19325_s25 + $0x110] ss:$12 sps:$4 sm:$0xff]  }
 0xcb7   : > { %15179 = vmatpush2.bf16.msra.mxu1 %v18329_v12  ;;  %15139 = vmatprep.subr.bf16.mxu0 %v18334_v32  ;;  %v18374_v12 = vld [vmem:[%s19325_s25 + $0x290] ss:$12 sps:$4 sm:$0xff]  }
 0xcb8   : > { %15180 = vmatprep.subr.bf16.mxu1 %v18337_v55  ;;  %v18375_v32 = vld [vmem:[%s19325_s25 + $0x50] ss:$12 sps:$4 sm:$0xff]  }
 0xcb9   : > { %v18376_v55 = vld [vmem:[%s19325_s25 + $0x1d0] ss:$12 sps:$4 sm:$0xff]  }
 0xcba   : > { %15140 = vmatpush2.bf16.msra.mxu0 %v18332_v17  ;;  %v18377_v17 = vld [vmem:[%s19325_s25 + $0xf8] ss:$12 sps:$4 sm:$0xff]  }
 0xcbb   : > { %15181 = vmatpush2.bf16.msra.mxu1 %v18335_v23  ;;  %15141 = vmatprep.subr.bf16.mxu0 %v18340_v49  ;;  %v18378_v23 = vld [vmem:[%s19325_s25 + $0x278] ss:$12 sps:$4 sm:$0xff]  }
 0xcbc   : > { %15182 = vmatprep.subr.bf16.mxu1 %v18343_v26  ;;  %v18379_v49 = vld [vmem:[%s19325_s25 + $0x38] ss:$12 sps:$4 sm:$0xff]  }
 0xcbd   : > { %v18380_v26 = vld [vmem:[%s19325_s25 + $0x1b8] ss:$12 sps:$4 sm:$0xff]  }
 0xcbe   : > { %15142 = vmatpush2.bf16.msra.mxu0 %v18338_v61  ;;  %v18381_v61 = vld [vmem:[%s19325_s25 + $0xe0] ss:$12 sps:$4 sm:$0xff]  }
 0xcbf   : > { %15183 = vmatpush2.bf16.msra.mxu1 %v18341_v59  ;;  %15143 = vmatprep.subr.bf16.mxu0 %v18346_v45  ;;  %v18382_v59 = vld [vmem:[%s19325_s25 + $0x260] ss:$12 sps:$4 sm:$0xff]  }
 0xcc0   : > { %15184 = vmatprep.subr.bf16.mxu1 %v18349_v15  ;;  %v18383_v45 = vld [vmem:[%s19325_s25 + $0x20] ss:$12 sps:$4 sm:$0xff]  }
 0xcc1   : > { %v18384_v15 = vld [vmem:[%s19325_s25 + $0x1a0] ss:$12 sps:$4 sm:$0xff]  }
 0xcc2   : > { %15144 = vmatpush2.bf16.msra.mxu0 %v18344_v11  ;;  %v18385_v11 = vld [vmem:[%s19325_s25 + $0xc8] ss:$12 sps:$4 sm:$0xff]  }
 0xcc3   : > { %15185 = vmatpush2.bf16.msra.mxu1 %v18347_v24  ;;  %15145 = vmatprep.subr.bf16.mxu0 %v18352_v52  ;;  %v18386_v24 = vld [vmem:[%s19325_s25 + $0x248] ss:$12 sps:$4 sm:$0xff]  }
 0xcc4   : > { %15186 = vmatprep.subr.bf16.mxu1 %v18355_v9  ;;  %v18387_v52 = vld [vmem:[%s19325_s25 + $0x8] ss:$12 sps:$4 sm:$0xff]  }
 0xcc5   : > { %v18388_v9 = vld [vmem:[%s19325_s25 + $0x188] ss:$12 sps:$4 sm:$0xff]  }
 0xcc6   : > { %15146 = vmatpush2.bf16.msra.mxu0 %v18350_v6  ;;  %v18389_v6 = vld [vmem:[%s19325_s25 + $0x470] ss:$12 sps:$4 sm:$0xff]  }
 0xcc7   : > { %15187 = vmatpush2.bf16.msra.mxu1 %v18353_v38  ;;  %17389 = vmatprep.subr.bf16.mxu0 %v18357_v56  ;;  %v18390_v38 = vld [vmem:[%s19325_s25 + $0x5f0] ss:$12 sps:$4 sm:$0xff]  }
 0xcc8   : > { %17411 = vmatprep.subr.bf16.mxu1 %v18358_v36  ;;  %v18391_v56 = vld [vmem:[%s19325_s25 + $0x3b0] ss:$12 sps:$4 sm:$0xff]  }
 0xcc9   : > { %v14903_v62 = vpop.f32.mrf.mxu0  ;;  %15148 = vmatmul.mubr.bf16.vlgmr.msra.gmra.mxu0 %v21399_v48  ;;  %v18392_v36 = vld [vmem:[%s19325_s25 + $0x530] ss:$12 sps:$4 sm:$0xff]  }
 0xcca   : > { %v14944_v10 = vpop.f32.mrf.mxu1  ;;  %15189 = vmatmul.mubr.bf16.vlgmr.msra.gmra.mxu1 %v21406_v37  ;;  %v14904_v1 = vadd.f32 %v14903_v62, %v12693_v53  ;;  %17390 = vmatpush3.bf16.msra.mxu0 %v18359_v29  ;;  %v18393_v29 = vld [vmem:[%s19325_s25 + $0x458] ss:$12 sps:$4 sm:$0xff]   ;;  %v18402_v62 = vld [vmem:[%s19325_s25 + $0x5a8] ss:$12 sps:$4 sm:$0xff]  }
 0xccb   : > { %17412 = vmatpush3.bf16.msra.mxu1 %v18360_v28  ;;  %v14905_v41 = vpop.f32.mrf.mxu0  ;;  %17391 = vmatprep.subr.bf16.mxu0 %v18361_v54  ;;  %v18394_v28 = vld [vmem:[%s19325_s25 + $0x5d8] ss:$12 sps:$4 sm:$0xff]  }
 0xccc   : > { %v14946_v33 = vpop.f32.mrf.mxu1  ;;  %17413 = vmatprep.subr.bf16.mxu1 %v18362_v19  ;;  %v21423_v5 = vadd.f32 %v14944_v10, %v14904_v1  ;;  %v14906_v47 = vadd.f32 %v14905_v41, %v12697_v22  ;;  %15229 = vmatprep.mubr.bf16.mxu0 %v21102_v20  ;;  %v18370_v20 = vld [vmem:[%s19325_s25 + $0x2a8] ss:$12 sps:$4 sm:$0xff]   ;;  %v18395_v53 = vld [vmem:[%s19325_s25 + $0x398] ss:$12 sps:$4 sm:$0xff]   ;;  %v18397_v19 = vld [vmem:[%s19325_s25 + $0x440] ss:$12 sps:$4 sm:$0xff]  }
 0xccd   : > { %15269 = vmatprep.mubr.bf16.mxu1 %v21109_v40  ;;  %v14907_v27 = vpop.f32.mrf.mxu0  ;;  %v18371_v40 = vld [vmem:[%s19325_s25 + $0x68] ss:$12 sps:$4 sm:$0xff]   ;;  %v18396_v54 = vld [vmem:[%s19325_s25 + $0x518] ss:$12 sps:$4 sm:$0xff]   ;;  %v18398_v22 = vld [vmem:[%s19325_s25 + $0x5c0] ss:$12 sps:$4 sm:$0xff]  }
 0xcce   : > { %v14948_v57 = vpop.f32.mrf.mxu1  ;;  %v21429_v31 = vadd.f32 %v14946_v33, %v14906_v47  ;;  %17392 = vmatpush3.bf16.msra.mxu0 %v18363_v44  ;;  %v18399_v44 = vld [vmem:[%s19325_s25 + $0x380] ss:$12 sps:$4 sm:$0xff]   ;;  %v18403_v10 = vld [vmem:[%s19325_s25 + $0x368] ss:$12 sps:$4 sm:$0xff]   ;;  %v18407_v1 = vld [vmem:[%s19325_s25 + $0x350] ss:$12 sps:$4 sm:$0xff]  }
 0xccf   : > { %17414 = vmatpush3.bf16.msra.mxu1 %v18364_v0  ;;  %v14908_v60 = vpop.f32.mrf.mxu0  ;;  %17393 = vmatprep.subr.bf16.mxu0 %v18365_v21  ;;  %v18404_v0 = vld [vmem:[%s19325_s25 + $0x4e8] ss:$12 sps:$4 sm:$0xff]   ;;  %v18408_v21 = vld [vmem:[%s19325_s25 + $0x4d0] ss:$12 sps:$4 sm:$0xff]   ;;  %v18409_v41 = vld [vmem:[%s19325_s25 + $0x3f8] ss:$12 sps:$4 sm:$0xff]  }
 0xcd0   : > { %v14949_v30 = vpop.f32.mrf.mxu1  ;;  %17415 = vmatprep.subr.bf16.mxu1 %v18366_v3  ;;  %v18410_v33 = vld [vmem:[%s19325_s25 + $0x578] ss:$12 sps:$4 sm:$0xff]   ;;  %v18414_v27 = vld [vmem:[%s19325_s25 + $0x560] ss:$12 sps:$4 sm:$0xff]   ;;  %v18418_v60 = vld [vmem:[%s19325_s25 + $0x548] ss:$12 sps:$4 sm:$0xff]  }
 0xcd1   : > { %v18411_v3 = vld [vmem:[%s19325_s25 + $0x338] ss:$12 sps:$4 sm:$0xff]   ;;  %v18415_v57 = vld [vmem:[%s19325_s25 + $0x320] ss:$12 sps:$4 sm:$0xff]   ;;  %v18419_v30 = vld [vmem:[%s19325_s25 + $0x308] ss:$12 sps:$4 sm:$0xff]  }
 0xcd2   : > { %17394 = vmatpush3.bf16.msra.mxu0 %v18367_v42  ;;  %v18412_v47 = vld [vmem:[%s19325_s25 + $0x4b8] ss:$12 sps:$4 sm:$0xff]   ;;  %v18413_v42 = vld [vmem:[%s19325_s25 + $0x3e0] ss:$12 sps:$4 sm:$0xff]  }
 0xcd3   : > { %17416 = vmatpush3.bf16.msra.mxu1 %v18368_v39  ;;  %17395 = vmatprep.subr.bf16.mxu0 %v18369_v13  ;;  %v18416_v39 = vld [vmem:[%s19325_s25 + $0x4a0] ss:$12 sps:$4 sm:$0xff]   ;;  %v18417_v13 = vld [vmem:[%s19325_s25 + $0x3c8] ss:$12 sps:$4 sm:$0xff]  }
 0xcd4   : > { %17417 = vmatprep.subr.bf16.mxu1 %v18370_v20  ;;  %v18420_v20 = vld [vmem:[%s19325_s25 + $0x488] ss:$12 sps:$4 sm:$0xff]  }
 0xcd6   : > { %17396 = vmatpush3.bf16.msra.mxu0 %v18371_v40  ;;  %v18421_v40 = vld [vmem:[%s19325_s25 + $0x770] ss:$12 sps:$4 sm:$0xff]  }
 0xcd7   : > { %17418 = vmatpush3.bf16.msra.mxu1 %v18372_v43  ;;  %17397 = vmatprep.subr.bf16.mxu0 %v18373_v50  ;;  %v18422_v43 = vld [vmem:[%s19325_s25 + $0x8f0] ss:$12 sps:$4 sm:$0xff]  }
 0xcd8   : > { %17419 = vmatprep.subr.bf16.mxu1 %v18374_v12  ;;  %v18423_v50 = vld [vmem:[%s19325_s25 + $0x6b0] ss:$12 sps:$4 sm:$0xff]  }
 0xcd9   : > { %v18424_v12 = vld [vmem:[%s19325_s25 + $0x830] ss:$12 sps:$4 sm:$0xff]  }
 0xcda   : > { %17398 = vmatpush3.bf16.msra.mxu0 %v18375_v32  ;;  %v18425_v32 = vld [vmem:[%s19325_s25 + $0x758] ss:$12 sps:$4 sm:$0xff]  }
 0xcdb   : > { %17420 = vmatpush3.bf16.msra.mxu1 %v18376_v55  ;;  %17399 = vmatprep.subr.bf16.mxu0 %v18377_v17  ;;  %v18426_v55 = vld [vmem:[%s19325_s25 + $0x8d8] ss:$12 sps:$4 sm:$0xff]  }
 0xcdc   : > { %17421 = vmatprep.subr.bf16.mxu1 %v18378_v23 }
 0xcde   : > { %17400 = vmatpush3.bf16.msra.mxu0 %v18379_v49 }
 0xcdf   : > { %17422 = vmatpush3.bf16.msra.mxu1 %v18380_v26  ;;  %17401 = vmatprep.subr.bf16.mxu0 %v18381_v61  ;;  %v18427_v26 = vld [vmem:[%s19325_s25 + $0x698] ss:$12 sps:$4 sm:$0xff]  }
 0xce0   : > { %17423 = vmatprep.subr.bf16.mxu1 %v18382_v59  ;;  %v18428_v61 = vld [vmem:[%s19325_s25 + $0x818] ss:$12 sps:$4 sm:$0xff]  }
 0xce2   : > { %17402 = vmatpush3.bf16.msra.mxu0 %v18383_v45 }
 0xce3   : > { %17424 = vmatpush3.bf16.msra.mxu1 %v18384_v15  ;;  %17403 = vmatprep.subr.bf16.mxu0 %v18385_v11  ;;  %v18429_v15 = vld [vmem:[%s19325_s25 + $0x740] ss:$12 sps:$4 sm:$0xff]  }
 0xce4   : > { %17425 = vmatprep.subr.bf16.mxu1 %v18386_v24  ;;  %v18430_v11 = vld [vmem:[%s19325_s25 + $0x8c0] ss:$12 sps:$4 sm:$0xff]  }
 0xce6   : > { %17404 = vmatpush3.bf16.msra.mxu0 %v18387_v52 }
 0xce7   : > { %17426 = vmatpush3.bf16.msra.mxu1 %v18388_v9  ;;  %17433 = vmatprep.subr.bf16.mxu0 %v18389_v6  ;;  %v18431_v9 = vld [vmem:[%s19325_s25 + $0x680] ss:$12 sps:$4 sm:$0xff]  }
 0xce8   : > { %17455 = vmatprep.subr.bf16.mxu1 %v18390_v38  ;;  %v18432_v6 = vld [vmem:[%s19325_s25 + $0x800] ss:$12 sps:$4 sm:$0xff]  }
 0xce9   : > { %15230 = vmatmul.mubr.bf16.vlgmr.msra.gmra.mxu0 %v21128_v58  ;;  %v18400_v58 = vld [vmem:[%s19325_s25 + $0x500] ss:$12 sps:$4 sm:$0xff]  }
 0xcea   : > { %15270 = vmatmul.mubr.bf16.vlgmr.msra.gmra.mxu1 %v21138_v18  ;;  %17434 = vmatpush3.bf16.msra.mxu0 %v18391_v56  ;;  %v18401_v18 = vld [vmem:[%s19325_s25 + $0x428] ss:$12 sps:$4 sm:$0xff]  }
 0xceb   : > { %17456 = vmatpush3.bf16.msra.mxu1 %v18392_v36  ;;  %17435 = vmatprep.subr.bf16.mxu0 %v18393_v29  ;;  %v18436_v36 = vld [vmem:[%s19325_s25 + $0x7e8] ss:$12 sps:$4 sm:$0xff]   ;;  %v18437_v29 = vld [vmem:[%s19325_s25 + $0x710] ss:$12 sps:$4 sm:$0xff]  }
 0xcec   : > { %17457 = vmatprep.subr.bf16.mxu1 %v18394_v28  ;;  %15309 = vmatprep.mubr.bf16.mxu0 %v21134_v63  ;;  %v18405_v63 = vld [vmem:[%s19325_s25 + $0x410] ss:$12 sps:$4 sm:$0xff]  }
 0xced   : > { %15349 = vmatprep.mubr.bf16.mxu1 %v21146_v2  ;;  %v18406_v2 = vld [vmem:[%s19325_s25 + $0x590] ss:$12 sps:$4 sm:$0xff]  }
 0xcee   : > { %17436 = vmatpush3.bf16.msra.mxu0 %v18395_v53  ;;  %v18438_v28 = vld [vmem:[%s19325_s25 + $0x890] ss:$12 sps:$4 sm:$0xff]  }
 0xcef   : > { %17458 = vmatpush3.bf16.msra.mxu1 %v18396_v54  ;;  %17437 = vmatprep.subr.bf16.mxu0 %v18397_v19  ;;  %v18439_v53 = vld [vmem:[%s19325_s25 + $0x650] ss:$12 sps:$4 sm:$0xff]   ;;  %v18441_v19 = vld [vmem:[%s19325_s25 + $0x6f8] ss:$12 sps:$4 sm:$0xff]  }
 0xcf0   : > { %17459 = vmatprep.subr.bf16.mxu1 %v18398_v22  ;;  %v18440_v54 = vld [vmem:[%s19325_s25 + $0x7d0] ss:$12 sps:$4 sm:$0xff]   ;;  %v18442_v22 = vld [vmem:[%s19325_s25 + $0x878] ss:$12 sps:$4 sm:$0xff]  }
 0xcf2   : > { %17438 = vmatpush3.bf16.msra.mxu0 %v18399_v44  ;;  %v18443_v44 = vld [vmem:[%s19325_s25 + $0x638] ss:$12 sps:$4 sm:$0xff]  }
 0xcf3   : > { %17460 = vmatpush3.bf16.msra.mxu1 %v18400_v58  ;;  %17439 = vmatprep.subr.bf16.mxu0 %v18401_v18  ;;  %v18444_v58 = vld [vmem:[%s19325_s25 + $0x7b8] ss:$12 sps:$4 sm:$0xff]   ;;  %v18445_v18 = vld [vmem:[%s19325_s25 + $0x6e0] ss:$12 sps:$4 sm:$0xff]  }
 0xcf4   : > { %17461 = vmatprep.subr.bf16.mxu1 %v18402_v62  ;;  %v18446_v62 = vld [vmem:[%s19325_s25 + $0x860] ss:$12 sps:$4 sm:$0xff]  }
 0xcf6   : > { %17440 = vmatpush3.bf16.msra.mxu0 %v18403_v10  ;;  %v18447_v10 = vld [vmem:[%s19325_s25 + $0x620] ss:$12 sps:$4 sm:$0xff]  }
 0xcf7   : > { %17462 = vmatpush3.bf16.msra.mxu1 %v18404_v0  ;;  %17441 = vmatprep.subr.bf16.mxu0 %v18405_v63  ;;  %v18448_v0 = vld [vmem:[%s19325_s25 + $0x7a0] ss:$12 sps:$4 sm:$0xff]   ;;  %v18449_v63 = vld [vmem:[%s19325_s25 + $0x6c8] ss:$12 sps:$4 sm:$0xff]  }
 0xcf8   : > { %17463 = vmatprep.subr.bf16.mxu1 %v18406_v2  ;;  %v18450_v2 = vld [vmem:[%s19325_s25 + $0x848] ss:$12 sps:$4 sm:$0xff]  }
 0xcfa   : > { %17442 = vmatpush3.bf16.msra.mxu0 %v18407_v1  ;;  %v18451_v1 = vld [vmem:[%s19325_s25 + $0x608] ss:$12 sps:$4 sm:$0xff]  }
 0xcfb   : > { %17464 = vmatpush3.bf16.msra.mxu1 %v18408_v21  ;;  %17443 = vmatprep.subr.bf16.mxu0 %v18409_v41  ;;  %v18452_v21 = vld [vmem:[%s19325_s25 + $0x788] ss:$12 sps:$4 sm:$0xff]   ;;  %v18453_v41 = vld [vmem:[%s19325_s25 + $0xa70] ss:$12 sps:$4 sm:$0xff]  }
 0xcfc   : > { %17465 = vmatprep.subr.bf16.mxu1 %v18410_v33  ;;  %v18454_v33 = vld [vmem:[%s19325_s25 + $0xbf0] ss:$12 sps:$4 sm:$0xff]  }
 0xcfe   : > { %17444 = vmatpush3.bf16.msra.mxu0 %v18411_v3  ;;  %v18455_v3 = vld [vmem:[%s19325_s25 + $0x9b0] ss:$12 sps:$4 sm:$0xff]  }
 0xcff   : > { %17466 = vmatpush3.bf16.msra.mxu1 %v18412_v47  ;;  %17445 = vmatprep.subr.bf16.mxu0 %v18413_v42  ;;  %v18456_v47 = vld [vmem:[%s19325_s25 + $0xb30] ss:$12 sps:$4 sm:$0xff]   ;;  %v18457_v42 = vld [vmem:[%s19325_s25 + $0xa58] ss:$12 sps:$4 sm:$0xff]  }
 0xd00   : > { %17467 = vmatprep.subr.bf16.mxu1 %v18414_v27  ;;  %v18458_v27 = vld [vmem:[%s19325_s25 + $0xbd8] ss:$12 sps:$4 sm:$0xff]  }
 0xd02   : > { %17446 = vmatpush3.bf16.msra.mxu0 %v18415_v57  ;;  %v18459_v57 = vld [vmem:[%s19325_s25 + $0x998] ss:$12 sps:$4 sm:$0xff]  }
 0xd03   : > { %17468 = vmatpush3.bf16.msra.mxu1 %v18416_v39  ;;  %17447 = vmatprep.subr.bf16.mxu0 %v18417_v13  ;;  %v18460_v39 = vld [vmem:[%s19325_s25 + $0xb18] ss:$12 sps:$4 sm:$0xff]   ;;  %v18461_v13 = vld [vmem:[%s19325_s25 + $0xa40] ss:$12 sps:$4 sm:$0xff]  }
 0xd04   : > { %17469 = vmatprep.subr.bf16.mxu1 %v18418_v60  ;;  %v18462_v60 = vld [vmem:[%s19325_s25 + $0xbc0] ss:$12 sps:$4 sm:$0xff]  }
 0xd06   : > { %17448 = vmatpush3.bf16.msra.mxu0 %v18419_v30  ;;  %v18465_v30 = vld [vmem:[%s19325_s25 + $0xa28] ss:$12 sps:$4 sm:$0xff]  }
 0xd07   : > { %17470 = vmatpush3.bf16.msra.mxu1 %v18420_v20  ;;  %17477 = vmatprep.subr.bf16.mxu0 %v18421_v40  ;;  %v18466_v20 = vld [vmem:[%s19325_s25 + $0xba8] ss:$12 sps:$4 sm:$0xff]  }
 0xd08   : > { %17499 = vmatprep.subr.bf16.mxu1 %v18422_v43  ;;  %v18467_v40 = vld [vmem:[%s19325_s25 + $0x968] ss:$12 sps:$4 sm:$0xff]   ;;  %v18470_v43 = vld [vmem:[%s19325_s25 + $0xb90] ss:$12 sps:$4 sm:$0xff]  }
 0xd09   : > { %v14985_v17 = vpop.f32.mrf.mxu0  ;;  %15310 = vmatmul.mubr.bf16.vlgmr.msra.gmra.mxu0 %v21211_v4 }
 0xd0a   : > { %v15026_v23 = vpop.f32.mrf.mxu1  ;;  %15350 = vmatmul.mubr.bf16.vlgmr.msra.gmra.mxu1 %v21218_v51  ;;  %v14986_v49 = vadd.f32 %v14985_v17, %v21423_v5  ;;  %17478 = vmatpush3.bf16.msra.mxu0 %v18423_v50  ;;  %v18471_v50 = vld [vmem:[%s19325_s25 + $0x950] ss:$12 sps:$4 sm:$0xff]   ;;  %v18475_v17 = vld [vmem:[%s19325_s25 + $0x938] ss:$12 sps:$4 sm:$0xff]  }
 0xd0b   : > { %17500 = vmatpush3.bf16.msra.mxu1 %v18424_v12  ;;  %v14987_v59 = vpop.f32.mrf.mxu0  ;;  %17479 = vmatprep.subr.bf16.mxu0 %v18425_v32  ;;  %v18472_v12 = vld [vmem:[%s19325_s25 + $0xad0] ss:$12 sps:$4 sm:$0xff]   ;;  %v18473_v32 = vld [vmem:[%s19325_s25 + $0x9f8] ss:$12 sps:$4 sm:$0xff]  }
 0xd0c   : > { %v15028_v45 = vpop.f32.mrf.mxu1  ;;  %17501 = vmatprep.subr.bf16.mxu1 %v18426_v55  ;;  %v21500_v24 = vadd.f32 %v15026_v23, %v14986_v49  ;;  %v14988_v4 = vadd.f32 %v14987_v59, %v21429_v31  ;;  %15389 = vmatprep.mubr.bf16.mxu0 %v21239_v46  ;;  %v18433_v46 = vld [vmem:[%s19325_s25 + $0x728] ss:$12 sps:$4 sm:$0xff]   ;;  %v18474_v55 = vld [vmem:[%s19325_s25 + $0xb78] ss:$12 sps:$4 sm:$0xff]   ;;  %v18477_v49 = vld [vmem:[%s19325_s25 + $0x9e0] ss:$12 sps:$4 sm:$0xff]  }
 0xd0d   : > { %15429 = vmatprep.mubr.bf16.mxu1 %v21244_v35  ;;  %v14989_v51 = vpop.f32.mrf.mxu0  ;;  %v18434_v35 = vld [vmem:[%s19325_s25 + $0x8a8] ss:$12 sps:$4 sm:$0xff]   ;;  %v18476_v23 = vld [vmem:[%s19325_s25 + $0xab8] ss:$12 sps:$4 sm:$0xff]   ;;  %v18480_v59 = vld [vmem:[%s19325_s25 + $0xaa0] ss:$12 sps:$4 sm:$0xff]  }
 0xd0e   : > { %v15030_v5 = vpop.f32.mrf.mxu1  ;;  %v21505_v52 = vadd.f32 %v15028_v45, %v14988_v4  ;;  %17480 = vmatpush3.bf16.msra.mxu0 %v18427_v26  ;;  %v18435_v31 = vld [vmem:[%s19325_s25 + $0x668] ss:$12 sps:$4 sm:$0xff]   ;;  %v18478_v26 = vld [vmem:[%s19325_s25 + $0xb60] ss:$12 sps:$4 sm:$0xff]  }
 0xd0f   : > { %17502 = vmatpush3.bf16.msra.mxu1 %v18428_v61  ;;  %v14990_v38 = vpop.f32.mrf.mxu0  ;;  %17481 = vmatprep.subr.bf16.mxu0 %v18429_v15  ;;  %v18479_v61 = vld [vmem:[%s19325_s25 + $0x920] ss:$12 sps:$4 sm:$0xff]   ;;  %v18481_v45 = vld [vmem:[%s19325_s25 + $0x9c8] ss:$12 sps:$4 sm:$0xff]  }
 0xd10   : > { %v15031_v56 = vpop.f32.mrf.mxu1  ;;  %17503 = vmatprep.subr.bf16.mxu1 %v18430_v11  ;;  %v18482_v15 = vld [vmem:[%s19325_s25 + $0xb48] ss:$12 sps:$4 sm:$0xff]  }
 0xd11   : > { %v18483_v11 = vld [vmem:[%s19325_s25 + $0x908] ss:$12 sps:$4 sm:$0xff]  }
 0xd12   : > { %17482 = vmatpush3.bf16.msra.mxu0 %v18431_v9  ;;  %v18484_v4 = vld [vmem:[%s19325_s25 + $0xa88] ss:$12 sps:$4 sm:$0xff]  }
 0xd13   : > { %17504 = vmatpush3.bf16.msra.mxu1 %v18432_v6  ;;  %17483 = vmatprep.subr.bf16.mxu0 %v18433_v46 }
 0xd14   : > { %17505 = vmatprep.subr.bf16.mxu1 %v18434_v35 }
 0xd16   : > { %17484 = vmatpush3.bf16.msra.mxu0 %v18435_v31 }
 0xd17   : > { %17506 = vmatpush3.bf16.msra.mxu1 %v18436_v36  ;;  %17485 = vmatprep.subr.bf16.mxu0 %v18437_v29 }
 0xd18   : > { %17507 = vmatprep.subr.bf16.mxu1 %v18438_v28 }
 0xd1a   : > { %17486 = vmatpush3.bf16.msra.mxu0 %v18439_v53 }
 0xd1b   : > { %17508 = vmatpush3.bf16.msra.mxu1 %v18440_v54  ;;  %17487 = vmatprep.subr.bf16.mxu0 %v18441_v19 }
 0xd1c   : > { %17509 = vmatprep.subr.bf16.mxu1 %v18442_v22 }
 0xd1e   : > { %17488 = vmatpush3.bf16.msra.mxu0 %v18443_v44 }
 0xd1f   : > { %17510 = vmatpush3.bf16.msra.mxu1 %v18444_v58  ;;  %17489 = vmatprep.subr.bf16.mxu0 %v18445_v18 }
 0xd20   : > { %17511 = vmatprep.subr.bf16.mxu1 %v18446_v62 }
 0xd22   : > { %17490 = vmatpush3.bf16.msra.mxu0 %v18447_v10 }
 0xd23   : > { %17512 = vmatpush3.bf16.msra.mxu1 %v18448_v0  ;;  %17491 = vmatprep.subr.bf16.mxu0 %v18449_v63 }
 0xd24   : > { %17513 = vmatprep.subr.bf16.mxu1 %v18450_v2 }
 0xd26   : > { %17492 = vmatpush3.bf16.msra.mxu0 %v18451_v1 }
 0xd27   : > { %17514 = vmatpush3.bf16.msra.mxu1 %v18452_v21  ;;  %17521 = vmatprep.subr.bf16.mxu0 %v18453_v41 }
 0xd28   : > { %17543 = vmatprep.subr.bf16.mxu1 %v18454_v33 }
 0xd29   : > { %15390 = vmatmul.mubr.bf16.vlgmr.msra.gmra.mxu0 %v21310_v7  ;;  %v18463_v7 = vld [vmem:[%s19325_s25 + $0x980] ss:$12 sps:$4 sm:$0xff]  }
 0xd2a   : > { %15430 = vmatmul.mubr.bf16.vlgmr.msra.gmra.mxu1 %v21321_v25  ;;  %17522 = vmatpush3.bf16.msra.mxu0 %v18455_v3  ;;  %v18464_v25 = vld [vmem:[%s19325_s25 + $0xb00] ss:$12 sps:$4 sm:$0xff]  }
 0xd2b   : > { %17544 = vmatpush3.bf16.msra.mxu1 %v18456_v47  ;;  %17523 = vmatprep.subr.bf16.mxu0 %v18457_v42 }
 0xd2c   : > { %17545 = vmatprep.subr.bf16.mxu1 %v18458_v27  ;;  %15469 = vmatprep.mubr.bf16.mxu0 %v21317_v16  ;;  %v18468_v16 = vld [vmem:[%s19325_s25 + $0xae8] ss:$12 sps:$4 sm:$0xff]  }
 0xd2d   : > { %15509 = vmatprep.mubr.bf16.mxu1 %v21330_v34  ;;  %v18469_v34 = vld [vmem:[%s19325_s25 + $0xa10] ss:$12 sps:$4 sm:$0xff]   ;;  %s18974_s25 = smov [#allocation25]  }
 0xd2e   : > { %17524 = vmatpush3.bf16.msra.mxu0 %v18459_v57  ;;  %s15550_s1 = sshll.u32 %s18974_s25, 4  ;;  %s15551_s1 = int_to_ptr.vmem [resolvable:$true] %s15550_s1 }
 0xd2f   : > { %17546 = vmatpush3.bf16.msra.mxu1 %v18460_v39  ;;  %17525 = vmatprep.subr.bf16.mxu0 %v18461_v13  ;;  %s18853_s24 = scalar_lea.vmem %s15551_s1, 32  ;;  %p18860_p1 = scmp.lt.s32.totalorder %s15551_s1, %s15551_s1 }
 0xd30   : > { %17547 = vmatprep.subr.bf16.mxu1 %v18462_v60  ;;  %p18854_p11 = scmp.ne.s32.totalorder %s15551_s1, %s18853_s24  ;;  %p18861_p4 = scmp.lt.s32.totalorder %s18853_s24, %s18853_s24 }
 0xd32   : > { %17526 = vmatpush3.bf16.msra.mxu0 %v18463_v7  ;;  %p18855_p10 = pnand %p18854_p11, %p17766_p2  ;;  %p18862_p3 = por %p18861_p4, %p18860_p1 }
 0xd33   : > { %17548 = vmatpush3.bf16.msra.mxu1 %v18464_v25  ;;  %17527 = vmatprep.subr.bf16.mxu0 %v18465_v30 }
 0xd34   : > { %17549 = vmatprep.subr.bf16.mxu1 %v18466_v20  ;;  %p18856_p5 = pneg %p18855_p10 }
 0xd36   : > { %17528 = vmatpush3.bf16.msra.mxu0 %v18467_v40  ;;  %p18863_p13 = pnand %p18862_p3, %p18856_p5 }
 0xd37   : > { %17550 = vmatpush3.bf16.msra.mxu1 %v18468_v16  ;;  %17529 = vmatprep.subr.bf16.mxu0 %v18469_v34 }
 0xd38   : > { %17551 = vmatprep.subr.bf16.mxu1 %v18470_v43 }
 0xd3a   : > { %17530 = vmatpush3.bf16.msra.mxu0 %v18471_v50 }
 0xd3b   : > { %17552 = vmatpush3.bf16.msra.mxu1 %v18472_v12  ;;  %17531 = vmatprep.subr.bf16.mxu0 %v18473_v32 }
 0xd3c   : > { %17553 = vmatprep.subr.bf16.mxu1 %v18474_v55 }
 0xd3e   : > { %17532 = vmatpush3.bf16.msra.mxu0 %v18475_v17 }
 0xd3f   : > { %17554 = vmatpush3.bf16.msra.mxu1 %v18476_v23  ;;  %17533 = vmatprep.subr.bf16.mxu0 %v18477_v49 }
 0xd40   : > { %17555 = vmatprep.subr.bf16.mxu1 %v18478_v26 }
 0xd42   : > { %17534 = vmatpush3.bf16.msra.mxu0 %v18479_v61 }
 0xd43   : > { %17556 = vmatpush3.bf16.msra.mxu1 %v18480_v59  ;;  %17535 = vmatprep.subr.bf16.mxu0 %v18481_v45 }
 0xd44   : > { %17557 = vmatprep.subr.bf16.mxu1 %v18482_v15 }
 0xd46   : > { %17536 = vmatpush3.bf16.msra.mxu0 %v18483_v11 }
 0xd47   : > { %17558 = vmatpush3.bf16.msra.mxu1 %v18484_v4 }
 0xd49   : > { %v15067_v51 = vpop.f32.mrf.mxu0  ;;  %15470 = vmatmul.mubr.bf16.vlgmr.msra.gmra.mxu0 %v21399_v48 }
 0xd4a   : > { %v15108_v5 = vpop.f32.mrf.mxu1  ;;  %15510 = vmatmul.mubr.bf16.vlgmr.msra.gmra.mxu1 %v21406_v37  ;;  %v15068_v9 = vadd.f32 %v15067_v51, %v21500_v24 }
 0xd4b   : > { %v15069_v6 = vpop.f32.mrf.mxu0 }
 0xd4c   : > { %v15110_v38 = vpop.f32.mrf.mxu1  ;;  %v15109_v56 = vadd.f32 %v15108_v5, %v15068_v9  ;;  %v15070_v46 = vadd.f32 %v15069_v6, %v21505_v52 }
 0xd4d   : > { %v15071_v35 = vpop.f32.mrf.mxu0 }
 0xd4e   : > { %v15112_v31 = vpop.f32.mrf.mxu1  ;;  %v15111_v36 = vadd.f32 %v15110_v38, %v15070_v46 }
 0xd4f   : > { %v15072_v29 = vpop.f32.mrf.mxu0 }
 0xd50   : > { %v15113_v28 = vpop.f32.mrf.mxu1 }
 0xd89   : > { %v15149_v53 = vpop.f32.mrf.mxu0 }
 0xd8a   : > { %v15190_v54 = vpop.f32.mrf.mxu1  ;;  %v15150_v19 = vadd.f32 %v15149_v53, %v15109_v56 }
 0xd8b   : > { %v15151_v22 = vpop.f32.mrf.mxu0 }
 0xd8c   : > { %v15192_v48 = vpop.f32.mrf.mxu1  ;;  %v21569_v37 = vadd.f32 %v15190_v54, %v15150_v19  ;;  %v15152_v24 = vadd.f32 %v15151_v22, %v15111_v36 }
 0xd8d   : > { %v15153_v44 = vpop.f32.mrf.mxu0 }
 0xd8e   : > { %v15194_v58 = vpop.f32.mrf.mxu1  ;;  %v21571_v18 = vadd.f32 %v15192_v48, %v15152_v24 }
 0xd8f   : > { %v15154_v52 = vpop.f32.mrf.mxu0 }
 0xd90   : > { %v15195_v62 = vpop.f32.mrf.mxu1  ;;  %v15520_v10 = vcombine.low %v21569_v37, %v21571_v18 }
 0xd91   : > { %18866 = shalt.err (!%p18863_p13)
}
 0xd92   : > { %s21681_s4 = sld [smem:[#allocation43_spill]]  ;;  %v12700_v0 = vsub.s32 2, %v21083_v14  ;;  %v18975_v45 = vmov 1983009808  }
 0xd93   : > { %v15522_v15 = vunpack.c.l.s4 %v18975_v45 }
 0xd94   : > { %v12701_v1 = vrot.slane %v21395_v8, %v12700_v0 }
 0xd95   : > { %v15523_v6 = vunpack.c.0.s8 %v15522_v15 }
 0xd97   : > { %v15526_v29 = vsub.s32 %v15523_v6, %v21083_v14 }
 0xd98   : > { %17694 = dma.vmem_to_hbm [thread:$0]  (%p17766_p2), %s15551_s1, 32, %s21681_s4, [#allocation5]  }
 0xd99   : > { %v15527_v48 = vrot.slane %v15520_v10, %v15526_v29 }
 0xda9   : > { %v17405_v63 = vpop.f32.mrf.mxu0 }
 0xdaa   : > { %v17427_v2 = vpop.f32.mrf.mxu1 }
 0xdab   : > { %v17406_v21 = vpop.f32.mrf.mxu0 }
 0xdac   : > { %v17428_v41 = vpop.f32.mrf.mxu1  ;;  %v17407_v33 = vadd.f32 %v17406_v21, %v17405_v63 }
 0xdad   : > { %v17429_v3 = vadd.f32 %v17428_v41, %v17427_v2  ;;  %v17408_v47 = vpop.f32.mrf.mxu0 }
 0xdae   : > { %v17430_v42 = vpop.f32.mrf.mxu1  ;;  %v15232_v27 = vadd.f32 %v17407_v33, %v12701_v1 }
 0xdaf   : > { %v17409_v57 = vpop.f32.mrf.mxu0 }
 0xdb0   : > { %v17431_v39 = vpop.f32.mrf.mxu1  ;;  %v15272_v13 = vadd.f32 %v17429_v3, %v15232_v27 }
 0xdc9   : > { %v17449_v60 = vpop.f32.mrf.mxu0 }
 0xdca   : > { %v17471_v7 = vpop.f32.mrf.mxu1 }
 0xdcb   : > { %v17450_v25 = vpop.f32.mrf.mxu0 }
 0xdcc   : > { %v17472_v30 = vpop.f32.mrf.mxu1  ;;  %v17451_v49 = vadd.f32 %v17450_v25, %v17449_v60 }
 0xdcd   : > { %v17452_v20 = vpop.f32.mrf.mxu0  ;;  %v17473_v61 = vadd.f32 %v17472_v30, %v17471_v7 }
 0xdce   : > { %v17474_v40 = vpop.f32.mrf.mxu1  ;;  %v15312_v26 = vadd.f32 %v17451_v49, %v15272_v13 }
 0xdcf   : > { %v17453_v16 = vpop.f32.mrf.mxu0 }
 0xdd0   : > { %v17475_v34 = vpop.f32.mrf.mxu1  ;;  %v15352_v11 = vadd.f32 %v17473_v61, %v15312_v26 }
 0xde9   : > { %v17493_v43 = vpop.f32.mrf.mxu0 }
 0xdea   : > { %v17515_v8 = vpop.f32.mrf.mxu1 }
 0xdeb   : > { %v17494_v50 = vpop.f32.mrf.mxu0 }
 0xdec   : > { %v17516_v12 = vpop.f32.mrf.mxu1  ;;  %v17495_v59 = vadd.f32 %v17494_v50, %v17493_v43 }
 0xded   : > { %v17496_v32 = vpop.f32.mrf.mxu0  ;;  %v17517_v51 = vadd.f32 %v17516_v12, %v17515_v8 }
 0xdee   : > { %v17518_v55 = vpop.f32.mrf.mxu1  ;;  %v15392_v4 = vadd.f32 %v17495_v59, %v15352_v11 }
 0xdef   : > { %v17497_v17 = vpop.f32.mrf.mxu0 }
 0xdf0   : > { %v17519_v23 = vpop.f32.mrf.mxu1  ;;  %v15432_v46 = vadd.f32 %v17517_v51, %v15392_v4 }
 0xe09   : > { %v17537_v5 = vpop.f32.mrf.mxu0 }
 0xe0a   : > { %v17559_v9 = vpop.f32.mrf.mxu1 }
 0xe0b   : > { %v17538_v38 = vpop.f32.mrf.mxu0 }
 0xe0c   : > { %v17560_v56 = vpop.f32.mrf.mxu1  ;;  %v17539_v35 = vadd.f32 %v17538_v38, %v17537_v5 }
 0xe0d   : > { %v17540_v31 = vpop.f32.mrf.mxu0  ;;  %v17561_v53 = vadd.f32 %v17560_v56, %v17559_v9 }
 0xe0e   : > { %v17562_v36 = vpop.f32.mrf.mxu1  ;;  %v15472_v28 = vadd.f32 %v17539_v35, %v15432_v46 }
 0xe0f   : > { %v17541_v54 = vpop.f32.mrf.mxu0 }
 0xe10   : > { %v17563_v19 = vpop.f32.mrf.mxu1  ;;  %v15512_v22 = vadd.f32 %v17561_v53, %v15472_v28 }
 0xe12   : > { %v15534_v24 = vrot.slane %v15512_v22, %v15526_v29 }
 0xe14   : > { %v15535_v44 = vcombine.low %v15527_v48, %v15534_v24 }
 0xe16   : > { %15537 = vst [vmem:[%s19337_s29] sm:$0x3f] %v15535_v44 }
 0xe17   : > { %18926 = dma.done.wait (%p17766_p2), [#allocation5], 32  }
 0xe18   : > { %18928 = vsyncadd (%p17766_p2), [#allocation5], 4294967264 }
 0xe19 PF: > { %p32_p7 = scmp.ge.s32.totalorder %s19160_s0, 4   ;;  %s21682_s21 = smov %s18935_s22 }
 0xe1a   : > { %s21683_s22 = smov %s18939_s23  ;;  %s21684_s23 = smov %s19172_s16 }
 0xe1b   : > { %s21685_s24 = smov %s19160_s0  ;;  %34 = sbr.rel (!%p32_p7) target bundleno = 19 (0x13), region = 191 }
 0xe20   :  { %15575 = vsyncpa [#allocation4], 1 }
 0xe21   :  { %15577 = vsyncpa [#allocation4 + $0x1], 1 }
 0xe22   :  { %15578 = vsyncpa [#allocation7], 1 }
 0xe23   :  { %15579 = vsyncpa [#allocation10], 1 }
 0xe24   :  { %15580 = vsyncpa [#allocation13], 1 }
 0xe25   :  { %15581 = vsyncpa [#allocation16], 1 }
 0xe26   :  { %15582 = vsyncpa [#allocation19], 1 }
 0xe27   :  { %15583 = vsyncpa [#allocation22], 1 }
 0xe28   :  { %15584 = vsyncpa [#allocation5], 1 }
 0xe29   :  { %15586 = vsyncpa [#allocation5 + $0x1], 1 }

</bundles_post_ra>
